<compile_context>
chip_gen: v7x
topology: tpu7x:2x2x1
jax: 0.10.0
libtpu: 0.0.40
codegen_flags: <defaults>
</compile_context>

<pallas_src>
import functools
import numpy as np
import jax
import jax.numpy as jnp
from jax import lax
from jax.experimental import pallas as pl
from jax.experimental.pallas import tpu as pltpu

C = 64  # decoder channel count (fixed by the module)


# ----------------------------------------------------------------------------
# Fused kernel: Linear -> ResBlock(64) -> ResBlock(64) -> Conv1x1 -> Tanh.
# One batch tile per grid step; feature maps live as [C, batch_tile*HW] in VMEM
# (channels on sublanes, batch*spatial flattened onto lanes).
# ----------------------------------------------------------------------------
def _recon_decoder_kernel(x_ref, w0_ref, b0_ref, mask_ref, wconv_ref,
                          bconv_ref, wp_ref, bp_ref, o_ref,
                          *, patch, batch_tile, dec_dim):
    hw = patch * patch
    m = batch_tile * hw

    # ---- Fused Linear (VPU): h_b[c, p] = sum_d x[b,d] * W0[d,c,p] + b0[c,p].
    # Loop interchanged (d outer, image inner): every w0[d] slice is loaded
    # once per step; per-image accumulators give batch_tile-way ILP.
    b0 = b0_ref[...]                                     # [C, HW]
    accs = [b0] * batch_tile
    for d in range(dec_dim):
        wd = w0_ref[d]                                   # [C, HW]
        for b in range(batch_tile):
            accs[b] = accs[b] + x_ref[b, d] * wd
    h = accs[0] if batch_tile == 1 else jnp.concatenate(accs, axis=1)  # [C, M]

    # ---- Per-tap validity masks (host-precomputed), loaded once per step.
    masks = [mask_ref[k] for k in range(9)]              # each [1, M]
    taps = [(dy, dx) for dy in (-1, 0, 1) for dx in (-1, 0, 1)]

    def conv3x3(z, w_mat, b_vec):
        # Channels-on-sublanes im2col: 9 rolled+masked taps stacked on the
        # SUBLANE axis (whole-tile copies) -> one K=576 MXU dot; M on lanes.
        cols = []
        for k, (dy, dx) in enumerate(taps):
            s = dy * patch + dx
            if s == 0:
                cols.append(z)                           # center tap: all-valid
            else:
                cols.append(pltpu.roll(z, (-s) % m, axis=1) * masks[k])
        cols = jnp.concatenate(cols, axis=0)             # [9*C, M]
        return jnp.dot(w_mat, cols,
                       preferred_element_type=jnp.float32) + b_vec

    # ResBlock 1 (BN folded into conv weight/bias, inference mode)
    r = jnp.maximum(conv3x3(h, wconv_ref[0], bconv_ref[0]), 0.0)
    h = h + conv3x3(r, wconv_ref[1], bconv_ref[1])
    # ResBlock 2
    r = jnp.maximum(conv3x3(h, wconv_ref[2], bconv_ref[2]), 0.0)
    h = h + conv3x3(r, wconv_ref[3], bconv_ref[3])

    # 1x1 conv (Cout padded to 8 sublanes) + Tanh; lane-dense store over M.
    out = jnp.dot(wp_ref[...], h, preferred_element_type=jnp.float32) + bp_ref[...]
    o_ref[...] = jnp.tanh(out)


def _pick_batch_tile(n, hw):
    """Pick batch_tile so M = batch_tile*HW is lane-dense (multiple of 128),
    fills the MXU (target 256-512 rows), stays <= 1024 rows (VMEM), and keeps
    >= 2 grid steps when possible so the parallel axis can use both v7x TCs."""
    lane, target_rows, max_rows = 128, 512, 1024
    cands = [bt for bt in range(1, n + 1)
             if n % bt == 0 and (bt * hw) % lane == 0 and bt * hw <= max_rows]
    if not cands:
        # TODO(synk): patch sizes with no lane-dense divisor fall back to one
        # full-array block (correct; VMEM-heavy only for very large N).
        return n
    multi = [bt for bt in cands if n // bt >= 2]
    pool = multi if multi else cands
    good = [bt for bt in pool if bt * hw <= target_rows]
    return max(good) if good else min(pool)


def recon_decoder_pallas(x, kp, patch, cout_pad, batch_tile):
    n, dec_dim = x.shape
    hw = patch * patch
    m = batch_tile * hw

    def full(shape):
        zeros = (0,) * len(shape)
        return pl.BlockSpec(shape, lambda i, z=zeros: z)

    kern = functools.partial(_recon_decoder_kernel, patch=patch,
                             batch_tile=batch_tile, dec_dim=dec_dim)
    return pl.pallas_call(
        kern,
        out_shape=jax.ShapeDtypeStruct((cout_pad, n * hw), jnp.float32),
        grid=(n // batch_tile,),
        in_specs=[
            pl.BlockSpec((batch_tile, dec_dim), lambda i: (i, 0),
                         memory_space=pltpu.MemorySpace.SMEM),  # x tile
            full((dec_dim, C, hw)),                             # w0 [D, C, HW]
            full((C, hw)),                                      # b0 [C, HW]
            full((9, 1, m)),                                    # tap masks
            full((4, C, 9 * C)),                                # conv weights
            full((4, C, 1)),                                    # conv biases
            full((cout_pad, C)),                                # 1x1 weight
            full((cout_pad, 1)),                                # 1x1 bias
        ],
        out_specs=pl.BlockSpec((cout_pad, m), lambda i: (0, i)),
        compiler_params=pltpu.CompilerParams(
            dimension_semantics=("parallel",),
            vmem_limit_bytes=48 * 1024 * 1024),
    )(x, kp["w0"], kp["b0"], kp["masks"], kp["wconv"], kp["bconv"],
      kp["wp"], kp["bp"])


# ----------------------------------------------------------------------------
# Glue: parameter preparation (BN folding, im2col / layout permutations)
# ----------------------------------------------------------------------------
def fold_bn_into_conv(W, b, gamma, beta, mean, var, eps=1e-5):
    s = gamma / jnp.sqrt(var + eps)
    return W * s[:, None, None, None], (b - mean) * s + beta


def conv3x3_weight_im2col(W):
    # PyTorch [Co, Ci, 3, 3] -> [Co, 9*Ci]; column index = (ky*3+kx)*Ci + ci,
    # matching the in-kernel sublane-stacked im2col order.
    co, ci = W.shape[0], W.shape[1]
    return jnp.transpose(W, (0, 2, 3, 1)).reshape(co, 9 * ci)


def _build_tap_masks(patch, batch_tile):
    # Validity of tap (dy,dx) per flattened output position m = b*HW + y*P + x.
    hw = patch * patch
    m = batch_tile * hw
    lidx = np.arange(m) % hw
    yy, xx = lidx // patch, lidx % patch
    masks = []
    for dy in (-1, 0, 1):
        for dx in (-1, 0, 1):
            ok = ((yy + dy >= 0) & (yy + dy < patch) &
                  (xx + dx >= 0) & (xx + dx < patch))
            masks.append(ok.astype(np.float32))
    return jnp.asarray(np.stack(masks)[:, None, :])      # [9, 1, M]


def prepare_kernel_params(params, patch, cout_pad, batch_tile):
    hw = patch * patch
    cout = params["W_out"].shape[0]
    # PyTorch Linear output index j = ch*HW + hw (Unflatten to (64, P, P)).
    # Store the weight as [D, C, HW]: channels on sublanes, spatial on lanes.
    d = params["W_lin"].shape[1]
    w0 = params["W_lin"].reshape(C, hw, d).transpose(2, 0, 1)    # [D, C, HW]
    b0 = params["b_lin"].reshape(C, hw)                          # [C, HW]

    ws, bs = [], []
    for rb in (params["rb1"], params["rb2"]):
        wa, ba = fold_bn_into_conv(rb["W1"], rb["b1"], rb["g1"], rb["be1"],
                                   rb["m1"], rb["v1"])
        wb, bb = fold_bn_into_conv(rb["W2"], rb["b2"], rb["g2"], rb["be2"],
                                   rb["m2"], rb["v2"])
        ws += [conv3x3_weight_im2col(wa), conv3x3_weight_im2col(wb)]
        bs += [ba.reshape(C, 1), bb.reshape(C, 1)]

    wp = params["W_out"][:, :, 0, 0]                             # [Cout, C]
    bp = params["b_out"].reshape(cout, 1)
    return {
        "w0": w0, "b0": b0,
        "masks": _build_tap_masks(patch, batch_tile),            # [9, 1, M]
        "wconv": jnp.stack(ws),                                  # [4, C, 9C]
        "bconv": jnp.stack(bs),                                  # [4, C, 1]
        "wp": jnp.pad(wp, ((0, cout_pad - cout), (0, 0))),       # [cout_pad, C]
        "bp": jnp.pad(bp, ((0, cout_pad - cout), (0, 0))),       # [cout_pad, 1]
    }


def reconstruction_method4_forward(x, params, patch, cout):
    n = x.shape[0]
    hw = patch * patch
    cout_pad = ((cout + 7) // 8) * 8                  # sublane-aligned output pad
    batch_tile = _pick_batch_tile(n, hw)
    kp = prepare_kernel_params(params, patch, cout_pad, batch_tile)
    out = recon_decoder_pallas(x, kp, patch, cout_pad, batch_tile)  # [Cp, N*HW]
    out = out[:cout].reshape(cout, n, patch, patch)
    return out.transpose(1, 0, 2, 3)                                # NCHW


# ----------------------------------------------------------------------------
# Pure-JAX reference with PyTorch semantics (NCHW, explicit eval-mode BN)
# ----------------------------------------------------------------------------
def reference_forward(x, params, patch, cout):
    n = x.shape[0]
    h = x @ params["W_lin"].T + params["b_lin"]
    h = h.reshape(n, C, patch, patch)                 # nn.Unflatten(1, (64,P,P))

    def conv(z, w, b):
        y = lax.conv_general_dilated(z, w, (1, 1), "SAME",
                                     dimension_numbers=("NCHW", "OIHW", "NCHW"))
        return y + b[None, :, None, None]

    def bn(z, g, be, m, v, eps=1e-5):
        s = (g / jnp.sqrt(v + eps))[None, :, None, None]
        return (z - m[None, :, None, None]) * s + be[None, :, None, None]

    def resblock(z, p):
        r = conv(z, p["W1"], p["b1"])
        r = bn(r, p["g1"], p["be1"], p["m1"], p["v1"])
        r = jnp.maximum(r, 0.0)
        r = conv(r, p["W2"], p["b2"])
        r = bn(r, p["g2"], p["be2"], p["m2"], p["v2"])
        return z + r

    h = resblock(h, params["rb1"])
    h = resblock(h, params["rb2"])
    y = conv(h, params["W_out"], params["b_out"])
    return jnp.tanh(y)


# ----------------------------------------------------------------------------
if __name__ == "__main__":
    N, DECODER_DIM, PATCH, COUT = 2, 32, 8, 3

    key = jax.random.PRNGKey(0)
    keys = iter(jax.random.split(key, 40))

    def nrm(shape, std):
        return std * jax.random.normal(next(keys), shape, jnp.float32)

    def make_resblock():
        p = {}
        for t in ("1", "2"):
            p["W" + t] = nrm((C, C, 3, 3), 0.06)
            p["b" + t] = nrm((C,), 0.05)
            p["g" + t] = 1.0 + nrm((C,), 0.1)          # BN gamma
            p["be" + t] = nrm((C,), 0.05)              # BN beta
            p["m" + t] = nrm((C,), 0.05)               # running mean
            p["v" + t] = jax.random.uniform(next(keys), (C,), jnp.float32,
                                            0.5, 1.5)  # running var
        return p

    params = {
        "W_lin": nrm((PATCH * PATCH * C, DECODER_DIM), 0.08),
        "b_lin": nrm((PATCH * PATCH * C,), 0.05),
        "rb1": make_resblock(),
        "rb2": make_resblock(),
        "W_out": nrm((COUT, C, 1, 1), 0.1),
        "b_out": nrm((COUT,), 0.05),
    }
    x = jax.random.normal(next(keys), (N, DECODER_DIM), jnp.float32)

    out = reconstruction_method4_forward(x, params, PATCH, COUT)
    out = jax.block_until_ready(out)
    assert out.shape == (N, COUT, PATCH, PATCH), out.shape

    ref = jax.block_until_ready(reference_forward(x, params, PATCH, COUT))
    np.testing.assert_allclose(np.asarray(out), np.asarray(ref),
                               atol=2e-4, rtol=2e-4)
    print("KERNEL_OK")
</pallas_src>

<mosaic_0001>
module attributes {stable_mosaic.version = 11 : i64} {
  func.func @_recon_decoder_kernel(%arg0: i32, %arg1: memref<2x32xf32, #tpu.memory_space<smem>>, %arg2: memref<32x64x64xf32, #tpu.memory_space<vmem>>, %arg3: memref<64x64xf32, #tpu.memory_space<vmem>>, %arg4: memref<9x1x128xf32, #tpu.memory_space<vmem>>, %arg5: memref<4x64x576xf32, #tpu.memory_space<vmem>>, %arg6: memref<4x64x1xf32, #tpu.memory_space<vmem>>, %arg7: memref<8x64xf32, #tpu.memory_space<vmem>>, %arg8: memref<8x1xf32, #tpu.memory_space<vmem>>, %arg9: memref<8x128xf32, #tpu.memory_space<vmem>>) attributes {dimension_semantics = [#tpu.dimension_semantics<parallel>], iteration_bounds = array<i64: 1>, scalar_prefetch = 0 : i64, scratch_operands = 0 : i64, tpu.core_type = #tpu.core_type<tc>, window_params = [{transform_indices = @transform_0, window_bounds = array<i64: 2, 32>}, {pipeline_mode = #tpu.pipeline_mode<synchronous>, transform_indices = @transform_1, window_bounds = array<i64: 32, 64, 64>}, {pipeline_mode = #tpu.pipeline_mode<synchronous>, transform_indices = @transform_2, window_bounds = array<i64: 64, 64>}, {pipeline_mode = #tpu.pipeline_mode<synchronous>, transform_indices = @transform_3, window_bounds = array<i64: 9, 1, 128>}, {pipeline_mode = #tpu.pipeline_mode<synchronous>, transform_indices = @transform_4, window_bounds = array<i64: 4, 64, 576>}, {pipeline_mode = #tpu.pipeline_mode<synchronous>, transform_indices = @transform_5, window_bounds = array<i64: 4, 64, 1>}, {pipeline_mode = #tpu.pipeline_mode<synchronous>, transform_indices = @transform_6, window_bounds = array<i64: 8, 64>}, {pipeline_mode = #tpu.pipeline_mode<synchronous>, transform_indices = @transform_7, window_bounds = array<i64: 8, 1>}, {transform_indices = @transform_8, window_bounds = array<i64: 8, 128>}]} {
    %c0 = arith.constant 0 : index
    %c0_0 = arith.constant 0 : index
    %0 = vector.load %arg3[%c0, %c0_0] : memref<64x64xf32, #tpu.memory_space<vmem>>, vector<64x64xf32>
    %c0_1 = arith.constant 0 : index
    %c0_2 = arith.constant 0 : index
    %c0_3 = arith.constant 0 : index
    %1 = vector.load %arg2[%c0_1, %c0_2, %c0_3] : memref<32x64x64xf32, #tpu.memory_space<vmem>>, vector<1x64x64xf32>
    %2 = vector.shape_cast %1 : vector<1x64x64xf32> to vector<64x64xf32>
    %c0_4 = arith.constant 0 : index
    %c0_5 = arith.constant 0 : index
    %3 = memref.load %arg1[%c0_4, %c0_5] : memref<2x32xf32, #tpu.memory_space<smem>>
    %4 = vector.broadcast %3 : f32 to vector<64x64xf32>
    %5 = arith.mulf %4, %2 : vector<64x64xf32>
    %6 = arith.addf %0, %5 : vector<64x64xf32>
    %c1 = arith.constant 1 : index
    %c0_6 = arith.constant 0 : index
    %7 = memref.load %arg1[%c1, %c0_6] : memref<2x32xf32, #tpu.memory_space<smem>>
    %8 = vector.broadcast %7 : f32 to vector<64x64xf32>
    %9 = arith.mulf %8, %2 : vector<64x64xf32>
    %10 = arith.addf %0, %9 : vector<64x64xf32>
    %c1_7 = arith.constant 1 : index
    %c0_8 = arith.constant 0 : index
    %c0_9 = arith.constant 0 : index
    %11 = vector.load %arg2[%c1_7, %c0_8, %c0_9] : memref<32x64x64xf32, #tpu.memory_space<vmem>>, vector<1x64x64xf32>
    %12 = vector.shape_cast %11 : vector<1x64x64xf32> to vector<64x64xf32>
    %c0_10 = arith.constant 0 : index
    %c1_11 = arith.constant 1 : index
    %13 = memref.load %arg1[%c0_10, %c1_11] : memref<2x32xf32, #tpu.memory_space<smem>>
    %14 = vector.broadcast %13 : f32 to vector<64x64xf32>
    %15 = arith.mulf %14, %12 : vector<64x64xf32>
    %16 = arith.addf %6, %15 : vector<64x64xf32>
    %c1_12 = arith.constant 1 : index
    %c1_13 = arith.constant 1 : index
    %17 = memref.load %arg1[%c1_12, %c1_13] : memref<2x32xf32, #tpu.memory_space<smem>>
    %18 = vector.broadcast %17 : f32 to vector<64x64xf32>
    %19 = arith.mulf %18, %12 : vector<64x64xf32>
    %20 = arith.addf %10, %19 : vector<64x64xf32>
    %c2 = arith.constant 2 : index
    %c0_14 = arith.constant 0 : index
    %c0_15 = arith.constant 0 : index
    %21 = vector.load %arg2[%c2, %c0_14, %c0_15] : memref<32x64x64xf32, #tpu.memory_space<vmem>>, vector<1x64x64xf32>
    %22 = vector.shape_cast %21 : vector<1x64x64xf32> to vector<64x64xf32>
    %c0_16 = arith.constant 0 : index
    %c2_17 = arith.constant 2 : index
    %23 = memref.load %arg1[%c0_16, %c2_17] : memref<2x32xf32, #tpu.memory_space<smem>>
    %24 = vector.broadcast %23 : f32 to vector<64x64xf32>
    %25 = arith.mulf %24, %22 : vector<64x64xf32>
    %26 = arith.addf %16, %25 : vector<64x64xf32>
    %c1_18 = arith.constant 1 : index
    %c2_19 = arith.constant 2 : index
    %27 = memref.load %arg1[%c1_18, %c2_19] : memref<2x32xf32, #tpu.memory_space<smem>>
    %28 = vector.broadcast %27 : f32 to vector<64x64xf32>
    %29 = arith.mulf %28, %22 : vector<64x64xf32>
    %30 = arith.addf %20, %29 : vector<64x64xf32>
    %c3 = arith.constant 3 : index
    %c0_20 = arith.constant 0 : index
    %c0_21 = arith.constant 0 : index
    %31 = vector.load %arg2[%c3, %c0_20, %c0_21] : memref<32x64x64xf32, #tpu.memory_space<vmem>>, vector<1x64x64xf32>
    %32 = vector.shape_cast %31 : vector<1x64x64xf32> to vector<64x64xf32>
    %c0_22 = arith.constant 0 : index
    %c3_23 = arith.constant 3 : index
    %33 = memref.load %arg1[%c0_22, %c3_23] : memref<2x32xf32, #tpu.memory_space<smem>>
    %34 = vector.broadcast %33 : f32 to vector<64x64xf32>
    %35 = arith.mulf %34, %32 : vector<64x64xf32>
    %36 = arith.addf %26, %35 : vector<64x64xf32>
    %c1_24 = arith.constant 1 : index
    %c3_25 = arith.constant 3 : index
    %37 = memref.load %arg1[%c1_24, %c3_25] : memref<2x32xf32, #tpu.memory_space<smem>>
    %38 = vector.broadcast %37 : f32 to vector<64x64xf32>
    %39 = arith.mulf %38, %32 : vector<64x64xf32>
    %40 = arith.addf %30, %39 : vector<64x64xf32>
    %c4 = arith.constant 4 : index
    %c0_26 = arith.constant 0 : index
    %c0_27 = arith.constant 0 : index
    %41 = vector.load %arg2[%c4, %c0_26, %c0_27] : memref<32x64x64xf32, #tpu.memory_space<vmem>>, vector<1x64x64xf32>
    %42 = vector.shape_cast %41 : vector<1x64x64xf32> to vector<64x64xf32>
    %c0_28 = arith.constant 0 : index
    %c4_29 = arith.constant 4 : index
    %43 = memref.load %arg1[%c0_28, %c4_29] : memref<2x32xf32, #tpu.memory_space<smem>>
    %44 = vector.broadcast %43 : f32 to vector<64x64xf32>
    %45 = arith.mulf %44, %42 : vector<64x64xf32>
    %46 = arith.addf %36, %45 : vector<64x64xf32>
    %c1_30 = arith.constant 1 : index
    %c4_31 = arith.constant 4 : index
    %47 = memref.load %arg1[%c1_30, %c4_31] : memref<2x32xf32, #tpu.memory_space<smem>>
    %48 = vector.broadcast %47 : f32 to vector<64x64xf32>
    %49 = arith.mulf %48, %42 : vector<64x64xf32>
    %50 = arith.addf %40, %49 : vector<64x64xf32>
    %c5 = arith.constant 5 : index
    %c0_32 = arith.constant 0 : index
    %c0_33 = arith.constant 0 : index
    %51 = vector.load %arg2[%c5, %c0_32, %c0_33] : memref<32x64x64xf32, #tpu.memory_space<vmem>>, vector<1x64x64xf32>
    %52 = vector.shape_cast %51 : vector<1x64x64xf32> to vector<64x64xf32>
    %c0_34 = arith.constant 0 : index
    %c5_35 = arith.constant 5 : index
    %53 = memref.load %arg1[%c0_34, %c5_35] : memref<2x32xf32, #tpu.memory_space<smem>>
    %54 = vector.broadcast %53 : f32 to vector<64x64xf32>
    %55 = arith.mulf %54, %52 : vector<64x64xf32>
    %56 = arith.addf %46, %55 : vector<64x64xf32>
    %c1_36 = arith.constant 1 : index
    %c5_37 = arith.constant 5 : index
    %57 = memref.load %arg1[%c1_36, %c5_37] : memref<2x32xf32, #tpu.memory_space<smem>>
    %58 = vector.broadcast %57 : f32 to vector<64x64xf32>
    %59 = arith.mulf %58, %52 : vector<64x64xf32>
    %60 = arith.addf %50, %59 : vector<64x64xf32>
    %c6 = arith.constant 6 : index
    %c0_38 = arith.constant 0 : index
    %c0_39 = arith.constant 0 : index
    %61 = vector.load %arg2[%c6, %c0_38, %c0_39] : memref<32x64x64xf32, #tpu.memory_space<vmem>>, vector<1x64x64xf32>
    %62 = vector.shape_cast %61 : vector<1x64x64xf32> to vector<64x64xf32>
    %c0_40 = arith.constant 0 : index
    %c6_41 = arith.constant 6 : index
    %63 = memref.load %arg1[%c0_40, %c6_41] : memref<2x32xf32, #tpu.memory_space<smem>>
    %64 = vector.broadcast %63 : f32 to vector<64x64xf32>
    %65 = arith.mulf %64, %62 : vector<64x64xf32>
    %66 = arith.addf %56, %65 : vector<64x64xf32>
    %c1_42 = arith.constant 1 : index
    %c6_43 = arith.constant 6 : index
    %67 = memref.load %arg1[%c1_42, %c6_43] : memref<2x32xf32, #tpu.memory_space<smem>>
    %68 = vector.broadcast %67 : f32 to vector<64x64xf32>
    %69 = arith.mulf %68, %62 : vector<64x64xf32>
    %70 = arith.addf %60, %69 : vector<64x64xf32>
    %c7 = arith.constant 7 : index
    %c0_44 = arith.constant 0 : index
    %c0_45 = arith.constant 0 : index
    %71 = vector.load %arg2[%c7, %c0_44, %c0_45] : memref<32x64x64xf32, #tpu.memory_space<vmem>>, vector<1x64x64xf32>
    %72 = vector.shape_cast %71 : vector<1x64x64xf32> to vector<64x64xf32>
    %c0_46 = arith.constant 0 : index
    %c7_47 = arith.constant 7 : index
    %73 = memref.load %arg1[%c0_46, %c7_47] : memref<2x32xf32, #tpu.memory_space<smem>>
    %74 = vector.broadcast %73 : f32 to vector<64x64xf32>
    %75 = arith.mulf %74, %72 : vector<64x64xf32>
    %76 = arith.addf %66, %75 : vector<64x64xf32>
    %c1_48 = arith.constant 1 : index
    %c7_49 = arith.constant 7 : index
    %77 = memref.load %arg1[%c1_48, %c7_49] : memref<2x32xf32, #tpu.memory_space<smem>>
    %78 = vector.broadcast %77 : f32 to vector<64x64xf32>
    %79 = arith.mulf %78, %72 : vector<64x64xf32>
    %80 = arith.addf %70, %79 : vector<64x64xf32>
    %c8 = arith.constant 8 : index
    %c0_50 = arith.constant 0 : index
    %c0_51 = arith.constant 0 : index
    %81 = vector.load %arg2[%c8, %c0_50, %c0_51] : memref<32x64x64xf32, #tpu.memory_space<vmem>>, vector<1x64x64xf32>
    %82 = vector.shape_cast %81 : vector<1x64x64xf32> to vector<64x64xf32>
    %c0_52 = arith.constant 0 : index
    %c8_53 = arith.constant 8 : index
    %83 = memref.load %arg1[%c0_52, %c8_53] : memref<2x32xf32, #tpu.memory_space<smem>>
    %84 = vector.broadcast %83 : f32 to vector<64x64xf32>
    %85 = arith.mulf %84, %82 : vector<64x64xf32>
    %86 = arith.addf %76, %85 : vector<64x64xf32>
    %c1_54 = arith.constant 1 : index
    %c8_55 = arith.constant 8 : index
    %87 = memref.load %arg1[%c1_54, %c8_55] : memref<2x32xf32, #tpu.memory_space<smem>>
    %88 = vector.broadcast %87 : f32 to vector<64x64xf32>
    %89 = arith.mulf %88, %82 : vector<64x64xf32>
    %90 = arith.addf %80, %89 : vector<64x64xf32>
    %c9 = arith.constant 9 : index
    %c0_56 = arith.constant 0 : index
    %c0_57 = arith.constant 0 : index
    %91 = vector.load %arg2[%c9, %c0_56, %c0_57] : memref<32x64x64xf32, #tpu.memory_space<vmem>>, vector<1x64x64xf32>
    %92 = vector.shape_cast %91 : vector<1x64x64xf32> to vector<64x64xf32>
    %c0_58 = arith.constant 0 : index
    %c9_59 = arith.constant 9 : index
    %93 = memref.load %arg1[%c0_58, %c9_59] : memref<2x32xf32, #tpu.memory_space<smem>>
    %94 = vector.broadcast %93 : f32 to vector<64x64xf32>
    %95 = arith.mulf %94, %92 : vector<64x64xf32>
    %96 = arith.addf %86, %95 : vector<64x64xf32>
    %c1_60 = arith.constant 1 : index
    %c9_61 = arith.constant 9 : index
    %97 = memref.load %arg1[%c1_60, %c9_61] : memref<2x32xf32, #tpu.memory_space<smem>>
    %98 = vector.broadcast %97 : f32 to vector<64x64xf32>
    %99 = arith.mulf %98, %92 : vector<64x64xf32>
    %100 = arith.addf %90, %99 : vector<64x64xf32>
    %c10 = arith.constant 10 : index
    %c0_62 = arith.constant 0 : index
    %c0_63 = arith.constant 0 : index
    %101 = vector.load %arg2[%c10, %c0_62, %c0_63] : memref<32x64x64xf32, #tpu.memory_space<vmem>>, vector<1x64x64xf32>
    %102 = vector.shape_cast %101 : vector<1x64x64xf32> to vector<64x64xf32>
    %c0_64 = arith.constant 0 : index
    %c10_65 = arith.constant 10 : index
    %103 = memref.load %arg1[%c0_64, %c10_65] : memref<2x32xf32, #tpu.memory_space<smem>>
    %104 = vector.broadcast %103 : f32 to vector<64x64xf32>
    %105 = arith.mulf %104, %102 : vector<64x64xf32>
    %106 = arith.addf %96, %105 : vector<64x64xf32>
    %c1_66 = arith.constant 1 : index
    %c10_67 = arith.constant 10 : index
    %107 = memref.load %arg1[%c1_66, %c10_67] : memref<2x32xf32, #tpu.memory_space<smem>>
    %108 = vector.broadcast %107 : f32 to vector<64x64xf32>
    %109 = arith.mulf %108, %102 : vector<64x64xf32>
    %110 = arith.addf %100, %109 : vector<64x64xf32>
    %c11 = arith.constant 11 : index
    %c0_68 = arith.constant 0 : index
    %c0_69 = arith.constant 0 : index
    %111 = vector.load %arg2[%c11, %c0_68, %c0_69] : memref<32x64x64xf32, #tpu.memory_space<vmem>>, vector<1x64x64xf32>
    %112 = vector.shape_cast %111 : vector<1x64x64xf32> to vector<64x64xf32>
    %c0_70 = arith.constant 0 : index
    %c11_71 = arith.constant 11 : index
    %113 = memref.load %arg1[%c0_70, %c11_71] : memref<2x32xf32, #tpu.memory_space<smem>>
    %114 = vector.broadcast %113 : f32 to vector<64x64xf32>
    %115 = arith.mulf %114, %112 : vector<64x64xf32>
    %116 = arith.addf %106, %115 : vector<64x64xf32>
    %c1_72 = arith.constant 1 : index
    %c11_73 = arith.constant 11 : index
    %117 = memref.load %arg1[%c1_72, %c11_73] : memref<2x32xf32, #tpu.memory_space<smem>>
    %118 = vector.broadcast %117 : f32 to vector<64x64xf32>
    %119 = arith.mulf %118, %112 : vector<64x64xf32>
    %120 = arith.addf %110, %119 : vector<64x64xf32>
    %c12 = arith.constant 12 : index
    %c0_74 = arith.constant 0 : index
    %c0_75 = arith.constant 0 : index
    %121 = vector.load %arg2[%c12, %c0_74, %c0_75] : memref<32x64x64xf32, #tpu.memory_space<vmem>>, vector<1x64x64xf32>
    %122 = vector.shape_cast %121 : vector<1x64x64xf32> to vector<64x64xf32>
    %c0_76 = arith.constant 0 : index
    %c12_77 = arith.constant 12 : index
    %123 = memref.load %arg1[%c0_76, %c12_77] : memref<2x32xf32, #tpu.memory_space<smem>>
    %124 = vector.broadcast %123 : f32 to vector<64x64xf32>
    %125 = arith.mulf %124, %122 : vector<64x64xf32>
    %126 = arith.addf %116, %125 : vector<64x64xf32>
    %c1_78 = arith.constant 1 : index
    %c12_79 = arith.constant 12 : index
    %127 = memref.load %arg1[%c1_78, %c12_79] : memref<2x32xf32, #tpu.memory_space<smem>>
    %128 = vector.broadcast %127 : f32 to vector<64x64xf32>
    %129 = arith.mulf %128, %122 : vector<64x64xf32>
    %130 = arith.addf %120, %129 : vector<64x64xf32>
    %c13 = arith.constant 13 : index
    %c0_80 = arith.constant 0 : index
    %c0_81 = arith.constant 0 : index
    %131 = vector.load %arg2[%c13, %c0_80, %c0_81] : memref<32x64x64xf32, #tpu.memory_space<vmem>>, vector<1x64x64xf32>
    %132 = vector.shape_cast %131 : vector<1x64x64xf32> to vector<64x64xf32>
    %c0_82 = arith.constant 0 : index
    %c13_83 = arith.constant 13 : index
    %133 = memref.load %arg1[%c0_82, %c13_83] : memref<2x32xf32, #tpu.memory_space<smem>>
    %134 = vector.broadcast %133 : f32 to vector<64x64xf32>
    %135 = arith.mulf %134, %132 : vector<64x64xf32>
    %136 = arith.addf %126, %135 : vector<64x64xf32>
    %c1_84 = arith.constant 1 : index
    %c13_85 = arith.constant 13 : index
    %137 = memref.load %arg1[%c1_84, %c13_85] : memref<2x32xf32, #tpu.memory_space<smem>>
    %138 = vector.broadcast %137 : f32 to vector<64x64xf32>
    %139 = arith.mulf %138, %132 : vector<64x64xf32>
    %140 = arith.addf %130, %139 : vector<64x64xf32>
    %c14 = arith.constant 14 : index
    %c0_86 = arith.constant 0 : index
    %c0_87 = arith.constant 0 : index
    %141 = vector.load %arg2[%c14, %c0_86, %c0_87] : memref<32x64x64xf32, #tpu.memory_space<vmem>>, vector<1x64x64xf32>
    %142 = vector.shape_cast %141 : vector<1x64x64xf32> to vector<64x64xf32>
    %c0_88 = arith.constant 0 : index
    %c14_89 = arith.constant 14 : index
    %143 = memref.load %arg1[%c0_88, %c14_89] : memref<2x32xf32, #tpu.memory_space<smem>>
    %144 = vector.broadcast %143 : f32 to vector<64x64xf32>
    %145 = arith.mulf %144, %142 : vector<64x64xf32>
    %146 = arith.addf %136, %145 : vector<64x64xf32>
    %c1_90 = arith.constant 1 : index
    %c14_91 = arith.constant 14 : index
    %147 = memref.load %arg1[%c1_90, %c14_91] : memref<2x32xf32, #tpu.memory_space<smem>>
    %148 = vector.broadcast %147 : f32 to vector<64x64xf32>
    %149 = arith.mulf %148, %142 : vector<64x64xf32>
    %150 = arith.addf %140, %149 : vector<64x64xf32>
    %c15 = arith.constant 15 : index
    %c0_92 = arith.constant 0 : index
    %c0_93 = arith.constant 0 : index
    %151 = vector.load %arg2[%c15, %c0_92, %c0_93] : memref<32x64x64xf32, #tpu.memory_space<vmem>>, vector<1x64x64xf32>
    %152 = vector.shape_cast %151 : vector<1x64x64xf32> to vector<64x64xf32>
    %c0_94 = arith.constant 0 : index
    %c15_95 = arith.constant 15 : index
    %153 = memref.load %arg1[%c0_94, %c15_95] : memref<2x32xf32, #tpu.memory_space<smem>>
    %154 = vector.broadcast %153 : f32 to vector<64x64xf32>
    %155 = arith.mulf %154, %152 : vector<64x64xf32>
    %156 = arith.addf %146, %155 : vector<64x64xf32>
    %c1_96 = arith.constant 1 : index
    %c15_97 = arith.constant 15 : index
    %157 = memref.load %arg1[%c1_96, %c15_97] : memref<2x32xf32, #tpu.memory_space<smem>>
    %158 = vector.broadcast %157 : f32 to vector<64x64xf32>
    %159 = arith.mulf %158, %152 : vector<64x64xf32>
    %160 = arith.addf %150, %159 : vector<64x64xf32>
    %c16 = arith.constant 16 : index
    %c0_98 = arith.constant 0 : index
    %c0_99 = arith.constant 0 : index
    %161 = vector.load %arg2[%c16, %c0_98, %c0_99] : memref<32x64x64xf32, #tpu.memory_space<vmem>>, vector<1x64x64xf32>
    %162 = vector.shape_cast %161 : vector<1x64x64xf32> to vector<64x64xf32>
    %c0_100 = arith.constant 0 : index
    %c16_101 = arith.constant 16 : index
    %163 = memref.load %arg1[%c0_100, %c16_101] : memref<2x32xf32, #tpu.memory_space<smem>>
    %164 = vector.broadcast %163 : f32 to vector<64x64xf32>
    %165 = arith.mulf %164, %162 : vector<64x64xf32>
    %166 = arith.addf %156, %165 : vector<64x64xf32>
    %c1_102 = arith.constant 1 : index
    %c16_103 = arith.constant 16 : index
    %167 = memref.load %arg1[%c1_102, %c16_103] : memref<2x32xf32, #tpu.memory_space<smem>>
    %168 = vector.broadcast %167 : f32 to vector<64x64xf32>
    %169 = arith.mulf %168, %162 : vector<64x64xf32>
    %170 = arith.addf %160, %169 : vector<64x64xf32>
    %c17 = arith.constant 17 : index
    %c0_104 = arith.constant 0 : index
    %c0_105 = arith.constant 0 : index
    %171 = vector.load %arg2[%c17, %c0_104, %c0_105] : memref<32x64x64xf32, #tpu.memory_space<vmem>>, vector<1x64x64xf32>
    %172 = vector.shape_cast %171 : vector<1x64x64xf32> to vector<64x64xf32>
    %c0_106 = arith.constant 0 : index
    %c17_107 = arith.constant 17 : index
    %173 = memref.load %arg1[%c0_106, %c17_107] : memref<2x32xf32, #tpu.memory_space<smem>>
    %174 = vector.broadcast %173 : f32 to vector<64x64xf32>
    %175 = arith.mulf %174, %172 : vector<64x64xf32>
    %176 = arith.addf %166, %175 : vector<64x64xf32>
    %c1_108 = arith.constant 1 : index
    %c17_109 = arith.constant 17 : index
    %177 = memref.load %arg1[%c1_108, %c17_109] : memref<2x32xf32, #tpu.memory_space<smem>>
    %178 = vector.broadcast %177 : f32 to vector<64x64xf32>
    %179 = arith.mulf %178, %172 : vector<64x64xf32>
    %180 = arith.addf %170, %179 : vector<64x64xf32>
    %c18 = arith.constant 18 : index
    %c0_110 = arith.constant 0 : index
    %c0_111 = arith.constant 0 : index
    %181 = vector.load %arg2[%c18, %c0_110, %c0_111] : memref<32x64x64xf32, #tpu.memory_space<vmem>>, vector<1x64x64xf32>
    %182 = vector.shape_cast %181 : vector<1x64x64xf32> to vector<64x64xf32>
    %c0_112 = arith.constant 0 : index
    %c18_113 = arith.constant 18 : index
    %183 = memref.load %arg1[%c0_112, %c18_113] : memref<2x32xf32, #tpu.memory_space<smem>>
    %184 = vector.broadcast %183 : f32 to vector<64x64xf32>
    %185 = arith.mulf %184, %182 : vector<64x64xf32>
    %186 = arith.addf %176, %185 : vector<64x64xf32>
    %c1_114 = arith.constant 1 : index
    %c18_115 = arith.constant 18 : index
    %187 = memref.load %arg1[%c1_114, %c18_115] : memref<2x32xf32, #tpu.memory_space<smem>>
    %188 = vector.broadcast %187 : f32 to vector<64x64xf32>
    %189 = arith.mulf %188, %182 : vector<64x64xf32>
    %190 = arith.addf %180, %189 : vector<64x64xf32>
    %c19 = arith.constant 19 : index
    %c0_116 = arith.constant 0 : index
    %c0_117 = arith.constant 0 : index
    %191 = vector.load %arg2[%c19, %c0_116, %c0_117] : memref<32x64x64xf32, #tpu.memory_space<vmem>>, vector<1x64x64xf32>
    %192 = vector.shape_cast %191 : vector<1x64x64xf32> to vector<64x64xf32>
    %c0_118 = arith.constant 0 : index
    %c19_119 = arith.constant 19 : index
    %193 = memref.load %arg1[%c0_118, %c19_119] : memref<2x32xf32, #tpu.memory_space<smem>>
    %194 = vector.broadcast %193 : f32 to vector<64x64xf32>
    %195 = arith.mulf %194, %192 : vector<64x64xf32>
    %196 = arith.addf %186, %195 : vector<64x64xf32>
    %c1_120 = arith.constant 1 : index
    %c19_121 = arith.constant 19 : index
    %197 = memref.load %arg1[%c1_120, %c19_121] : memref<2x32xf32, #tpu.memory_space<smem>>
    %198 = vector.broadcast %197 : f32 to vector<64x64xf32>
    %199 = arith.mulf %198, %192 : vector<64x64xf32>
    %200 = arith.addf %190, %199 : vector<64x64xf32>
    %c20 = arith.constant 20 : index
    %c0_122 = arith.constant 0 : index
    %c0_123 = arith.constant 0 : index
    %201 = vector.load %arg2[%c20, %c0_122, %c0_123] : memref<32x64x64xf32, #tpu.memory_space<vmem>>, vector<1x64x64xf32>
    %202 = vector.shape_cast %201 : vector<1x64x64xf32> to vector<64x64xf32>
    %c0_124 = arith.constant 0 : index
    %c20_125 = arith.constant 20 : index
    %203 = memref.load %arg1[%c0_124, %c20_125] : memref<2x32xf32, #tpu.memory_space<smem>>
    %204 = vector.broadcast %203 : f32 to vector<64x64xf32>
    %205 = arith.mulf %204, %202 : vector<64x64xf32>
    %206 = arith.addf %196, %205 : vector<64x64xf32>
    %c1_126 = arith.constant 1 : index
    %c20_127 = arith.constant 20 : index
    %207 = memref.load %arg1[%c1_126, %c20_127] : memref<2x32xf32, #tpu.memory_space<smem>>
    %208 = vector.broadcast %207 : f32 to vector<64x64xf32>
    %209 = arith.mulf %208, %202 : vector<64x64xf32>
    %210 = arith.addf %200, %209 : vector<64x64xf32>
    %c21 = arith.constant 21 : index
    %c0_128 = arith.constant 0 : index
    %c0_129 = arith.constant 0 : index
    %211 = vector.load %arg2[%c21, %c0_128, %c0_129] : memref<32x64x64xf32, #tpu.memory_space<vmem>>, vector<1x64x64xf32>
    %212 = vector.shape_cast %211 : vector<1x64x64xf32> to vector<64x64xf32>
    %c0_130 = arith.constant 0 : index
    %c21_131 = arith.constant 21 : index
    %213 = memref.load %arg1[%c0_130, %c21_131] : memref<2x32xf32, #tpu.memory_space<smem>>
    %214 = vector.broadcast %213 : f32 to vector<64x64xf32>
    %215 = arith.mulf %214, %212 : vector<64x64xf32>
    %216 = arith.addf %206, %215 : vector<64x64xf32>
    %c1_132 = arith.constant 1 : index
    %c21_133 = arith.constant 21 : index
    %217 = memref.load %arg1[%c1_132, %c21_133] : memref<2x32xf32, #tpu.memory_space<smem>>
    %218 = vector.broadcast %217 : f32 to vector<64x64xf32>
    %219 = arith.mulf %218, %212 : vector<64x64xf32>
    %220 = arith.addf %210, %219 : vector<64x64xf32>
    %c22 = arith.constant 22 : index
    %c0_134 = arith.constant 0 : index
    %c0_135 = arith.constant 0 : index
    %221 = vector.load %arg2[%c22, %c0_134, %c0_135] : memref<32x64x64xf32, #tpu.memory_space<vmem>>, vector<1x64x64xf32>
    %222 = vector.shape_cast %221 : vector<1x64x64xf32> to vector<64x64xf32>
    %c0_136 = arith.constant 0 : index
    %c22_137 = arith.constant 22 : index
    %223 = memref.load %arg1[%c0_136, %c22_137] : memref<2x32xf32, #tpu.memory_space<smem>>
    %224 = vector.broadcast %223 : f32 to vector<64x64xf32>
    %225 = arith.mulf %224, %222 : vector<64x64xf32>
    %226 = arith.addf %216, %225 : vector<64x64xf32>
    %c1_138 = arith.constant 1 : index
    %c22_139 = arith.constant 22 : index
    %227 = memref.load %arg1[%c1_138, %c22_139] : memref<2x32xf32, #tpu.memory_space<smem>>
    %228 = vector.broadcast %227 : f32 to vector<64x64xf32>
    %229 = arith.mulf %228, %222 : vector<64x64xf32>
    %230 = arith.addf %220, %229 : vector<64x64xf32>
    %c23 = arith.constant 23 : index
    %c0_140 = arith.constant 0 : index
    %c0_141 = arith.constant 0 : index
    %231 = vector.load %arg2[%c23, %c0_140, %c0_141] : memref<32x64x64xf32, #tpu.memory_space<vmem>>, vector<1x64x64xf32>
    %232 = vector.shape_cast %231 : vector<1x64x64xf32> to vector<64x64xf32>
    %c0_142 = arith.constant 0 : index
    %c23_143 = arith.constant 23 : index
    %233 = memref.load %arg1[%c0_142, %c23_143] : memref<2x32xf32, #tpu.memory_space<smem>>
    %234 = vector.broadcast %233 : f32 to vector<64x64xf32>
    %235 = arith.mulf %234, %232 : vector<64x64xf32>
    %236 = arith.addf %226, %235 : vector<64x64xf32>
    %c1_144 = arith.constant 1 : index
    %c23_145 = arith.constant 23 : index
    %237 = memref.load %arg1[%c1_144, %c23_145] : memref<2x32xf32, #tpu.memory_space<smem>>
    %238 = vector.broadcast %237 : f32 to vector<64x64xf32>
    %239 = arith.mulf %238, %232 : vector<64x64xf32>
    %240 = arith.addf %230, %239 : vector<64x64xf32>
    %c24 = arith.constant 24 : index
    %c0_146 = arith.constant 0 : index
    %c0_147 = arith.constant 0 : index
    %241 = vector.load %arg2[%c24, %c0_146, %c0_147] : memref<32x64x64xf32, #tpu.memory_space<vmem>>, vector<1x64x64xf32>
    %242 = vector.shape_cast %241 : vector<1x64x64xf32> to vector<64x64xf32>
    %c0_148 = arith.constant 0 : index
    %c24_149 = arith.constant 24 : index
    %243 = memref.load %arg1[%c0_148, %c24_149] : memref<2x32xf32, #tpu.memory_space<smem>>
    %244 = vector.broadcast %243 : f32 to vector<64x64xf32>
    %245 = arith.mulf %244, %242 : vector<64x64xf32>
    %246 = arith.addf %236, %245 : vector<64x64xf32>
    %c1_150 = arith.constant 1 : index
    %c24_151 = arith.constant 24 : index
    %247 = memref.load %arg1[%c1_150, %c24_151] : memref<2x32xf32, #tpu.memory_space<smem>>
    %248 = vector.broadcast %247 : f32 to vector<64x64xf32>
    %249 = arith.mulf %248, %242 : vector<64x64xf32>
    %250 = arith.addf %240, %249 : vector<64x64xf32>
    %c25 = arith.constant 25 : index
    %c0_152 = arith.constant 0 : index
    %c0_153 = arith.constant 0 : index
    %251 = vector.load %arg2[%c25, %c0_152, %c0_153] : memref<32x64x64xf32, #tpu.memory_space<vmem>>, vector<1x64x64xf32>
    %252 = vector.shape_cast %251 : vector<1x64x64xf32> to vector<64x64xf32>
    %c0_154 = arith.constant 0 : index
    %c25_155 = arith.constant 25 : index
    %253 = memref.load %arg1[%c0_154, %c25_155] : memref<2x32xf32, #tpu.memory_space<smem>>
    %254 = vector.broadcast %253 : f32 to vector<64x64xf32>
    %255 = arith.mulf %254, %252 : vector<64x64xf32>
    %256 = arith.addf %246, %255 : vector<64x64xf32>
    %c1_156 = arith.constant 1 : index
    %c25_157 = arith.constant 25 : index
    %257 = memref.load %arg1[%c1_156, %c25_157] : memref<2x32xf32, #tpu.memory_space<smem>>
    %258 = vector.broadcast %257 : f32 to vector<64x64xf32>
    %259 = arith.mulf %258, %252 : vector<64x64xf32>
    %260 = arith.addf %250, %259 : vector<64x64xf32>
    %c26 = arith.constant 26 : index
    %c0_158 = arith.constant 0 : index
    %c0_159 = arith.constant 0 : index
    %261 = vector.load %arg2[%c26, %c0_158, %c0_159] : memref<32x64x64xf32, #tpu.memory_space<vmem>>, vector<1x64x64xf32>
    %262 = vector.shape_cast %261 : vector<1x64x64xf32> to vector<64x64xf32>
    %c0_160 = arith.constant 0 : index
    %c26_161 = arith.constant 26 : index
    %263 = memref.load %arg1[%c0_160, %c26_161] : memref<2x32xf32, #tpu.memory_space<smem>>
    %264 = vector.broadcast %263 : f32 to vector<64x64xf32>
    %265 = arith.mulf %264, %262 : vector<64x64xf32>
    %266 = arith.addf %256, %265 : vector<64x64xf32>
    %c1_162 = arith.constant 1 : index
    %c26_163 = arith.constant 26 : index
    %267 = memref.load %arg1[%c1_162, %c26_163] : memref<2x32xf32, #tpu.memory_space<smem>>
    %268 = vector.broadcast %267 : f32 to vector<64x64xf32>
    %269 = arith.mulf %268, %262 : vector<64x64xf32>
    %270 = arith.addf %260, %269 : vector<64x64xf32>
    %c27 = arith.constant 27 : index
    %c0_164 = arith.constant 0 : index
    %c0_165 = arith.constant 0 : index
    %271 = vector.load %arg2[%c27, %c0_164, %c0_165] : memref<32x64x64xf32, #tpu.memory_space<vmem>>, vector<1x64x64xf32>
    %272 = vector.shape_cast %271 : vector<1x64x64xf32> to vector<64x64xf32>
    %c0_166 = arith.constant 0 : index
    %c27_167 = arith.constant 27 : index
    %273 = memref.load %arg1[%c0_166, %c27_167] : memref<2x32xf32, #tpu.memory_space<smem>>
    %274 = vector.broadcast %273 : f32 to vector<64x64xf32>
    %275 = arith.mulf %274, %272 : vector<64x64xf32>
    %276 = arith.addf %266, %275 : vector<64x64xf32>
    %c1_168 = arith.constant 1 : index
    %c27_169 = arith.constant 27 : index
    %277 = memref.load %arg1[%c1_168, %c27_169] : memref<2x32xf32, #tpu.memory_space<smem>>
    %278 = vector.broadcast %277 : f32 to vector<64x64xf32>
    %279 = arith.mulf %278, %272 : vector<64x64xf32>
    %280 = arith.addf %270, %279 : vector<64x64xf32>
    %c28 = arith.constant 28 : index
    %c0_170 = arith.constant 0 : index
    %c0_171 = arith.constant 0 : index
    %281 = vector.load %arg2[%c28, %c0_170, %c0_171] : memref<32x64x64xf32, #tpu.memory_space<vmem>>, vector<1x64x64xf32>
    %282 = vector.shape_cast %281 : vector<1x64x64xf32> to vector<64x64xf32>
    %c0_172 = arith.constant 0 : index
    %c28_173 = arith.constant 28 : index
    %283 = memref.load %arg1[%c0_172, %c28_173] : memref<2x32xf32, #tpu.memory_space<smem>>
    %284 = vector.broadcast %283 : f32 to vector<64x64xf32>
    %285 = arith.mulf %284, %282 : vector<64x64xf32>
    %286 = arith.addf %276, %285 : vector<64x64xf32>
    %c1_174 = arith.constant 1 : index
    %c28_175 = arith.constant 28 : index
    %287 = memref.load %arg1[%c1_174, %c28_175] : memref<2x32xf32, #tpu.memory_space<smem>>
    %288 = vector.broadcast %287 : f32 to vector<64x64xf32>
    %289 = arith.mulf %288, %282 : vector<64x64xf32>
    %290 = arith.addf %280, %289 : vector<64x64xf32>
    %c29 = arith.constant 29 : index
    %c0_176 = arith.constant 0 : index
    %c0_177 = arith.constant 0 : index
    %291 = vector.load %arg2[%c29, %c0_176, %c0_177] : memref<32x64x64xf32, #tpu.memory_space<vmem>>, vector<1x64x64xf32>
    %292 = vector.shape_cast %291 : vector<1x64x64xf32> to vector<64x64xf32>
    %c0_178 = arith.constant 0 : index
    %c29_179 = arith.constant 29 : index
    %293 = memref.load %arg1[%c0_178, %c29_179] : memref<2x32xf32, #tpu.memory_space<smem>>
    %294 = vector.broadcast %293 : f32 to vector<64x64xf32>
    %295 = arith.mulf %294, %292 : vector<64x64xf32>
    %296 = arith.addf %286, %295 : vector<64x64xf32>
    %c1_180 = arith.constant 1 : index
    %c29_181 = arith.constant 29 : index
    %297 = memref.load %arg1[%c1_180, %c29_181] : memref<2x32xf32, #tpu.memory_space<smem>>
    %298 = vector.broadcast %297 : f32 to vector<64x64xf32>
    %299 = arith.mulf %298, %292 : vector<64x64xf32>
    %300 = arith.addf %290, %299 : vector<64x64xf32>
    %c30 = arith.constant 30 : index
    %c0_182 = arith.constant 0 : index
    %c0_183 = arith.constant 0 : index
    %301 = vector.load %arg2[%c30, %c0_182, %c0_183] : memref<32x64x64xf32, #tpu.memory_space<vmem>>, vector<1x64x64xf32>
    %302 = vector.shape_cast %301 : vector<1x64x64xf32> to vector<64x64xf32>
    %c0_184 = arith.constant 0 : index
    %c30_185 = arith.constant 30 : index
    %303 = memref.load %arg1[%c0_184, %c30_185] : memref<2x32xf32, #tpu.memory_space<smem>>
    %304 = vector.broadcast %303 : f32 to vector<64x64xf32>
    %305 = arith.mulf %304, %302 : vector<64x64xf32>
    %306 = arith.addf %296, %305 : vector<64x64xf32>
    %c1_186 = arith.constant 1 : index
    %c30_187 = arith.constant 30 : index
    %307 = memref.load %arg1[%c1_186, %c30_187] : memref<2x32xf32, #tpu.memory_space<smem>>
    %308 = vector.broadcast %307 : f32 to vector<64x64xf32>
    %309 = arith.mulf %308, %302 : vector<64x64xf32>
    %310 = arith.addf %300, %309 : vector<64x64xf32>
    %c31 = arith.constant 31 : index
    %c0_188 = arith.constant 0 : index
    %c0_189 = arith.constant 0 : index
    %311 = vector.load %arg2[%c31, %c0_188, %c0_189] : memref<32x64x64xf32, #tpu.memory_space<vmem>>, vector<1x64x64xf32>
    %312 = vector.shape_cast %311 : vector<1x64x64xf32> to vector<64x64xf32>
    %c0_190 = arith.constant 0 : index
    %c31_191 = arith.constant 31 : index
    %313 = memref.load %arg1[%c0_190, %c31_191] : memref<2x32xf32, #tpu.memory_space<smem>>
    %314 = vector.broadcast %313 : f32 to vector<64x64xf32>
    %315 = arith.mulf %314, %312 : vector<64x64xf32>
    %316 = arith.addf %306, %315 : vector<64x64xf32>
    %c1_192 = arith.constant 1 : index
    %c31_193 = arith.constant 31 : index
    %317 = memref.load %arg1[%c1_192, %c31_193] : memref<2x32xf32, #tpu.memory_space<smem>>
    %318 = vector.broadcast %317 : f32 to vector<64x64xf32>
    %319 = arith.mulf %318, %312 : vector<64x64xf32>
    %320 = arith.addf %310, %319 : vector<64x64xf32>
    %321 = tpu.concatenate %316, %320 in 1 : vector<64x64xf32>, vector<64x64xf32> -> vector<64x128xf32>
    %c0_194 = arith.constant 0 : index
    %c0_195 = arith.constant 0 : index
    %c0_196 = arith.constant 0 : index
    %322 = vector.load %arg4[%c0_194, %c0_195, %c0_196] : memref<9x1x128xf32, #tpu.memory_space<vmem>>, vector<1x1x128xf32>
    %323 = vector.shape_cast %322 : vector<1x1x128xf32> to vector<1x128xf32>
    %c1_197 = arith.constant 1 : index
    %c0_198 = arith.constant 0 : index
    %c0_199 = arith.constant 0 : index
    %324 = vector.load %arg4[%c1_197, %c0_198, %c0_199] : memref<9x1x128xf32, #tpu.memory_space<vmem>>, vector<1x1x128xf32>
    %325 = vector.shape_cast %324 : vector<1x1x128xf32> to vector<1x128xf32>
    %c2_200 = arith.constant 2 : index
    %c0_201 = arith.constant 0 : index
    %c0_202 = arith.constant 0 : index
    %326 = vector.load %arg4[%c2_200, %c0_201, %c0_202] : memref<9x1x128xf32, #tpu.memory_space<vmem>>, vector<1x1x128xf32>
    %327 = vector.shape_cast %326 : vector<1x1x128xf32> to vector<1x128xf32>
    %c3_203 = arith.constant 3 : index
    %c0_204 = arith.constant 0 : index
    %c0_205 = arith.constant 0 : index
    %328 = vector.load %arg4[%c3_203, %c0_204, %c0_205] : memref<9x1x128xf32, #tpu.memory_space<vmem>>, vector<1x1x128xf32>
    %329 = vector.shape_cast %328 : vector<1x1x128xf32> to vector<1x128xf32>
    %c5_206 = arith.constant 5 : index
    %c0_207 = arith.constant 0 : index
    %c0_208 = arith.constant 0 : index
    %330 = vector.load %arg4[%c5_206, %c0_207, %c0_208] : memref<9x1x128xf32, #tpu.memory_space<vmem>>, vector<1x1x128xf32>
    %331 = vector.shape_cast %330 : vector<1x1x128xf32> to vector<1x128xf32>
    %c6_209 = arith.constant 6 : index
    %c0_210 = arith.constant 0 : index
    %c0_211 = arith.constant 0 : index
    %332 = vector.load %arg4[%c6_209, %c0_210, %c0_211] : memref<9x1x128xf32, #tpu.memory_space<vmem>>, vector<1x1x128xf32>
    %333 = vector.shape_cast %332 : vector<1x1x128xf32> to vector<1x128xf32>
    %c7_212 = arith.constant 7 : index
    %c0_213 = arith.constant 0 : index
    %c0_214 = arith.constant 0 : index
    %334 = vector.load %arg4[%c7_212, %c0_213, %c0_214] : memref<9x1x128xf32, #tpu.memory_space<vmem>>, vector<1x1x128xf32>
    %335 = vector.shape_cast %334 : vector<1x1x128xf32> to vector<1x128xf32>
    %c8_215 = arith.constant 8 : index
    %c0_216 = arith.constant 0 : index
    %c0_217 = arith.constant 0 : index
    %336 = vector.load %arg4[%c8_215, %c0_216, %c0_217] : memref<9x1x128xf32, #tpu.memory_space<vmem>>, vector<1x1x128xf32>
    %337 = vector.shape_cast %336 : vector<1x1x128xf32> to vector<1x128xf32>
    %c0_218 = arith.constant 0 : index
    %c0_219 = arith.constant 0 : index
    %c0_220 = arith.constant 0 : index
    %338 = vector.load %arg5[%c0_218, %c0_219, %c0_220] : memref<4x64x576xf32, #tpu.memory_space<vmem>>, vector<1x64x576xf32>
    %339 = vector.shape_cast %338 : vector<1x64x576xf32> to vector<64x576xf32>
    %c0_221 = arith.constant 0 : index
    %c0_222 = arith.constant 0 : index
    %c0_223 = arith.constant 0 : index
    %340 = vector.load %arg6[%c0_221, %c0_222, %c0_223] : memref<4x64x1xf32, #tpu.memory_space<vmem>>, vector<1x64x1xf32>
    %341 = vector.shape_cast %340 : vector<1x64x1xf32> to vector<64x1xf32>
    %c9_i32 = arith.constant 9 : i32
    %342 = tpu.dynamic_rotate %321 by %c9_i32 dim 1 : vector<64x128xf32>, i32 -> vector<64x128xf32>
    %343 = vector.broadcast %323 : vector<1x128xf32> to vector<64x128xf32>
    %344 = arith.mulf %342, %343 : vector<64x128xf32>
    %c8_i32 = arith.constant 8 : i32
    %345 = tpu.dynamic_rotate %321 by %c8_i32 dim 1 : vector<64x128xf32>, i32 -> vector<64x128xf32>
    %346 = vector.broadcast %325 : vector<1x128xf32> to vector<64x128xf32>
    %347 = arith.mulf %345, %346 : vector<64x128xf32>
    %c7_i32 = arith.constant 7 : i32
    %348 = tpu.dynamic_rotate %321 by %c7_i32 dim 1 : vector<64x128xf32>, i32 -> vector<64x128xf32>
    %349 = vector.broadcast %327 : vector<1x128xf32> to vector<64x128xf32>
    %350 = arith.mulf %348, %349 : vector<64x128xf32>
    %c1_i32 = arith.constant 1 : i32
    %351 = tpu.dynamic_rotate %321 by %c1_i32 dim 1 : vector<64x128xf32>, i32 -> vector<64x128xf32>
    %352 = vector.broadcast %329 : vector<1x128xf32> to vector<64x128xf32>
    %353 = arith.mulf %351, %352 : vector<64x128xf32>
    %c127_i32 = arith.constant 127 : i32
    %354 = tpu.dynamic_rotate %321 by %c127_i32 dim 1 : vector<64x128xf32>, i32 -> vector<64x128xf32>
    %355 = vector.broadcast %331 : vector<1x128xf32> to vector<64x128xf32>
    %356 = arith.mulf %354, %355 : vector<64x128xf32>
    %c121_i32 = arith.constant 121 : i32
    %357 = tpu.dynamic_rotate %321 by %c121_i32 dim 1 : vector<64x128xf32>, i32 -> vector<64x128xf32>
    %358 = vector.broadcast %333 : vector<1x128xf32> to vector<64x128xf32>
    %359 = arith.mulf %357, %358 : vector<64x128xf32>
    %c120_i32 = arith.constant 120 : i32
    %360 = tpu.dynamic_rotate %321 by %c120_i32 dim 1 : vector<64x128xf32>, i32 -> vector<64x128xf32>
    %361 = vector.broadcast %335 : vector<1x128xf32> to vector<64x128xf32>
    %362 = arith.mulf %360, %361 : vector<64x128xf32>
    %c119_i32 = arith.constant 119 : i32
    %363 = tpu.dynamic_rotate %321 by %c119_i32 dim 1 : vector<64x128xf32>, i32 -> vector<64x128xf32>
    %364 = vector.broadcast %337 : vector<1x128xf32> to vector<64x128xf32>
    %365 = arith.mulf %363, %364 : vector<64x128xf32>
    %366 = tpu.concatenate %344, %347, %350, %353, %321, %356, %359, %362, %365 in 0 : vector<64x128xf32>, vector<64x128xf32>, vector<64x128xf32>, vector<64x128xf32>, vector<64x128xf32>, vector<64x128xf32>, vector<64x128xf32>, vector<64x128xf32>, vector<64x128xf32> -> vector<576x128xf32>
    %cst = arith.constant dense<0.000000e+00> : vector<64x128xf32>
    %367 = tpu.matmul %339, %366, %cst {dimension_numbers = #tpu.dot_dimension_numbers<[1], [0], [0], [1], [0, 0, 1, 1], [], []>} : vector<64x576xf32>, vector<576x128xf32>, vector<64x128xf32> -> vector<64x128xf32>
    %368 = vector.broadcast %341 : vector<64x1xf32> to vector<64x128xf32>
    %369 = arith.addf %367, %368 : vector<64x128xf32>
    %cst_224 = arith.constant 0.000000e+00 : f32
    %370 = vector.broadcast %cst_224 : f32 to vector<64x128xf32>
    %371 = arith.maximumf %369, %370 : vector<64x128xf32>
    %c1_225 = arith.constant 1 : index
    %c0_226 = arith.constant 0 : index
    %c0_227 = arith.constant 0 : index
    %372 = vector.load %arg5[%c1_225, %c0_226, %c0_227] : memref<4x64x576xf32, #tpu.memory_space<vmem>>, vector<1x64x576xf32>
    %373 = vector.shape_cast %372 : vector<1x64x576xf32> to vector<64x576xf32>
    %c1_228 = arith.constant 1 : index
    %c0_229 = arith.constant 0 : index
    %c0_230 = arith.constant 0 : index
    %374 = vector.load %arg6[%c1_228, %c0_229, %c0_230] : memref<4x64x1xf32, #tpu.memory_space<vmem>>, vector<1x64x1xf32>
    %375 = vector.shape_cast %374 : vector<1x64x1xf32> to vector<64x1xf32>
    %c9_i32_231 = arith.constant 9 : i32
    %376 = tpu.dynamic_rotate %371 by %c9_i32_231 dim 1 : vector<64x128xf32>, i32 -> vector<64x128xf32>
    %377 = vector.broadcast %323 : vector<1x128xf32> to vector<64x128xf32>
    %378 = arith.mulf %376, %377 : vector<64x128xf32>
    %c8_i32_232 = arith.constant 8 : i32
    %379 = tpu.dynamic_rotate %371 by %c8_i32_232 dim 1 : vector<64x128xf32>, i32 -> vector<64x128xf32>
    %380 = vector.broadcast %325 : vector<1x128xf32> to vector<64x128xf32>
    %381 = arith.mulf %379, %380 : vector<64x128xf32>
    %c7_i32_233 = arith.constant 7 : i32
    %382 = tpu.dynamic_rotate %371 by %c7_i32_233 dim 1 : vector<64x128xf32>, i32 -> vector<64x128xf32>
    %383 = vector.broadcast %327 : vector<1x128xf32> to vector<64x128xf32>
    %384 = arith.mulf %382, %383 : vector<64x128xf32>
    %c1_i32_234 = arith.constant 1 : i32
    %385 = tpu.dynamic_rotate %371 by %c1_i32_234 dim 1 : vector<64x128xf32>, i32 -> vector<64x128xf32>
    %386 = vector.broadcast %329 : vector<1x128xf32> to vector<64x128xf32>
    %387 = arith.mulf %385, %386 : vector<64x128xf32>
    %c127_i32_235 = arith.constant 127 : i32
    %388 = tpu.dynamic_rotate %371 by %c127_i32_235 dim 1 : vector<64x128xf32>, i32 -> vector<64x128xf32>
    %389 = vector.broadcast %331 : vector<1x128xf32> to vector<64x128xf32>
    %390 = arith.mulf %388, %389 : vector<64x128xf32>
    %c121_i32_236 = arith.constant 121 : i32
    %391 = tpu.dynamic_rotate %371 by %c121_i32_236 dim 1 : vector<64x128xf32>, i32 -> vector<64x128xf32>
    %392 = vector.broadcast %333 : vector<1x128xf32> to vector<64x128xf32>
    %393 = arith.mulf %391, %392 : vector<64x128xf32>
    %c120_i32_237 = arith.constant 120 : i32
    %394 = tpu.dynamic_rotate %371 by %c120_i32_237 dim 1 : vector<64x128xf32>, i32 -> vector<64x128xf32>
    %395 = vector.broadcast %335 : vector<1x128xf32> to vector<64x128xf32>
    %396 = arith.mulf %394, %395 : vector<64x128xf32>
    %c119_i32_238 = arith.constant 119 : i32
    %397 = tpu.dynamic_rotate %371 by %c119_i32_238 dim 1 : vector<64x128xf32>, i32 -> vector<64x128xf32>
    %398 = vector.broadcast %337 : vector<1x128xf32> to vector<64x128xf32>
    %399 = arith.mulf %397, %398 : vector<64x128xf32>
    %400 = tpu.concatenate %378, %381, %384, %387, %371, %390, %393, %396, %399 in 0 : vector<64x128xf32>, vector<64x128xf32>, vector<64x128xf32>, vector<64x128xf32>, vector<64x128xf32>, vector<64x128xf32>, vector<64x128xf32>, vector<64x128xf32>, vector<64x128xf32> -> vector<576x128xf32>
    %cst_239 = arith.constant dense<0.000000e+00> : vector<64x128xf32>
    %401 = tpu.matmul %373, %400, %cst_239 {dimension_numbers = #tpu.dot_dimension_numbers<[1], [0], [0], [1], [0, 0, 1, 1], [], []>} : vector<64x576xf32>, vector<576x128xf32>, vector<64x128xf32> -> vector<64x128xf32>
    %402 = vector.broadcast %375 : vector<64x1xf32> to vector<64x128xf32>
    %403 = arith.addf %401, %402 : vector<64x128xf32>
    %404 = arith.addf %321, %403 : vector<64x128xf32>
    %c2_240 = arith.constant 2 : index
    %c0_241 = arith.constant 0 : index
    %c0_242 = arith.constant 0 : index
    %405 = vector.load %arg5[%c2_240, %c0_241, %c0_242] : memref<4x64x576xf32, #tpu.memory_space<vmem>>, vector<1x64x576xf32>
    %406 = vector.shape_cast %405 : vector<1x64x576xf32> to vector<64x576xf32>
    %c2_243 = arith.constant 2 : index
    %c0_244 = arith.constant 0 : index
    %c0_245 = arith.constant 0 : index
    %407 = vector.load %arg6[%c2_243, %c0_244, %c0_245] : memref<4x64x1xf32, #tpu.memory_space<vmem>>, vector<1x64x1xf32>
    %408 = vector.shape_cast %407 : vector<1x64x1xf32> to vector<64x1xf32>
    %c9_i32_246 = arith.constant 9 : i32
    %409 = tpu.dynamic_rotate %404 by %c9_i32_246 dim 1 : vector<64x128xf32>, i32 -> vector<64x128xf32>
    %410 = vector.broadcast %323 : vector<1x128xf32> to vector<64x128xf32>
    %411 = arith.mulf %409, %410 : vector<64x128xf32>
    %c8_i32_247 = arith.constant 8 : i32
    %412 = tpu.dynamic_rotate %404 by %c8_i32_247 dim 1 : vector<64x128xf32>, i32 -> vector<64x128xf32>
    %413 = vector.broadcast %325 : vector<1x128xf32> to vector<64x128xf32>
    %414 = arith.mulf %412, %413 : vector<64x128xf32>
    %c7_i32_248 = arith.constant 7 : i32
    %415 = tpu.dynamic_rotate %404 by %c7_i32_248 dim 1 : vector<64x128xf32>, i32 -> vector<64x128xf32>
    %416 = vector.broadcast %327 : vector<1x128xf32> to vector<64x128xf32>
    %417 = arith.mulf %415, %416 : vector<64x128xf32>
    %c1_i32_249 = arith.constant 1 : i32
    %418 = tpu.dynamic_rotate %404 by %c1_i32_249 dim 1 : vector<64x128xf32>, i32 -> vector<64x128xf32>
    %419 = vector.broadcast %329 : vector<1x128xf32> to vector<64x128xf32>
    %420 = arith.mulf %418, %419 : vector<64x128xf32>
    %c127_i32_250 = arith.constant 127 : i32
    %421 = tpu.dynamic_rotate %404 by %c127_i32_250 dim 1 : vector<64x128xf32>, i32 -> vector<64x128xf32>
    %422 = vector.broadcast %331 : vector<1x128xf32> to vector<64x128xf32>
    %423 = arith.mulf %421, %422 : vector<64x128xf32>
    %c121_i32_251 = arith.constant 121 : i32
    %424 = tpu.dynamic_rotate %404 by %c121_i32_251 dim 1 : vector<64x128xf32>, i32 -> vector<64x128xf32>
    %425 = vector.broadcast %333 : vector<1x128xf32> to vector<64x128xf32>
    %426 = arith.mulf %424, %425 : vector<64x128xf32>
    %c120_i32_252 = arith.constant 120 : i32
    %427 = tpu.dynamic_rotate %404 by %c120_i32_252 dim 1 : vector<64x128xf32>, i32 -> vector<64x128xf32>
    %428 = vector.broadcast %335 : vector<1x128xf32> to vector<64x128xf32>
    %429 = arith.mulf %427, %428 : vector<64x128xf32>
    %c119_i32_253 = arith.constant 119 : i32
    %430 = tpu.dynamic_rotate %404 by %c119_i32_253 dim 1 : vector<64x128xf32>, i32 -> vector<64x128xf32>
    %431 = vector.broadcast %337 : vector<1x128xf32> to vector<64x128xf32>
    %432 = arith.mulf %430, %431 : vector<64x128xf32>
    %433 = tpu.concatenate %411, %414, %417, %420, %404, %423, %426, %429, %432 in 0 : vector<64x128xf32>, vector<64x128xf32>, vector<64x128xf32>, vector<64x128xf32>, vector<64x128xf32>, vector<64x128xf32>, vector<64x128xf32>, vector<64x128xf32>, vector<64x128xf32> -> vector<576x128xf32>
    %cst_254 = arith.constant dense<0.000000e+00> : vector<64x128xf32>
    %434 = tpu.matmul %406, %433, %cst_254 {dimension_numbers = #tpu.dot_dimension_numbers<[1], [0], [0], [1], [0, 0, 1, 1], [], []>} : vector<64x576xf32>, vector<576x128xf32>, vector<64x128xf32> -> vector<64x128xf32>
    %435 = vector.broadcast %408 : vector<64x1xf32> to vector<64x128xf32>
    %436 = arith.addf %434, %435 : vector<64x128xf32>
    %cst_255 = arith.constant 0.000000e+00 : f32
    %437 = vector.broadcast %cst_255 : f32 to vector<64x128xf32>
    %438 = arith.maximumf %436, %437 : vector<64x128xf32>
    %c3_256 = arith.constant 3 : index
    %c0_257 = arith.constant 0 : index
    %c0_258 = arith.constant 0 : index
    %439 = vector.load %arg5[%c3_256, %c0_257, %c0_258] : memref<4x64x576xf32, #tpu.memory_space<vmem>>, vector<1x64x576xf32>
    %440 = vector.shape_cast %439 : vector<1x64x576xf32> to vector<64x576xf32>
    %c3_259 = arith.constant 3 : index
    %c0_260 = arith.constant 0 : index
    %c0_261 = arith.constant 0 : index
    %441 = vector.load %arg6[%c3_259, %c0_260, %c0_261] : memref<4x64x1xf32, #tpu.memory_space<vmem>>, vector<1x64x1xf32>
    %442 = vector.shape_cast %441 : vector<1x64x1xf32> to vector<64x1xf32>
    %c9_i32_262 = arith.constant 9 : i32
    %443 = tpu.dynamic_rotate %438 by %c9_i32_262 dim 1 : vector<64x128xf32>, i32 -> vector<64x128xf32>
    %444 = vector.broadcast %323 : vector<1x128xf32> to vector<64x128xf32>
    %445 = arith.mulf %443, %444 : vector<64x128xf32>
    %c8_i32_263 = arith.constant 8 : i32
    %446 = tpu.dynamic_rotate %438 by %c8_i32_263 dim 1 : vector<64x128xf32>, i32 -> vector<64x128xf32>
    %447 = vector.broadcast %325 : vector<1x128xf32> to vector<64x128xf32>
    %448 = arith.mulf %446, %447 : vector<64x128xf32>
    %c7_i32_264 = arith.constant 7 : i32
    %449 = tpu.dynamic_rotate %438 by %c7_i32_264 dim 1 : vector<64x128xf32>, i32 -> vector<64x128xf32>
    %450 = vector.broadcast %327 : vector<1x128xf32> to vector<64x128xf32>
    %451 = arith.mulf %449, %450 : vector<64x128xf32>
    %c1_i32_265 = arith.constant 1 : i32
    %452 = tpu.dynamic_rotate %438 by %c1_i32_265 dim 1 : vector<64x128xf32>, i32 -> vector<64x128xf32>
    %453 = vector.broadcast %329 : vector<1x128xf32> to vector<64x128xf32>
    %454 = arith.mulf %452, %453 : vector<64x128xf32>
    %c127_i32_266 = arith.constant 127 : i32
    %455 = tpu.dynamic_rotate %438 by %c127_i32_266 dim 1 : vector<64x128xf32>, i32 -> vector<64x128xf32>
    %456 = vector.broadcast %331 : vector<1x128xf32> to vector<64x128xf32>
    %457 = arith.mulf %455, %456 : vector<64x128xf32>
    %c121_i32_267 = arith.constant 121 : i32
    %458 = tpu.dynamic_rotate %438 by %c121_i32_267 dim 1 : vector<64x128xf32>, i32 -> vector<64x128xf32>
    %459 = vector.broadcast %333 : vector<1x128xf32> to vector<64x128xf32>
    %460 = arith.mulf %458, %459 : vector<64x128xf32>
    %c120_i32_268 = arith.constant 120 : i32
    %461 = tpu.dynamic_rotate %438 by %c120_i32_268 dim 1 : vector<64x128xf32>, i32 -> vector<64x128xf32>
    %462 = vector.broadcast %335 : vector<1x128xf32> to vector<64x128xf32>
    %463 = arith.mulf %461, %462 : vector<64x128xf32>
    %c119_i32_269 = arith.constant 119 : i32
    %464 = tpu.dynamic_rotate %438 by %c119_i32_269 dim 1 : vector<64x128xf32>, i32 -> vector<64x128xf32>
    %465 = vector.broadcast %337 : vector<1x128xf32> to vector<64x128xf32>
    %466 = arith.mulf %464, %465 : vector<64x128xf32>
    %467 = tpu.concatenate %445, %448, %451, %454, %438, %457, %460, %463, %466 in 0 : vector<64x128xf32>, vector<64x128xf32>, vector<64x128xf32>, vector<64x128xf32>, vector<64x128xf32>, vector<64x128xf32>, vector<64x128xf32>, vector<64x128xf32>, vector<64x128xf32> -> vector<576x128xf32>
    %cst_270 = arith.constant dense<0.000000e+00> : vector<64x128xf32>
    %468 = tpu.matmul %440, %467, %cst_270 {dimension_numbers = #tpu.dot_dimension_numbers<[1], [0], [0], [1], [0, 0, 1, 1], [], []>} : vector<64x576xf32>, vector<576x128xf32>, vector<64x128xf32> -> vector<64x128xf32>
    %469 = vector.broadcast %442 : vector<64x1xf32> to vector<64x128xf32>
    %470 = arith.addf %468, %469 : vector<64x128xf32>
    %471 = arith.addf %404, %470 : vector<64x128xf32>
    %c0_271 = arith.constant 0 : index
    %c0_272 = arith.constant 0 : index
    %472 = vector.load %arg7[%c0_271, %c0_272] : memref<8x64xf32, #tpu.memory_space<vmem>>, vector<8x64xf32>
    %cst_273 = arith.constant dense<0.000000e+00> : vector<8x128xf32>
    %473 = tpu.matmul %472, %471, %cst_273 {dimension_numbers = #tpu.dot_dimension_numbers<[1], [0], [0], [1], [0, 0, 1, 1], [], []>} : vector<8x64xf32>, vector<64x128xf32>, vector<8x128xf32> -> vector<8x128xf32>
    %c0_274 = arith.constant 0 : index
    %c0_275 = arith.constant 0 : index
    %474 = vector.load %arg8[%c0_274, %c0_275] : memref<8x1xf32, #tpu.memory_space<vmem>>, vector<8x1xf32>
    %475 = vector.broadcast %474 : vector<8x1xf32> to vector<8x128xf32>
    %476 = arith.addf %473, %475 : vector<8x128xf32>
    %477 = math.tanh %476 : vector<8x128xf32>
    %c0_276 = arith.constant 0 : index
    %c0_277 = arith.constant 0 : index
    %478 = vector.load %arg9[%c0_276, %c0_277] : memref<8x128xf32, #tpu.memory_space<vmem>>, vector<8x128xf32>
    tpu.vector_store %arg9[%c0_276, %c0_277], %477 {strides = array<i32>} : memref<8x128xf32, #tpu.memory_space<vmem>>, vector<8x128xf32>,
    return
  }
  func.func @transform_0(%arg0: i32) -> (i32, i32) {
    %c0_i32 = arith.constant 0 : i32
    %c0_i32_0 = arith.constant 0 : i32
    return %arg0, %c0_i32 : i32, i32
  }
  func.func @transform_1(%arg0: i32) -> (i32, i32, i32) {
    %c0_i32 = arith.constant 0 : i32
    %c0_i32_0 = arith.constant 0 : i32
    %c0_i32_1 = arith.constant 0 : i32
    %c0_i32_2 = arith.constant 0 : i32
    return %c0_i32, %c0_i32_0, %c0_i32_1 : i32, i32, i32
  }
  func.func @transform_2(%arg0: i32) -> (i32, i32) {
    %c0_i32 = arith.constant 0 : i32
    %c0_i32_0 = arith.constant 0 : i32
    %c0_i32_1 = arith.constant 0 : i32
    return %c0_i32, %c0_i32_0 : i32, i32
  }
  func.func @transform_3(%arg0: i32) -> (i32, i32, i32) {
    %c0_i32 = arith.constant 0 : i32
    %c0_i32_0 = arith.constant 0 : i32
    %c0_i32_1 = arith.constant 0 : i32
    %c0_i32_2 = arith.constant 0 : i32
    return %c0_i32, %c0_i32_0, %c0_i32_1 : i32, i32, i32
  }
  func.func @transform_4(%arg0: i32) -> (i32, i32, i32) {
    %c0_i32 = arith.constant 0 : i32
    %c0_i32_0 = arith.constant 0 : i32
    %c0_i32_1 = arith.constant 0 : i32
    %c0_i32_2 = arith.constant 0 : i32
    return %c0_i32, %c0_i32_0, %c0_i32_1 : i32, i32, i32
  }
  func.func @transform_5(%arg0: i32) -> (i32, i32, i32) {
    %c0_i32 = arith.constant 0 : i32
    %c0_i32_0 = arith.constant 0 : i32
    %c0_i32_1 = arith.constant 0 : i32
    %c0_i32_2 = arith.constant 0 : i32
    return %c0_i32, %c0_i32_0, %c0_i32_1 : i32, i32, i32
  }
  func.func @transform_6(%arg0: i32) -> (i32, i32) {
    %c0_i32 = arith.constant 0 : i32
    %c0_i32_0 = arith.constant 0 : i32
    %c0_i32_1 = arith.constant 0 : i32
    return %c0_i32, %c0_i32_0 : i32, i32
  }
  func.func @transform_7(%arg0: i32) -> (i32, i32) {
    %c0_i32 = arith.constant 0 : i32
    %c0_i32_0 = arith.constant 0 : i32
    %c0_i32_1 = arith.constant 0 : i32
    return %c0_i32, %c0_i32_0 : i32, i32
  }
  func.func @transform_8(%arg0: i32) -> (i32, i32) {
    %c0_i32 = arith.constant 0 : i32
    %c0_i32_0 = arith.constant 0 : i32
    return %c0_i32, %arg0 : i32, i32
  }
}

</mosaic_0001>

<bundles_post_ra>
// kernel: tpu_custom_call.1
= control target key start
LH: loop header
LB: loop body
LE: loop exit
PB: predicated region body
PF: predicated region fallthrough
CT: control target
= control target key end

     0   :  { %13 = vsyncpa [#allocation5], 0  ;;  %s8944_s0 = inlined_call_operand.vmem [shape: f32[2,32], index: 0, kind: input, shape index: {}]   ;;  %s8945_s1 = inlined_call_operand.hbm [shape: f32[32,64,64], index: 1, kind: input, shape index: {}]   ;;  %s8946_s2 = inlined_call_operand.vmem [shape: f32[64,64], index: 2, kind: input, shape index: {}]   ;;  %s8947_s3 = inlined_call_operand.vmem [shape: f32[9,1,128], index: 3, kind: input, shape index: {}]   ;;  %s8948_s4 = inlined_call_operand.hbm [shape: f32[4,64,576], index: 4, kind: input, shape index: {}]   ;;  %s8949_s5 = inlined_call_operand.vmem [shape: f32[4,64,1], index: 5, kind: input, shape index: {}]   ;;  %s8950_s6 = inlined_call_operand.vmem [shape: f32[8,64], index: 6, kind: input, shape index: {}]   ;;  %s8951_s7 = inlined_call_operand.vmem [shape: f32[8,1], index: 7, kind: input, shape index: {}]   ;;  %s8952_s8 = inlined_call_operand.hbm [shape: f32[8,128], index: 8, kind: output, shape index: {}]  }
   0x1   :  { %14 = vsyncpa [#allocation3], 0 }
   0x2   :  { %15 = vsyncpa [#allocation8], 0 }
   0x3   :  { %16 = vsyncpa [#allocation4], 0  ;;  %s23_s29 = sshll.u32 %s8944_s0, 4  ;;  %s24_s29 = int_to_ptr.vmem [resolvable:$true] %s23_s29 }
   0x4   :  { %s5393_s30 = scalar_lea.vmem %s24_s29, 32  ;;  %p5398_p1 = scmp.lt.s32.totalorder %s24_s29, %s24_s29 }
   0x5   :  { %p5394_p0 = scmp.ne.s32.totalorder %s24_s29, %s5393_s30  ;;  %p5399_p2 = scmp.lt.s32.totalorder %s5393_s30, %s5393_s30 }
   0x7   :  { %p5400_p3 = por %p5399_p2, %p5398_p1 }
   0x9   :  { %p5401_p4 = pnand %p5400_p3, %p5394_p0 }
   0xb   :  { %5404 = shalt.err (!%p5401_p4)
}
   0xc   :  { %s5479_s9 = smov [#allocation2]   ;;  %s5480_s10 = smov [#allocation6]  }
   0xd   :  { %26 = dma.vmem_to_smem %s24_s29, 32, %s5479_s9, [#allocation5]  }
   0xe   :  { %s32_s11 = sshll.u32 %s5480_s10, 4  ;;  %s5405_s14 = scalar_lea.hbm %s8945_s1, 32768  ;;  %s33_s11 = int_to_ptr.vmem [resolvable:$true] %s32_s11 }
   0xf   :  { %p5406_p5 = scmp.ne.s32.totalorder %s8945_s1, %s5405_s14  ;;  %p5409_p6 = scmp.lt.u32.totalorder %s5405_s14, %s8945_s1 }
  0x11   :  { %p5411_p7 = pnand %p5409_p6, %p5406_p5 }
  0x13   :  { %5414 = shalt.err (!%p5411_p7)
}
  0x14   :  { %s5415_s18 = scalar_lea.vmem %s33_s11, 32768  ;;  %p5420_p9 = scmp.lt.s32.totalorder %s33_s11, %s33_s11 }
  0x15   :  { %p5416_p8 = scmp.ne.s32.totalorder %s33_s11, %s5415_s18  ;;  %p5421_p10 = scmp.lt.s32.totalorder %s5415_s18, %s5415_s18 }
  0x17   :  { %p5422_p11 = por %p5421_p10, %p5420_p9 }
  0x19   :  { %p5423_p12 = pnand %p5422_p11, %p5416_p8 }
  0x1b   :  { %5426 = shalt.err (!%p5423_p12)
}
  0x1c   :  { %s5481_s19 = smov 128   ;;  %s5482_s20 = smov 8  }
  0x1d   :  { %38 = dma.hbm_to_vmem [thread:$0]  %s8945_s1, 32768, %s33_s11, [#allocation3], %s5481_s19, %s5481_s19, %s5482_s20  }
  0x1e   :  { %s5483_s23 = smov [#allocation7]   ;;  %s5427_s27 = scalar_lea.hbm %s8948_s4, 20480 }
  0x1f   :  { %s48_s24 = sshll.u32 %s5483_s23, 4  ;;  %p5428_p13 = scmp.ne.s32.totalorder %s8948_s4, %s5427_s27  ;;  %s49_s24 = int_to_ptr.vmem [resolvable:$true] %s48_s24 }
  0x20   :  { %p5431_p0 = scmp.lt.u32.totalorder %s5427_s27, %s8948_s4 }
  0x22   :  { %p5433_p1 = pnand %p5431_p0, %p5428_p13 }
  0x24   :  { %5436 = shalt.err (!%p5433_p1)
}
  0x25   :  { %s5437_s10 = scalar_lea.vmem %s49_s24, 20480  ;;  %p5442_p3 = scmp.lt.s32.totalorder %s49_s24, %s49_s24 }
  0x26   :  { %p5438_p2 = scmp.ne.s32.totalorder %s49_s24, %s5437_s10  ;;  %p5443_p4 = scmp.lt.s32.totalorder %s5437_s10, %s5437_s10 }
  0x28   :  { %p5444_p5 = por %p5443_p4, %p5442_p3 }
  0x2a   :  { %p5445_p6 = pnand %p5444_p5, %p5438_p2 }
  0x2c   :  { %5448 = shalt.err (!%p5445_p6)
}
  0x2d   :  { %s5484_s1 = smov 640   ;;  %s5485_s11 = smov 40  }
  0x2e   :  { %54 = dma.hbm_to_vmem [thread:$0]  %s8948_s4, 20480, %s49_s24, [#allocation8], %s5484_s1, %s5484_s1, %s5485_s11  }
  0x2f   :  { %5471 = dma.done.wait [#allocation5], 32  }
  0x30   :  { %5472 = vsyncadd [#allocation5], 4294967264 }
  0x31   :  { %5473 = dma.done.wait [#allocation3], 32768  }
  0x32   :  { %5474 = vsyncadd [#allocation3], 4294934528 }
  0x33   :  { %5475 = dma.done.wait [#allocation8], 20480  }
  0x34   :  { %5476 = vsyncadd [#allocation8], 4294946816 }
  0x35   :  { %70 = sfence }
  0x36   :  { %s4235_s14 = sld [smem:[#allocation2 + $0x80]]  ;;  %s4237_s15 = sld [smem:[#allocation2 + $0x81]]  ;;  %v79_v0 = vld [vmem:[#allocation6] sm:$0xff]  ;;  %vm1550_vm0 = vcmask 523264   ;;  %vm5496_vm1 = vmmov 0  }
  0x37   :  { %s4239_s16 = sld [smem:[#allocation2 + $0x82]]  ;;  %s4241_s0 = sld [smem:[#allocation2 + $0x83]]  ;;  %v124_v1 = vld [vmem:[#allocation6 + $0x40] sm:$0xff] }
  0x38   :  { %s4243_s17 = sld [smem:[#allocation2 + $0x84]]  ;;  %s4245_s18 = sld [smem:[#allocation2 + $0x85]]  ;;  %v5575_v2 = vld [vmem:[%s8946_s2] sm:$0xff] }
  0x39   :  { %v169_v4 = vld [vmem:[#allocation6 + $0x80] sm:$0xff]  ;;  %s4247_s4 = sld [smem:[#allocation2 + $0x86]]  ;;  %s5579_s22 = sld [smem:[#allocation2]] }
  0x3a   :  { %s5584_s23 = sld [smem:[#allocation2 + $0x1]]  ;;  %v214_v9 = vld [vmem:[#allocation6 + $0xc0] sm:$0xff]  ;;  %s5589_s24 = sld [smem:[#allocation2 + $0x87]] }
  0x3b   :  { %s5592_s25 = sld [smem:[#allocation2 + $0x2]]  ;;  %s5595_s26 = sld [smem:[#allocation2 + $0x3]]  ;;  %v259_v13 = vld [vmem:[#allocation6 + $0x100] sm:$0xff] }
  0x3c   :  { %v5577_v3 = vstv %s4235_s14  ;;  %v5582_v6 = vstv %s4237_s15  ;;  %s5601_s27 = sld [smem:[#allocation2 + $0x88]]  ;;  %s5604_s28 = sld [smem:[#allocation2 + $0x4]]  ;;  %v5606_v17 = vld [vmem:[#allocation6 + $0x140] sm:$0xff] }
  0x3d   :  { %9095 = vst [vmem:[#allocation14_spill] sm:$0xff] %v5577_v3  ;;  %v107_v5 = vmul.f32 %v5577_v3, %v79_v0  ;;  %9096 = vst [vmem:[#allocation15_spill] sm:$0xff] %v5582_v6  ;;  %v152_v7 = vmul.f32 %v5582_v6, %v124_v1  ;;  %v5587_v8 = vstv %s4239_s16  ;;  %v5597_v12 = vstv %s4241_s0  ;;  %s5608_s29 = sld [smem:[#allocation2 + $0x5]]  ;;  %s5612_s30 = sld [smem:[#allocation2 + $0x89]]  ;;  %v349_v21 = vld [vmem:[#allocation6 + $0x180] sm:$0xff] }
  0x3e   :  { %9097 = vst [vmem:[#allocation16_spill] sm:$0xff] %v5587_v8  ;;  %v197_v11 = vmul.f32 %v5587_v8, %v169_v4  ;;  %9098 = vst [vmem:[#allocation17_spill] sm:$0xff] %v5597_v12  ;;  %v5599_v14 = vstv %s4243_s17  ;;  %v242_v16 = vmul.f32 %v5597_v12, %v214_v9  ;;  %v5610_v18 = vstv %s4245_s18  ;;  %s5615_s9 = sld [smem:[#allocation2 + $0x6]]  ;;  %s5617_s10 = sld [smem:[#allocation2 + $0x7]]  ;;  %v394_v27 = vld [vmem:[#allocation6 + $0x1c0] sm:$0xff] }
  0x3f   :  { %v115_v10 = vadd.f32 %v107_v5, %v5575_v2  ;;  %9099 = vst [vmem:[#allocation18_spill] sm:$0xff] %v5599_v14  ;;  %9100 = vst [vmem:[#allocation19_spill] sm:$0xff] %v5610_v18  ;;  %v287_v20 = vmul.f32 %v5599_v14, %v259_v13  ;;  %v5619_v22 = vstv %s4247_s4  ;;  %s5621_s1 = sld [smem:[#allocation2 + $0x8]]  ;;  %s5623_s11 = sld [smem:[#allocation2 + $0x8a]]  ;;  %v332_v24 = vmul.f32 %v5610_v18, %v5606_v17  ;;  %v439_v33 = vld [vmem:[#allocation6 + $0x200] sm:$0xff] }
  0x40   :  { %s5627_s12 = sld [smem:[#allocation2 + $0x9]]  ;;  %s5629_s13 = sld [smem:[#allocation2 + $0xa]]  ;;  %v5632_v25 = vstv %s5579_s22  ;;  %v5635_v26 = vstv %s5584_s23  ;;  %v5638_v28 = vstv %s5589_s24  ;;  %v377_v32 = vmul.f32 %v5619_v22, %v349_v21  ;;  %v484_v42 = vld [vmem:[#allocation6 + $0x240] sm:$0xff] }
  0x41   :  { %v160_v15 = vadd.f32 %v152_v7, %v115_v10  ;;  %9101 = vst [vmem:[#allocation20_spill] sm:$0xff] %v5632_v25  ;;  %s5640_s14 = sld [smem:[#allocation2 + $0xb]]  ;;  %v5645_v29 = vstv %s5592_s25  ;;  %v5648_v30 = vstv %s5595_s26  ;;  %s5651_s16 = sld [smem:[#allocation2 + $0xc]]  ;;  %v5661_v35 = vmul.f32 %v5632_v25, %v79_v0  ;;  %v529_v51 = vld [vmem:[#allocation6 + $0x280] sm:$0xff] }
  0x42   :  { %s5642_s15 = sld [smem:[#allocation2 + $0x8b]]  ;;  %s5653_s0 = sld [smem:[#allocation2 + $0x8c]]  ;;  %v5656_v34 = vstv %s5601_s27  ;;  %v5664_v36 = vstv %s5604_s28  ;;  %v422_v38 = vmul.f32 %v5638_v28, %v394_v27  ;;  %v5672_v39 = vmul.f32 %v5635_v26, %v124_v1  ;;  %v574_v59 = vld [vmem:[#allocation6 + $0x2c0] sm:$0xff] }
  0x43   :  { %v205_v19 = vadd.f32 %v197_v11, %v160_v15  ;;  %s5658_s17 = sld [smem:[#allocation2 + $0xd]]  ;;  %s5669_s19 = sld [smem:[#allocation2 + $0xe]]  ;;  %v5675_v40 = vmul.f32 %v5645_v29, %v169_v4  ;;  %v5678_v41 = vmul.f32 %v5648_v30, %v214_v9  ;;  %v5681_v43 = vstv %s5612_s30  ;;  %v619_v0 = vld [vmem:[#allocation6 + $0x300] sm:$0xff] }
  0x44   :  { %s5667_s18 = sld [smem:[#allocation2 + $0x8d]]  ;;  %9102 = vst [vmem:[#allocation21_spill] sm:$0xff] %v5672_v39  ;;  %9105 = vst [vmem:[#allocation24_spill] sm:$0xff] %v5681_v43  ;;  %s5683_s21 = sld [smem:[#allocation2 + $0x8e]]  ;;  %v5688_v44 = vstv %s5608_s29  ;;  %v5691_v45 = vstv %s5615_s9  ;;  %v467_v47 = vmul.f32 %v5656_v34, %v439_v33  ;;  %v5699_v48 = vmul.f32 %v5664_v36, %v259_v13  ;;  %v664_v15 = vld [vmem:[#allocation6 + $0x340] sm:$0xff] }
  0x45   :  { %v250_v23 = vadd.f32 %v242_v16, %v205_v19  ;;  %9103 = vst [vmem:[#allocation22_spill] sm:$0xff] %v5675_v40  ;;  %9104 = vst [vmem:[#allocation23_spill] sm:$0xff] %v5678_v41  ;;  %s5685_s4 = sld [smem:[#allocation2 + $0xf]]  ;;  %s5696_s23 = sld [smem:[#allocation2 + $0x10]]  ;;  %v5702_v49 = vstv %s5617_s10  ;;  %v5705_v50 = vstv %s5621_s1  ;;  %v5708_v52 = vstv %s5623_s11  ;;  %v1114_v39 = vld [vmem:[#allocation6 + $0x5c0] sm:$0xff] }
  0x46   :  { %9106 = vst [vmem:[#allocation25_spill] sm:$0xff] %v5691_v45  ;;  %s5694_s22 = sld [smem:[#allocation2 + $0x8f]]  ;;  %9107 = vst [vmem:[#allocation26_spill] sm:$0xff] %v5699_v48  ;;  %s5710_s24 = sld [smem:[#allocation2 + $0x90]]  ;;  %v5715_v54 = vstv %s5627_s12  ;;  %v512_v55 = vmul.f32 %v5681_v43, %v484_v42  ;;  %v5719_v56 = vstv %s5629_s13  ;;  %v5727_v57 = vmul.f32 %v5688_v44, %v5606_v17 }
  0x47   :  { %v295_v31 = vadd.f32 %v287_v20, %v250_v23  ;;  %9108 = vst [vmem:[#allocation27_spill] sm:$0xff] %v5702_v49  ;;  %9109 = vst [vmem:[#allocation28_spill] sm:$0xff] %v5705_v50  ;;  %s5712_s25 = sld [smem:[#allocation2 + $0x11]]  ;;  %s5723_s27 = sld [smem:[#allocation2 + $0x12]]  ;;  %v5730_v58 = vmul.f32 %v5691_v45, %v349_v21  ;;  %v5733_v60 = vstv %s5640_s14  ;;  %v557_v63 = vmul.f32 %v5708_v52, %v529_v51 }
  0x48   :  { %9110 = vst [vmem:[#allocation29_spill] sm:$0xff] %v5708_v52  ;;  %9111 = vst [vmem:[#allocation30_spill] sm:$0xff] %v5715_v54  ;;  %s5721_s26 = sld [smem:[#allocation2 + $0x91]]  ;;  %v5736_v61 = vstv %s5642_s15  ;;  %v5740_v1 = vstv %s5651_s16  ;;  %v5743_v4 = vstv %s5653_s0  ;;  %s5745_s28 = sld [smem:[#allocation2 + $0x92]]  ;;  %v5750_v5 = vmul.f32 %v5702_v49, %v394_v27  ;;  %v709_v27 = vld [vmem:[#allocation6 + $0x380] sm:$0xff] }
  0x49   :  { %v340_v37 = vadd.f32 %v332_v24, %v295_v31  ;;  %9112 = vst [vmem:[#allocation31_spill] sm:$0xff] %v5719_v56  ;;  %9113 = vst [vmem:[#allocation32_spill] sm:$0xff] %v5727_v57  ;;  %s5747_s29 = sld [smem:[#allocation2 + $0x13]]  ;;  %v5753_v7 = vmul.f32 %v5705_v50, %v439_v33  ;;  %v5756_v9 = vmul.f32 %v5715_v54, %v484_v42  ;;  %s5763_s9 = sld [smem:[#allocation2 + $0x14]]  ;;  %v5767_v16 = vstv %s5658_s17 }
  0x4a   :  { %9114 = vst [vmem:[#allocation33_spill] sm:$0xff] %v5730_v58  ;;  %9115 = vst [vmem:[#allocation34_spill] sm:$0xff] %v5733_v60  ;;  %v5759_v10 = vmul.f32 %v5719_v56, %v529_v51  ;;  %s5761_s30 = sld [smem:[#allocation2 + $0x93]]  ;;  %v602_v13 = vmul.f32 %v5736_v61, %v574_v59  ;;  %v5770_v17 = vstv %s5667_s18  ;;  %s5772_s10 = sld [smem:[#allocation2 + $0x94]]  ;;  %v5777_v19 = vmul.f32 %v5733_v60, %v574_v59  ;;  %v1069_v58 = vld [vmem:[#allocation6 + $0x580] sm:$0xff] }
  0x4b   :  { %v385_v46 = vadd.f32 %v377_v32, %v340_v37  ;;  %9116 = vst [vmem:[#allocation35_spill] sm:$0xff] %v5736_v61  ;;  %9117 = vst [vmem:[#allocation36_spill] sm:$0xff] %v5740_v1  ;;  %s5774_s1 = sld [smem:[#allocation2 + $0x15]]  ;;  %v5780_v20 = vmul.f32 %v5740_v1, %v619_v0  ;;  %v647_v21 = vmul.f32 %v5743_v4, %v619_v0  ;;  %v5784_v23 = vstv %s5669_s19  ;;  %s5788_s12 = sld [smem:[#allocation2 + $0x16]]  ;;  %v754_v32 = vld [vmem:[#allocation6 + $0x3c0] sm:$0xff] }
  0x4c   :  { %9118 = vst [vmem:[#allocation37_spill] sm:$0xff] %v5743_v4  ;;  %9119 = vst [vmem:[#allocation38_spill] sm:$0xff] %v5750_v5  ;;  %s5786_s11 = sld [smem:[#allocation2 + $0x95]]  ;;  %v5791_v31 = vstv %s5683_s21  ;;  %v5794_v33 = vstv %s5685_s4  ;;  %v5797_v37 = vstv %s5694_s22  ;;  %s5799_s13 = sld [smem:[#allocation2 + $0x96]]  ;;  %v692_v42 = vmul.f32 %v5770_v17, %v664_v15  ;;  %v1024_v5 = vld [vmem:[#allocation6 + $0x540] sm:$0xff] }
  0x4d   :  { %v430_v53 = vadd.f32 %v422_v38, %v385_v46  ;;  %9120 = vst [vmem:[#allocation39_spill] sm:$0xff] %v5753_v7  ;;  %9121 = vst [vmem:[#allocation40_spill] sm:$0xff] %v5756_v9  ;;  %s5801_s14 = sld [smem:[#allocation2 + $0x17]]  ;;  %v5804_v38 = vmul.f32 %v5767_v16, %v664_v15  ;;  %v5808_v46 = vstv %s5696_s23  ;;  %v5816_v59 = vstv %s5712_s25  ;;  %s5824_s16 = sld [smem:[#allocation2 + $0x18]]  ;;  %v979_v9 = vld [vmem:[#allocation6 + $0x500] sm:$0xff] }
  0x4e   :  { %9122 = vst [vmem:[#allocation41_spill] sm:$0xff] %v5759_v10  ;;  %9123 = vst [vmem:[#allocation42_spill] sm:$0xff] %v5767_v16  ;;  %s5813_s15 = sld [smem:[#allocation2 + $0x97]]  ;;  %s5826_s0 = sld [smem:[#allocation2 + $0x98]]  ;;  %v5829_v0 = vmul.f32 %v5784_v23, %v709_v27  ;;  %v782_v15 = vmul.f32 %v5797_v37, %v754_v32 }
  0x4f   :  { %v475_v62 = vadd.f32 %v467_v47, %v430_v53  ;;  %9124 = vst [vmem:[#allocation43_spill] sm:$0xff] %v5770_v17  ;;  %9125 = vst [vmem:[#allocation44_spill] sm:$0xff] %v5777_v19  ;;  %v5811_v47 = vstv %s5710_s24  ;;  %v799_v53 = vld [vmem:[#allocation6 + $0x400] sm:$0xff]  ;;  %v5840_v19 = vstv %s5745_s28  ;;  %v5843_v10 = vstv %s5747_s29  ;;  %s5845_s17 = sld [smem:[#allocation2 + $0x19]]  ;;  %s5857_s19 = sld [smem:[#allocation2 + $0x1a]] }
  0x50   :  { %9126 = vst [vmem:[#allocation45_spill] sm:$0xff] %v5780_v20  ;;  %9127 = vst [vmem:[#allocation46_spill] sm:$0xff] %v5784_v23  ;;  %v889_v20 = vld [vmem:[#allocation6 + $0x480] sm:$0xff]  ;;  %s5847_s18 = sld [smem:[#allocation2 + $0x99]]  ;;  %v5866_v7 = vstv %s5772_s10  ;;  %s5868_s21 = sld [smem:[#allocation2 + $0x9a]] }
  0x51   :  { %v520_v11 = vadd.f32 %v512_v55, %v475_v62  ;;  %9128 = vst [vmem:[#allocation47_spill] sm:$0xff] %v5791_v31  ;;  %9129 = vst [vmem:[#allocation48_spill] sm:$0xff] %v5794_v33  ;;  %v844_v55 = vld [vmem:[#allocation6 + $0x440] sm:$0xff]  ;;  %v5819_v62 = vstv %s5721_s26  ;;  %s5870_s4 = sld [smem:[#allocation2 + $0x1b]]  ;;  %v5885_v57 = vstv %s5788_s12  ;;  %v5898_v40 = vmul.f32 %v5866_v7, %v979_v9  ;;  %s5903_s23 = sld [smem:[#allocation2 + $0x1c]] }
  0x52   :  { %9130 = vst [vmem:[#allocation49_spill] sm:$0xff] %v5797_v37  ;;  %9131 = vst [vmem:[#allocation50_spill] sm:$0xff] %v5804_v38  ;;  %v5837_v38 = vmul.f32 %v5808_v46, %v799_v53  ;;  %s5882_s22 = sld [smem:[#allocation2 + $0x9b]]  ;;  %v5888_v48 = vstv %s5799_s13  ;;  %s5905_s24 = sld [smem:[#allocation2 + $0x9c]] }
  0x53   :  { %v565_v24 = vadd.f32 %v557_v63, %v520_v11  ;;  %9132 = vst [vmem:[#allocation51_spill] sm:$0xff] %v5808_v46  ;;  %9133 = vst [vmem:[#allocation52_spill] sm:$0xff] %v5811_v47  ;;  %v5822_v63 = vstv %s5723_s27  ;;  %v737_v11 = vmul.f32 %v5791_v31, %v709_v27  ;;  %v827_v27 = vmul.f32 %v5811_v47, %v799_v53  ;;  %s5916_s25 = sld [smem:[#allocation2 + $0x1d]]  ;;  %s5932_s27 = sld [smem:[#allocation2 + $0x1e]]  ;;  %v351_v46 = vld [vmem:[#allocation6 + $0x190] sm:$0xff] }
  0x54   :  { %9134 = vst [vmem:[#allocation53_spill] sm:$0xff] %v5816_v59  ;;  %9135 = vst [vmem:[#allocation54_spill] sm:$0xff] %v5819_v62  ;;  %v5863_v53 = vstv %s5763_s9  ;;  %v5891_v41 = vstv %s5801_s14  ;;  %s5918_s26 = sld [smem:[#allocation2 + $0x9d]]  ;;  %s5934_s28 = sld [smem:[#allocation2 + $0x9e]] }
  0x55   :  { %v610_v51 = vadd.f32 %v602_v13, %v565_v24  ;;  %9136 = vst [vmem:[#allocation55_spill] sm:$0xff] %v5822_v63  ;;  %9137 = vst [vmem:[#allocation56_spill] sm:$0xff] %v5829_v0  ;;  %v5833_v13 = vmul.f32 %v5794_v33, %v754_v32  ;;  %v872_v32 = vmul.f32 %v5819_v62, %v844_v55  ;;  %v5860_v0 = vstv %s5761_s30  ;;  %s5947_s29 = sld [smem:[#allocation2 + $0x1f]]  ;;  %v306_v62 = vld [vmem:[#allocation6 + $0x150] sm:$0xff]  ;;  %s5486_s12 = smov 64  }
  0x56   :  { %9139 = vst [vmem:[#allocation58_spill] sm:$0xff] %v5837_v38  ;;  %9140 = vst [vmem:[#allocation59_spill] sm:$0xff] %v5840_v19  ;;  %s5960_s30 = sld [smem:[#allocation2 + $0x9f]]  ;;  %s5493_s9 = smov 119  }
  0x57   :  { %9138 = vst [vmem:[#allocation57_spill] sm:$0xff] %v5833_v13  ;;  %v655_v24 = vadd.f32 %v647_v21, %v610_v51  ;;  %9141 = vst [vmem:[#allocation60_spill] sm:$0xff] %v5843_v10  ;;  %v5851_v21 = vmul.f32 %v5816_v59, %v844_v55  ;;  %v5855_v51 = vmul.f32 %v5822_v63, %v889_v20  ;;  %v934_v13 = vld [vmem:[#allocation6 + $0x4c0] sm:$0xff] }
  0x58   :  { %9144 = vst [vmem:[#allocation63_spill] sm:$0xff] %v5860_v0  ;;  %9145 = vst [vmem:[#allocation64_spill] sm:$0xff] %v5863_v53  ;;  %v917_v55 = vmul.f32 %v5840_v19, %v889_v20  ;;  %v962_v20 = vmul.f32 %v5860_v0, %v934_v13  ;;  %v1159_v19 = vld [vmem:[#allocation6 + $0x600] sm:$0xff] }
  0x59   :  { %9142 = vst [vmem:[#allocation61_spill] sm:$0xff] %v5851_v21  ;;  %9143 = vst [vmem:[#allocation62_spill] sm:$0xff] %v5855_v51  ;;  %v700_v38 = vadd.f32 %v692_v42, %v655_v24  ;;  %v5874_v42 = vmul.f32 %v5843_v10, %v934_v13  ;;  %v5877_v24 = vstv %s5774_s1  ;;  %v5880_v51 = vstv %s5786_s11  ;;  %v1294_v63 = vld [vmem:[#allocation6 + $0x6c0] sm:$0xff] }
  0x5a   :  { %9146 = vst [vmem:[#allocation65_spill] sm:$0xff] %v5866_v7  ;;  %9148 = vst [vmem:[#allocation67_spill] sm:$0xff] %v5877_v24  ;;  %v5908_v10 = vmul.f32 %v5877_v24, %v1024_v5  ;;  %v5911_v13 = vstv %s5824_s16  ;;  %v5936_v24 = vld [vmem:[#allocation6 + $0x10] sm:$0xff] }
  0x5b   :  { %9147 = vst [vmem:[#allocation66_spill] sm:$0xff] %v5874_v42  ;;  %9149 = vst [vmem:[#allocation68_spill] sm:$0xff] %v5880_v51  ;;  %v745_v21 = vadd.f32 %v737_v11, %v700_v38  ;;  %v5895_v42 = vmul.f32 %v5863_v53, %v979_v9  ;;  %v5901_v38 = vstv %s5813_s15  ;;  %v5921_v9 = vmul.f32 %v5880_v51, %v1024_v5 }
  0x5c   :  { %9150 = vst [vmem:[#allocation69_spill] sm:$0xff] %v5885_v57  ;;  %9151 = vst [vmem:[#allocation70_spill] sm:$0xff] %v5888_v48  ;;  %v5939_v5 = vmul.f32 %v5901_v38, %v1114_v39  ;;  %v6025_v59 = vstv %s5947_s29  ;;  %v6038_v47 = vstv %s5960_s30  ;;  %s5491_s29 = smov 120   ;;  %s5492_s30 = smov 127  }
  0x5d   :  { %9152 = vst [vmem:[#allocation71_spill] sm:$0xff] %v5891_v41  ;;  %9153 = vst [vmem:[#allocation72_spill] sm:$0xff] %v5895_v42  ;;  %v790_v11 = vadd.f32 %v782_v15, %v745_v21  ;;  %v5914_v42 = vstv %s5826_s0  ;;  %v5924_v15 = vmul.f32 %v5885_v57, %v1069_v58  ;;  %v5927_v21 = vmul.f32 %v5888_v48, %v1069_v58  ;;  %v1204_v57 = vld [vmem:[#allocation6 + $0x640] sm:$0xff]  ;;  %v171_v48 = vld [vmem:[#allocation6 + $0x90] sm:$0xff] }
  0x5e   :  { %9154 = vst [vmem:[#allocation73_spill] sm:$0xff] %v5901_v38  ;;  %9155 = vst [vmem:[#allocation74_spill] sm:$0xff] %v5908_v10  ;;  %v5930_v10 = vmul.f32 %v5891_v41, %v1114_v39  ;;  %v5945_v58 = vstv %s5847_s18  ;;  %v5952_v41 = vmul.f32 %v5911_v13, %v1159_v19  ;;  %v5964_v39 = vadd.f32 %v5661_v35, %v5575_v2  ;;  %v5969_v38 = vld [vmem:[%s8946_s2 + $0x10] sm:$0xff] }
  0x5f   :  { %9156 = vst [vmem:[#allocation75_spill] sm:$0xff] %v5911_v13  ;;  %9157 = vst [vmem:[#allocation76_spill] sm:$0xff] %v5914_v42  ;;  %v835_v7 = vadd.f32 %v827_v27, %v790_v11  ;;  %v5955_v27 = vmul.f32 %v5914_v42, %v1159_v19  ;;  %v5958_v11 = vstv %s5857_s19  ;;  %v1249_v13 = vld [vmem:[#allocation6 + $0x680] sm:$0xff]  ;;  %v5975_v19 = vstv %s5870_s4 }
  0x60   :  { %9158 = vst [vmem:[#allocation77_spill] sm:$0xff] %v5924_v15  ;;  %9159 = vst [vmem:[#allocation78_spill] sm:$0xff] %v5930_v10  ;;  %v5942_v15 = vstv %s5845_s17  ;;  %v5949_v10 = vld [vmem:[#allocation6 + $0x50] sm:$0xff]  ;;  %v109_v42 = vmul.f32 %v5577_v3, %v5936_v24  ;;  %v5983_v35 = vmul.f32 %v5945_v58, %v1204_v57  ;;  %v5991_v0 = vmul.f32 %v5958_v11, %v1249_v13 }
  0x61   :  { %9160 = vst [vmem:[#allocation79_spill] sm:$0xff] %v5942_v15  ;;  %9161 = vst [vmem:[#allocation80_spill] sm:$0xff] %v5945_v58  ;;  %v880_v51 = vadd.f32 %v872_v32, %v835_v7  ;;  %v5980_v2 = vmul.f32 %v5942_v15, %v1204_v57  ;;  %v154_v7 = vmul.f32 %v5582_v6, %v5949_v10  ;;  %v216_v32 = vld [vmem:[#allocation6 + $0xd0] sm:$0xff]  ;;  %v6002_v6 = vstv %s5903_s23  ;;  %s5489_s23 = smov 121  }
  0x62   :  { %9162 = vst [vmem:[#allocation81_spill] sm:$0xff] %v5952_v41  ;;  %9163 = vst [vmem:[#allocation82_spill] sm:$0xff] %v5958_v11  ;;  %v5972_v41 = vstv %s5868_s21  ;;  %v117_v15 = vadd.f32 %v109_v42, %v5969_v38  ;;  %v199_v57 = vmul.f32 %v5587_v8, %v171_v48  ;;  %v5999_v58 = vmul.f32 %v5975_v19, %v1294_v63  ;;  %v1339_v11 = vld [vmem:[#allocation6 + $0x700] sm:$0xff] }
  0x63   :  { %9164 = vst [vmem:[#allocation83_spill] sm:$0xff] %v5964_v39  ;;  %9165 = vst [vmem:[#allocation84_spill] sm:$0xff] %v5969_v38  ;;  %v5986_v39 = vstv %s5882_s22  ;;  %v925_v53 = vadd.f32 %v917_v55, %v880_v51  ;;  %v6005_v51 = vstv %s5905_s24  ;;  %v261_v55 = vld [vmem:[#allocation6 + $0x110] sm:$0xff]  ;;  %v6008_v3 = vstv %s5916_s25  ;;  %s5488_s22 = smov 9   ;;  %s5490_s24 = smov 1  }
  0x64   :  { %9166 = vst [vmem:[#allocation85_spill] sm:$0xff] %v5972_v41  ;;  %9167 = vst [vmem:[#allocation86_spill] sm:$0xff] %v5975_v19  ;;  %v162_v42 = vadd.f32 %v154_v7, %v117_v15  ;;  %v244_v38 = vmul.f32 %v5597_v12, %v216_v32  ;;  %v6015_v19 = vstv %s5918_s26  ;;  %v6021_v8 = vstv %s5934_s28 }
  0x65   :  { %9168 = vst [vmem:[#allocation87_spill] sm:$0xff] %v5980_v2  ;;  %9169 = vst [vmem:[#allocation88_spill] sm:$0xff] %v5986_v39  ;;  %v5996_v2 = vmul.f32 %v5972_v41, %v1249_v13  ;;  %v6012_v13 = vmul.f32 %v5986_v39, %v1294_v63  ;;  %v1384_v41 = vld [vmem:[#allocation6 + $0x740] sm:$0xff]  ;;  %v289_v7 = vmul.f32 %v5599_v14, %v261_v55 }
  0x66   :  { %9170 = vst [vmem:[#allocation89_spill] sm:$0xff] %v5991_v0  ;;  %9171 = vst [vmem:[#allocation90_spill] sm:$0xff] %v5999_v58  ;;  %v970_v0 = vadd.f32 %v962_v20, %v925_v53  ;;  %v6018_v58 = vstv %s5932_s27  ;;  %v1429_v20 = vld [vmem:[#allocation6 + $0x780] sm:$0xff]  ;;  %v207_v15 = vadd.f32 %v199_v57, %v162_v42  ;;  %v6029_v12 = vmul.f32 %v6002_v6, %v1339_v11 }
  0x67   :  { %9172 = vst [vmem:[#allocation91_spill] sm:$0xff] %v6002_v6  ;;  %9173 = vst [vmem:[#allocation92_spill] sm:$0xff] %v6008_v3  ;;  %v6032_v63 = vmul.f32 %v6005_v51, %v1339_v11  ;;  %v6035_v39 = vmul.f32 %v6008_v3, %v1384_v41  ;;  %v334_v42 = vmul.f32 %v5610_v18, %v306_v62 }
  0x68   :  { %9174 = vst [vmem:[#allocation93_spill] sm:$0xff] %v6012_v13  ;;  %9175 = vst [vmem:[#allocation94_spill] sm:$0xff] %v6018_v58  ;;  %v1015_v53 = vadd.f32 %v5898_v40, %v970_v0  ;;  %v1474_v13 = vld [vmem:[#allocation6 + $0x7c0] sm:$0xff]  ;;  %v6042_v0 = vmul.f32 %v6015_v19, %v1384_v41  ;;  %v252_v57 = vadd.f32 %v244_v38, %v207_v15 }
  0x69   :  { %9176 = vst [vmem:[#allocation95_spill] sm:$0xff] %v6025_v59  ;;  %9177 = vst [vmem:[#allocation96_spill] sm:$0xff] %v6029_v12  ;;  %v6046_v12 = vmul.f32 %v6018_v58, %v1429_v20  ;;  %v6049_v11 = vmul.f32 %v6021_v8, %v1429_v20  ;;  %v6056_v3 = vmul.f32 %v5632_v25, %v5936_v24 }
  0x6a   :  { %9178 = vst [vmem:[#allocation97_spill] sm:$0xff] %v6035_v39  ;;  %v1060_v40 = vadd.f32 %v5921_v9, %v1015_v53  ;;  %v6052_v39 = vmul.f32 %v6025_v59, %v1474_v13  ;;  %v396_v9 = vld [vmem:[#allocation6 + $0x1d0] sm:$0xff]  ;;  %v6060_v38 = vmul.f32 %v6038_v47, %v1474_v13  ;;  %v297_v53 = vadd.f32 %v289_v7, %v252_v57 }
  0x6b   :  { %9179 = vst [vmem:[#allocation98_spill] sm:$0xff] %v6046_v12  ;;  %v379_v15 = vmul.f32 %v5619_v22, %v351_v46  ;;  %v441_v12 = vld [vmem:[#allocation6 + $0x210] sm:$0xff]  ;;  %v6065_v20 = vmul.f32 %v5635_v26, %v5949_v10  ;;  %v6071_v24 = vmul.f32 %v5648_v30, %v216_v32  ;;  %v6074_v59 = vmul.f32 %v5664_v36, %v261_v55 }
  0x6c   :  { %9180 = vst [vmem:[#allocation99_spill] sm:$0xff] %v6052_v39  ;;  %v1105_v41 = vadd.f32 %v5927_v21, %v1060_v40  ;;  %v6068_v39 = vmul.f32 %v5645_v29, %v171_v48  ;;  %v486_v21 = vld [vmem:[#allocation6 + $0x250] sm:$0xff]  ;;  %v6078_v7 = vmul.f32 %v5688_v44, %v306_v62  ;;  %v342_v40 = vadd.f32 %v334_v42, %v297_v53 }
  0x6d   :  { %9181 = vst [vmem:[#allocation100_spill] sm:$0xff] %v6065_v20  ;;  %9183 = vst [vmem:[#allocation102_spill] sm:$0xff] %v6071_v24  ;;  %v424_v57 = vmul.f32 %v5638_v28, %v396_v9  ;;  %v531_v10 = vld [vmem:[#allocation6 + $0x290] sm:$0xff]  ;;  %v6082_v48 = vmul.f32 %v5691_v45, %v351_v46  ;;  %v6085_v32 = vmul.f32 %v5702_v49, %v396_v9 }
  0x6e   :  { %9182 = vst [vmem:[#allocation101_spill] sm:$0xff] %v6068_v39  ;;  %9184 = vst [vmem:[#allocation103_spill] sm:$0xff] %v6074_v59  ;;  %v1150_v13 = vadd.f32 %v5939_v5, %v1105_v41  ;;  %v576_v20 = vld [vmem:[#allocation6 + $0x2d0] sm:$0xff]  ;;  %v6088_v55 = vmul.f32 %v5705_v50, %v441_v12  ;;  %v469_v59 = vmul.f32 %v5656_v34, %v441_v12 }
  0x6f   :  { %9185 = vst [vmem:[#allocation104_spill] sm:$0xff] %v6078_v7  ;;  %9186 = vst [vmem:[#allocation105_spill] sm:$0xff] %v6082_v48  ;;  %v621_v5 = vld [vmem:[#allocation6 + $0x310] sm:$0xff]  ;;  %v387_v41 = vadd.f32 %v379_v15, %v342_v40  ;;  %v6093_v42 = vmul.f32 %v5715_v54, %v486_v21  ;;  %v514_v53 = vmul.f32 %v5681_v43, %v486_v21 }
  0x70   :  { %9187 = vst [vmem:[#allocation106_spill] sm:$0xff] %v6085_v32  ;;  %9188 = vst [vmem:[#allocation107_spill] sm:$0xff] %v6088_v55  ;;  %v1195_v62 = vadd.f32 %v5955_v27, %v1150_v13  ;;  %v666_v7 = vld [vmem:[#allocation6 + $0x350] sm:$0xff]  ;;  %v6097_v48 = vmul.f32 %v5719_v56, %v531_v10  ;;  %v559_v9 = vmul.f32 %v5708_v52, %v531_v10 }
  0x71   :  { %9189 = vst [vmem:[#allocation108_spill] sm:$0xff] %v6093_v42  ;;  %v711_v46 = vld [vmem:[#allocation6 + $0x390] sm:$0xff]  ;;  %v6101_v55 = vmul.f32 %v5733_v60, %v576_v20  ;;  %v604_v12 = vmul.f32 %v5736_v61, %v576_v20  ;;  %v432_v15 = vadd.f32 %v424_v57, %v387_v41  ;;  %v6106_v13 = vmul.f32 %v5740_v1, %v621_v5 }
  0x72   :  { %9190 = vst [vmem:[#allocation109_spill] sm:$0xff] %v6097_v48  ;;  %v756_v32 = vld [vmem:[#allocation6 + $0x3d0] sm:$0xff]  ;;  %v1240_v27 = vadd.f32 %v5983_v35, %v1195_v62  ;;  %v649_v21 = vmul.f32 %v5743_v4, %v621_v5  ;;  %v6110_v48 = vmul.f32 %v5767_v16, %v666_v7  ;;  %v694_v10 = vmul.f32 %v5770_v17, %v666_v7  ;;  %v9198_v7 = vld [vmem:[#allocation52_spill] sm:$0xff] }
  0x73   :  { %9191 = vst [vmem:[#allocation110_spill] sm:$0xff] %v6101_v55  ;;  %9192 = vst [vmem:[#allocation111_spill] sm:$0xff] %v6106_v13  ;;  %v801_v40 = vld [vmem:[#allocation6 + $0x410] sm:$0xff]  ;;  %v6114_v55 = vmul.f32 %v5784_v23, %v711_v46  ;;  %v6117_v20 = vmul.f32 %v5791_v31, %v711_v46  ;;  %v477_v62 = vadd.f32 %v469_v59, %v432_v15  ;;  %v80_v13 = vld [vmem:[#allocation6 + $0x8] sm:$0xff] }
  0x74   :  { %v846_v42 = vld [vmem:[#allocation6 + $0x450] sm:$0xff]  ;;  %9193 = vst [vmem:[#allocation112_spill] sm:$0xff] %v6110_v48  ;;  %v1285_v57 = vadd.f32 %v5996_v2, %v1240_v27  ;;  %v6121_v41 = vmul.f32 %v5794_v33, %v756_v32  ;;  %v6124_v5 = vmul.f32 %v5797_v37, %v756_v32  ;;  %v6130_v39 = vmul.f32 %v9198_v7, %v801_v40  ;;  %v9201_v31 = vld [vmem:[#allocation54_spill] sm:$0xff]  ;;  %v9202_v27 = vld [vmem:[#allocation93_spill] sm:$0xff] }
  0x75   :  { %9194 = vst [vmem:[#allocation113_spill] sm:$0xff] %v6114_v55  ;;  %v891_v35 = vld [vmem:[#allocation6 + $0x490] sm:$0xff]  ;;  %v9199_v55 = vld [vmem:[#allocation53_spill] sm:$0xff]  ;;  %v6136_v23 = vmul.f32 %v9201_v31, %v846_v42  ;;  %v6138_v2 = vld [vmem:[#allocation6 + $0x48] sm:$0xff]  ;;  %v522_v32 = vadd.f32 %v514_v53, %v477_v62  ;;  %v90_v53 = vmul.f32 %v5632_v25, %v80_v13 }
  0x76   :  { %9195 = vst [vmem:[#allocation114_spill] sm:$0xff] %v6121_v41  ;;  %v9196_v48 = vld [vmem:[#allocation51_spill] sm:$0xff]  ;;  %v6133_v46 = vmul.f32 %v9199_v55, %v846_v42  ;;  %v1330_v15 = vadd.f32 %v9202_v27, %v1285_v57  ;;  %v9206_v42 = vld [vmem:[#allocation60_spill] sm:$0xff]  ;;  %v9210_v62 = vld [vmem:[#allocation14_spill] sm:$0xff] }
  0x77   :  { %v6127_v24 = vmul.f32 %v9196_v48, %v801_v40  ;;  %v936_v59 = vld [vmem:[#allocation6 + $0x4d0] sm:$0xff]  ;;  %v72_v40 = vld [vmem:[%s8946_s2 + $0x8] sm:$0xff]  ;;  %v9208_v7 = vld [vmem:[#allocation84_spill] sm:$0xff]  ;;  %v108_v27 = vmul.f32 %v9210_v62, %v80_v13 }
  0x78   :  { %9200 = vst [vmem:[#allocation116_spill] sm:$0xff] %v6133_v46  ;;  %v9203_v41 = vld [vmem:[#allocation55_spill] sm:$0xff]  ;;  %v6150_v46 = vld [vmem:[#allocation6 + $0x88] sm:$0xff]  ;;  %v6153_v31 = vmul.f32 %v9206_v42, %v936_v59  ;;  %v6157_v57 = vadd.f32 %v6056_v3, %v9208_v7  ;;  %v9213_v16 = vld [vmem:[#allocation64_spill] sm:$0xff]  ;;  %v6172_v7 = vadd.f32 %v90_v53, %v72_v40 }
  0x79   :  { %9197 = vst [vmem:[#allocation115_spill] sm:$0xff] %v6127_v24  ;;  %v6142_v37 = vmul.f32 %v9203_v41, %v891_v35  ;;  %v9205_v48 = vld [vmem:[#allocation59_spill] sm:$0xff]  ;;  %v9216_v13 = vld [vmem:[#allocation16_spill] sm:$0xff]  ;;  %v260_v25 = vld [vmem:[#allocation6 + $0x108] sm:$0xff] }
  0x7a   :  { %v6145_v24 = vmul.f32 %v9205_v48, %v891_v35  ;;  %9207 = vst [vmem:[#allocation117_spill] sm:$0xff] %v6153_v31  ;;  %v981_v55 = vld [vmem:[#allocation6 + $0x510] sm:$0xff]  ;;  %9209 = vst [vmem:[#allocation84_spill] sm:$0xff] %v6157_v57  ;;  %v1375_v35 = vadd.f32 %v6032_v63, %v1330_v15  ;;  %v6167_v31 = vld [vmem:[#allocation6 + $0xc8] sm:$0xff]  ;;  %v116_v57 = vadd.f32 %v108_v27, %v72_v40 }
  0x7b   :  { %9204 = vst [vmem:[#allocation93_spill] sm:$0xff] %v6142_v37  ;;  %v567_v37 = vadd.f32 %v559_v9, %v522_v32  ;;  %v9211_v48 = vld [vmem:[#allocation63_spill] sm:$0xff]  ;;  %v6170_v4 = vmul.f32 %v9213_v16, %v981_v55  ;;  %9215 = vst [vmem:[#allocation119_spill] sm:$0xff] %v6172_v7  ;;  %v198_v63 = vmul.f32 %v9216_v13, %v6150_v46  ;;  %v9217_v15 = vld [vmem:[#allocation65_spill] sm:$0xff] }
  0x7c   :  { %v6163_v41 = vmul.f32 %v9211_v48, %v936_v59  ;;  %v1026_v33 = vld [vmem:[#allocation6 + $0x550] sm:$0xff]  ;;  %v1420_v9 = vadd.f32 %v6042_v0, %v1375_v35  ;;  %v6178_v32 = vmul.f32 %v9217_v15, %v981_v55  ;;  %v9220_v16 = vld [vmem:[#allocation68_spill] sm:$0xff]  ;;  %v9222_v53 = vld [vmem:[#allocation69_spill] sm:$0xff] }
  0x7d   :  { %v9212_v17 = vld [vmem:[#allocation15_spill] sm:$0xff]  ;;  %9214 = vst [vmem:[#allocation118_spill] sm:$0xff] %v6170_v4  ;;  %v612_v59 = vadd.f32 %v604_v12, %v567_v37  ;;  %v6184_v4 = vmul.f32 %v9220_v16, %v1026_v33  ;;  %v9224_v13 = vld [vmem:[#allocation17_spill] sm:$0xff]  ;;  %v9225_v12 = vld [vmem:[#allocation70_spill] sm:$0xff] }
  0x7e   :  { %v153_v42 = vmul.f32 %v9212_v17, %v6138_v2  ;;  %v1071_v3 = vld [vmem:[#allocation6 + $0x590] sm:$0xff]  ;;  %v243_v0 = vmul.f32 %v9224_v13, %v6167_v31  ;;  %v1465_v37 = vadd.f32 %v6049_v11, %v1420_v9  ;;  %v9228_v16 = vld [vmem:[#allocation73_spill] sm:$0xff]  ;;  %v288_v11 = vmul.f32 %v5599_v14, %v260_v25  ;;  %v9232_v9 = vld [vmem:[#allocation76_spill] sm:$0xff] }
  0x7f   :  { %v9218_v48 = vld [vmem:[#allocation67_spill] sm:$0xff]  ;;  %9221 = vst [vmem:[#allocation121_spill] sm:$0xff] %v6184_v4  ;;  %v6187_v7 = vmul.f32 %v9222_v53, %v1071_v3  ;;  %v657_v55 = vadd.f32 %v649_v21, %v612_v59  ;;  %v6193_v35 = vmul.f32 %v9225_v12, %v1071_v3 }
  0x80   :  { %v6181_v17 = vmul.f32 %v9218_v48, %v1026_v33  ;;  %v1116_v62 = vld [vmem:[#allocation6 + $0x5d0] sm:$0xff]  ;;  %v161_v27 = vadd.f32 %v153_v42, %v116_v57  ;;  %v305_v33 = vld [vmem:[#allocation6 + $0x148] sm:$0xff]  ;;  %v1510_v21 = vadd.f32 %v6060_v38, %v1465_v37 }
  0x81   :  { %9223 = vst [vmem:[#allocation122_spill] sm:$0xff] %v6187_v7  ;;  %v1161_v40 = vld [vmem:[#allocation6 + $0x610] sm:$0xff]  ;;  %v6199_v4 = vmul.f32 %v9228_v16, %v1116_v62  ;;  %v702_v3 = vadd.f32 %v694_v10, %v657_v55  ;;  %v9235_v16 = vld [vmem:[#allocation80_spill] sm:$0xff]  ;;  %v333_v14 = vmul.f32 %v5610_v18, %v305_v33  ;;  %v9238_v10 = vld [vmem:[#allocation85_spill] sm:$0xff] }
  0x82   :  { %9219 = vst [vmem:[#allocation120_spill] sm:$0xff] %v6181_v17  ;;  %v9226_v17 = vld [vmem:[#allocation71_spill] sm:$0xff]  ;;  %v206_v13 = vadd.f32 %v198_v63, %v161_v27  ;;  %v6207_v59 = vmul.f32 %v9232_v9, %v1161_v40  ;;  %1526 = vrot.lane.b32.xlu0 %v1510_v21, %s5486_s12  ;;  %v9240_v37 = vld [vmem:[#allocation86_spill] sm:$0xff] }
  0x83   :  { %v6196_v48 = vmul.f32 %v9226_v17, %v1116_v62  ;;  %v1206_v15 = vld [vmem:[#allocation6 + $0x650] sm:$0xff]  ;;  %9229 = vst [vmem:[#allocation124_spill] sm:$0xff] %v6199_v4  ;;  %v350_v62 = vld [vmem:[#allocation6 + $0x188] sm:$0xff]  ;;  %v747_v38 = vadd.f32 %v6117_v20, %v702_v3  ;;  %v9246_v3 = vld [vmem:[#allocation92_spill] sm:$0xff] }
  0x84   :  { %v9230_v7 = vld [vmem:[#allocation75_spill] sm:$0xff]  ;;  %v6213_v4 = vmul.f32 %v9235_v16, %v1206_v15  ;;  %v251_v27 = vadd.f32 %v243_v0, %v206_v13  ;;  %v378_v20 = vmul.f32 %v5619_v22, %v350_v62 }
  0x85   :  { %9227 = vst [vmem:[#allocation123_spill] sm:$0xff] %v6196_v48  ;;  %v6202_v53 = vmul.f32 %v9230_v7, %v1161_v40  ;;  %v1251_v42 = vld [vmem:[#allocation6 + $0x690] sm:$0xff] }
  0x86   :  { %v1296_v57 = vld [vmem:[#allocation6 + $0x6d0] sm:$0xff]  ;;  %v6222_v40 = vmul.f32 %v9238_v10, %v1251_v42  ;;  %v296_v18 = vadd.f32 %v288_v11, %v251_v27 }
  0x87   :  { %9231 = vst [vmem:[#allocation125_spill] sm:$0xff] %v6202_v53  ;;  %v9233_v48 = vld [vmem:[#allocation79_spill] sm:$0xff]  ;;  %v9236_v53 = vld [vmem:[#allocation82_spill] sm:$0xff]  ;;  %v6225_v55 = vmul.f32 %v9240_v37, %v1296_v57 }
  0x88   :  { %v6210_v17 = vmul.f32 %v9233_v48, %v1206_v15  ;;  %v1341_v12 = vld [vmem:[#allocation6 + $0x710] sm:$0xff]  ;;  %v6216_v7 = vmul.f32 %v9236_v53, %v1251_v42  ;;  %9239 = vst [vmem:[#allocation85_spill] sm:$0xff] %v6222_v40  ;;  %v9242_v15 = vld [vmem:[#allocation88_spill] sm:$0xff]  ;;  %v792_v42 = vadd.f32 %v6124_v5, %v747_v38  ;;  %v341_v11 = vadd.f32 %v333_v14, %v296_v18 }
  0x89   :  { %v1386_v63 = vld [vmem:[#allocation6 + $0x750] sm:$0xff]  ;;  %9241 = vst [vmem:[#allocation128_spill] sm:$0xff] %v6225_v55  ;;  %v6231_v13 = vmul.f32 %v6002_v6, %v1341_v12  ;;  %v6234_v0 = vmul.f32 %v6005_v51, %v1341_v12  ;;  %v6271_v14 = vmul.f32 %v5664_v36, %v260_v25 }
  0x8a   :  { %9234 = vst [vmem:[#allocation126_spill] sm:$0xff] %v6210_v17  ;;  %9237 = vst [vmem:[#allocation127_spill] sm:$0xff] %v6216_v7  ;;  %v6228_v17 = vmul.f32 %v9242_v15, %v1296_v57  ;;  %v1431_v53 = vld [vmem:[#allocation6 + $0x790] sm:$0xff]  ;;  %v395_v7 = vld [vmem:[#allocation6 + $0x1c8] sm:$0xff]  ;;  %v6239_v40 = vmul.f32 %v9246_v3, %v1386_v63  ;;  %v6242_v57 = vmul.f32 %v6015_v19, %v1386_v63 }
  0x8b   :  { %9244 = vst [vmem:[#allocation129_spill] sm:$0xff] %v6231_v13  ;;  %9245 = vst [vmem:[#allocation130_spill] sm:$0xff] %v6234_v0  ;;  %v1476_v21 = vld [vmem:[#allocation6 + $0x7d0] sm:$0xff]  ;;  %v6245_v55 = vmul.f32 %v6018_v58, %v1431_v53  ;;  %v6248_v13 = vmul.f32 %v6021_v8, %v1431_v53  ;;  %v423_v27 = vmul.f32 %v5638_v28, %v395_v7  ;;  %v485_v53 = vld [vmem:[#allocation6 + $0x248] sm:$0xff] }
  0x8c   :  { %9243 = vst [vmem:[#allocation88_spill] sm:$0xff] %v6228_v17  ;;  %9247 = vst [vmem:[#allocation131_spill] sm:$0xff] %v6239_v40  ;;  %v440_v17 = vld [vmem:[#allocation6 + $0x208] sm:$0xff]  ;;  %v9250_v12 = vld [vmem:[#allocation95_spill] sm:$0xff]  ;;  %v837_v5 = vadd.f32 %v6130_v39, %v792_v42  ;;  %v6256_v38 = vmul.f32 %v6038_v47, %v1476_v21  ;;  %v6260_v63 = vmul.f32 %v5635_v26, %v6138_v2 }
  0x8d   :  { %9248 = vst [vmem:[#allocation132_spill] sm:$0xff] %v6245_v55  ;;  %9249 = vst [vmem:[#allocation133_spill] sm:$0xff] %v6248_v13  ;;  %v6251_v0 = vmul.f32 %v9250_v12, %v1476_v21  ;;  %v6264_v55 = vmul.f32 %v5645_v29, %v6150_v46  ;;  %v386_v18 = vadd.f32 %v378_v20, %v341_v11  ;;  %v530_v21 = vld [vmem:[#allocation6 + $0x288] sm:$0xff]  ;;  %v262_v13 = vld [vmem:[#allocation6 + $0x118] sm:$0xff] }
  0x8e   :  { %9252 = vst [vmem:[#allocation135_spill] sm:$0xff] %v6256_v38  ;;  %9253 = vst [vmem:[#allocation136_spill] sm:$0xff] %v6260_v63  ;;  %v468_v39 = vmul.f32 %v5656_v34, %v440_v17  ;;  %v882_v42 = vadd.f32 %v6136_v23, %v837_v5  ;;  %v6276_v2 = vmul.f32 %v5688_v44, %v305_v33  ;;  %v665_v11 = vld [vmem:[#allocation6 + $0x348] sm:$0xff] }
  0x8f   :  { %9251 = vst [vmem:[#allocation134_spill] sm:$0xff] %v6251_v0  ;;  %9254 = vst [vmem:[#allocation137_spill] sm:$0xff] %v6264_v55  ;;  %v6268_v0 = vmul.f32 %v5648_v30, %v6167_v31  ;;  %v6279_v46 = vmul.f32 %v5691_v45, %v350_v62  ;;  %v6282_v40 = vmul.f32 %v5702_v49, %v395_v7  ;;  %v575_v31 = vld [vmem:[#allocation6 + $0x2c8] sm:$0xff] }
  0x90   :  { %9256 = vst [vmem:[#allocation139_spill] sm:$0xff] %v6271_v14  ;;  %9257 = vst [vmem:[#allocation140_spill] sm:$0xff] %v6276_v2  ;;  %v431_v55 = vadd.f32 %v423_v27, %v386_v18  ;;  %v6285_v25 = vmul.f32 %v5705_v50, %v440_v17  ;;  %v6288_v20 = vmul.f32 %v5715_v54, %v485_v53  ;;  %v710_v27 = vld [vmem:[#allocation6 + $0x388] sm:$0xff]  ;;  %v9301_v50 = vld [vmem:[#allocation69_spill] sm:$0xff] }
  0x91   :  { %9255 = vst [vmem:[#allocation138_spill] sm:$0xff] %v6268_v0  ;;  %9258 = vst [vmem:[#allocation141_spill] sm:$0xff] %v6279_v46  ;;  %v620_v0 = vld [vmem:[#allocation6 + $0x308] sm:$0xff]  ;;  %v513_v23 = vmul.f32 %v5681_v43, %v485_v53  ;;  %v927_v33 = vadd.f32 %v6145_v24, %v882_v42  ;;  %v6293_v62 = vmul.f32 %v5719_v56, %v530_v21  ;;  %v9265_v53 = vld [vmem:[#allocation37_spill] sm:$0xff] }
  0x92   :  { %9259 = vst [vmem:[#allocation142_spill] sm:$0xff] %v6282_v40  ;;  %9260 = vst [vmem:[#allocation143_spill] sm:$0xff] %v6285_v25  ;;  %v558_v7 = vmul.f32 %v5708_v52, %v530_v21  ;;  %v6297_v5 = vmul.f32 %v5733_v60, %v575_v31  ;;  %v755_v18 = vld [vmem:[#allocation6 + $0x3c8] sm:$0xff]  ;;  %v476_v17 = vadd.f32 %v468_v39, %v431_v55  ;;  %v9268_v21 = vld [vmem:[#allocation43_spill] sm:$0xff] }
  0x93   :  { %9261 = vst [vmem:[#allocation144_spill] sm:$0xff] %v6288_v20  ;;  %9262 = vst [vmem:[#allocation145_spill] sm:$0xff] %v6293_v62  ;;  %v603_v25 = vmul.f32 %v5736_v61, %v575_v31  ;;  %v6301_v20 = vmul.f32 %v5740_v1, %v620_v0  ;;  %v648_v40 = vmul.f32 %v9265_v53, %v620_v0  ;;  %v800_v46 = vld [vmem:[#allocation6 + $0x408] sm:$0xff]  ;;  %v9271_v31 = vld [vmem:[#allocation47_spill] sm:$0xff] }
  0x94   :  { %9263 = vst [vmem:[#allocation146_spill] sm:$0xff] %v6297_v5  ;;  %v972_v24 = vadd.f32 %v6163_v41, %v927_v33  ;;  %v9266_v42 = vld [vmem:[#allocation42_spill] sm:$0xff]  ;;  %v693_v2 = vmul.f32 %v9268_v21, %v665_v11  ;;  %v521_v39 = vadd.f32 %v513_v23, %v476_v17  ;;  %v738_v38 = vmul.f32 %v9271_v31, %v710_v27  ;;  %v9272_v1 = vld [vmem:[#allocation48_spill] sm:$0xff]  ;;  %v9274_v0 = vld [vmem:[#allocation49_spill] sm:$0xff] }
  0x95   :  { %9264 = vst [vmem:[#allocation147_spill] sm:$0xff] %v6301_v20  ;;  %v6306_v62 = vmul.f32 %v9266_v42, %v665_v11  ;;  %v9269_v14 = vld [vmem:[#allocation46_spill] sm:$0xff]  ;;  %v6314_v20 = vmul.f32 %v9272_v1, %v755_v18  ;;  %v6317_v53 = vmul.f32 %v9274_v0, %v755_v18  ;;  %v82_v41 = vld [vmem:[#allocation6 + $0x18] sm:$0xff]  ;;  %v9281_v18 = vld [vmem:[#allocation55_spill] sm:$0xff] }
  0x96   :  { %v6310_v5 = vmul.f32 %v9269_v14, %v710_v27  ;;  %v845_v63 = vld [vmem:[#allocation6 + $0x448] sm:$0xff]  ;;  %v1017_v33 = vadd.f32 %v6178_v32, %v972_v24  ;;  %v9277_v11 = vld [vmem:[#allocation52_spill] sm:$0xff]  ;;  %v566_v17 = vadd.f32 %v558_v7, %v521_v39  ;;  %v9283_v32 = vld [vmem:[#allocation59_spill] sm:$0xff] }
  0x97   :  { %9267 = vst [vmem:[#allocation148_spill] sm:$0xff] %v6306_v62  ;;  %v890_v55 = vld [vmem:[#allocation6 + $0x488] sm:$0xff]  ;;  %9273 = vst [vmem:[#allocation150_spill] sm:$0xff] %v6314_v20  ;;  %v9275_v62 = vld [vmem:[#allocation51_spill] sm:$0xff]  ;;  %v6324_v14 = vmul.f32 %v9277_v11, %v800_v46 }
  0x98   :  { %9270 = vst [vmem:[#allocation149_spill] sm:$0xff] %v6310_v5  ;;  %v6321_v42 = vmul.f32 %v9275_v62, %v800_v46  ;;  %v9278_v5 = vld [vmem:[#allocation53_spill] sm:$0xff]  ;;  %v935_v23 = vld [vmem:[#allocation6 + $0x4c8] sm:$0xff]  ;;  %v6329_v27 = vld [vmem:[#allocation6 + $0x58] sm:$0xff]  ;;  %v6335_v0 = vmul.f32 %v9281_v18, %v890_v55  ;;  %v6338_v24 = vmul.f32 %v9283_v32, %v890_v55  ;;  %v611_v31 = vadd.f32 %v603_v25, %v566_v17 }
  0x99   :  { %v6327_v21 = vmul.f32 %v9278_v5, %v845_v63  ;;  %v9280_v20 = vld [vmem:[#allocation54_spill] sm:$0xff]  ;;  %v74_v46 = vld [vmem:[%s8946_s2 + $0x18] sm:$0xff]  ;;  %v9289_v55 = vld [vmem:[#allocation63_spill] sm:$0xff] }
  0x9a   :  { %9276 = vst [vmem:[#allocation151_spill] sm:$0xff] %v6321_v42  ;;  %v6332_v1 = vmul.f32 %v9280_v20, %v845_v63  ;;  %9282 = vst [vmem:[#allocation153_spill] sm:$0xff] %v6335_v0  ;;  %v6343_v42 = vld [vmem:[#allocation6 + $0x98] sm:$0xff]  ;;  %v980_v7 = vld [vmem:[#allocation6 + $0x508] sm:$0xff]  ;;  %v6352_v32 = vmul.f32 %v9289_v55, %v935_v23 }
  0x9b   :  { %9279 = vst [vmem:[#allocation152_spill] sm:$0xff] %v6327_v21  ;;  %v9284_v21 = vld [vmem:[#allocation121_spill] sm:$0xff]  ;;  %v9285_v11 = vld [vmem:[#allocation60_spill] sm:$0xff]  ;;  %v1025_v63 = vld [vmem:[#allocation6 + $0x548] sm:$0xff] }
  0x9c   :  { %v1062_v5 = vadd.f32 %v9284_v21, %v1017_v33  ;;  %v6347_v62 = vmul.f32 %v9285_v11, %v935_v23  ;;  %v9287_v39 = vld [vmem:[#allocation20_spill] sm:$0xff]  ;;  %v9288_v18 = vld [vmem:[#allocation14_spill] sm:$0xff]  ;;  %v9292_v56 = vld [vmem:[#allocation15_spill] sm:$0xff]  ;;  %v656_v23 = vadd.f32 %v648_v40, %v611_v31 }
  0x9d   :  { %v92_v20 = vmul.f32 %v9287_v39, %v82_v41  ;;  %v110_v0 = vmul.f32 %v9288_v18, %v82_v41  ;;  %v9290_v61 = vld [vmem:[#allocation64_spill] sm:$0xff]  ;;  %v155_v52 = vmul.f32 %v9292_v56, %v6329_v27  ;;  %v1115_v11 = vld [vmem:[#allocation6 + $0x5c8] sm:$0xff]  ;;  %v9295_v17 = vld [vmem:[#allocation65_spill] sm:$0xff] }
  0x9e   :  { %9286 = vst [vmem:[#allocation121_spill] sm:$0xff] %v6347_v62  ;;  %v6355_v60 = vmul.f32 %v9290_v61, %v980_v7  ;;  %v6359_v21 = vld [vmem:[#allocation6 + $0xd8] sm:$0xff]  ;;  %v1107_v33 = vadd.f32 %v6193_v35, %v1062_v5  ;;  %v1070_v62 = vld [vmem:[#allocation6 + $0x588] sm:$0xff]  ;;  %v6367_v55 = vmul.f32 %v9295_v17, %v980_v7  ;;  %v9303_v40 = vld [vmem:[#allocation17_spill] sm:$0xff]  ;;  %v701_v7 = vadd.f32 %v693_v2, %v656_v23 }
  0x9f   :  { %v6362_v54 = vadd.f32 %v92_v20, %v74_v46  ;;  %v118_v39 = vadd.f32 %v110_v0, %v74_v46  ;;  %v9294_v25 = vld [vmem:[#allocation16_spill] sm:$0xff]  ;;  %v6377_v20 = vmul.f32 %v9301_v50, %v1070_v62  ;;  %v1160_v0 = vld [vmem:[#allocation6 + $0x608] sm:$0xff]  ;;  %v245_v31 = vmul.f32 %v9303_v40, %v6359_v21 }
  0xa0   :  { %9291 = vst [vmem:[#allocation154_spill] sm:$0xff] %v6355_v60  ;;  %v200_v41 = vmul.f32 %v9294_v25, %v6343_v42  ;;  %v9296_v60 = vld [vmem:[#allocation67_spill] sm:$0xff]  ;;  %v9298_v56 = vld [vmem:[#allocation68_spill] sm:$0xff]  ;;  %v1205_v46 = vld [vmem:[#allocation6 + $0x648] sm:$0xff]  ;;  %v746_v23 = vadd.f32 %v738_v38, %v701_v7 }
  0xa1   :  { %9293 = vst [vmem:[#allocation155_spill] sm:$0xff] %v6362_v54  ;;  %v6370_v61 = vmul.f32 %v9296_v60, %v1025_v63  ;;  %v6373_v18 = vmul.f32 %v9298_v56, %v1025_v63  ;;  %v9300_v35 = vld [vmem:[#allocation124_spill] sm:$0xff]  ;;  %v163_v54 = vadd.f32 %v155_v52, %v118_v39  ;;  %v9304_v17 = vld [vmem:[#allocation70_spill] sm:$0xff]  ;;  %v9307_v63 = vld [vmem:[#allocation73_spill] sm:$0xff] }
  0xa2   :  { %v1152_v5 = vadd.f32 %v9300_v35, %v1107_v33  ;;  %9302 = vst [vmem:[#allocation124_spill] sm:$0xff] %v6377_v20  ;;  %v6382_v25 = vmul.f32 %v9304_v17, %v1070_v62  ;;  %v6388_v56 = vmul.f32 %v9307_v63, %v1115_v11  ;;  %v307_v33 = vld [vmem:[#allocation6 + $0x158] sm:$0xff]  ;;  %v9308_v20 = vld [vmem:[#allocation75_spill] sm:$0xff]  ;;  %v1250_v52 = vld [vmem:[#allocation6 + $0x688] sm:$0xff]  ;;  %v6396_v62 = vmul.f32 %v9232_v9, %v1160_v0 }
  0xa3   :  { %9297 = vst [vmem:[#allocation156_spill] sm:$0xff] %v6370_v61  ;;  %9299 = vst [vmem:[#allocation157_spill] sm:$0xff] %v6373_v18  ;;  %v9305_v61 = vld [vmem:[#allocation71_spill] sm:$0xff]  ;;  %v6392_v50 = vmul.f32 %v9308_v20, %v1160_v0  ;;  %v1295_v39 = vld [vmem:[#allocation6 + $0x6c8] sm:$0xff]  ;;  %v208_v18 = vadd.f32 %v200_v41, %v163_v54  ;;  %v791_v0 = vadd.f32 %v6317_v53, %v746_v23 }
  0xa4   :  { %v6385_v60 = vmul.f32 %v9305_v61, %v1115_v11  ;;  %v1197_v35 = vadd.f32 %v6207_v59, %v1152_v5  ;;  %v9310_v40 = vld [vmem:[#allocation18_spill] sm:$0xff]  ;;  %v6402_v11 = vmul.f32 %v9235_v16, %v1205_v46  ;;  %v352_v63 = vld [vmem:[#allocation6 + $0x198] sm:$0xff]  ;;  %v6411_v7 = vmul.f32 %v9238_v10, %v1250_v52 }
  0xa5   :  { %9309 = vst [vmem:[#allocation159_spill] sm:$0xff] %v6392_v50  ;;  %v290_v2 = vmul.f32 %v9310_v40, %v262_v13  ;;  %v9312_v5 = vld [vmem:[#allocation82_spill] sm:$0xff]  ;;  %v253_v41 = vadd.f32 %v245_v31, %v208_v18  ;;  %v9314_v40 = vld [vmem:[#allocation19_spill] sm:$0xff]  ;;  %v380_v53 = vmul.f32 %v5619_v22, %v352_v63 }
  0xa6   :  { %9306 = vst [vmem:[#allocation158_spill] sm:$0xff] %v6385_v60  ;;  %v6399_v60 = vmul.f32 %v9233_v48, %v1205_v46  ;;  %v1242_v59 = vadd.f32 %v6213_v4, %v1197_v35  ;;  %v6406_v50 = vmul.f32 %v9312_v5, %v1250_v52  ;;  %v1340_v20 = vld [vmem:[#allocation6 + $0x708] sm:$0xff]  ;;  %v335_v38 = vmul.f32 %v9314_v40, %v307_v33  ;;  %v397_v4 = vld [vmem:[#allocation6 + $0x1d8] sm:$0xff]  ;;  %v9316_v35 = vld [vmem:[#allocation85_spill] sm:$0xff] }
  0xa7   :  { %v1385_v54 = vld [vmem:[#allocation6 + $0x748] sm:$0xff]  ;;  %v6417_v46 = vmul.f32 %v9242_v15, %v1295_v39  ;;  %v298_v40 = vadd.f32 %v290_v2, %v253_v41  ;;  %v836_v52 = vadd.f32 %v6324_v14, %v791_v0  ;;  %v6426_v23 = vmul.f32 %v6005_v51, %v1340_v20 }
  0xa8   :  { %9311 = vst [vmem:[#allocation160_spill] sm:$0xff] %v6399_v60  ;;  %9313 = vst [vmem:[#allocation161_spill] sm:$0xff] %v6406_v50  ;;  %v6414_v60 = vmul.f32 %v9240_v37, %v1295_v39  ;;  %v1287_v5 = vadd.f32 %v9316_v35, %v1242_v59  ;;  %v6421_v50 = vmul.f32 %v6002_v6, %v1340_v20  ;;  %v1430_v18 = vld [vmem:[#allocation6 + $0x788] sm:$0xff]  ;;  %v442_v59 = vld [vmem:[#allocation6 + $0x218] sm:$0xff] }
  0xa9   :  { %v1475_v31 = vld [vmem:[#allocation6 + $0x7c8] sm:$0xff]  ;;  %v6432_v39 = vmul.f32 %v6015_v19, %v1385_v54  ;;  %v9320_v35 = vld [vmem:[#allocation88_spill] sm:$0xff]  ;;  %v343_v2 = vadd.f32 %v335_v38, %v298_v40  ;;  %v425_v41 = vmul.f32 %v5638_v28, %v397_v4  ;;  %v881_v14 = vadd.f32 %v6332_v1, %v836_v52 }
  0xaa   :  { %9315 = vst [vmem:[#allocation162_spill] sm:$0xff] %v6414_v60  ;;  %9317 = vst [vmem:[#allocation85_spill] sm:$0xff] %v6421_v50  ;;  %v6429_v60 = vmul.f32 %v9246_v3, %v1385_v54  ;;  %v1332_v6 = vadd.f32 %v9320_v35, %v1287_v5  ;;  %v6436_v50 = vmul.f32 %v6018_v58, %v1430_v18 }
  0xab   :  { %9319 = vst [vmem:[#allocation164_spill] sm:$0xff] %v6432_v39  ;;  %v6441_v20 = vmul.f32 %v6021_v8, %v1430_v18  ;;  %v6444_v0 = vmul.f32 %v9250_v12, %v1475_v31  ;;  %v6447_v54 = vmul.f32 %v6038_v47, %v1475_v31  ;;  %v9323_v39 = vld [vmem:[#allocation130_spill] sm:$0xff]  ;;  %v6452_v35 = vmul.f32 %v5635_v26, %v6329_v27 }
  0xac   :  { %9318 = vst [vmem:[#allocation163_spill] sm:$0xff] %v6429_v60  ;;  %9321 = vst [vmem:[#allocation88_spill] sm:$0xff] %v6436_v50  ;;  %v487_v60 = vld [vmem:[#allocation6 + $0x258] sm:$0xff]  ;;  %v1377_v5 = vadd.f32 %v9323_v39, %v1332_v6  ;;  %v388_v40 = vadd.f32 %v380_v53, %v343_v2  ;;  %v470_v38 = vmul.f32 %v5656_v34, %v442_v59 }
  0xad   :  { %9322 = vst [vmem:[#allocation165_spill] sm:$0xff] %v6444_v0  ;;  %9324 = vst [vmem:[#allocation130_spill] sm:$0xff] %v6452_v35  ;;  %v926_v1 = vadd.f32 %v6338_v24, %v881_v14  ;;  %v6458_v18 = vmul.f32 %v5645_v29, %v6343_v42  ;;  %v6462_v31 = vmul.f32 %v5648_v30, %v6359_v21  ;;  %v532_v6 = vld [vmem:[#allocation6 + $0x298] sm:$0xff] }
  0xae   :  { %v6465_v52 = vmul.f32 %v5664_v36, %v262_v13  ;;  %v1422_v27 = vadd.f32 %v6242_v57, %v1377_v5  ;;  %v6469_v53 = vmul.f32 %v5688_v44, %v307_v33  ;;  %v433_v39 = vadd.f32 %v425_v41, %v388_v40  ;;  %v577_v2 = vld [vmem:[#allocation6 + $0x2d8] sm:$0xff]  ;;  %v9333_v57 = vld [vmem:[#allocation133_spill] sm:$0xff] }
  0xaf   :  { %9325 = vst [vmem:[#allocation166_spill] sm:$0xff] %v6458_v18  ;;  %9326 = vst [vmem:[#allocation167_spill] sm:$0xff] %v6462_v31  ;;  %v515_v24 = vmul.f32 %v5681_v43, %v487_v60  ;;  %v971_v42 = vadd.f32 %v6352_v32, %v926_v1  ;;  %v6474_v14 = vmul.f32 %v5691_v45, %v352_v63  ;;  %v9331_v13 = vld [vmem:[#allocation28_spill] sm:$0xff]  ;;  %v9336_v40 = vld [vmem:[#allocation29_spill] sm:$0xff] }
  0xb0   :  { %9327 = vst [vmem:[#allocation168_spill] sm:$0xff] %v6465_v52  ;;  %9328 = vst [vmem:[#allocation169_spill] sm:$0xff] %v6469_v53  ;;  %v6477_v21 = vmul.f32 %v5702_v49, %v397_v4  ;;  %v6480_v0 = vmul.f32 %v9331_v13, %v442_v59  ;;  %v622_v50 = vld [vmem:[#allocation6 + $0x318] sm:$0xff]  ;;  %v1467_v5 = vadd.f32 %v9333_v57, %v1422_v27  ;;  %v9334_v53 = vld [vmem:[#allocation30_spill] sm:$0xff] }
  0xb1   :  { %9329 = vst [vmem:[#allocation170_spill] sm:$0xff] %v6474_v14  ;;  %v478_v33 = vadd.f32 %v470_v38, %v433_v39  ;;  %v6484_v41 = vmul.f32 %v9334_v53, %v487_v60  ;;  %v560_v52 = vmul.f32 %v9336_v40, %v532_v6  ;;  %v667_v31 = vld [vmem:[#allocation6 + $0x358] sm:$0xff]  ;;  %v1016_v32 = vadd.f32 %v6367_v55, %v971_v42  ;;  %v9337_v63 = vld [vmem:[#allocation31_spill] sm:$0xff]  ;;  %v9339_v4 = vld [vmem:[#allocation34_spill] sm:$0xff] }
  0xb2   :  { %9330 = vst [vmem:[#allocation171_spill] sm:$0xff] %v6477_v21  ;;  %9332 = vst [vmem:[#allocation172_spill] sm:$0xff] %v6480_v0  ;;  %v6489_v1 = vmul.f32 %v9337_v63, %v532_v6  ;;  %v6492_v21 = vmul.f32 %v9339_v4, %v577_v2  ;;  %v9341_v59 = vld [vmem:[#allocation35_spill] sm:$0xff]  ;;  %v712_v14 = vld [vmem:[#allocation6 + $0x398] sm:$0xff] }
  0xb3   :  { %9335 = vst [vmem:[#allocation133_spill] sm:$0xff] %v6484_v41  ;;  %v605_v0 = vmul.f32 %v9341_v59, %v577_v2  ;;  %v757_v18 = vld [vmem:[#allocation6 + $0x3d8] sm:$0xff]  ;;  %v9342_v27 = vld [vmem:[#allocation135_spill] sm:$0xff]  ;;  %v523_v39 = vadd.f32 %v515_v24, %v478_v33  ;;  %v9345_v41 = vld [vmem:[#allocation37_spill] sm:$0xff] }
  0xb4   :  { %9338 = vst [vmem:[#allocation173_spill] sm:$0xff] %v6489_v1  ;;  %9340 = vst [vmem:[#allocation174_spill] sm:$0xff] %v6492_v21  ;;  %v1512_v38 = vadd.f32 %v9342_v27, %v1467_v5  ;;  %v9343_v60 = vld [vmem:[#allocation36_spill] sm:$0xff]  ;;  %v650_v35 = vmul.f32 %v9345_v41, %v622_v50  ;;  %v9346_v55 = vld [vmem:[#allocation157_spill] sm:$0xff] }
  0xb5   :  { %v6497_v57 = vmul.f32 %v9343_v60, %v622_v50  ;;  %v802_v40 = vld [vmem:[#allocation6 + $0x418] sm:$0xff]  ;;  %v1061_v42 = vadd.f32 %v9346_v55, %v1016_v32  ;;  %v9347_v6 = vld [vmem:[#allocation42_spill] sm:$0xff]  ;;  %v9349_v4 = vld [vmem:[#allocation43_spill] sm:$0xff]  ;;  %v568_v24 = vadd.f32 %v560_v52, %v523_v39 }
  0xb6   :  { %v6502_v1 = vmul.f32 %v9347_v6, %v667_v31  ;;  %v695_v21 = vmul.f32 %v9349_v4, %v667_v31  ;;  %v9350_v63 = vld [vmem:[#allocation46_spill] sm:$0xff]  ;;  %v847_v59 = vld [vmem:[#allocation6 + $0x458] sm:$0xff]  ;;  %1530 = vrot.lane.b32.xlu1 %v1512_v38, %s5486_s12  ;;  %v9352_v5 = vld [vmem:[#allocation47_spill] sm:$0xff] }
  0xb7   :  { %9344 = vst [vmem:[#allocation135_spill] sm:$0xff] %v6497_v57  ;;  %v6506_v2 = vmul.f32 %v9350_v63, %v712_v14  ;;  %v892_v53 = vld [vmem:[#allocation6 + $0x498] sm:$0xff]  ;;  %v740_v33 = vmul.f32 %v9352_v5, %v712_v14  ;;  %v9355_v57 = vld [vmem:[#allocation49_spill] sm:$0xff]  ;;  %v9356_v6 = vld [vmem:[#allocation51_spill] sm:$0xff]  ;;  %v613_v14 = vadd.f32 %v605_v0, %v568_v24 }
  0xb8   :  { %9348 = vst [vmem:[#allocation157_spill] sm:$0xff] %v6502_v1  ;;  %v9353_v27 = vld [vmem:[#allocation48_spill] sm:$0xff]  ;;  %v785_v32 = vmul.f32 %v9355_v57, %v757_v18  ;;  %v83_v55 = vld [vmem:[#allocation6 + $0x20] sm:$0xff]  ;;  %v1106_v1 = vadd.f32 %v6382_v25, %v1061_v42  ;;  %v6516_v31 = vmul.f32 %v9356_v6, %v802_v40  ;;  %v9361_v39 = vld [vmem:[#allocation54_spill] sm:$0xff] }
  0xb9   :  { %9351 = vst [vmem:[#allocation175_spill] sm:$0xff] %v6506_v2  ;;  %v6511_v50 = vmul.f32 %v9353_v27, %v757_v18  ;;  %v9358_v63 = vld [vmem:[#allocation52_spill] sm:$0xff]  ;;  %v9359_v4 = vld [vmem:[#allocation53_spill] sm:$0xff]  ;;  %v6525_v27 = vmul.f32 %v9361_v39, %v847_v59  ;;  %v9364_v57 = vld [vmem:[#allocation59_spill] sm:$0xff] }
  0xba   :  { %9357 = vst [vmem:[#allocation177_spill] sm:$0xff] %v6516_v31  ;;  %v830_v2 = vmul.f32 %v9358_v63, %v802_v40  ;;  %v6520_v41 = vmul.f32 %v9359_v4, %v847_v59  ;;  %v937_v38 = vld [vmem:[#allocation6 + $0x4d8] sm:$0xff]  ;;  %v6522_v52 = vld [vmem:[#allocation6 + $0x60] sm:$0xff]  ;;  %v6531_v25 = vmul.f32 %v9364_v57, %v892_v53  ;;  %v658_v63 = vadd.f32 %v650_v35, %v613_v14  ;;  %v9372_v60 = vld [vmem:[#allocation15_spill] sm:$0xff] }
  0xbb   :  { %9354 = vst [vmem:[#allocation176_spill] sm:$0xff] %v6511_v50  ;;  %v9362_v50 = vld [vmem:[#allocation55_spill] sm:$0xff]  ;;  %v75_v40 = vld [vmem:[%s8946_s2 + $0x20] sm:$0xff]  ;;  %v9365_v31 = vld [vmem:[#allocation60_spill] sm:$0xff]  ;;  %v156_v13 = vmul.f32 %v9372_v60, %v6522_v52 }
  0xbc   :  { %9360 = vst [vmem:[#allocation178_spill] sm:$0xff] %v6520_v41  ;;  %v6528_v18 = vmul.f32 %v9362_v50, %v892_v53  ;;  %v6536_v42 = vld [vmem:[#allocation6 + $0xa0] sm:$0xff]  ;;  %v1151_v41 = vadd.f32 %v6388_v56, %v1106_v1  ;;  %v6540_v4 = vmul.f32 %v9365_v31, %v937_v38  ;;  %v982_v0 = vld [vmem:[#allocation6 + $0x518] sm:$0xff]  ;;  %v9368_v50 = vld [vmem:[#allocation14_spill] sm:$0xff] }
  0xbd   :  { %v1027_v59 = vld [vmem:[#allocation6 + $0x558] sm:$0xff]  ;;  %v9369_v53 = vld [vmem:[#allocation63_spill] sm:$0xff]  ;;  %v6552_v56 = vld [vmem:[#allocation6 + $0xe0] sm:$0xff] }
  0xbe   :  { %9363 = vst [vmem:[#allocation179_spill] sm:$0xff] %v6528_v18  ;;  %9366 = vst [vmem:[#allocation180_spill] sm:$0xff] %v6540_v4  ;;  %v9367_v24 = vld [vmem:[#allocation20_spill] sm:$0xff]  ;;  %v111_v18 = vmul.f32 %v9368_v50, %v83_v55  ;;  %v6545_v57 = vmul.f32 %v9369_v53, %v937_v38  ;;  %v1196_v1 = vadd.f32 %v6396_v62, %v1151_v41  ;;  %v9375_v14 = vld [vmem:[#allocation65_spill] sm:$0xff] }
  0xbf   :  { %v93_v39 = vmul.f32 %v9367_v24, %v83_v55  ;;  %v9370_v6 = vld [vmem:[#allocation64_spill] sm:$0xff]  ;;  %v703_v38 = vadd.f32 %v695_v21, %v658_v63  ;;  %v6560_v50 = vmul.f32 %v9375_v14, %v982_v0  ;;  %v263_v45 = vld [vmem:[#allocation6 + $0x120] sm:$0xff] }
  0xc0   :  { %v6548_v5 = vmul.f32 %v9370_v6, %v982_v0  ;;  %v1072_v4 = vld [vmem:[#allocation6 + $0x598] sm:$0xff]  ;;  %v119_v24 = vadd.f32 %v111_v18, %v75_v40  ;;  %v1241_v62 = vadd.f32 %v6402_v11, %v1196_v1  ;;  %v9379_v41 = vld [vmem:[#allocation69_spill] sm:$0xff] }
  0xc1   :  { %v1117_v31 = vld [vmem:[#allocation6 + $0x5d8] sm:$0xff]  ;;  %v6555_v49 = vadd.f32 %v93_v39, %v75_v40  ;;  %v6570_v39 = vmul.f32 %v9379_v41, %v1072_v4  ;;  %v9381_v21 = vld [vmem:[#allocation17_spill] sm:$0xff]  ;;  %v748_v0 = vadd.f32 %v740_v33, %v703_v38 }
  0xc2   :  { %9371 = vst [vmem:[#allocation181_spill] sm:$0xff] %v6548_v5  ;;  %v9374_v35 = vld [vmem:[#allocation16_spill] sm:$0xff]  ;;  %v9376_v5 = vld [vmem:[#allocation67_spill] sm:$0xff]  ;;  %v246_v63 = vmul.f32 %v9381_v21, %v6552_v56  ;;  %v308_v11 = vld [vmem:[#allocation6 + $0x160] sm:$0xff]  ;;  %v1286_v1 = vadd.f32 %v6411_v7, %v1241_v62 }
  0xc3   :  { %9373 = vst [vmem:[#allocation182_spill] sm:$0xff] %v6555_v49  ;;  %v201_v55 = vmul.f32 %v9374_v35, %v6536_v42  ;;  %v6563_v6 = vmul.f32 %v9376_v5, %v1027_v59  ;;  %v9378_v60 = vld [vmem:[#allocation68_spill] sm:$0xff]  ;;  %9380 = vst [vmem:[#allocation184_spill] sm:$0xff] %v6570_v39  ;;  %v164_v49 = vadd.f32 %v156_v13, %v119_v24  ;;  %v9384_v39 = vld [vmem:[#allocation75_spill] sm:$0xff] }
  0xc4   :  { %v6566_v53 = vmul.f32 %v9378_v60, %v1027_v59  ;;  %v1162_v18 = vld [vmem:[#allocation6 + $0x618] sm:$0xff]  ;;  %v6575_v35 = vmul.f32 %v9304_v17, %v1072_v4  ;;  %v9383_v59 = vld [vmem:[#allocation73_spill] sm:$0xff]  ;;  %v9386_v21 = vld [vmem:[#allocation18_spill] sm:$0xff]  ;;  %v793_v38 = vadd.f32 %v785_v32, %v748_v0  ;;  %v1331_v7 = vadd.f32 %v6417_v46, %v1286_v1 }
  0xc5   :  { %9377 = vst [vmem:[#allocation183_spill] sm:$0xff] %v6563_v6  ;;  %v1207_v40 = vld [vmem:[#allocation6 + $0x658] sm:$0xff]  ;;  %v6578_v6 = vmul.f32 %v9305_v61, %v1117_v31  ;;  %v6581_v60 = vmul.f32 %v9383_v59, %v1117_v31  ;;  %v6585_v41 = vmul.f32 %v9384_v39, %v1162_v18  ;;  %v209_v5 = vadd.f32 %v201_v55, %v164_v49  ;;  %v353_v59 = vld [vmem:[#allocation6 + $0x1a0] sm:$0xff]  ;;  %v9388_v62 = vld [vmem:[#allocation82_spill] sm:$0xff] }
  0xc6   :  { %v1252_v13 = vld [vmem:[#allocation6 + $0x698] sm:$0xff]  ;;  %v291_v33 = vmul.f32 %v9386_v21, %v263_v45  ;;  %v6589_v4 = vmul.f32 %v9232_v9, %v1162_v18  ;;  %v6595_v31 = vmul.f32 %v9235_v16, %v1207_v40  ;;  %v9390_v21 = vld [vmem:[#allocation19_spill] sm:$0xff]  ;;  %v838_v0 = vadd.f32 %v830_v2, %v793_v38  ;;  %v398_v16 = vld [vmem:[#allocation6 + $0x1e0] sm:$0xff] }
  0xc7   :  { %9382 = vst [vmem:[#allocation185_spill] sm:$0xff] %v6578_v6  ;;  %9385 = vst [vmem:[#allocation186_spill] sm:$0xff] %v6585_v41  ;;  %v1297_v24 = vld [vmem:[#allocation6 + $0x6d8] sm:$0xff]  ;;  %v6592_v6 = vmul.f32 %v9233_v48, %v1207_v40  ;;  %v6599_v41 = vmul.f32 %v9388_v62, %v1252_v13  ;;  %v254_v55 = vadd.f32 %v246_v63, %v209_v5  ;;  %v9392_v1 = vld [vmem:[#allocation91_spill] sm:$0xff] }
  0xc8   :  { %v1342_v39 = vld [vmem:[#allocation6 + $0x718] sm:$0xff]  ;;  %v336_v32 = vmul.f32 %v9390_v21, %v308_v11  ;;  %v6603_v18 = vmul.f32 %v9238_v10, %v1252_v13  ;;  %v6609_v40 = vmul.f32 %v9242_v15, %v1297_v24  ;;  %v1376_v46 = vadd.f32 %v6426_v23, %v1331_v7  ;;  %v443_v23 = vld [vmem:[#allocation6 + $0x220] sm:$0xff] }
  0xc9   :  { %9387 = vst [vmem:[#allocation187_spill] sm:$0xff] %v6592_v6  ;;  %9389 = vst [vmem:[#allocation188_spill] sm:$0xff] %v6599_v41  ;;  %v1387_v49 = vld [vmem:[#allocation6 + $0x758] sm:$0xff]  ;;  %v6606_v6 = vmul.f32 %v9240_v37, %v1297_v24  ;;  %v6613_v41 = vmul.f32 %v9392_v1, %v1342_v39  ;;  %v299_v63 = vadd.f32 %v291_v33, %v254_v55 }
  0xca   :  { %v1432_v62 = vld [vmem:[#allocation6 + $0x798] sm:$0xff]  ;;  %v381_v2 = vmul.f32 %v5619_v22, %v353_v59  ;;  %v883_v13 = vadd.f32 %v6525_v27, %v838_v0  ;;  %v6618_v38 = vmul.f32 %v6005_v51, %v1342_v39  ;;  %v6624_v24 = vmul.f32 %v6015_v19, %v1387_v49 }
  0xcb   :  { %9391 = vst [vmem:[#allocation189_spill] sm:$0xff] %v6606_v6  ;;  %9393 = vst [vmem:[#allocation190_spill] sm:$0xff] %v6613_v41  ;;  %v1477_v5 = vld [vmem:[#allocation6 + $0x7d8] sm:$0xff]  ;;  %v6621_v6 = vmul.f32 %v9246_v3, %v1387_v49  ;;  %v6628_v41 = vmul.f32 %v6018_v58, %v1432_v62  ;;  %v344_v33 = vadd.f32 %v336_v32, %v299_v63 }
  0xcc   :  { %v9395_v7 = vld [vmem:[#allocation164_spill] sm:$0xff]  ;;  %v426_v55 = vmul.f32 %v5638_v28, %v398_v16  ;;  %v928_v27 = vadd.f32 %v6531_v25, %v883_v13  ;;  %v6633_v39 = vmul.f32 %v6021_v8, %v1432_v62  ;;  %v6636_v0 = vmul.f32 %v9250_v12, %v1477_v5 }
  0xcd   :  { %9394 = vst [vmem:[#allocation191_spill] sm:$0xff] %v6621_v6  ;;  %v1421_v1 = vadd.f32 %v9395_v7, %v1376_v46  ;;  %9396 = vst [vmem:[#allocation164_spill] sm:$0xff] %v6628_v41  ;;  %v6639_v49 = vmul.f32 %v6038_v47, %v1477_v5  ;;  %v488_v6 = vld [vmem:[#allocation6 + $0x260] sm:$0xff]  ;;  %v6644_v7 = vmul.f32 %v5635_v26, %v6522_v52 }
  0xce   :  { %9397 = vst [vmem:[#allocation192_spill] sm:$0xff] %v6636_v0  ;;  %v389_v32 = vadd.f32 %v381_v2, %v344_v33  ;;  %v471_v63 = vmul.f32 %v5656_v34, %v443_v23  ;;  %v973_v25 = vadd.f32 %v6545_v57, %v928_v27  ;;  %v6650_v62 = vmul.f32 %v5645_v29, %v6536_v42  ;;  %v578_v33 = vld [vmem:[#allocation6 + $0x2e0] sm:$0xff] }
  0xcf   :  { %v1466_v46 = vadd.f32 %v6441_v20, %v1421_v1  ;;  %9398 = vst [vmem:[#allocation193_spill] sm:$0xff] %v6644_v7  ;;  %v6654_v5 = vmul.f32 %v5648_v30, %v6552_v56  ;;  %v6657_v13 = vmul.f32 %v5664_v36, %v263_v45  ;;  %v533_v20 = vld [vmem:[#allocation6 + $0x2a0] sm:$0xff]  ;;  %v6661_v1 = vmul.f32 %v5688_v44, %v308_v11  ;;  %v9405_v56 = vld [vmem:[#allocation27_spill] sm:$0xff]  ;;  %v9407_v45 = vld [vmem:[#allocation28_spill] sm:$0xff] }
  0xd0   :  { %9399 = vst [vmem:[#allocation194_spill] sm:$0xff] %v6650_v62  ;;  %v434_v2 = vadd.f32 %v426_v55, %v389_v32  ;;  %v516_v57 = vmul.f32 %v5681_v43, %v488_v6  ;;  %v1018_v42 = vadd.f32 %v6560_v50, %v973_v25  ;;  %v9403_v27 = vld [vmem:[#allocation25_spill] sm:$0xff]  ;;  %v6669_v41 = vmul.f32 %v9405_v56, %v398_v16  ;;  %v9409_v55 = vld [vmem:[#allocation30_spill] sm:$0xff]  ;;  %v9411_v32 = vld [vmem:[#allocation31_spill] sm:$0xff] }
  0xd1   :  { %9400 = vst [vmem:[#allocation195_spill] sm:$0xff] %v6654_v5  ;;  %9401 = vst [vmem:[#allocation196_spill] sm:$0xff] %v6657_v13  ;;  %v1511_v52 = vadd.f32 %v6447_v54, %v1466_v46  ;;  %v6666_v0 = vmul.f32 %v9403_v27, %v353_v59  ;;  %v6672_v13 = vmul.f32 %v9407_v45, %v443_v23  ;;  %v623_v5 = vld [vmem:[#allocation6 + $0x320] sm:$0xff]  ;;  %v9416_v23 = vld [vmem:[#allocation35_spill] sm:$0xff] }
  0xd2   :  { %9402 = vst [vmem:[#allocation197_spill] sm:$0xff] %v6661_v1  ;;  %9406 = vst [vmem:[#allocation198_spill] sm:$0xff] %v6669_v41  ;;  %v668_v54 = vld [vmem:[#allocation6 + $0x360] sm:$0xff]  ;;  %v479_v11 = vadd.f32 %v471_v63, %v434_v2  ;;  %v6676_v46 = vmul.f32 %v9409_v55, %v488_v6  ;;  %v6679_v1 = vmul.f32 %v9411_v32, %v533_v20  ;;  %v9414_v41 = vld [vmem:[#allocation34_spill] sm:$0xff] }
  0xd3   :  { %9404 = vst [vmem:[#allocation25_spill] sm:$0xff] %v6666_v0  ;;  %9408 = vst [vmem:[#allocation199_spill] sm:$0xff] %v6672_v13  ;;  %1528 = vrot.lane.b32.xlu0 %v1511_v52, %s5486_s12  ;;  %v9413_v50 = vld [vmem:[#allocation29_spill] sm:$0xff]  ;;  %v1063_v16 = vadd.f32 %v6566_v53, %v1018_v42  ;;  %v6684_v0 = vmul.f32 %v9414_v41, %v578_v33  ;;  %v606_v13 = vmul.f32 %v9416_v23, %v578_v33  ;;  %v9417_v62 = vld [vmem:[#allocation36_spill] sm:$0xff] }
  0xd4   :  { %9410 = vst [vmem:[#allocation200_spill] sm:$0xff] %v6676_v46  ;;  %9412 = vst [vmem:[#allocation201_spill] sm:$0xff] %v6679_v1  ;;  %v561_v59 = vmul.f32 %v9413_v50, %v533_v20  ;;  %v713_v25 = vld [vmem:[#allocation6 + $0x3a0] sm:$0xff]  ;;  %v6688_v7 = vmul.f32 %v9417_v62, %v623_v5  ;;  %v524_v6 = vadd.f32 %v516_v57, %v479_v11  ;;  %v9420_v32 = vld [vmem:[#allocation42_spill] sm:$0xff] }
  0xd5   :  { %9415 = vst [vmem:[#allocation202_spill] sm:$0xff] %v6684_v0  ;;  %v758_v63 = vld [vmem:[#allocation6 + $0x3e0] sm:$0xff]  ;;  %v6692_v1 = vmul.f32 %v9420_v32, %v668_v54  ;;  %v9422_v20 = vld [vmem:[#allocation43_spill] sm:$0xff]  ;;  %v1108_v53 = vadd.f32 %v6575_v35, %v1063_v16  ;;  %v9423_v42 = vld [vmem:[#allocation46_spill] sm:$0xff] }
  0xd6   :  { %9418 = vst [vmem:[#allocation203_spill] sm:$0xff] %v6688_v7  ;;  %v803_v52 = vld [vmem:[#allocation6 + $0x420] sm:$0xff]  ;;  %v696_v50 = vmul.f32 %v9422_v20, %v668_v54  ;;  %v6697_v0 = vmul.f32 %v9423_v42, %v713_v25  ;;  %v9425_v33 = vld [vmem:[#allocation47_spill] sm:$0xff]  ;;  %v9426_v62 = vld [vmem:[#allocation48_spill] sm:$0xff]  ;;  %v569_v57 = vadd.f32 %v561_v59, %v524_v6 }
  0xd7   :  { %v9419_v2 = vld [vmem:[#allocation37_spill] sm:$0xff]  ;;  %9421 = vst [vmem:[#allocation204_spill] sm:$0xff] %v6692_v1  ;;  %v741_v23 = vmul.f32 %v9425_v33, %v713_v25  ;;  %v6701_v7 = vmul.f32 %v9426_v62, %v758_v63  ;;  %v9431_v1 = vld [vmem:[#allocation52_spill] sm:$0xff]  ;;  %v84_v35 = vld [vmem:[#allocation6 + $0x28] sm:$0xff] }
  0xd8   :  { %v651_v46 = vmul.f32 %v9419_v2, %v623_v5  ;;  %v848_v55 = vld [vmem:[#allocation6 + $0x460] sm:$0xff]  ;;  %9424 = vst [vmem:[#allocation205_spill] sm:$0xff] %v6697_v0  ;;  %v9429_v2 = vld [vmem:[#allocation51_spill] sm:$0xff]  ;;  %v6708_v54 = vmul.f32 %v9431_v1, %v803_v52  ;;  %v6710_v16 = vld [vmem:[#allocation6 + $0x68] sm:$0xff]  ;;  %v1153_v0 = vadd.f32 %v6581_v60, %v1108_v53 }
  0xd9   :  { %9427 = vst [vmem:[#allocation206_spill] sm:$0xff] %v6701_v7  ;;  %v893_v41 = vld [vmem:[#allocation6 + $0x4a0] sm:$0xff]  ;;  %v6705_v32 = vmul.f32 %v9429_v2, %v803_v52  ;;  %v9434_v7 = vld [vmem:[#allocation54_spill] sm:$0xff]  ;;  %v9435_v59 = vld [vmem:[#allocation55_spill] sm:$0xff] }
  0xda   :  { %v9428_v11 = vld [vmem:[#allocation49_spill] sm:$0xff]  ;;  %v6717_v62 = vmul.f32 %v9434_v7, %v848_v55  ;;  %v9437_v2 = vld [vmem:[#allocation59_spill] sm:$0xff]  ;;  %v9438_v1 = vld [vmem:[#allocation60_spill] sm:$0xff] }
  0xdb   :  { %v786_v5 = vmul.f32 %v9428_v11, %v758_v63  ;;  %9430 = vst [vmem:[#allocation207_spill] sm:$0xff] %v6705_v32  ;;  %v938_v20 = vld [vmem:[#allocation6 + $0x4e0] sm:$0xff]  ;;  %v6720_v63 = vmul.f32 %v9435_v59, %v893_v41  ;;  %v614_v32 = vadd.f32 %v606_v13, %v569_v57  ;;  %v6723_v52 = vmul.f32 %v9437_v2, %v893_v41  ;;  %v76_v60 = vld [vmem:[%s8946_s2 + $0x28] sm:$0xff]  ;;  %v9440_v53 = vld [vmem:[#allocation20_spill] sm:$0xff] }
  0xdc   :  { %v9432_v25 = vld [vmem:[#allocation53_spill] sm:$0xff]  ;;  %v6726_v11 = vmul.f32 %v9438_v1, %v938_v20  ;;  %v9441_v59 = vld [vmem:[#allocation63_spill] sm:$0xff]  ;;  %v9442_v41 = vld [vmem:[#allocation14_spill] sm:$0xff] }
  0xdd   :  { %v6714_v33 = vmul.f32 %v9432_v25, %v848_v55  ;;  %9436 = vst [vmem:[#allocation209_spill] sm:$0xff] %v6720_v63  ;;  %v983_v6 = vld [vmem:[#allocation6 + $0x520] sm:$0xff]  ;;  %v6732_v25 = vld [vmem:[#allocation6 + $0xa8] sm:$0xff]  ;;  %v1198_v55 = vadd.f32 %v6589_v4, %v1153_v0  ;;  %v6736_v63 = vmul.f32 %v9441_v59, %v938_v20  ;;  %v112_v2 = vmul.f32 %v9442_v41, %v84_v35  ;;  %v9443_v1 = vld [vmem:[#allocation15_spill] sm:$0xff] }
  0xde   :  { %9439 = vst [vmem:[#allocation210_spill] sm:$0xff] %v6726_v11  ;;  %v1028_v13 = vld [vmem:[#allocation6 + $0x560] sm:$0xff]  ;;  %v157_v11 = vmul.f32 %v9443_v1, %v6710_v16  ;;  %v659_v7 = vadd.f32 %v651_v46, %v614_v32  ;;  %v9444_v42 = vld [vmem:[#allocation64_spill] sm:$0xff]  ;;  %v6749_v4 = vld [vmem:[#allocation6 + $0xe8] sm:$0xff] }
  0xdf   :  { %9433 = vst [vmem:[#allocation208_spill] sm:$0xff] %v6714_v33  ;;  %v94_v33 = vmul.f32 %v9440_v53, %v84_v35  ;;  %v1073_v57 = vld [vmem:[#allocation6 + $0x5a0] sm:$0xff]  ;;  %v6742_v43 = vmul.f32 %v9444_v42, %v983_v6  ;;  %v6745_v53 = vmul.f32 %v9375_v14, %v983_v6  ;;  %v1243_v0 = vadd.f32 %v6595_v31, %v1198_v55  ;;  %v9447_v20 = vld [vmem:[#allocation67_spill] sm:$0xff]  ;;  %v9449_v46 = vld [vmem:[#allocation16_spill] sm:$0xff] }
  0xe0   :  { %v6753_v59 = vmul.f32 %v9447_v20, %v1028_v13  ;;  %v1118_v35 = vld [vmem:[#allocation6 + $0x5e0] sm:$0xff]  ;;  %v120_v56 = vadd.f32 %v112_v2, %v76_v60  ;;  %v202_v32 = vmul.f32 %v9449_v46, %v6732_v25  ;;  %v704_v42 = vadd.f32 %v696_v50, %v659_v7  ;;  %v264_v31 = vld [vmem:[#allocation6 + $0x128] sm:$0xff] }
  0xe1   :  { %9445 = vst [vmem:[#allocation211_spill] sm:$0xff] %v6742_v43  ;;  %v6747_v45 = vadd.f32 %v94_v33, %v76_v60  ;;  %v1163_v41 = vld [vmem:[#allocation6 + $0x620] sm:$0xff]  ;;  %v9450_v43 = vld [vmem:[#allocation68_spill] sm:$0xff]  ;;  %v1288_v55 = vadd.f32 %v6603_v18, %v1243_v0  ;;  %v309_v18 = vld [vmem:[#allocation6 + $0x168] sm:$0xff] }
  0xe2   :  { %9448 = vst [vmem:[#allocation213_spill] sm:$0xff] %v6753_v59  ;;  %v6758_v1 = vmul.f32 %v9450_v43, %v1028_v13  ;;  %v9451_v6 = vld [vmem:[#allocation69_spill] sm:$0xff]  ;;  %v6768_v59 = vmul.f32 %v9305_v61, %v1118_v35  ;;  %v165_v20 = vadd.f32 %v157_v11, %v120_v56  ;;  %v749_v13 = vadd.f32 %v741_v23, %v704_v42 }
  0xe3   :  { %9446 = vst [vmem:[#allocation212_spill] sm:$0xff] %v6747_v45  ;;  %v6761_v33 = vmul.f32 %v9451_v6, %v1073_v57  ;;  %v6764_v45 = vmul.f32 %v9304_v17, %v1073_v57  ;;  %v1208_v2 = vld [vmem:[#allocation6 + $0x660] sm:$0xff]  ;;  %v6779_v57 = vmul.f32 %v9232_v9, %v1163_v41  ;;  %v1333_v0 = vadd.f32 %v6609_v40, %v1288_v55  ;;  %v354_v9 = vld [vmem:[#allocation6 + $0x1a8] sm:$0xff] }
  0xe4   :  { %9453 = vst [vmem:[#allocation215_spill] sm:$0xff] %v6768_v59  ;;  %v1253_v60 = vld [vmem:[#allocation6 + $0x6a0] sm:$0xff]  ;;  %v6783_v59 = vmul.f32 %v9233_v48, %v1208_v2  ;;  %v210_v61 = vadd.f32 %v202_v32, %v165_v20  ;;  %v794_v42 = vadd.f32 %v786_v5, %v749_v13  ;;  %v337_v5 = vmul.f32 %v9390_v21, %v309_v18 }
  0xe5   :  { %9452 = vst [vmem:[#allocation214_spill] sm:$0xff] %v6761_v33  ;;  %v9454_v7 = vld [vmem:[#allocation17_spill] sm:$0xff]  ;;  %v9456_v33 = vld [vmem:[#allocation75_spill] sm:$0xff]  ;;  %v1378_v40 = vadd.f32 %v6618_v38, %v1333_v0  ;;  %v399_v38 = vld [vmem:[#allocation6 + $0x1e8] sm:$0xff]  ;;  %v382_v21 = vmul.f32 %v5619_v22, %v354_v9 }
  0xe6   :  { %v247_v50 = vmul.f32 %v9454_v7, %v6749_v4  ;;  %v9455_v43 = vld [vmem:[#allocation73_spill] sm:$0xff]  ;;  %v6776_v6 = vmul.f32 %v9456_v33, %v1163_v41  ;;  %9458 = vst [vmem:[#allocation217_spill] sm:$0xff] %v6783_v59  ;;  %v9459_v7 = vld [vmem:[#allocation18_spill] sm:$0xff]  ;;  %v6793_v41 = vmul.f32 %v9238_v10, %v1253_v60 }
  0xe7   :  { %v6773_v46 = vmul.f32 %v9455_v43, %v1118_v35  ;;  %v1298_v56 = vld [vmem:[#allocation6 + $0x6e0] sm:$0xff]  ;;  %v292_v23 = vmul.f32 %v9459_v7, %v264_v31  ;;  %v9460_v35 = vld [vmem:[#allocation80_spill] sm:$0xff]  ;;  %v9461_v33 = vld [vmem:[#allocation82_spill] sm:$0xff]  ;;  %v1423_v0 = vadd.f32 %v6624_v24, %v1378_v40 }
  0xe8   :  { %9457 = vst [vmem:[#allocation216_spill] sm:$0xff] %v6776_v6  ;;  %v1343_v11 = vld [vmem:[#allocation6 + $0x720] sm:$0xff]  ;;  %v6787_v43 = vmul.f32 %v9460_v35, %v1208_v2  ;;  %v6790_v6 = vmul.f32 %v9461_v33, %v1253_v60  ;;  %v6797_v55 = vmul.f32 %v9240_v37, %v1298_v56  ;;  %v255_v32 = vadd.f32 %v247_v50, %v210_v61 }
  0xe9   :  { %v1388_v59 = vld [vmem:[#allocation6 + $0x760] sm:$0xff]  ;;  %v839_v2 = vadd.f32 %v6708_v54, %v794_v42  ;;  %v6802_v13 = vmul.f32 %v9242_v15, %v1298_v56  ;;  %v6808_v60 = vmul.f32 %v6005_v51, %v1343_v11  ;;  %v1468_v24 = vadd.f32 %v6633_v39, %v1423_v0  ;;  %v489_v39 = vld [vmem:[#allocation6 + $0x268] sm:$0xff] }
  0xea   :  { %9462 = vst [vmem:[#allocation80_spill] sm:$0xff] %v6790_v6  ;;  %9463 = vst [vmem:[#allocation218_spill] sm:$0xff] %v6797_v55  ;;  %v1433_v20 = vld [vmem:[#allocation6 + $0x7a0] sm:$0xff]  ;;  %v9464_v6 = vld [vmem:[#allocation91_spill] sm:$0xff]  ;;  %v6812_v55 = vmul.f32 %v9246_v3, %v1388_v59  ;;  %v300_v50 = vadd.f32 %v292_v23, %v255_v32  ;;  %v6817_v56 = vmul.f32 %v6015_v19, %v1388_v59 }
  0xeb   :  { %v6805_v33 = vmul.f32 %v9464_v6, %v1343_v11  ;;  %v1478_v61 = vld [vmem:[#allocation6 + $0x7e0] sm:$0xff]  ;;  %v884_v54 = vadd.f32 %v6717_v62, %v839_v2  ;;  %v6820_v42 = vmul.f32 %v6018_v58, %v1433_v20  ;;  %v6823_v11 = vmul.f32 %v6021_v8, %v1433_v20 }
  0xec   :  { %9466 = vst [vmem:[#allocation220_spill] sm:$0xff] %v6812_v55  ;;  %v6827_v40 = vmul.f32 %v9250_v12, %v1478_v61  ;;  %v345_v23 = vadd.f32 %v337_v5, %v300_v50  ;;  %v427_v32 = vmul.f32 %v5638_v28, %v399_v38  ;;  %v6832_v59 = vmul.f32 %v6038_v47, %v1478_v61  ;;  %v534_v61 = vld [vmem:[#allocation6 + $0x2a8] sm:$0xff] }
  0xed   :  { %9465 = vst [vmem:[#allocation219_spill] sm:$0xff] %v6805_v33  ;;  %9467 = vst [vmem:[#allocation221_spill] sm:$0xff] %v6820_v42  ;;  %v444_v33 = vld [vmem:[#allocation6 + $0x228] sm:$0xff]  ;;  %v929_v62 = vadd.f32 %v6723_v52, %v884_v54  ;;  %v6836_v2 = vmul.f32 %v5635_v26, %v6710_v16  ;;  %v6840_v20 = vmul.f32 %v5645_v29, %v6732_v25 }
  0xee   :  { %9468 = vst [vmem:[#allocation222_spill] sm:$0xff] %v6827_v40  ;;  %v1513_v0 = vadd.f32 %v6639_v49, %v1468_v24  ;;  %v6845_v5 = vmul.f32 %v5648_v30, %v6749_v4  ;;  %v390_v50 = vadd.f32 %v382_v21, %v345_v23  ;;  %v472_v52 = vmul.f32 %v5656_v34, %v444_v33  ;;  %v579_v49 = vld [vmem:[#allocation6 + $0x2e8] sm:$0xff]  ;;  %v9475_v4 = vld [vmem:[#allocation27_spill] sm:$0xff]  ;;  %v9477_v23 = vld [vmem:[#allocation28_spill] sm:$0xff] }
  0xef   :  { %9469 = vst [vmem:[#allocation223_spill] sm:$0xff] %v6836_v2  ;;  %9470 = vst [vmem:[#allocation224_spill] sm:$0xff] %v6840_v20  ;;  %v974_v54 = vadd.f32 %v6736_v63, %v929_v62  ;;  %v6850_v16 = vmul.f32 %v5664_v36, %v264_v31  ;;  %v6853_v40 = vmul.f32 %v5688_v44, %v309_v18  ;;  %v9479_v63 = vld [vmem:[#allocation24_spill] sm:$0xff]  ;;  %v624_v31 = vld [vmem:[#allocation6 + $0x328] sm:$0xff] }
  0xf0   :  { %9471 = vst [vmem:[#allocation225_spill] sm:$0xff] %v6845_v5  ;;  %v6856_v25 = vmul.f32 %v9403_v27, %v354_v9  ;;  %1532 = vrot.lane.b32.xlu1 %v1513_v0, %s5486_s12  ;;  %v6860_v24 = vmul.f32 %v9475_v4, %v399_v38  ;;  %v435_v21 = vadd.f32 %v427_v32, %v390_v50  ;;  %v669_v55 = vld [vmem:[#allocation6 + $0x368] sm:$0xff]  ;;  %v9482_v9 = vld [vmem:[#allocation31_spill] sm:$0xff]  ;;  %v9484_v0 = vld [vmem:[#allocation29_spill] sm:$0xff] }
  0xf1   :  { %9472 = vst [vmem:[#allocation226_spill] sm:$0xff] %v6850_v16  ;;  %9473 = vst [vmem:[#allocation227_spill] sm:$0xff] %v6853_v40  ;;  %v6863_v42 = vmul.f32 %v9477_v23, %v444_v33  ;;  %v517_v62 = vmul.f32 %v9479_v63, %v489_v39  ;;  %v1019_v18 = vadd.f32 %v6745_v53, %v974_v54  ;;  %v9480_v40 = vld [vmem:[#allocation30_spill] sm:$0xff]  ;;  %v9487_v33 = vld [vmem:[#allocation35_spill] sm:$0xff] }
  0xf2   :  { %9474 = vst [vmem:[#allocation228_spill] sm:$0xff] %v6856_v25  ;;  %9476 = vst [vmem:[#allocation229_spill] sm:$0xff] %v6860_v24  ;;  %v6868_v16 = vmul.f32 %v9480_v40, %v489_v39  ;;  %v6871_v25 = vmul.f32 %v9482_v9, %v534_v61  ;;  %v562_v5 = vmul.f32 %v9484_v0, %v534_v61  ;;  %v714_v38 = vld [vmem:[#allocation6 + $0x3a8] sm:$0xff]  ;;  %v9488_v20 = vld [vmem:[#allocation36_spill] sm:$0xff] }
  0xf3   :  { %9478 = vst [vmem:[#allocation230_spill] sm:$0xff] %v6863_v42  ;;  %v480_v24 = vadd.f32 %v472_v52, %v435_v21  ;;  %v9485_v32 = vld [vmem:[#allocation34_spill] sm:$0xff]  ;;  %v607_v42 = vmul.f32 %v9487_v33, %v579_v49  ;;  %v6879_v2 = vmul.f32 %v9488_v20, %v624_v31  ;;  %v1064_v39 = vadd.f32 %v6758_v1, %v1019_v18  ;;  %v9490_v54 = vld [vmem:[#allocation37_spill] sm:$0xff]  ;;  %v9493_v61 = vld [vmem:[#allocation43_spill] sm:$0xff] }
  0xf4   :  { %9481 = vst [vmem:[#allocation231_spill] sm:$0xff] %v6868_v16  ;;  %9483 = vst [vmem:[#allocation232_spill] sm:$0xff] %v6871_v25  ;;  %v6875_v50 = vmul.f32 %v9485_v32, %v579_v49  ;;  %v759_v23 = vld [vmem:[#allocation6 + $0x3e8] sm:$0xff]  ;;  %v652_v16 = vmul.f32 %v9490_v54, %v624_v31  ;;  %v697_v0 = vmul.f32 %v9493_v61, %v669_v55  ;;  %v9496_v49 = vld [vmem:[#allocation47_spill] sm:$0xff] }
  0xf5   :  { %9489 = vst [vmem:[#allocation234_spill] sm:$0xff] %v6879_v2  ;;  %v804_v53 = vld [vmem:[#allocation6 + $0x428] sm:$0xff]  ;;  %v525_v21 = vadd.f32 %v517_v62, %v480_v24  ;;  %v742_v33 = vmul.f32 %v9496_v49, %v714_v38  ;;  %v9497_v20 = vld [vmem:[#allocation48_spill] sm:$0xff]  ;;  %v1109_v1 = vadd.f32 %v6764_v45, %v1064_v39  ;;  %v9499_v18 = vld [vmem:[#allocation49_spill] sm:$0xff] }
  0xf6   :  { %9486 = vst [vmem:[#allocation233_spill] sm:$0xff] %v6875_v50  ;;  %v9491_v9 = vld [vmem:[#allocation42_spill] sm:$0xff]  ;;  %v6892_v2 = vmul.f32 %v9497_v20, %v759_v23  ;;  %v787_v31 = vmul.f32 %v9499_v18, %v759_v23  ;;  %v9500_v54 = vld [vmem:[#allocation51_spill] sm:$0xff]  ;;  %v9516_v61 = vld [vmem:[#allocation64_spill] sm:$0xff] }
  0xf7   :  { %v6884_v25 = vmul.f32 %v9491_v9, %v669_v55  ;;  %v849_v52 = vld [vmem:[#allocation6 + $0x468] sm:$0xff]  ;;  %v6897_v9 = vmul.f32 %v9500_v54, %v804_v53  ;;  %v85_v62 = vld [vmem:[#allocation6 + $0x30] sm:$0xff] }
  0xf8   :  { %v9494_v32 = vld [vmem:[#allocation46_spill] sm:$0xff]  ;;  %9498 = vst [vmem:[#allocation237_spill] sm:$0xff] %v6892_v2  ;;  %v9506_v45 = vld [vmem:[#allocation55_spill] sm:$0xff] }
  0xf9   :  { %9492 = vst [vmem:[#allocation235_spill] sm:$0xff] %v6884_v25  ;;  %v6888_v50 = vmul.f32 %v9494_v32, %v714_v38  ;;  %v894_v40 = vld [vmem:[#allocation6 + $0x4a8] sm:$0xff]  ;;  %9501 = vst [vmem:[#allocation238_spill] sm:$0xff] %v6897_v9  ;;  %v9502_v25 = vld [vmem:[#allocation52_spill] sm:$0xff]  ;;  %v1154_v9 = vadd.f32 %v6773_v46, %v1109_v1 }
  0xfa   :  { %v6900_v55 = vmul.f32 %v9502_v25, %v804_v53  ;;  %v939_v24 = vld [vmem:[#allocation6 + $0x4e8] sm:$0xff]  ;;  %v6902_v32 = vld [vmem:[#allocation6 + $0x70] sm:$0xff]  ;;  %v9503_v38 = vld [vmem:[#allocation53_spill] sm:$0xff]  ;;  %v6911_v39 = vmul.f32 %v9506_v45, %v894_v40 }
  0xfb   :  { %9495 = vst [vmem:[#allocation236_spill] sm:$0xff] %v6888_v50  ;;  %v570_v50 = vadd.f32 %v562_v5, %v525_v21  ;;  %v6905_v49 = vmul.f32 %v9503_v38, %v849_v52  ;;  %v9505_v2 = vld [vmem:[#allocation54_spill] sm:$0xff]  ;;  %v9508_v54 = vld [vmem:[#allocation59_spill] sm:$0xff]  ;;  %v9509_v25 = vld [vmem:[#allocation60_spill] sm:$0xff] }
  0xfc   :  { %v6908_v20 = vmul.f32 %v9505_v2, %v849_v52  ;;  %9507 = vst [vmem:[#allocation240_spill] sm:$0xff] %v6911_v39  ;;  %v984_v23 = vld [vmem:[#allocation6 + $0x528] sm:$0xff]  ;;  %v6915_v53 = vmul.f32 %v9508_v54, %v894_v40  ;;  %v6918_v18 = vmul.f32 %v9509_v25, %v939_v24  ;;  %v77_v5 = vld [vmem:[%s8946_s2 + $0x30] sm:$0xff]  ;;  %v9511_v21 = vld [vmem:[#allocation20_spill] sm:$0xff] }
  0xfd   :  { %9504 = vst [vmem:[#allocation239_spill] sm:$0xff] %v6905_v49  ;;  %v95_v49 = vmul.f32 %v9511_v21, %v85_v62  ;;  %v6924_v52 = vld [vmem:[#allocation6 + $0xb0] sm:$0xff]  ;;  %v615_v2 = vadd.f32 %v607_v42, %v570_v50  ;;  %v1029_v38 = vld [vmem:[#allocation6 + $0x568] sm:$0xff]  ;;  %v6934_v63 = vmul.f32 %v9516_v61, %v984_v23  ;;  %v6937_v21 = vmul.f32 %v9375_v14, %v984_v23  ;;  %v9523_v23 = vld [vmem:[#allocation69_spill] sm:$0xff] }
  0xfe   :  { %9510 = vst [vmem:[#allocation241_spill] sm:$0xff] %v6918_v18  ;;  %v9512_v45 = vld [vmem:[#allocation63_spill] sm:$0xff]  ;;  %v1074_v46 = vld [vmem:[#allocation6 + $0x5a8] sm:$0xff]  ;;  %v1199_v18 = vadd.f32 %v6779_v57, %v1154_v9 }
  0xff   :  { %v6927_v39 = vmul.f32 %v9512_v45, %v939_v24  ;;  %v9514_v1 = vld [vmem:[#allocation14_spill] sm:$0xff]  ;;  %v9515_v54 = vld [vmem:[#allocation15_spill] sm:$0xff]  ;;  %9517 = vst [vmem:[#allocation243_spill] sm:$0xff] %v6934_v63  ;;  %v6939_v4 = vadd.f32 %v95_v49, %v77_v5  ;;  %v660_v50 = vadd.f32 %v652_v16, %v615_v2  ;;  %v9522_v63 = vld [vmem:[#allocation68_spill] sm:$0xff]  ;;  %v6953_v49 = vmul.f32 %v9523_v23, %v1074_v46 }
 0x100   :  { %v113_v40 = vmul.f32 %v9514_v1, %v85_v62  ;;  %v158_v25 = vmul.f32 %v9515_v54, %v6902_v32  ;;  %v6941_v42 = vld [vmem:[#allocation6 + $0xf0] sm:$0xff]  ;;  %v1119_v62 = vld [vmem:[#allocation6 + $0x5e8] sm:$0xff]  ;;  %v9521_v54 = vld [vmem:[#allocation16_spill] sm:$0xff]  ;;  %v1244_v9 = vadd.f32 %v6787_v43, %v1199_v18  ;;  %v6950_v61 = vmul.f32 %v9522_v63, %v1029_v38 }
 0x101   :  { %9513 = vst [vmem:[#allocation242_spill] sm:$0xff] %v6927_v39  ;;  %9518 = vst [vmem:[#allocation244_spill] sm:$0xff] %v6939_v4  ;;  %v9519_v24 = vld [vmem:[#allocation67_spill] sm:$0xff]  ;;  %v1164_v1 = vld [vmem:[#allocation6 + $0x628] sm:$0xff]  ;;  %v203_v57 = vmul.f32 %v9521_v54, %v6924_v52  ;;  %v6956_v4 = vmul.f32 %v9304_v17, %v1074_v46  ;;  %v705_v16 = vadd.f32 %v697_v0, %v660_v50 }
 0x102   :  { %v6944_v45 = vmul.f32 %v9519_v24, %v1029_v38  ;;  %v121_v39 = vadd.f32 %v113_v40, %v77_v5  ;;  %9524 = vst [vmem:[#allocation246_spill] sm:$0xff] %v6953_v49  ;;  %v265_v2 = vld [vmem:[#allocation6 + $0x130] sm:$0xff]  ;;  %v1209_v5 = vld [vmem:[#allocation6 + $0x668] sm:$0xff]  ;;  %v9527_v54 = vld [vmem:[#allocation17_spill] sm:$0xff]  ;;  %v1289_v18 = vadd.f32 %v6793_v41, %v1244_v9 }
 0x103   :  { %v1254_v40 = vld [vmem:[#allocation6 + $0x6a8] sm:$0xff]  ;;  %v248_v43 = vmul.f32 %v9527_v54, %v6941_v42  ;;  %v9528_v38 = vld [vmem:[#allocation73_spill] sm:$0xff]  ;;  %v9529_v49 = vld [vmem:[#allocation75_spill] sm:$0xff]  ;;  %v750_v50 = vadd.f32 %v742_v33, %v705_v16  ;;  %v293_v54 = vmul.f32 %v9459_v7, %v265_v2 }
 0x104   :  { %9520 = vst [vmem:[#allocation245_spill] sm:$0xff] %v6944_v45  ;;  %v9525_v45 = vld [vmem:[#allocation71_spill] sm:$0xff]  ;;  %v166_v14 = vadd.f32 %v158_v25, %v121_v39  ;;  %v6965_v63 = vmul.f32 %v9528_v38, %v1119_v62  ;;  %v6968_v23 = vmul.f32 %v9529_v49, %v1164_v1  ;;  %v9531_v46 = vld [vmem:[#allocation76_spill] sm:$0xff]  ;;  %v1299_v25 = vld [vmem:[#allocation6 + $0x6e8] sm:$0xff]  ;;  %v1334_v41 = vadd.f32 %v6802_v13, %v1289_v18 }
 0x105   :  { %v6959_v24 = vmul.f32 %v9525_v45, %v1119_v62  ;;  %v6971_v17 = vmul.f32 %v9531_v46, %v1164_v1  ;;  %v310_v0 = vld [vmem:[#allocation6 + $0x170] sm:$0xff]  ;;  %v1344_v39 = vld [vmem:[#allocation6 + $0x728] sm:$0xff]  ;;  %v6979_v62 = vmul.f32 %v9460_v35, %v1209_v5  ;;  %v6985_v1 = vmul.f32 %v9238_v10, %v1254_v40 }
 0x106   :  { %9530 = vst [vmem:[#allocation73_spill] sm:$0xff] %v6968_v23  ;;  %v211_v45 = vadd.f32 %v203_v57, %v166_v14  ;;  %v9533_v9 = vld [vmem:[#allocation82_spill] sm:$0xff]  ;;  %v355_v33 = vld [vmem:[#allocation6 + $0x1b0] sm:$0xff]  ;;  %v795_v16 = vadd.f32 %v787_v31, %v750_v50  ;;  %v1379_v13 = vadd.f32 %v6808_v60, %v1334_v41  ;;  %v6996_v18 = vmul.f32 %v9464_v6, %v1344_v39 }
 0x107   :  { %9526 = vst [vmem:[#allocation247_spill] sm:$0xff] %v6959_v24  ;;  %v6974_v24 = vmul.f32 %v9233_v48, %v1209_v5  ;;  %v6982_v23 = vmul.f32 %v9533_v9, %v1254_v40  ;;  %v1389_v48 = vld [vmem:[#allocation6 + $0x768] sm:$0xff]  ;;  %v9536_v7 = vld [vmem:[#allocation19_spill] sm:$0xff]  ;;  %v6993_v5 = vmul.f32 %v9242_v15, %v1299_v25  ;;  %v6999_v40 = vmul.f32 %v6005_v51, %v1344_v39 }
 0x108   :  { %v1434_v14 = vld [vmem:[#allocation6 + $0x7a8] sm:$0xff]  ;;  %v256_v57 = vadd.f32 %v248_v43, %v211_v45  ;;  %v338_v46 = vmul.f32 %v9536_v7, %v310_v0  ;;  %9537 = vst [vmem:[#allocation19_spill] sm:$0xff] %v6996_v18  ;;  %v400_v31 = vld [vmem:[#allocation6 + $0x1f0] sm:$0xff]  ;;  %v840_v50 = vadd.f32 %v6900_v55, %v795_v16  ;;  %v383_v9 = vmul.f32 %v5619_v22, %v355_v33 }
 0x109   :  { %9532 = vst [vmem:[#allocation248_spill] sm:$0xff] %v6974_v24  ;;  %9534 = vst [vmem:[#allocation249_spill] sm:$0xff] %v6982_v23  ;;  %v6988_v24 = vmul.f32 %v9240_v37, %v1299_v25  ;;  %v7003_v37 = vmul.f32 %v9246_v3, %v1389_v48  ;;  %v1479_v45 = vld [vmem:[#allocation6 + $0x7e8] sm:$0xff]  ;;  %v1424_v60 = vadd.f32 %v6817_v56, %v1379_v13  ;;  %v445_v6 = vld [vmem:[#allocation6 + $0x230] sm:$0xff] }
 0x10a   :  { %v301_v43 = vadd.f32 %v293_v54, %v256_v57  ;;  %v7008_v25 = vmul.f32 %v6015_v19, %v1389_v48  ;;  %v7011_v41 = vmul.f32 %v6018_v58, %v1434_v14  ;;  %v7014_v39 = vmul.f32 %v6021_v8, %v1434_v14 }
 0x10b   :  { %9535 = vst [vmem:[#allocation250_spill] sm:$0xff] %v6988_v24  ;;  %9538 = vst [vmem:[#allocation251_spill] sm:$0xff] %v7003_v37  ;;  %v885_v55 = vadd.f32 %v6908_v20, %v840_v50  ;;  %v7018_v16 = vmul.f32 %v9250_v12, %v1479_v45  ;;  %v428_v57 = vmul.f32 %v5638_v28, %v400_v31  ;;  %v490_v20 = vld [vmem:[#allocation6 + $0x270] sm:$0xff]  ;;  %v9559_v24 = vld [vmem:[#allocation34_spill] sm:$0xff] }
 0x10c   :  { %9539 = vst [vmem:[#allocation252_spill] sm:$0xff] %v7011_v41  ;;  %v346_v54 = vadd.f32 %v338_v46, %v301_v43  ;;  %v1469_v56 = vadd.f32 %v6823_v11, %v1424_v60  ;;  %v7023_v48 = vmul.f32 %v6038_v47, %v1479_v45  ;;  %v7027_v13 = vmul.f32 %v5635_v26, %v6902_v32  ;;  %v535_v45 = vld [vmem:[#allocation6 + $0x2b0] sm:$0xff] }
 0x10d   :  { %9540 = vst [vmem:[#allocation253_spill] sm:$0xff] %v7018_v16  ;;  %v7031_v14 = vmul.f32 %v5645_v29, %v6924_v52  ;;  %v930_v50 = vadd.f32 %v6915_v53, %v885_v55  ;;  %v7036_v46 = vmul.f32 %v5648_v30, %v6941_v42  ;;  %v473_v11 = vmul.f32 %v5656_v34, %v445_v6  ;;  %v580_v53 = vld [vmem:[#allocation6 + $0x2f0] sm:$0xff]  ;;  %v9548_v55 = vld [vmem:[#allocation242_spill] sm:$0xff] }
 0x10e   :  { %9541 = vst [vmem:[#allocation254_spill] sm:$0xff] %v7023_v48  ;;  %9542 = vst [vmem:[#allocation255_spill] sm:$0xff] %v7027_v13  ;;  %v391_v43 = vadd.f32 %v383_v9, %v346_v54  ;;  %v1514_v60 = vadd.f32 %v6832_v59, %v1469_v56  ;;  %v7041_v32 = vmul.f32 %v5664_v36, %v265_v2  ;;  %v9549_v42 = vld [vmem:[#allocation27_spill] sm:$0xff]  ;;  %v9551_v54 = vld [vmem:[#allocation24_spill] sm:$0xff] }
 0x10f   :  { %9543 = vst [vmem:[#allocation256_spill] sm:$0xff] %v7031_v14  ;;  %9544 = vst [vmem:[#allocation257_spill] sm:$0xff] %v7036_v46  ;;  %v7044_v12 = vmul.f32 %v5688_v44, %v310_v0  ;;  %v7047_v52 = vmul.f32 %v9403_v27, %v355_v33  ;;  %v975_v58 = vadd.f32 %v9548_v55, %v930_v50  ;;  %v625_v41 = vld [vmem:[#allocation6 + $0x330] sm:$0xff]  ;;  %v9552_v2 = vld [vmem:[#allocation28_spill] sm:$0xff] }
 0x110   :  { %9545 = vst [vmem:[#allocation258_spill] sm:$0xff] %v7041_v32  ;;  %v7051_v3 = vmul.f32 %v9549_v42, %v400_v31  ;;  %v436_v9 = vadd.f32 %v428_v57, %v391_v43  ;;  %v518_v16 = vmul.f32 %v9551_v54, %v490_v20  ;;  %v670_v59 = vld [vmem:[#allocation6 + $0x370] sm:$0xff]  ;;  %1534 = vrot.lane.b32.xlu0 %v1514_v60, %s5486_s12  ;;  %v9554_v0 = vld [vmem:[#allocation30_spill] sm:$0xff]  ;;  %v9558_v50 = vld [vmem:[#allocation29_spill] sm:$0xff] }
 0x111   :  { %9546 = vst [vmem:[#allocation259_spill] sm:$0xff] %v7044_v12  ;;  %9547 = vst [vmem:[#allocation260_spill] sm:$0xff] %v7047_v52  ;;  %v7056_v56 = vmul.f32 %v9552_v2, %v445_v6  ;;  %v7059_v37 = vmul.f32 %v9554_v0, %v490_v20  ;;  %v9556_v33 = vld [vmem:[#allocation31_spill] sm:$0xff]  ;;  %v563_v55 = vmul.f32 %v9558_v50, %v535_v45  ;;  %v9564_v20 = vld [vmem:[#allocation37_spill] sm:$0xff] }
 0x112   :  { %9550 = vst [vmem:[#allocation242_spill] sm:$0xff] %v7051_v3  ;;  %v7062_v18 = vmul.f32 %v9556_v33, %v535_v45  ;;  %v715_v31 = vld [vmem:[#allocation6 + $0x3b0] sm:$0xff]  ;;  %v1020_v57 = vadd.f32 %v6937_v21, %v975_v58  ;;  %v481_v43 = vadd.f32 %v473_v11, %v436_v9  ;;  %v7067_v23 = vmul.f32 %v9559_v24, %v580_v53  ;;  %v9565_v32 = vld [vmem:[#allocation42_spill] sm:$0xff] }
 0x113   :  { %9553 = vst [vmem:[#allocation27_spill] sm:$0xff] %v7056_v56  ;;  %9555 = vst [vmem:[#allocation24_spill] sm:$0xff] %v7059_v37  ;;  %v9561_v3 = vld [vmem:[#allocation35_spill] sm:$0xff]  ;;  %v9562_v56 = vld [vmem:[#allocation36_spill] sm:$0xff]  ;;  %v653_v37 = vmul.f32 %v9564_v20, %v625_v41 }
 0x114   :  { %9557 = vst [vmem:[#allocation28_spill] sm:$0xff] %v7062_v18  ;;  %9560 = vst [vmem:[#allocation30_spill] sm:$0xff] %v7067_v23  ;;  %v608_v60 = vmul.f32 %v9561_v3, %v580_v53  ;;  %v760_v52 = vld [vmem:[#allocation6 + $0x3f0] sm:$0xff]  ;;  %v7071_v12 = vmul.f32 %v9562_v56, %v625_v41  ;;  %v7075_v18 = vmul.f32 %v9565_v32, %v670_v59  ;;  %v9568_v11 = vld [vmem:[#allocation46_spill] sm:$0xff] }
 0x115   :  { %v805_v6 = vld [vmem:[#allocation6 + $0x430] sm:$0xff]  ;;  %v1065_v58 = vadd.f32 %v6950_v61, %v1020_v57  ;;  %v526_v21 = vadd.f32 %v518_v16, %v481_v43  ;;  %v7080_v9 = vmul.f32 %v9568_v11, %v715_v31  ;;  %v9571_v3 = vld [vmem:[#allocation48_spill] sm:$0xff]  ;;  %v9577_v11 = vld [vmem:[#allocation53_spill] sm:$0xff] }
 0x116   :  { %9563 = vst [vmem:[#allocation31_spill] sm:$0xff] %v7071_v12  ;;  %9566 = vst [vmem:[#allocation261_spill] sm:$0xff] %v7075_v18  ;;  %v9567_v45 = vld [vmem:[#allocation43_spill] sm:$0xff]  ;;  %v7084_v56 = vmul.f32 %v9571_v3, %v760_v52  ;;  %v9573_v12 = vld [vmem:[#allocation49_spill] sm:$0xff] }
 0x117   :  { %v698_v46 = vmul.f32 %v9567_v45, %v670_v59  ;;  %v850_v14 = vld [vmem:[#allocation6 + $0x470] sm:$0xff]  ;;  %9569 = vst [vmem:[#allocation262_spill] sm:$0xff] %v7080_v9  ;;  %v7087_v41 = vmul.f32 %v9573_v12, %v760_v52  ;;  %v9576_v59 = vld [vmem:[#allocation52_spill] sm:$0xff]  ;;  %v1110_v57 = vadd.f32 %v6956_v4, %v1065_v58  ;;  %v571_v43 = vadd.f32 %v563_v55, %v526_v21  ;;  %v9579_v9 = vld [vmem:[#allocation54_spill] sm:$0xff] }
 0x118   :  { %v9570_v53 = vld [vmem:[#allocation47_spill] sm:$0xff]  ;;  %9572 = vst [vmem:[#allocation263_spill] sm:$0xff] %v7084_v56  ;;  %v7093_v45 = vmul.f32 %v9576_v59, %v805_v6  ;;  %v86_v16 = vld [vmem:[#allocation6 + $0x38] sm:$0xff]  ;;  %v7100_v3 = vmul.f32 %v9579_v9, %v850_v14 }
 0x119   :  { %v743_v23 = vmul.f32 %v9570_v53, %v715_v31  ;;  %v895_v13 = vld [vmem:[#allocation6 + $0x4b0] sm:$0xff]  ;;  %v7097_v31 = vmul.f32 %v9577_v11, %v850_v14  ;;  %v7102_v52 = vld [vmem:[#allocation6 + $0x78] sm:$0xff]  ;;  %v1155_v21 = vadd.f32 %v6965_v63, %v1110_v57  ;;  %v616_v11 = vadd.f32 %v608_v60, %v571_v43 }
 0x11a   :  { %v9574_v32 = vld [vmem:[#allocation51_spill] sm:$0xff]  ;;  %v9583_v59 = vld [vmem:[#allocation60_spill] sm:$0xff] }
 0x11b   :  { %v7090_v18 = vmul.f32 %v9574_v32, %v805_v6  ;;  %v940_v61 = vld [vmem:[#allocation6 + $0x4f0] sm:$0xff]  ;;  %9578 = vst [vmem:[#allocation265_spill] sm:$0xff] %v7097_v31  ;;  %v78_v4 = vld [vmem:[%s8946_s2 + $0x38] sm:$0xff]  ;;  %v1200_v60 = vadd.f32 %v6971_v17, %v1155_v21  ;;  %v9604_v21 = vld [vmem:[#allocation17_spill] sm:$0xff]  ;;  %s5487_s2 = smov 7  }
 0x11c   :  { %v985_v56 = vld [vmem:[#allocation6 + $0x530] sm:$0xff]  ;;  %v7111_v53 = vmul.f32 %v9583_v59, %v940_v61  ;;  %v9585_v55 = vld [vmem:[#allocation20_spill] sm:$0xff] }
 0x11d   :  { %9575 = vst [vmem:[#allocation264_spill] sm:$0xff] %v7090_v18  ;;  %v9580_v12 = vld [vmem:[#allocation55_spill] sm:$0xff]  ;;  %v96_v58 = vmul.f32 %v9585_v55, %v86_v16  ;;  %v176_v14 = vld [vmem:[#allocation6 + $0xb8] sm:$0xff] }
 0x11e   :  { %v7105_v32 = vmul.f32 %v9580_v12, %v895_v13  ;;  %v9582_v18 = vld [vmem:[#allocation59_spill] sm:$0xff]  ;;  %9584 = vst [vmem:[#allocation267_spill] sm:$0xff] %v7111_v53  ;;  %v9589_v20 = vld [vmem:[#allocation64_spill] sm:$0xff]  ;;  %v9591_v53 = vld [vmem:[#allocation65_spill] sm:$0xff] }
 0x11f   :  { %v7108_v6 = vmul.f32 %v9582_v18, %v895_v13  ;;  %v9586_v31 = vld [vmem:[#allocation63_spill] sm:$0xff]  ;;  %v9588_v13 = vld [vmem:[#allocation14_spill] sm:$0xff]  ;;  %v7123_v59 = vmul.f32 %v9589_v20, %v985_v56  ;;  %v7126_v24 = vmul.f32 %v9591_v53, %v985_v56  ;;  %v7128_v48 = vadd.f32 %v96_v58, %v78_v4  ;;  %v221_v63 = vld [vmem:[#allocation6 + $0xf8] sm:$0xff] }
 0x120   :  { %9581 = vst [vmem:[#allocation266_spill] sm:$0xff] %v7105_v32  ;;  %v7119_v9 = vmul.f32 %v9586_v31, %v940_v61  ;;  %v1030_v12 = vld [vmem:[#allocation6 + $0x570] sm:$0xff]  ;;  %v114_v18 = vmul.f32 %v9588_v13, %v86_v16  ;;  %v661_v61 = vadd.f32 %v653_v37, %v616_v11  ;;  %v9599_v58 = vld [vmem:[#allocation69_spill] sm:$0xff]  ;;  %v9601_v53 = vld [vmem:[#allocation70_spill] sm:$0xff]  ;;  %v1245_v37 = vadd.f32 %v6979_v62, %v1200_v60 }
 0x121   :  { %v1075_v32 = vld [vmem:[#allocation6 + $0x5b0] sm:$0xff]  ;;  %9590 = vst [vmem:[#allocation14_spill] sm:$0xff] %v7123_v59  ;;  %9592 = vst [vmem:[#allocation268_spill] sm:$0xff] %v7126_v24  ;;  %v9598_v59 = vld [vmem:[#allocation68_spill] sm:$0xff] }
 0x122   :  { %9587 = vst [vmem:[#allocation20_spill] sm:$0xff] %v7119_v9  ;;  %9593 = vst [vmem:[#allocation269_spill] sm:$0xff] %v7128_v48  ;;  %v9594_v55 = vld [vmem:[#allocation15_spill] sm:$0xff]  ;;  %v122_v31 = vadd.f32 %v114_v18, %v78_v4  ;;  %v9595_v9 = vld [vmem:[#allocation16_spill] sm:$0xff]  ;;  %v7138_v56 = vmul.f32 %v9598_v59, %v1030_v12  ;;  %v7141_v48 = vmul.f32 %v9599_v58, %v1075_v32 }
 0x123   :  { %v159_v50 = vmul.f32 %v9594_v55, %v7102_v52  ;;  %v1120_v57 = vld [vmem:[#allocation6 + $0x5f0] sm:$0xff]  ;;  %v204_v16 = vmul.f32 %v9595_v9, %v176_v14  ;;  %v7144_v55 = vmul.f32 %v9601_v53, %v1075_v32  ;;  %v266_v24 = vld [vmem:[#allocation6 + $0x138] sm:$0xff]  ;;  %v706_v17 = vadd.f32 %v698_v46, %v661_v61 }
 0x124   :  { %v1165_v43 = vld [vmem:[#allocation6 + $0x630] sm:$0xff]  ;;  %9600 = vst [vmem:[#allocation16_spill] sm:$0xff] %v7141_v48  ;;  %v7156_v58 = vmul.f32 %v9528_v38, %v1120_v57  ;;  %v9609_v48 = vld [vmem:[#allocation76_spill] sm:$0xff]  ;;  %v1290_v61 = vadd.f32 %v6985_v1, %v1245_v37 }
 0x125   :  { %v9596_v13 = vld [vmem:[#allocation67_spill] sm:$0xff]  ;;  %v167_v4 = vadd.f32 %v159_v50, %v122_v31  ;;  %v7159_v32 = vmul.f32 %v9529_v49, %v1165_v43  ;;  %v7162_v62 = vmul.f32 %v9609_v48, %v1165_v43  ;;  %v311_v60 = vld [vmem:[#allocation6 + $0x178] sm:$0xff]  ;;  %v751_v50 = vadd.f32 %v743_v23, %v706_v17 }
 0x126   :  { %v7135_v20 = vmul.f32 %v9596_v13, %v1030_v12  ;;  %v1210_v11 = vld [vmem:[#allocation6 + $0x670] sm:$0xff]  ;;  %v249_v13 = vmul.f32 %v9604_v21, %v221_v63  ;;  %9607 = vst [vmem:[#allocation270_spill] sm:$0xff] %v7156_v58  ;;  %v356_v1 = vld [vmem:[#allocation6 + $0x1b8] sm:$0xff]  ;;  %v1335_v37 = vadd.f32 %v6993_v5, %v1290_v61  ;;  %v339_v17 = vmul.f32 %v9536_v7, %v311_v60 }
 0x127   :  { %v7147_v18 = vld [vmem:[#allocation6 + $0x6b0] sm:$0xff]  ;;  %9608 = vst [vmem:[#allocation271_spill] sm:$0xff] %v7159_v32  ;;  %9610 = vst [vmem:[#allocation76_spill] sm:$0xff] %v7162_v62  ;;  %v7178_v43 = vmul.f32 %v9460_v35, %v1210_v11 }
 0x128   :  { %9597 = vst [vmem:[#allocation15_spill] sm:$0xff] %v7135_v20  ;;  %9602 = vst [vmem:[#allocation68_spill] sm:$0xff] %v7147_v18  ;;  %v7149_v9 = vld [vmem:[#allocation6 + $0x6f0] sm:$0xff]  ;;  %v7182_v62 = vmul.f32 %v9238_v10, %v7147_v18  ;;  %v9673_v18 = vld [vmem:[#allocation166_spill] sm:$0xff] }
 0x129   :  { %9603 = vst [vmem:[#allocation70_spill] sm:$0xff] %v7149_v9  ;;  %v9605_v12 = vld [vmem:[#allocation71_spill] sm:$0xff]  ;;  %v7186_v23 = vmul.f32 %v9242_v15, %v7149_v9  ;;  %v7318_v9 = vld [vmem:[#allocation6 + $0x738] sm:$0xff] }
 0x12a   :  { %v7153_v20 = vmul.f32 %v9605_v12, %v1120_v57  ;;  %v7164_v46 = vld [vmem:[#allocation6 + $0x730] sm:$0xff]  ;;  %v212_v57 = vadd.f32 %v204_v16, %v167_v4  ;;  %v796_v16 = vadd.f32 %v7087_v41, %v751_v50  ;;  %v401_v41 = vld [vmem:[#allocation6 + $0x1f8] sm:$0xff]  ;;  %v384_v50 = vmul.f32 %v5619_v22, %v356_v1 }
 0x12b   :  { %9611 = vst [vmem:[#allocation272_spill] sm:$0xff] %v7164_v46  ;;  %v7167_v31 = vld [vmem:[#allocation6 + $0x770] sm:$0xff]  ;;  %v429_v22 = vmul.f32 %v5638_v28, %v401_v41 }
 0x12c   :  { %9606 = vst [vmem:[#allocation17_spill] sm:$0xff] %v7153_v20  ;;  %9612 = vst [vmem:[#allocation273_spill] sm:$0xff] %v7167_v31  ;;  %v7169_v21 = vld [vmem:[#allocation6 + $0x7b0] sm:$0xff]  ;;  %v9615_v20 = vld [vmem:[#allocation18_spill] sm:$0xff]  ;;  %v7197_v4 = vmul.f32 %v6015_v19, %v7167_v31  ;;  %v841_v7 = vadd.f32 %v7093_v45, %v796_v16  ;;  %v7215_v31 = vmul.f32 %v5645_v29, %v176_v14 }
 0x12d   :  { %9613 = vst [vmem:[#allocation274_spill] sm:$0xff] %v7169_v21  ;;  %v7171_v12 = vld [vmem:[#allocation6 + $0x7f0] sm:$0xff]  ;;  %v294_v58 = vmul.f32 %v9615_v20, %v266_v24  ;;  %v257_v20 = vadd.f32 %v249_v13, %v212_v57  ;;  %v1380_v13 = vadd.f32 %v6999_v40, %v1335_v37  ;;  %v7212_v57 = vmul.f32 %v5635_v26, %v7102_v52  ;;  %v491_v37 = vld [vmem:[#allocation6 + $0x278] sm:$0xff] }
 0x12e   :  { %9614 = vst [vmem:[#allocation275_spill] sm:$0xff] %v7171_v12  ;;  %v9616_v49 = vld [vmem:[#allocation79_spill] sm:$0xff]  ;;  %v7205_v5 = vmul.f32 %v6038_v47, %v7171_v12  ;;  %v7221_v12 = vmul.f32 %v5664_v36, %v266_v24  ;;  %v886_v45 = vadd.f32 %v7100_v3, %v841_v7  ;;  %v536_v26 = vld [vmem:[#allocation6 + $0x2b8] sm:$0xff]  ;;  %v7227_v52 = vmul.f32 %v5688_v44, %v311_v60  ;;  %v9618_v60 = vld [vmem:[#allocation29_spill] sm:$0xff] }
 0x12f   :  { %v7175_v32 = vmul.f32 %v9616_v49, %v1210_v11  ;;  %v7193_v11 = vmul.f32 %v6005_v51, %v7164_v46  ;;  %v7201_v49 = vmul.f32 %v6021_v8, %v7169_v21  ;;  %v302_v61 = vadd.f32 %v294_v58, %v257_v20  ;;  %v446_v46 = vld [vmem:[#allocation6 + $0x238] sm:$0xff]  ;;  %v9628_v7 = vld [vmem:[#allocation35_spill] sm:$0xff] }
 0x130   :  { %v7218_v21 = vmul.f32 %v5648_v30, %v221_v63  ;;  %v1425_v40 = vadd.f32 %v7008_v25, %v1380_v13  ;;  %v7230_v29 = vmul.f32 %v9403_v27, %v356_v1  ;;  %v7233_v30 = vmul.f32 %v9549_v42, %v401_v41  ;;  %v581_v14 = vld [vmem:[#allocation6 + $0x2f8] sm:$0xff]  ;;  %v9623_v41 = vld [vmem:[#allocation34_spill] sm:$0xff] }
 0x131   :  { %9617 = vst [vmem:[#allocation18_spill] sm:$0xff] %v7175_v32  ;;  %v347_v58 = vadd.f32 %v339_v17, %v302_v61  ;;  %v7236_v36 = vmul.f32 %v9552_v2, %v446_v46  ;;  %v931_v3 = vadd.f32 %v7108_v6, %v886_v45  ;;  %v474_v28 = vmul.f32 %v5656_v34, %v446_v46  ;;  %v626_v63 = vld [vmem:[#allocation6 + $0x338] sm:$0xff]  ;;  %v9621_v6 = vld [vmem:[#allocation254_spill] sm:$0xff]  ;;  %v9631_v45 = vld [vmem:[#allocation37_spill] sm:$0xff] }
 0x132   :  { %v1470_v24 = vadd.f32 %v7014_v39, %v1425_v40  ;;  %v7242_v44 = vmul.f32 %v9554_v0, %v491_v37  ;;  %v519_v27 = vmul.f32 %v9551_v54, %v491_v37  ;;  %v7246_v42 = vmul.f32 %v9556_v33, %v536_v26  ;;  %v671_v1 = vld [vmem:[#allocation6 + $0x378] sm:$0xff]  ;;  %v9632_v37 = vld [vmem:[#allocation42_spill] sm:$0xff] }
 0x133   :  { %v392_v25 = vadd.f32 %v384_v50, %v347_v58  ;;  %v564_v2 = vmul.f32 %v9618_v60, %v536_v26  ;;  %v7249_v16 = vld [vmem:[#allocation6 + $0x3b8] sm:$0xff]  ;;  %v7256_v0 = vmul.f32 %v9623_v41, %v581_v14  ;;  %v609_v61 = vmul.f32 %v9628_v7, %v581_v14  ;;  %v9638_v14 = vld [vmem:[#allocation43_spill] sm:$0xff] }
 0x134   :  { %9619 = vst [vmem:[#allocation29_spill] sm:$0xff] %v7249_v16  ;;  %v7251_v39 = vld [vmem:[#allocation6 + $0x3f8] sm:$0xff]  ;;  %v1515_v20 = vadd.f32 %v9621_v6, %v1470_v24  ;;  %v654_v58 = vmul.f32 %v9631_v45, %v626_v63  ;;  %v7270_v26 = vmul.f32 %v9632_v37, %v671_v1  ;;  %v9639_v41 = vld [vmem:[#allocation47_spill] sm:$0xff]  ;;  %v9643_v37 = vld [vmem:[#allocation49_spill] sm:$0xff] }
 0x135   :  { %9620 = vst [vmem:[#allocation276_spill] sm:$0xff] %v7251_v39  ;;  %v9622_v34 = vld [vmem:[#allocation20_spill] sm:$0xff]  ;;  %v437_v17 = vadd.f32 %v429_v22, %v392_v25  ;;  %9624 = vst [vmem:[#allocation254_spill] sm:$0xff] %v7256_v0  ;;  %v744_v7 = vmul.f32 %v9639_v41, %v7249_v16 }
 0x136   :  { %v976_v46 = vadd.f32 %v9622_v34, %v931_v3  ;;  %v7258_v13 = vld [vmem:[#allocation6 + $0x438] sm:$0xff]  ;;  %1536 = vrot.lane.b32.xlu1 %v1515_v20, %s5486_s12  ;;  %v699_v34 = vmul.f32 %v9638_v14, %v671_v1  ;;  %v9646_v1 = vld [vmem:[#allocation59_spill] sm:$0xff] }
 0x137   :  { %9625 = vst [vmem:[#allocation20_spill] sm:$0xff] %v7258_v13  ;;  %v7260_v54 = vld [vmem:[#allocation6 + $0x478] sm:$0xff]  ;;  %v482_v6 = vadd.f32 %v474_v28, %v437_v17  ;;  %v9645_v28 = vld [vmem:[#allocation54_spill] sm:$0xff]  ;;  %9652 = vst [vmem:[#allocation59_spill] sm:$0xff] %v7318_v9 }
 0x138   :  { %9626 = vst [vmem:[#allocation34_spill] sm:$0xff] %v7260_v54  ;;  %v7262_v33 = vld [vmem:[#allocation6 + $0x4b8] sm:$0xff] }
 0x139   :  { %9627 = vst [vmem:[#allocation277_spill] sm:$0xff] %v7262_v33  ;;  %v9629_v50 = vld [vmem:[#allocation36_spill] sm:$0xff]  ;;  %v7301_v17 = vmul.f32 %v9646_v1, %v7262_v33 }
 0x13a   :  { %v7266_v40 = vmul.f32 %v9629_v50, %v626_v63  ;;  %9633 = vst [vmem:[#allocation36_spill] sm:$0xff] %v7270_v26  ;;  %v7272_v22 = vld [vmem:[#allocation6 + $0x4f8] sm:$0xff]  ;;  %v789_v26 = vmul.f32 %v9643_v37, %v7251_v39  ;;  %v527_v39 = vadd.f32 %v519_v27, %v482_v6 }
 0x13b   :  { %9634 = vst [vmem:[#allocation37_spill] sm:$0xff] %v7272_v22  ;;  %v7274_v24 = vld [vmem:[#allocation6 + $0x538] sm:$0xff] }
 0x13c   :  { %9630 = vst [vmem:[#allocation35_spill] sm:$0xff] %v7266_v40  ;;  %9635 = vst [vmem:[#allocation42_spill] sm:$0xff] %v7274_v24  ;;  %v7276_v3 = vld [vmem:[#allocation6 + $0x578] sm:$0xff] }
 0x13d   :  { %9636 = vst [vmem:[#allocation278_spill] sm:$0xff] %v7276_v3  ;;  %v9637_v25 = vld [vmem:[#allocation268_spill] sm:$0xff]  ;;  %v7326_v40 = vmul.f32 %v9598_v59, %v7276_v3  ;;  %v9666_v3 = vld [vmem:[#allocation193_spill] sm:$0xff] }
 0x13e   :  { %v1021_v60 = vadd.f32 %v9637_v25, %v976_v46  ;;  %v7283_v63 = vld [vmem:[#allocation6 + $0x5b8] sm:$0xff]  ;;  %v7297_v46 = vmul.f32 %v9645_v28, %v7260_v54  ;;  %v9651_v28 = vld [vmem:[#allocation65_spill] sm:$0xff] }
 0x13f   :  { %9640 = vst [vmem:[#allocation268_spill] sm:$0xff] %v7283_v63  ;;  %v7285_v50 = vld [vmem:[#allocation6 + $0x5f8] sm:$0xff]  ;;  %v7316_v54 = vmul.f32 %v9651_v28, %v7274_v24  ;;  %v572_v28 = vadd.f32 %v564_v2, %v527_v39  ;;  %v9656_v2 = vld [vmem:[#allocation270_spill] sm:$0xff] }
 0x140   :  { %9641 = vst [vmem:[#allocation43_spill] sm:$0xff] %v7285_v50  ;;  %v7287_v45 = vld [vmem:[#allocation6 + $0x638] sm:$0xff]  ;;  %v1066_v37 = vadd.f32 %v7138_v56, %v1021_v60  ;;  %v7330_v56 = vmul.f32 %v9601_v53, %v7283_v63  ;;  %v7334_v27 = vmul.f32 %v9528_v38, %v7285_v50  ;;  %v9663_v50 = vld [vmem:[#allocation155_spill] sm:$0xff]  ;;  %v9664_v63 = vld [vmem:[#allocation130_spill] sm:$0xff] }
 0x141   :  { %9642 = vst [vmem:[#allocation47_spill] sm:$0xff] %v7287_v45  ;;  %v9644_v32 = vld [vmem:[#allocation52_spill] sm:$0xff]  ;;  %v7338_v60 = vmul.f32 %v9609_v48, %v7287_v45  ;;  %v7357_v48 = vmul.f32 %v6005_v51, %v7318_v9  ;;  %v9661_v45 = vld [vmem:[#allocation119_spill] sm:$0xff] }
 0x142   :  { %v7293_v20 = vmul.f32 %v9644_v32, %v7258_v13  ;;  %v7303_v25 = vld [vmem:[#allocation6 + $0x678] sm:$0xff]  ;;  %v9650_v32 = vld [vmem:[#allocation63_spill] sm:$0xff] }
 0x143   :  { %9647 = vst [vmem:[#allocation49_spill] sm:$0xff] %v7303_v25  ;;  %v7305_v14 = vld [vmem:[#allocation6 + $0x6b8] sm:$0xff]  ;;  %v7312_v13 = vmul.f32 %v9650_v32, %v7272_v22  ;;  %v1111_v32 = vadd.f32 %v7144_v55, %v1066_v37  ;;  %v7345_v59 = vmul.f32 %v9460_v35, %v7303_v25  ;;  %v9670_v22 = vld [vmem:[#allocation223_spill] sm:$0xff] }
 0x144   :  { %9648 = vst [vmem:[#allocation52_spill] sm:$0xff] %v7305_v14  ;;  %v7307_v41 = vld [vmem:[#allocation6 + $0x6f8] sm:$0xff]  ;;  %v7349_v53 = vmul.f32 %v9238_v10, %v7305_v14  ;;  %v617_v10 = vadd.f32 %v609_v61, %v572_v28 }
 0x145   :  { %9649 = vst [vmem:[#allocation54_spill] sm:$0xff] %v7307_v41  ;;  %v7320_v1 = vld [vmem:[#allocation6 + $0x778] sm:$0xff]  ;;  %v7353_v38 = vmul.f32 %v9242_v15, %v7307_v41  ;;  %v1156_v39 = vadd.f32 %v9656_v2, %v1111_v32  ;;  %v9657_v15 = vld [vmem:[#allocation83_spill] sm:$0xff]  ;;  %v9658_v41 = vld [vmem:[#allocation21_spill] sm:$0xff] }
 0x146   :  { %9653 = vst [vmem:[#allocation63_spill] sm:$0xff] %v7320_v1  ;;  %v7322_v33 = vld [vmem:[#allocation6 + $0x7b8] sm:$0xff]  ;;  %v7361_v55 = vmul.f32 %v6015_v19, %v7320_v1  ;;  %v142_v14 = vadd.f32 %v9658_v41, %v9657_v15  ;;  %v662_v2 = vadd.f32 %v654_v58, %v617_v10  ;;  %v9671_v15 = vld [vmem:[#allocation101_spill] sm:$0xff]  ;;  %v9677_v10 = vld [vmem:[#allocation102_spill] sm:$0xff] }
 0x147   :  { %9654 = vst [vmem:[#allocation65_spill] sm:$0xff] %v7322_v33  ;;  %v7340_v6 = vld [vmem:[#allocation6 + $0x7f8] sm:$0xff]  ;;  %v7365_v35 = vmul.f32 %v6021_v8, %v7322_v33  ;;  %v145_v8 = vadd.f32 %v9664_v63, %v9663_v50  ;;  %v9665_v33 = vld [vmem:[#allocation182_spill] sm:$0xff] }
 0x148   :  { %9655 = vst [vmem:[#allocation279_spill] sm:$0xff] %v7340_v6  ;;  %v7370_v37 = vmul.f32 %v6038_v47, %v7340_v6  ;;  %v9659_v51 = vld [vmem:[#allocation84_spill] sm:$0xff]  ;;  %v146_v32 = vadd.f32 %v9666_v3, %v9665_v33  ;;  %v9668_v47 = vld [vmem:[#allocation22_spill] sm:$0xff]  ;;  %v707_v50 = vadd.f32 %v699_v34, %v662_v2  ;;  %v9675_v33 = vld [vmem:[#allocation23_spill] sm:$0xff] }
 0x149   :  { %v9660_v9 = vld [vmem:[#allocation100_spill] sm:$0xff]  ;;  %v187_v6 = vadd.f32 %v9668_v47, %v142_v14  ;;  %v9683_v34 = vld [vmem:[#allocation103_spill] sm:$0xff] }
 0x14a   :  { %v144_v25 = vadd.f32 %v9660_v9, %v9659_v51  ;;  %v9662_v19 = vld [vmem:[#allocation136_spill] sm:$0xff]  ;;  %v9672_v9 = vld [vmem:[#allocation137_spill] sm:$0xff] }
 0x14b   :  { %v143_v1 = vadd.f32 %v9662_v19, %v9661_v45  ;;  %v9667_v61 = vld [vmem:[#allocation76_spill] sm:$0xff]  ;;  %v190_v45 = vadd.f32 %v9673_v18, %v145_v8  ;;  %v9674_v19 = vld [vmem:[#allocation194_spill] sm:$0xff]  ;;  %v232_v3 = vadd.f32 %v9675_v33, %v187_v6  ;;  %v752_v18 = vadd.f32 %v744_v7, %v707_v50  ;;  %v9684_v6 = vld [vmem:[#allocation139_spill] sm:$0xff] }
 0x14c   :  { %v1201_v28 = vadd.f32 %v9667_v61, %v1156_v39  ;;  %v9669_v24 = vld [vmem:[#allocation212_spill] sm:$0xff]  ;;  %v189_v16 = vadd.f32 %v9671_v15, %v144_v25  ;;  %v191_v0 = vadd.f32 %v9674_v19, %v146_v32  ;;  %v9678_v61 = vld [vmem:[#allocation138_spill] sm:$0xff]  ;;  %v9680_v25 = vld [vmem:[#allocation195_spill] sm:$0xff] }
 0x14d   :  { %v147_v41 = vadd.f32 %v9670_v22, %v9669_v24  ;;  %v188_v51 = vadd.f32 %v9672_v9, %v143_v1  ;;  %v9676_v39 = vld [vmem:[#allocation224_spill] sm:$0xff]  ;;  %v9679_v22 = vld [vmem:[#allocation167_spill] sm:$0xff]  ;;  %v9681_v8 = vld [vmem:[#allocation26_spill] sm:$0xff] }
 0x14e   :  { %v1246_v63 = vadd.f32 %v7178_v43, %v1201_v28  ;;  %v234_v14 = vadd.f32 %v9677_v10, %v189_v16  ;;  %v235_v24 = vadd.f32 %v9679_v22, %v190_v45  ;;  %v236_v15 = vadd.f32 %v9680_v25, %v191_v0  ;;  %v9682_v9 = vld [vmem:[#allocation225_spill] sm:$0xff]  ;;  %v9686_v16 = vld [vmem:[#allocation196_spill] sm:$0xff]  ;;  %v9688_v10 = vld [vmem:[#allocation226_spill] sm:$0xff] }
 0x14f   :  { %v192_v58 = vadd.f32 %v9676_v39, %v147_v41  ;;  %v233_v47 = vadd.f32 %v9678_v61, %v188_v51  ;;  %v277_v32 = vadd.f32 %v9681_v8, %v232_v3  ;;  %v9685_v41 = vld [vmem:[#allocation168_spill] sm:$0xff]  ;;  %v797_v45 = vadd.f32 %v789_v26, %v752_v18  ;;  %v9693_v25 = vld [vmem:[#allocation33_spill] sm:$0xff] }
 0x150   :  { %v1291_v1 = vadd.f32 %v7182_v62, %v1246_v63  ;;  %v279_v28 = vadd.f32 %v9683_v34, %v234_v14  ;;  %v280_v19 = vadd.f32 %v9685_v41, %v235_v24  ;;  %v281_v33 = vadd.f32 %v9686_v16, %v236_v15  ;;  %v9687_v39 = vld [vmem:[#allocation32_spill] sm:$0xff]  ;;  %v9692_v14 = vld [vmem:[#allocation197_spill] sm:$0xff]  ;;  %v9699_v41 = vld [vmem:[#allocation38_spill] sm:$0xff] }
 0x151   :  { %v237_v43 = vadd.f32 %v9682_v9, %v192_v58  ;;  %v278_v2 = vadd.f32 %v9684_v6, %v233_v47  ;;  %v322_v0 = vadd.f32 %v9687_v39, %v277_v32  ;;  %v9689_v7 = vld [vmem:[#allocation104_spill] sm:$0xff]  ;;  %v9691_v58 = vld [vmem:[#allocation169_spill] sm:$0xff]  ;;  %v842_v24 = vadd.f32 %v7293_v20, %v797_v45  ;;  %v9697_v9 = vld [vmem:[#allocation170_spill] sm:$0xff] }
 0x152   :  { %v1336_v51 = vadd.f32 %v7186_v23, %v1291_v1  ;;  %v324_v63 = vadd.f32 %v9689_v7, %v279_v28  ;;  %v9690_v50 = vld [vmem:[#allocation140_spill] sm:$0xff]  ;;  %v325_v61 = vadd.f32 %v9691_v58, %v280_v19  ;;  %v326_v22 = vadd.f32 %v9692_v14, %v281_v33  ;;  %v9694_v23 = vld [vmem:[#allocation227_spill] sm:$0xff]  ;;  %v9695_v1 = vld [vmem:[#allocation105_spill] sm:$0xff] }
 0x153   :  { %v282_v62 = vadd.f32 %v9688_v10, %v237_v43  ;;  %v323_v3 = vadd.f32 %v9690_v50, %v278_v2  ;;  %v367_v15 = vadd.f32 %v9693_v25, %v322_v0  ;;  %v9696_v8 = vld [vmem:[#allocation141_spill] sm:$0xff]  ;;  %v887_v2 = vadd.f32 %v7297_v46, %v842_v24  ;;  %v9700_v19 = vld [vmem:[#allocation228_spill] sm:$0xff]  ;;  %v9701_v16 = vld [vmem:[#allocation106_spill] sm:$0xff] }
 0x154   :  { %v1381_v47 = vadd.f32 %v7193_v11, %v1336_v51  ;;  %v369_v18 = vadd.f32 %v9695_v1, %v324_v63  ;;  %v370_v43 = vadd.f32 %v9697_v9, %v325_v61  ;;  %v9698_v34 = vld [vmem:[#allocation25_spill] sm:$0xff]  ;;  %v9702_v51 = vld [vmem:[#allocation142_spill] sm:$0xff]  ;;  %v9703_v39 = vld [vmem:[#allocation171_spill] sm:$0xff] }
 0x155   :  { %v327_v26 = vadd.f32 %v9694_v23, %v282_v62  ;;  %v368_v32 = vadd.f32 %v9696_v8, %v323_v3  ;;  %v371_v28 = vadd.f32 %v9698_v34, %v326_v22  ;;  %v412_v11 = vadd.f32 %v9699_v41, %v367_v15  ;;  %v9704_v10 = vld [vmem:[#allocation198_spill] sm:$0xff]  ;;  %v9705_v50 = vld [vmem:[#allocation39_spill] sm:$0xff]  ;;  %v9706_v3 = vld [vmem:[#allocation229_spill] sm:$0xff] }
 0x156   :  { %v1426_v6 = vadd.f32 %v7197_v4, %v1381_v47  ;;  %v414_v33 = vadd.f32 %v9701_v16, %v369_v18  ;;  %v415_v0 = vadd.f32 %v9703_v39, %v370_v43  ;;  %v932_v63 = vadd.f32 %v7301_v17, %v887_v2  ;;  %v9707_v58 = vld [vmem:[#allocation107_spill] sm:$0xff]  ;;  %v9709_v47 = vld [vmem:[#allocation172_spill] sm:$0xff]  ;;  %v9712_v18 = vld [vmem:[#allocation230_spill] sm:$0xff] }
 0x157   :  { %v372_v20 = vadd.f32 %v9700_v19, %v327_v26  ;;  %v413_v45 = vadd.f32 %v9702_v51, %v368_v32  ;;  %v416_v62 = vadd.f32 %v9704_v10, %v371_v28  ;;  %v457_v4 = vadd.f32 %v9705_v50, %v412_v11  ;;  %v9708_v14 = vld [vmem:[#allocation143_spill] sm:$0xff]  ;;  %v9711_v1 = vld [vmem:[#allocation40_spill] sm:$0xff]  ;;  %v9715_v34 = vld [vmem:[#allocation133_spill] sm:$0xff] }
 0x158   :  { %v1471_v7 = vadd.f32 %v7201_v49, %v1426_v6  ;;  %v459_v61 = vadd.f32 %v9707_v58, %v414_v33  ;;  %v460_v24 = vadd.f32 %v9709_v47, %v415_v0  ;;  %v9710_v25 = vld [vmem:[#allocation199_spill] sm:$0xff]  ;;  %v977_v26 = vadd.f32 %v7312_v13, %v932_v63  ;;  %v9713_v8 = vld [vmem:[#allocation108_spill] sm:$0xff]  ;;  %v9717_v11 = vld [vmem:[#allocation41_spill] sm:$0xff] }
 0x159   :  { %v417_v46 = vadd.f32 %v9706_v3, %v372_v20  ;;  %v458_v22 = vadd.f32 %v9708_v14, %v413_v45  ;;  %v461_v15 = vadd.f32 %v9710_v25, %v416_v62  ;;  %v502_v49 = vadd.f32 %v9711_v1, %v457_v4  ;;  %v9714_v9 = vld [vmem:[#allocation144_spill] sm:$0xff]  ;;  %v9718_v19 = vld [vmem:[#allocation231_spill] sm:$0xff]  ;;  %v9721_v51 = vld [vmem:[#allocation109_spill] sm:$0xff] }
 0x15a   :  { %v1516_v23 = vadd.f32 %v7205_v5, %v1471_v7  ;;  %v504_v32 = vadd.f32 %v9713_v8, %v459_v61  ;;  %v505_v28 = vadd.f32 %v9715_v34, %v460_v24  ;;  %v9716_v6 = vld [vmem:[#allocation200_spill] sm:$0xff]  ;;  %v1022_v41 = vadd.f32 %v7316_v54, %v977_v26  ;;  %v9720_v16 = vld [vmem:[#allocation255_spill] sm:$0xff]  ;;  %v9722_v39 = vld [vmem:[#allocation145_spill] sm:$0xff] }
 0x15b   :  { %v462_v17 = vadd.f32 %v9712_v18, %v417_v46  ;;  %v503_v43 = vadd.f32 %v9714_v9, %v458_v22  ;;  %v506_v2 = vadd.f32 %v9716_v6, %v461_v15  ;;  %v547_v5 = vadd.f32 %v9717_v11, %v502_v49  ;;  %v9719_v20 = vld [vmem:[#allocation244_spill] sm:$0xff]  ;;  %v9723_v10 = vld [vmem:[#allocation173_spill] sm:$0xff]  ;;  %v9728_v14 = vld [vmem:[#allocation110_spill] sm:$0xff] }
 0x15c   :  { %1538 = vrot.lane.b32.xlu0 %v1516_v23, %s5486_s12  ;;  %v148_v33 = vadd.f32 %v9720_v16, %v9719_v20  ;;  %v549_v45 = vadd.f32 %v9721_v51, %v504_v32  ;;  %v550_v62 = vadd.f32 %v9723_v10, %v505_v28  ;;  %v9724_v7 = vld [vmem:[#allocation201_spill] sm:$0xff]  ;;  %v1067_v50 = vadd.f32 %v7326_v40, %v1022_v41  ;;  %v9725_v4 = vld [vmem:[#allocation44_spill] sm:$0xff]  ;;  %v9729_v47 = vld [vmem:[#allocation146_spill] sm:$0xff] }
 0x15d   :  { %v507_v13 = vadd.f32 %v9718_v19, %v462_v17  ;;  %v548_v0 = vadd.f32 %v9722_v39, %v503_v43  ;;  %v551_v63 = vadd.f32 %v9724_v7, %v506_v2  ;;  %v592_v3 = vadd.f32 %v9725_v4, %v547_v5  ;;  %v9726_v54 = vld [vmem:[#allocation232_spill] sm:$0xff]  ;;  %v9730_v25 = vld [vmem:[#allocation174_spill] sm:$0xff]  ;;  %v9732_v49 = vld [vmem:[#allocation45_spill] sm:$0xff] }
 0x15e   :  { %v9727_v58 = vld [vmem:[#allocation256_spill] sm:$0xff]  ;;  %v594_v22 = vadd.f32 %v9728_v14, %v549_v45  ;;  %v595_v15 = vadd.f32 %v9730_v25, %v550_v62  ;;  %v9731_v23 = vld [vmem:[#allocation202_spill] sm:$0xff]  ;;  %v1112_v1 = vadd.f32 %v7330_v56, %v1067_v50  ;;  %v9733_v17 = vld [vmem:[#allocation233_spill] sm:$0xff] }
 0x15f   :  { %v552_v46 = vadd.f32 %v9726_v54, %v507_v13  ;;  %v193_v61 = vadd.f32 %v9727_v58, %v148_v33  ;;  %v593_v24 = vadd.f32 %v9729_v47, %v548_v0  ;;  %v596_v26 = vadd.f32 %v9731_v23, %v551_v63  ;;  %v9734_v8 = vld [vmem:[#allocation257_spill] sm:$0xff]  ;;  %v9735_v9 = vld [vmem:[#allocation111_spill] sm:$0xff]  ;;  %v9739_v19 = vld [vmem:[#allocation50_spill] sm:$0xff] }
 0x160   :  { %v637_v18 = vadd.f32 %v9732_v49, %v592_v3  ;;  %v639_v43 = vadd.f32 %v9735_v9, %v594_v22  ;;  %v9736_v34 = vld [vmem:[#allocation147_spill] sm:$0xff]  ;;  %v1157_v5 = vadd.f32 %v7334_v27, %v1112_v1  ;;  %v9740_v20 = vld [vmem:[#allocation234_spill] sm:$0xff]  ;;  %v9742_v51 = vld [vmem:[#allocation112_spill] sm:$0xff] }
 0x161   :  { %v597_v40 = vadd.f32 %v9733_v17, %v552_v46  ;;  %v238_v32 = vadd.f32 %v9734_v8, %v193_v61  ;;  %v638_v28 = vadd.f32 %v9736_v34, %v593_v24  ;;  %v9737_v6 = vld [vmem:[#allocation135_spill] sm:$0xff]  ;;  %v9741_v16 = vld [vmem:[#allocation258_spill] sm:$0xff]  ;;  %v9743_v39 = vld [vmem:[#allocation148_spill] sm:$0xff] }
 0x162   :  { %v640_v2 = vadd.f32 %v9737_v6, %v595_v15  ;;  %v9738_v41 = vld [vmem:[#allocation203_spill] sm:$0xff]  ;;  %v682_v13 = vadd.f32 %v9739_v19, %v637_v18  ;;  %v684_v45 = vadd.f32 %v9742_v51, %v639_v43  ;;  %v9744_v10 = vld [vmem:[#allocation157_spill] sm:$0xff]  ;;  %v9745_v7 = vld [vmem:[#allocation204_spill] sm:$0xff]  ;;  %v1202_v50 = vadd.f32 %v7338_v60, %v1157_v5 }
 0x163   :  { %v641_v11 = vadd.f32 %v9738_v41, %v596_v26  ;;  %v642_v56 = vadd.f32 %v9740_v20, %v597_v40  ;;  %v283_v33 = vadd.f32 %v9741_v16, %v238_v32  ;;  %v683_v0 = vadd.f32 %v9743_v39, %v638_v28  ;;  %v9746_v4 = vld [vmem:[#allocation56_spill] sm:$0xff]  ;;  %v9747_v54 = vld [vmem:[#allocation235_spill] sm:$0xff]  ;;  %v9749_v61 = vld [vmem:[#allocation113_spill] sm:$0xff] }
 0x164   :  { %v685_v62 = vadd.f32 %v9744_v10, %v640_v2  ;;  %v727_v3 = vadd.f32 %v9746_v4, %v682_v13  ;;  %v9748_v46 = vld [vmem:[#allocation259_spill] sm:$0xff]  ;;  %v729_v14 = vadd.f32 %v9749_v61, %v684_v45  ;;  %v9750_v22 = vld [vmem:[#allocation149_spill] sm:$0xff]  ;;  %v1247_v26 = vadd.f32 %v7345_v59, %v1202_v50  ;;  %v9754_v18 = vld [vmem:[#allocation236_spill] sm:$0xff] }
 0x165   :  { %v686_v63 = vadd.f32 %v9745_v7, %v641_v11  ;;  %v687_v27 = vadd.f32 %v9747_v54, %v642_v56  ;;  %v328_v58 = vadd.f32 %v9748_v46, %v283_v33  ;;  %v728_v47 = vadd.f32 %v9750_v22, %v683_v0  ;;  %v9751_v24 = vld [vmem:[#allocation175_spill] sm:$0xff]  ;;  %v9752_v15 = vld [vmem:[#allocation205_spill] sm:$0xff]  ;;  %v9755_v17 = vld [vmem:[#allocation260_spill] sm:$0xff] }
 0x166   :  { %v730_v25 = vadd.f32 %v9751_v24, %v685_v62  ;;  %v9753_v1 = vld [vmem:[#allocation57_spill] sm:$0xff]  ;;  %v9756_v8 = vld [vmem:[#allocation114_spill] sm:$0xff]  ;;  %v9758_v34 = vld [vmem:[#allocation176_spill] sm:$0xff]  ;;  %v1292_v41 = vadd.f32 %v7349_v53, %v1247_v26 }
 0x167   :  { %v731_v23 = vadd.f32 %v9752_v15, %v686_v63  ;;  %v772_v49 = vadd.f32 %v9753_v1, %v727_v3  ;;  %v732_v60 = vadd.f32 %v9754_v18, %v687_v27  ;;  %v373_v40 = vadd.f32 %v9755_v17, %v328_v58  ;;  %v9757_v9 = vld [vmem:[#allocation150_spill] sm:$0xff]  ;;  %v9761_v19 = vld [vmem:[#allocation237_spill] sm:$0xff]  ;;  %v9763_v56 = vld [vmem:[#allocation115_spill] sm:$0xff] }
 0x168   :  { %v774_v32 = vadd.f32 %v9756_v8, %v729_v14  ;;  %v773_v43 = vadd.f32 %v9757_v9, %v728_v47  ;;  %v775_v28 = vadd.f32 %v9758_v34, %v730_v25  ;;  %v9759_v6 = vld [vmem:[#allocation206_spill] sm:$0xff]  ;;  %v9764_v33 = vld [vmem:[#allocation151_spill] sm:$0xff]  ;;  %v9765_v45 = vld [vmem:[#allocation177_spill] sm:$0xff]  ;;  %v1337_v62 = vadd.f32 %v7353_v38, %v1292_v41 }
 0x169   :  { %v776_v2 = vadd.f32 %v9759_v6, %v731_v23  ;;  %v9760_v11 = vld [vmem:[#allocation58_spill] sm:$0xff]  ;;  %v777_v59 = vadd.f32 %v9761_v19, %v732_v60  ;;  %v9766_v0 = vld [vmem:[#allocation207_spill] sm:$0xff]  ;;  %v9767_v7 = vld [vmem:[#allocation61_spill] sm:$0xff] }
 0x16a   :  { %v817_v5 = vadd.f32 %v9760_v11, %v772_v49  ;;  %v9762_v13 = vld [vmem:[#allocation242_spill] sm:$0xff]  ;;  %v819_v16 = vadd.f32 %v9763_v56, %v774_v32  ;;  %v818_v51 = vadd.f32 %v9764_v33, %v773_v43  ;;  %v820_v39 = vadd.f32 %v9765_v45, %v775_v28  ;;  %v9769_v4 = vld [vmem:[#allocation27_spill] sm:$0xff]  ;;  %v9770_v54 = vld [vmem:[#allocation116_spill] sm:$0xff] }
 0x16b   :  { %v418_v20 = vadd.f32 %v9762_v13, %v373_v40  ;;  %v821_v10 = vadd.f32 %v9766_v0, %v776_v2  ;;  %v9768_v50 = vld [vmem:[#allocation238_spill] sm:$0xff]  ;;  %v9771_v46 = vld [vmem:[#allocation152_spill] sm:$0xff]  ;;  %v1382_v24 = vadd.f32 %v7357_v48, %v1337_v62  ;;  %v9775_v23 = vld [vmem:[#allocation239_spill] sm:$0xff] }
 0x16c   :  { %v862_v63 = vadd.f32 %v9767_v7, %v817_v5  ;;  %v822_v53 = vadd.f32 %v9768_v50, %v777_v59  ;;  %v864_v27 = vadd.f32 %v9770_v54, %v819_v16  ;;  %v863_v58 = vadd.f32 %v9771_v46, %v818_v51  ;;  %v9772_v61 = vld [vmem:[#allocation178_spill] sm:$0xff]  ;;  %v9773_v22 = vld [vmem:[#allocation208_spill] sm:$0xff]  ;;  %v9777_v49 = vld [vmem:[#allocation93_spill] sm:$0xff] }
 0x16d   :  { %v463_v3 = vadd.f32 %v9769_v4, %v418_v20  ;;  %v865_v14 = vadd.f32 %v9772_v61, %v820_v39  ;;  %v866_v47 = vadd.f32 %v9773_v22, %v821_v10  ;;  %v9774_v25 = vld [vmem:[#allocation62_spill] sm:$0xff]  ;;  %v9776_v26 = vld [vmem:[#allocation24_spill] sm:$0xff]  ;;  %v9778_v60 = vld [vmem:[#allocation153_spill] sm:$0xff]  ;;  %v1427_v43 = vadd.f32 %v7361_v55, %v1382_v24 }
 0x16e   :  { %v907_v15 = vadd.f32 %v9774_v25, %v862_v63  ;;  %v867_v38 = vadd.f32 %v9775_v23, %v822_v53  ;;  %v909_v18 = vadd.f32 %v9777_v49, %v864_v27  ;;  %v908_v17 = vadd.f32 %v9778_v60, %v863_v58  ;;  %v9779_v40 = vld [vmem:[#allocation179_spill] sm:$0xff]  ;;  %v9780_v32 = vld [vmem:[#allocation209_spill] sm:$0xff]  ;;  %v9781_v34 = vld [vmem:[#allocation66_spill] sm:$0xff] }
 0x16f   :  { %v508_v1 = vadd.f32 %v9776_v26, %v463_v3  ;;  %v910_v8 = vadd.f32 %v9779_v40, %v865_v14  ;;  %v911_v9 = vadd.f32 %v9780_v32, %v866_v47  ;;  %v9782_v6 = vld [vmem:[#allocation240_spill] sm:$0xff]  ;;  %v9784_v11 = vld [vmem:[#allocation117_spill] sm:$0xff]  ;;  %v9787_v56 = vld [vmem:[#allocation210_spill] sm:$0xff]  ;;  %v1472_v33 = vadd.f32 %v7365_v35, %v1427_v43 }
 0x170   :  { %v952_v28 = vadd.f32 %v9781_v34, %v907_v15  ;;  %v912_v48 = vadd.f32 %v9782_v6, %v867_v38  ;;  %v9783_v2 = vld [vmem:[#allocation28_spill] sm:$0xff]  ;;  %v954_v5 = vadd.f32 %v9784_v11, %v909_v18  ;;  %v9785_v19 = vld [vmem:[#allocation121_spill] sm:$0xff]  ;;  %v9790_v0 = vld [vmem:[#allocation30_spill] sm:$0xff] }
 0x171   :  { %v553_v41 = vadd.f32 %v9783_v2, %v508_v1  ;;  %v953_v59 = vadd.f32 %v9785_v19, %v908_v17  ;;  %v9786_v13 = vld [vmem:[#allocation180_spill] sm:$0xff]  ;;  %v956_v16 = vadd.f32 %v9787_v56, %v911_v9  ;;  %v9789_v39 = vld [vmem:[#allocation241_spill] sm:$0xff]  ;;  %v9791_v62 = vld [vmem:[#allocation118_spill] sm:$0xff]  ;;  %v1517_v27 = vadd.f32 %v7370_v37, %v1472_v33 }
 0x172   :  { %v955_v20 = vadd.f32 %v9786_v13, %v910_v8  ;;  %v9788_v51 = vld [vmem:[#allocation72_spill] sm:$0xff]  ;;  %v957_v55 = vadd.f32 %v9789_v39, %v912_v48  ;;  %v999_v7 = vadd.f32 %v9791_v62, %v954_v5  ;;  %v9792_v63 = vld [vmem:[#allocation154_spill] sm:$0xff]  ;;  %v9793_v53 = vld [vmem:[#allocation181_spill] sm:$0xff] }
 0x173   :  { %v997_v45 = vadd.f32 %v9788_v51, %v952_v28  ;;  %v598_v10 = vadd.f32 %v9790_v0, %v553_v41  ;;  %v998_v50 = vadd.f32 %v9792_v63, %v953_v59  ;;  %v9794_v3 = vld [vmem:[#allocation211_spill] sm:$0xff]  ;;  %v9795_v46 = vld [vmem:[#allocation74_spill] sm:$0xff]  ;;  %v9798_v47 = vld [vmem:[#allocation120_spill] sm:$0xff]  ;;  %1540 = vrot.lane.b32.xlu1 %v1517_v27, %s5486_s12 }
 0x174   :  { %v1000_v4 = vadd.f32 %v9793_v53, %v955_v20  ;;  %v1001_v54 = vadd.f32 %v9794_v3, %v956_v16  ;;  %v9796_v61 = vld [vmem:[#allocation243_spill] sm:$0xff]  ;;  %v1044_v24 = vadd.f32 %v9798_v47, %v999_v7  ;;  %v9799_v25 = vld [vmem:[#allocation156_spill] sm:$0xff]  ;;  %v9801_v26 = vld [vmem:[#allocation213_spill] sm:$0xff] }
 0x175   :  { %v1042_v58 = vadd.f32 %v9795_v46, %v997_v45  ;;  %v1002_v35 = vadd.f32 %v9796_v61, %v957_v55  ;;  %v9797_v14 = vld [vmem:[#allocation31_spill] sm:$0xff]  ;;  %v1043_v15 = vadd.f32 %v9799_v25, %v998_v50  ;;  %v9802_v49 = vld [vmem:[#allocation77_spill] sm:$0xff]  ;;  %v9806_v9 = vld [vmem:[#allocation122_spill] sm:$0xff] }
 0x176   :  { %v643_v22 = vadd.f32 %v9797_v14, %v598_v10  ;;  %v9800_v23 = vld [vmem:[#allocation183_spill] sm:$0xff]  ;;  %v1046_v1 = vadd.f32 %v9801_v26, %v1001_v54  ;;  %v9803_v60 = vld [vmem:[#allocation245_spill] sm:$0xff]  ;;  %v1089_v43 = vadd.f32 %v9806_v9, %v1044_v24  ;;  %v9807_v34 = vld [vmem:[#allocation124_spill] sm:$0xff] }
 0x177   :  { %v1045_v38 = vadd.f32 %v9800_v23, %v1000_v4  ;;  %v1087_v18 = vadd.f32 %v9802_v49, %v1042_v58  ;;  %v1047_v37 = vadd.f32 %v9803_v60, %v1002_v35  ;;  %v9804_v17 = vld [vmem:[#allocation261_spill] sm:$0xff]  ;;  %v1088_v28 = vadd.f32 %v9807_v34, %v1043_v15  ;;  %v9808_v6 = vld [vmem:[#allocation184_spill] sm:$0xff]  ;;  %v9809_v2 = vld [vmem:[#allocation214_spill] sm:$0xff] }
 0x178   :  { %v688_v40 = vadd.f32 %v9804_v17, %v643_v22  ;;  %v9805_v8 = vld [vmem:[#allocation269_spill] sm:$0xff]  ;;  %v1091_v41 = vadd.f32 %v9809_v2, %v1046_v1  ;;  %v9810_v11 = vld [vmem:[#allocation78_spill] sm:$0xff]  ;;  %v9813_v16 = vld [vmem:[#allocation123_spill] sm:$0xff] }
 0x179   :  { %v149_v32 = vadd.f32 %v7212_v57, %v9805_v8  ;;  %v1090_v48 = vadd.f32 %v9808_v6, %v1045_v38  ;;  %v1132_v5 = vadd.f32 %v9810_v11, %v1087_v18  ;;  %v9811_v19 = vld [vmem:[#allocation246_spill] sm:$0xff]  ;;  %v1134_v33 = vadd.f32 %v9813_v16, %v1089_v43  ;;  %v9815_v45 = vld [vmem:[#allocation185_spill] sm:$0xff]  ;;  %v9816_v55 = vld [vmem:[#allocation215_spill] sm:$0xff] }
 0x17a   :  { %v1092_v59 = vadd.f32 %v9811_v19, %v1047_v37  ;;  %v9812_v13 = vld [vmem:[#allocation262_spill] sm:$0xff]  ;;  %v1136_v0 = vadd.f32 %v9816_v55, %v1091_v41  ;;  %v9817_v10 = vld [vmem:[#allocation81_spill] sm:$0xff]  ;;  %v9818_v7 = vld [vmem:[#allocation247_spill] sm:$0xff] }
 0x17b   :  { %v733_v20 = vadd.f32 %v9812_v13, %v688_v40  ;;  %v194_v56 = vadd.f32 %v7215_v31, %v149_v32  ;;  %v9814_v51 = vld [vmem:[#allocation158_spill] sm:$0xff]  ;;  %v1135_v39 = vadd.f32 %v9815_v45, %v1090_v48  ;;  %v1177_v62 = vadd.f32 %v9817_v10, %v1132_v5  ;;  %v9819_v50 = vld [vmem:[#allocation263_spill] sm:$0xff]  ;;  %v9820_v3 = vld [vmem:[#allocation125_spill] sm:$0xff] }
 0x17c   :  { %v1133_v57 = vadd.f32 %v9814_v51, %v1088_v28  ;;  %v1137_v63 = vadd.f32 %v9818_v7, %v1092_v59  ;;  %v1179_v54 = vadd.f32 %v9820_v3, %v1134_v33  ;;  %v9821_v27 = vld [vmem:[#allocation159_spill] sm:$0xff]  ;;  %v9822_v46 = vld [vmem:[#allocation186_spill] sm:$0xff]  ;;  %v9823_v61 = vld [vmem:[#allocation216_spill] sm:$0xff] }
 0x17d   :  { %v778_v53 = vadd.f32 %v9819_v50, %v733_v20  ;;  %v239_v4 = vadd.f32 %v7218_v21, %v194_v56  ;;  %v1180_v58 = vadd.f32 %v9822_v46, %v1135_v39  ;;  %v1181_v35 = vadd.f32 %v9823_v61, %v1136_v0  ;;  %v9824_v14 = vld [vmem:[#allocation87_spill] sm:$0xff]  ;;  %v9825_v47 = vld [vmem:[#allocation73_spill] sm:$0xff]  ;;  %v9826_v25 = vld [vmem:[#allocation264_spill] sm:$0xff] }
 0x17e   :  { %v1178_v31 = vadd.f32 %v9821_v27, %v1133_v57  ;;  %v1222_v22 = vadd.f32 %v9824_v14, %v1177_v62  ;;  %v1182_v24 = vadd.f32 %v9825_v47, %v1137_v63  ;;  %v9827_v38 = vld [vmem:[#allocation126_spill] sm:$0xff]  ;;  %v9828_v1 = vld [vmem:[#allocation160_spill] sm:$0xff]  ;;  %v9829_v49 = vld [vmem:[#allocation187_spill] sm:$0xff]  ;;  %v1527_v62 = vpop.permute.xlu0 %1526 }
 0x17f   :  { %v823_v15 = vadd.f32 %v9826_v25, %v778_v53  ;;  %v284_v23 = vadd.f32 %v7221_v12, %v239_v4  ;;  %v1224_v26 = vadd.f32 %v9827_v38, %v1179_v54  ;;  %v1225_v18 = vadd.f32 %v9829_v49, %v1180_v58  ;;  %v9830_v60 = vld [vmem:[#allocation217_spill] sm:$0xff]  ;;  %v9832_v8 = vld [vmem:[#allocation248_spill] sm:$0xff]  ;;  %v9834_v28 = vld [vmem:[#allocation127_spill] sm:$0xff] }
 0x180   :  { %v1223_v21 = vadd.f32 %v9828_v1, %v1178_v31  ;;  %v1226_v37 = vadd.f32 %v9830_v60, %v1181_v35  ;;  %v9831_v17 = vld [vmem:[#allocation89_spill] sm:$0xff]  ;;  %v1227_v32 = vadd.f32 %v9832_v8, %v1182_v24  ;;  %v9836_v2 = vld [vmem:[#allocation188_spill] sm:$0xff]  ;;  %v9838_v19 = vld [vmem:[#allocation90_spill] sm:$0xff] }
 0x181   :  { %v1267_v40 = vadd.f32 %v9831_v17, %v1222_v22  ;;  %v9833_v9 = vld [vmem:[#allocation265_spill] sm:$0xff]  ;;  %v329_v34 = vadd.f32 %v7227_v52, %v284_v23  ;;  %v1269_v6 = vadd.f32 %v9834_v28, %v1224_v26  ;;  %v1270_v41 = vadd.f32 %v9836_v2, %v1225_v18  ;;  %v9837_v11 = vld [vmem:[#allocation80_spill] sm:$0xff]  ;;  %v9840_v56 = vld [vmem:[#allocation266_spill] sm:$0xff] }
 0x182   :  { %v868_v43 = vadd.f32 %v9833_v9, %v823_v15  ;;  %v9835_v12 = vld [vmem:[#allocation161_spill] sm:$0xff]  ;;  %v1271_v5 = vadd.f32 %v9837_v11, %v1226_v37  ;;  %v9841_v51 = vld [vmem:[#allocation128_spill] sm:$0xff]  ;;  %v9842_v52 = vld [vmem:[#allocation162_spill] sm:$0xff] }
 0x183   :  { %v1268_v48 = vadd.f32 %v9835_v12, %v1223_v21  ;;  %v1312_v59 = vadd.f32 %v9838_v19, %v1267_v40  ;;  %v9839_v13 = vld [vmem:[#allocation249_spill] sm:$0xff]  ;;  %v374_v33 = vadd.f32 %v7230_v29, %v329_v34  ;;  %v1314_v57 = vadd.f32 %v9841_v51, %v1269_v6  ;;  %v9844_v0 = vld [vmem:[#allocation218_spill] sm:$0xff]  ;;  %v9845_v7 = vld [vmem:[#allocation96_spill] sm:$0xff] }
 0x184   :  { %v1272_v20 = vadd.f32 %v9839_v13, %v1227_v32  ;;  %v913_v16 = vadd.f32 %v9840_v56, %v868_v43  ;;  %v9843_v39 = vld [vmem:[#allocation189_spill] sm:$0xff]  ;;  %v1316_v10 = vadd.f32 %v9844_v0, %v1271_v5  ;;  %v9846_v50 = vld [vmem:[#allocation250_spill] sm:$0xff]  ;;  %v9847_v4 = vld [vmem:[#allocation267_spill] sm:$0xff] }
 0x185   :  { %v1313_v45 = vadd.f32 %v9842_v52, %v1268_v48  ;;  %v1315_v55 = vadd.f32 %v9843_v39, %v1270_v41  ;;  %v1357_v63 = vadd.f32 %v9845_v7, %v1312_v59  ;;  %v419_v54 = vadd.f32 %v7233_v30, %v374_v33  ;;  %v9848_v27 = vld [vmem:[#allocation129_spill] sm:$0xff]  ;;  %v9850_v58 = vld [vmem:[#allocation190_spill] sm:$0xff]  ;;  %v9851_v35 = vld [vmem:[#allocation219_spill] sm:$0xff]  ;;  %v1529_v59 = vpop.permute.xlu0 %1528  ;;  %v1531_v7 = vpop.permute.xlu1 %1530 }
 0x186   :  { %v1317_v53 = vadd.f32 %v9846_v50, %v1272_v20  ;;  %v958_v3 = vadd.f32 %v9847_v4, %v913_v16  ;;  %v1359_v31 = vadd.f32 %v9848_v27, %v1314_v57  ;;  %v9849_v29 = vld [vmem:[#allocation85_spill] sm:$0xff]  ;;  %v1361_v14 = vadd.f32 %v9851_v35, %v1316_v10  ;;  %v9853_v24 = vld [vmem:[#allocation19_spill] sm:$0xff]  ;;  %v9854_v15 = vld [vmem:[#allocation14_spill] sm:$0xff] }
 0x187   :  { %v1358_v46 = vadd.f32 %v9849_v29, %v1313_v45  ;;  %v1360_v61 = vadd.f32 %v9850_v58, %v1315_v55  ;;  %v9852_v22 = vld [vmem:[#allocation97_spill] sm:$0xff]  ;;  %v464_v38 = vadd.f32 %v7236_v36, %v419_v54  ;;  %v9855_v26 = vld [vmem:[#allocation131_spill] sm:$0xff]  ;;  %v9858_v60 = vld [vmem:[#allocation220_spill] sm:$0xff] }
 0x188   :  { %v1402_v47 = vadd.f32 %v9852_v22, %v1357_v63  ;;  %v1362_v25 = vadd.f32 %v9853_v24, %v1317_v53  ;;  %v1003_v23 = vadd.f32 %v9854_v15, %v958_v3  ;;  %v1404_v1 = vadd.f32 %v9855_v26, %v1359_v31  ;;  %v9856_v21 = vld [vmem:[#allocation163_spill] sm:$0xff]  ;;  %v9859_v17 = vld [vmem:[#allocation98_spill] sm:$0xff]  ;;  %v9862_v28 = vld [vmem:[#allocation132_spill] sm:$0xff] }
 0x189   :  { %v1403_v30 = vadd.f32 %v9856_v21, %v1358_v46  ;;  %v9857_v49 = vld [vmem:[#allocation191_spill] sm:$0xff]  ;;  %v1406_v37 = vadd.f32 %v9858_v60, %v1361_v14  ;;  %v509_v34 = vadd.f32 %v7242_v44, %v464_v38  ;;  %v9863_v12 = vld [vmem:[#allocation88_spill] sm:$0xff]  ;;  %v9865_v41 = vld [vmem:[#allocation221_spill] sm:$0xff] }
 0x18a   :  { %v1405_v18 = vadd.f32 %v9857_v49, %v1360_v61  ;;  %v1447_v40 = vadd.f32 %v9859_v17, %v1402_v47  ;;  %v9860_v8 = vld [vmem:[#allocation251_spill] sm:$0xff]  ;;  %v1449_v6 = vadd.f32 %v9862_v28, %v1404_v1  ;;  %v9864_v48 = vld [vmem:[#allocation164_spill] sm:$0xff]  ;;  %v9869_v51 = vld [vmem:[#allocation134_spill] sm:$0xff] }
 0x18b   :  { %v1407_v32 = vadd.f32 %v9860_v8, %v1362_v25  ;;  %v9861_v9 = vld [vmem:[#allocation15_spill] sm:$0xff]  ;;  %v1448_v36 = vadd.f32 %v9863_v12, %v1403_v30  ;;  %v1451_v11 = vadd.f32 %v9865_v41, %v1406_v37  ;;  %v9867_v13 = vld [vmem:[#allocation252_spill] sm:$0xff]  ;;  %v554_v33 = vadd.f32 %v7246_v42, %v509_v34  ;;  %v9870_v44 = vld [vmem:[#allocation165_spill] sm:$0xff] }
 0x18c   :  { %v1048_v43 = vadd.f32 %v9861_v9, %v1003_v23  ;;  %v1450_v2 = vadd.f32 %v9864_v48, %v1405_v18  ;;  %v9866_v5 = vld [vmem:[#allocation99_spill] sm:$0xff]  ;;  %v9868_v56 = vld [vmem:[#allocation16_spill] sm:$0xff]  ;;  %v1494_v57 = vadd.f32 %v9869_v51, %v1449_v6  ;;  %v9872_v55 = vld [vmem:[#allocation222_spill] sm:$0xff] }
 0x18d   :  { %v1492_v19 = vadd.f32 %v9866_v5, %v1447_v40  ;;  %v1452_v20 = vadd.f32 %v9867_v13, %v1407_v32  ;;  %v1493_v52 = vadd.f32 %v9870_v44, %v1448_v36  ;;  %v9871_v45 = vld [vmem:[#allocation192_spill] sm:$0xff]  ;;  %v1496_v0 = vadd.f32 %v9872_v55, %v1451_v11  ;;  %v9873_v63 = vld [vmem:[#allocation253_spill] sm:$0xff]  ;;  %v9875_v3 = vld [vmem:[#allocation254_spill] sm:$0xff]  ;;  %v1533_v32 = vpop.permute.xlu1 %1532 }
 0x18e   :  { %v1093_v16 = vadd.f32 %v9868_v56, %v1048_v43  ;;  %v1495_v39 = vadd.f32 %v9871_v45, %v1450_v2  ;;  %v9874_v53 = vld [vmem:[#allocation17_spill] sm:$0xff]  ;;  %v599_v54 = vadd.f32 %v9875_v3, %v554_v33  ;;  %v9876_v27 = vld [vmem:[#allocation68_spill] sm:$0xff]  ;;  %v9877_v31 = vld [vmem:[#allocation82_spill] sm:$0xff]  ;;  %v7657_v8 = vsel %vm1550_vm0, %v1494_v57, %v1531_v7 }
 0x18f   :  { %v7624_v10 = vsel %vm1550_vm0, %v1492_v19, %v1527_v62  ;;  %v7627_v50 = vadd.f32 %v9873_v63, %v1452_v20  ;;  %v7634_v42 = vsel %vm1550_vm0, %v1493_v52, %v1529_v59  ;;  %v1265_v29 = vmul.f32 %v9877_v31, %v9876_v27  ;;  %v9878_v62 = vld [vmem:[#allocation29_spill] sm:$0xff]  ;;  %v9879_v46 = vld [vmem:[#allocation46_spill] sm:$0xff]  ;;  %v9880_v61 = vld [vmem:[#allocation271_spill] sm:$0xff] }
 0x190   :  { %v1138_v4 = vadd.f32 %v9874_v53, %v1093_v16  ;;  %1682 = vrot.lane.b32.xlu0 %v7624_v10, %s5487_s2  ;;  %v726_v58 = vmul.f32 %v9879_v46, %v9878_v62  ;;  %1684 = vrot.lane.b32.xlu1 %v7634_v42, %s5487_s2  ;;  %v9881_v14 = vld [vmem:[#allocation35_spill] sm:$0xff]  ;;  %v9882_v47 = vld [vmem:[#allocation70_spill] sm:$0xff]  ;;  %v9884_v15 = vld [vmem:[#allocation276_spill] sm:$0xff]  ;;  %v7666_v11 = vsel %vm1550_vm0, %v1495_v39, %v1533_v32 }
 0x191   :  { %v644_v22 = vadd.f32 %v9881_v14, %v599_v54  ;;  %v9883_v24 = vld [vmem:[#allocation86_spill] sm:$0xff]  ;;  %v9885_v23 = vld [vmem:[#allocation48_spill] sm:$0xff]  ;;  %v9889_v18 = vld [vmem:[#allocation91_spill] sm:$0xff] }
 0x192   :  { %v1183_v35 = vadd.f32 %v9880_v61, %v1138_v4  ;;  %v1310_v25 = vmul.f32 %v9883_v24, %v9882_v47  ;;  %v771_v38 = vmul.f32 %v9885_v23, %v9884_v15  ;;  %v9886_v26 = vld [vmem:[#allocation18_spill] sm:$0xff]  ;;  %v9887_v21 = vld [vmem:[#allocation36_spill] sm:$0xff]  ;;  %v9891_v17 = vld [vmem:[#allocation51_spill] sm:$0xff] }
 0x193   :  { %v689_v30 = vadd.f32 %v9887_v21, %v644_v22  ;;  %v9888_v49 = vld [vmem:[#allocation272_spill] sm:$0xff]  ;;  %v9892_v34 = vld [vmem:[#allocation273_spill] sm:$0xff]  ;;  %v9894_v12 = vld [vmem:[#allocation34_spill] sm:$0xff] }
 0x194   :  { %v1228_v1 = vadd.f32 %v9886_v26, %v1183_v35  ;;  %v1355_v60 = vmul.f32 %v9889_v18, %v9888_v49  ;;  %1622 = vrot.lane.b32.xlu0 %v7624_v10, %s5488_s22  ;;  %v9890_v37 = vld [vmem:[#allocation20_spill] sm:$0xff]  ;;  %1624 = vrot.lane.b32.xlu1 %v7634_v42, %s5488_s22  ;;  %v9895_v36 = vld [vmem:[#allocation53_spill] sm:$0xff]  ;;  %v9896_v5 = vld [vmem:[#allocation274_spill] sm:$0xff] }
 0x195   :  { %v816_v40 = vmul.f32 %v9891_v17, %v9890_v37  ;;  %v734_v43 = vadd.f32 %v726_v58, %v689_v30  ;;  %v9893_v28 = vld [vmem:[#allocation92_spill] sm:$0xff]  ;;  %v861_v48 = vmul.f32 %v9895_v36, %v9894_v12  ;;  %v9897_v19 = vld [vmem:[#allocation94_spill] sm:$0xff]  ;;  %v9898_v13 = vld [vmem:[#allocation277_spill] sm:$0xff] }
 0x196   :  { %v1273_v9 = vadd.f32 %v1265_v29, %v1228_v1  ;;  %v1400_v6 = vmul.f32 %v9893_v28, %v9892_v34  ;;  %v1445_v59 = vmul.f32 %v9897_v19, %v9896_v5  ;;  %v9899_v20 = vld [vmem:[#allocation55_spill] sm:$0xff]  ;;  %v9902_v52 = vld [vmem:[#allocation37_spill] sm:$0xff]  ;;  %v9903_v45 = vld [vmem:[#allocation60_spill] sm:$0xff] }
 0x197   :  { %v779_v41 = vadd.f32 %v771_v38, %v734_v43  ;;  %v906_v56 = vmul.f32 %v9899_v20, %v9898_v13  ;;  %v9900_v51 = vld [vmem:[#allocation275_spill] sm:$0xff]  ;;  %v951_v39 = vmul.f32 %v9903_v45, %v9902_v52  ;;  %v9904_v63 = vld [vmem:[#allocation42_spill] sm:$0xff]  ;;  %v9905_v53 = vld [vmem:[#allocation64_spill] sm:$0xff]  ;;  %v1535_v38 = vpop.permute.xlu0 %1534 }
 0x198   :  { %v1318_v2 = vadd.f32 %v1310_v25, %v1273_v9  ;;  %1686 = vrot.lane.b32.xlu0 %v7657_v8, %s5487_s2  ;;  %1688 = vrot.lane.b32.xlu1 %v7666_v11, %s5487_s2  ;;  %v9901_v57 = vld [vmem:[#allocation95_spill] sm:$0xff]  ;;  %v996_v4 = vmul.f32 %v9905_v53, %v9904_v63  ;;  %v9906_v27 = vld [vmem:[#allocation278_spill] sm:$0xff]  ;;  %v9908_v61 = vld [vmem:[#allocation268_spill] sm:$0xff]  ;;  %v7695_v30 = vsel %vm1550_vm0, %v1496_v0, %v1535_v38 }
 0x199   :  { %v824_v33 = vadd.f32 %v816_v40, %v779_v41  ;;  %v1490_v44 = vmul.f32 %v9901_v57, %v9900_v51  ;;  %v9907_v29 = vld [vmem:[#allocation67_spill] sm:$0xff]  ;;  %v9909_v35 = vld [vmem:[#allocation69_spill] sm:$0xff]  ;;  %v9916_v32 = vld [vmem:[#allocation52_spill] sm:$0xff] }
 0x19a   :  { %v1363_v16 = vadd.f32 %v1355_v60, %v1318_v2  ;;  %v1041_v62 = vmul.f32 %v9907_v29, %v9906_v27  ;;  %v1086_v14 = vmul.f32 %v9909_v35, %v9908_v61  ;;  %v9910_v47 = vld [vmem:[#allocation43_spill] sm:$0xff]  ;;  %v9914_v60 = vld [vmem:[#allocation49_spill] sm:$0xff]  ;;  %v1266_v9 = vmul.f32 %v9877_v31, %v9916_v32  ;;  %v9917_v34 = vld [vmem:[#allocation54_spill] sm:$0xff] }
 0x19b   :  { %v869_v7 = vadd.f32 %v861_v48, %v824_v33  ;;  %v9911_v25 = vld [vmem:[#allocation71_spill] sm:$0xff]  ;;  %v1577_v32 = vld [vmem:[#allocation7 + $0x18] sm:$0xff] }
 0x19c   :  { %v1408_v55 = vadd.f32 %v1400_v6, %v1363_v16  ;;  %1626 = vrot.lane.b32.xlu0 %v7657_v8, %s5488_s22  ;;  %1628 = vrot.lane.b32.xlu1 %v7666_v11, %s5488_s22  ;;  %v1131_v15 = vmul.f32 %v9911_v25, %v9910_v47  ;;  %v9912_v26 = vld [vmem:[#allocation47_spill] sm:$0xff]  ;;  %v1311_v6 = vmul.f32 %v9883_v24, %v9917_v34 }
 0x19d   :  { %v914_v54 = vadd.f32 %v906_v56, %v869_v7  ;;  %v9913_v1 = vld [vmem:[#allocation75_spill] sm:$0xff]  ;;  %v7775_v7 = vld [vmem:[%s8947_s3] ss:$0 sm:$0xff]  ;;  %2095 = vmatprep.mubr.f32.mxu1 %v1577_v32 }
 0x19e   :  { %v1453_v3 = vadd.f32 %v1445_v59, %v1408_v55  ;;  %v1176_v21 = vmul.f32 %v9913_v1, %v9912_v26  ;;  %v9915_v37 = vld [vmem:[#allocation79_spill] sm:$0xff]  ;;  %v9920_v59 = vld [vmem:[#allocation65_spill] sm:$0xff] }
 0x19f   :  { %v959_v58 = vadd.f32 %v951_v39, %v914_v54  ;;  %v1221_v17 = vmul.f32 %v9915_v37, %v9914_v60  ;;  %v9918_v12 = vld [vmem:[#allocation59_spill] sm:$0xff]  ;;  %v1446_v13 = vmul.f32 %v9897_v19, %v9920_v59 }
 0x1a0   :  { %v1498_v46 = vadd.f32 %v1490_v44, %v1453_v3  ;;  %1690 = vrot.lane.b32.xlu0 %v7695_v30, %s5487_s2  ;;  %v1356_v36 = vmul.f32 %v9889_v18, %v9918_v12  ;;  %v9919_v2 = vld [vmem:[#allocation63_spill] sm:$0xff]  ;;  %v1614_v12 = vld [vmem:[%s8949_s5] sm:$0xff] }
 0x1a1   :  { %v1004_v22 = vadd.f32 %v996_v4, %v959_v58  ;;  %v1401_v41 = vmul.f32 %v9893_v28, %v9919_v2  ;;  %v9921_v20 = vld [vmem:[#allocation279_spill] sm:$0xff] }
 0x1a2   :  { %v1491_v56 = vmul.f32 %v9901_v57, %v9921_v20  ;;  %v7764_v57 = vld [vmem:[%s8947_s3 + $0x2] ss:$0 sm:$0xff] }
 0x1a3   :  { %v1049_v23 = vadd.f32 %v1041_v62, %v1004_v22  ;;  %v1618_v20 = vld [vmem:[%s8949_s5 + $0x20] sm:$0xff] }
 0x1a4   :  { %1630 = vrot.lane.b32.xlu0 %v7695_v30, %s5488_s22 }
 0x1a5   :  { %v1094_v49 = vadd.f32 %v1086_v14, %v1049_v23 }
 0x1a7   :  { %v1139_v40 = vadd.f32 %v1131_v15, %v1094_v49  ;;  %v1575_v15 = vld [vmem:[#allocation7 + $0x8] sm:$0xff] }
 0x1a8   :  { %v1537_v24 = vpop.permute.xlu1 %1536  ;;  %1990 = vmatprep.mubr.f32.mxu0 %v1575_v15  ;;  %v7904_v15 = vld [vmem:[%s8947_s3 + $0x1] ss:$0 sm:$0xff] }
 0x1a9   :  { %v1184_v43 = vadd.f32 %v1176_v21, %v1139_v40  ;;  %v7717_v44 = vsel %vm1550_vm0, %v7627_v50, %v1537_v24 }
 0x1aa   :  { %1692 = vrot.lane.b32.xlu1 %v7717_v44, %s5487_s2 }
 0x1ab   :  { %v1229_v0 = vadd.f32 %v1221_v17, %v1184_v43 }
 0x1ad   :  { %v1274_v48 = vadd.f32 %v1266_v9, %v1229_v0 }
 0x1ae   :  { %1632 = vrot.lane.b32.xlu1 %v7717_v44, %s5488_s22 }
 0x1af   :  { %v1319_v5 = vadd.f32 %v1311_v6, %v1274_v48  ;;  %v5494_v48 = vmov 0  }
 0x1b0   :  { %5374 = vset.pattern.permute.xlu0 %v5494_v48  ;;  %5375 = vset.pattern.permute.xlu1 %v5494_v48  ;;  %v5064_v48 = vpack.c.bf16 %v7717_v44, %v7695_v30 }
 0x1b1   :  { %v1364_v31 = vadd.f32 %v1356_v36, %v1319_v5  ;;  %v1615_v36 = vld [vmem:[%s8949_s5 + $0x8] sm:$0xff]  ;;  %v1617_v5 = vld [vmem:[%s8949_s5 + $0x18] sm:$0xff] }
 0x1b3   :  { %v1409_v16 = vadd.f32 %v1401_v41, %v1364_v31  ;;  %v1616_v41 = vld [vmem:[%s8949_s5 + $0x10] sm:$0xff] }
 0x1b5   :  { %v1454_v33 = vadd.f32 %v1446_v13, %v1409_v16 }
 0x1b7   :  { %v1499_v51 = vadd.f32 %v1491_v56, %v1454_v33  ;;  %v1619_v56 = vld [vmem:[%s8949_s5 + $0x28] sm:$0xff]  ;;  %v7878_v33 = vld [vmem:[%s8947_s3 + $0x6] ss:$0 sm:$0xff] }
 0x1ce   :  { %v1539_v18 = vpop.permute.xlu0 %1538 }
 0x1cf   :  { %v7724_v28 = vsel %vm1550_vm0, %v1498_v46, %v1539_v18 }
 0x1d0   :  { %1694 = vrot.lane.b32.xlu0 %v7724_v28, %s5487_s2 }
 0x1d4   :  { %1772 = vrot.lane.b32.xlu0 %v7624_v10, %s5489_s23 }
 0x1d8   :  { %1634 = vrot.lane.b32.xlu0 %v7724_v28, %s5488_s22 }
 0x1dc   :  { %1712 = vrot.lane.b32.xlu0 %v7624_v10, %s5490_s24 }
 0x1e0   :  { %1776 = vrot.lane.b32.xlu0 %v7657_v8, %s5489_s23 }
 0x1e4   :  { %1652 = vrot.lane.b32.xlu0 %v7624_v10, %s5482_s20 }
 0x1e5   :  { %v1541_v50 = vpop.permute.xlu1 %1540 }
 0x1e6   :  { %v7739_v19 = vsel %vm1550_vm0, %v1499_v51, %v1541_v50  ;;  %v1620_v50 = vld [vmem:[%s8949_s5 + $0x30] sm:$0xff] }
 0x1e7   :  { %1696 = vrot.lane.b32.xlu1 %v7739_v19, %s5487_s2 }
 0x1e8   :  { %1716 = vrot.lane.b32.xlu0 %v7657_v8, %s5490_s24 }
 0x1eb   :  { %1774 = vrot.lane.b32.xlu1 %v7634_v42, %s5489_s23 }
 0x1ec   :  { %1780 = vrot.lane.b32.xlu0 %v7695_v30, %s5489_s23 }
 0x1ef   :  { %1636 = vrot.lane.b32.xlu1 %v7739_v19, %s5488_s22 }
 0x1f0   :  { %1656 = vrot.lane.b32.xlu0 %v7657_v8, %s5482_s20 }
 0x1f3   :  { %1714 = vrot.lane.b32.xlu1 %v7634_v42, %s5490_s24 }
 0x1f4   :  { %1720 = vrot.lane.b32.xlu0 %v7695_v30, %s5490_s24 }
 0x1f7   :  { %1778 = vrot.lane.b32.xlu1 %v7666_v11, %s5489_s23 }
 0x1f8   :  { %1784 = vrot.lane.b32.xlu0 %v7724_v28, %s5489_s23 }
 0x1fb   :  { %1654 = vrot.lane.b32.xlu1 %v7634_v42, %s5482_s20 }
 0x1fc   :  { %1660 = vrot.lane.b32.xlu0 %v7695_v30, %s5482_s20 }
 0x1ff   :  { %1718 = vrot.lane.b32.xlu1 %v7666_v11, %s5490_s24 }
 0x200   :  { %1724 = vrot.lane.b32.xlu0 %v7724_v28, %s5490_s24 }
 0x202   :  { %v1683_v52 = vpop.permute.xlu0 %1682  ;;  %v1685_v45 = vpop.permute.xlu1 %1684 }
 0x203   :  { %v1704_v39 = vmul.f32 %v7764_v57, %v1683_v52  ;;  %v1705_v55 = vmul.f32 %v7764_v57, %v1685_v45  ;;  %1782 = vrot.lane.b32.xlu1 %v7717_v44, %s5489_s23  ;;  %v1621_v52 = vld [vmem:[%s8949_s5 + $0x38] sm:$0xff] }
 0x204   :  { %1802 = vrot.lane.b32.xlu0 %v7624_v10, %s5491_s29 }
 0x205   :  { %v5022_v53 = vpack.c.bf16 %v1705_v55, %v1704_v39 }
 0x206   :  { %v1623_v63 = vpop.permute.xlu0 %1622  ;;  %v1625_v4 = vpop.permute.xlu1 %1624 }
 0x207   :  { %v1644_v3 = vmul.f32 %v7775_v7, %v1623_v63  ;;  %v1645_v54 = vmul.f32 %v7775_v7, %v1625_v4  ;;  %5023 = vmatprep.subr.bf16.mxu0 %v5022_v53  ;;  %1658 = vrot.lane.b32.xlu1 %v7666_v11, %s5482_s20  ;;  %v5056_v53 = vpack.c.bf16 %v7634_v42, %v7624_v10 }
 0x208   :  { %1664 = vrot.lane.b32.xlu0 %v7724_v28, %s5482_s20 }
 0x209   :  { %v5024_v29 = vpack.c.bf16 %v1645_v54, %v1644_v3 }
 0x20a   :  { %v1687_v27 = vpop.permute.xlu0 %1686  ;;  %v1689_v62 = vpop.permute.xlu1 %1688 }
 0x20b   :  { %v1706_v46 = vmul.f32 %v7764_v57, %v1687_v27  ;;  %v1707_v58 = vmul.f32 %v7764_v57, %v1689_v62  ;;  %5025 = vmatpush3.bf16.msra.mxu0 %v5024_v29  ;;  %1722 = vrot.lane.b32.xlu1 %v7717_v44, %s5490_s24  ;;  %v7895_v27 = vld [vmem:[%s8947_s3 + $0x3] ss:$0 sm:$0xff] }
 0x20c   :  { %1742 = vrot.lane.b32.xlu0 %v7624_v10, %s5492_s30 }
 0x20d   :  { %v5026_v61 = vpack.c.bf16 %v1707_v58, %v1706_v46 }
 0x20e   :  { %v1627_v35 = vpop.permute.xlu0 %1626  ;;  %v1629_v14 = vpop.permute.xlu1 %1628 }
 0x20f   :  { %v1646_v22 = vmul.f32 %v7775_v7, %v1627_v35  ;;  %v1647_v47 = vmul.f32 %v7775_v7, %v1629_v14  ;;  %5027 = vmatprep.subr.bf16.mxu0 %v5026_v61  ;;  %1786 = vrot.lane.b32.xlu1 %v7739_v19, %s5489_s23 }
 0x210   :  { %1806 = vrot.lane.b32.xlu0 %v7657_v8, %s5491_s29 }
 0x211   :  { %v5028_v25 = vpack.c.bf16 %v1647_v47, %v1646_v22 }
 0x212   :  { %v1691_v23 = vpop.permute.xlu0 %1690 }
 0x213   :  { %5029 = vmatpush3.bf16.msra.mxu0 %v5028_v25  ;;  %1662 = vrot.lane.b32.xlu1 %v7717_v44, %s5482_s20  ;;  %v1708_v38 = vmul.f32 %v7764_v57, %v1691_v23 }
 0x214   :  { %1746 = vrot.lane.b32.xlu0 %v7657_v8, %s5492_s30 }
 0x216   :  { %v1631_v21 = vpop.permute.xlu0 %1630 }
 0x217   :  { %1726 = vrot.lane.b32.xlu1 %v7739_v19, %s5490_s24  ;;  %v1648_v37 = vmul.f32 %v7775_v7, %v1631_v21 }
 0x218   :  { %1810 = vrot.lane.b32.xlu0 %v7695_v30, %s5491_s29 }
 0x21b   :  { %1804 = vrot.lane.b32.xlu1 %v7634_v42, %s5491_s29 }
 0x21c   :  { %1750 = vrot.lane.b32.xlu0 %v7695_v30, %s5492_s30  ;;  %v1693_v26 = vpop.permute.xlu1 %1692 }
 0x21d   :  { %v1709_v1 = vmul.f32 %v7764_v57, %v1693_v26  ;;  %v5060_v26 = vpack.c.bf16 %v7666_v11, %v7657_v8 }
 0x21f   :  { %1666 = vrot.lane.b32.xlu1 %v7739_v19, %s5482_s20  ;;  %v5030_v49 = vpack.c.bf16 %v1709_v1, %v1708_v38 }
 0x220   :  { %1814 = vrot.lane.b32.xlu0 %v7724_v28, %s5491_s29  ;;  %v1633_v60 = vpop.permute.xlu1 %1632 }
 0x221   :  { %v1649_v17 = vmul.f32 %v7775_v7, %v1633_v60  ;;  %5031 = vmatprep.subr.bf16.mxu0 %v5030_v49 }
 0x223   :  { %1744 = vrot.lane.b32.xlu1 %v7634_v42, %s5492_s30  ;;  %v5032_v40 = vpack.c.bf16 %v1649_v17, %v1648_v37 }
 0x224   :  { %1754 = vrot.lane.b32.xlu0 %v7724_v28, %s5492_s30 }
 0x225   :  { %5033 = vmatpush3.bf16.msra.mxu0 %v5032_v40 }
 0x227   :  { %1808 = vrot.lane.b32.xlu1 %v7666_v11, %s5491_s29 }
 0x228   :  { %1832 = vrot.lane.b32.xlu0 %v7624_v10, %s5493_s9 }
 0x22b   :  { %1748 = vrot.lane.b32.xlu1 %v7666_v11, %s5492_s30 }
 0x22c   :  { %1836 = vrot.lane.b32.xlu0 %v7657_v8, %s5493_s9 }
 0x22f   :  { %1812 = vrot.lane.b32.xlu1 %v7717_v44, %s5491_s29 }
 0x230   :  { %1840 = vrot.lane.b32.xlu0 %v7695_v30, %s5493_s9 }
 0x233   :  { %1752 = vrot.lane.b32.xlu1 %v7717_v44, %s5492_s30 }
 0x234   :  { %1844 = vrot.lane.b32.xlu0 %v7724_v28, %s5493_s9 }
 0x237   :  { %1816 = vrot.lane.b32.xlu1 %v7739_v19, %s5491_s29 }
 0x238   :  { %1864 = vperm.xlu0 %5374, %v1614_v12  }
 0x23b   :  { %1756 = vrot.lane.b32.xlu1 %v7739_v19, %s5492_s30 }
 0x23c   :  { %1879 = vperm.xlu0 %5374, %v1617_v5  }
 0x23f   :  { %1834 = vrot.lane.b32.xlu1 %v7634_v42, %s5493_s9 }
 0x240   :  { %1889 = vperm.xlu0 %5374, %v1619_v56  }
 0x242   :  { %v1695_v9 = vpop.permute.xlu0 %1694 }
 0x243   :  { %1838 = vrot.lane.b32.xlu1 %v7666_v11, %s5493_s9  ;;  %v1710_v59 = vmul.f32 %v7764_v57, %v1695_v9 }
 0x244   :  { %1899 = vperm.xlu0 %5374, %v1621_v52  }
 0x246   :  { %v1773_v43 = vpop.permute.xlu0 %1772 }
 0x247   :  { %1842 = vrot.lane.b32.xlu1 %v7717_v44, %s5493_s9  ;;  %v1794_v45 = vmul.f32 %v7878_v33, %v1773_v43 }
 0x24a   :  { %v1635_v34 = vpop.permute.xlu0 %1634 }
 0x24b   :  { %1846 = vrot.lane.b32.xlu1 %v7739_v19, %s5493_s9  ;;  %v1650_v3 = vmul.f32 %v7775_v7, %v1635_v34 }
 0x24e   :  { %v1713_v6 = vpop.permute.xlu0 %1712 }
 0x24f   :  { %1869 = vperm.xlu1 %5375, %v1615_v36   ;;  %v1734_v58 = vmul.f32 %v7895_v27, %v1713_v6 }
 0x252   :  { %v1777_v0 = vpop.permute.xlu0 %1776 }
 0x253   :  { %1874 = vperm.xlu1 %5375, %v1616_v41   ;;  %v1796_v47 = vmul.f32 %v7878_v33, %v1777_v0 }
 0x256   :  { %v1653_v2 = vpop.permute.xlu0 %1652 }
 0x257   :  { %1884 = vperm.xlu1 %5375, %v1618_v20   ;;  %v1674_v21 = vmul.f32 %v7904_v15, %v1653_v2 }
 0x259   :  { %v1697_v13 = vpop.permute.xlu1 %1696 }
 0x25a   :  { %v1717_v31 = vpop.permute.xlu0 %1716  ;;  %v1711_v16 = vmul.f32 %v7764_v57, %v1697_v13 }
 0x25b   :  { %1894 = vperm.xlu1 %5375, %v1620_v50   ;;  %v1736_v40 = vmul.f32 %v7895_v27, %v1717_v31 }
 0x25c   :  { %v5034_v51 = vpack.c.bf16 %v1711_v16, %v1710_v59 }
 0x25d   :  { %v1775_v24 = vpop.permute.xlu1 %1774 }
 0x25e   :  { %v1781_v18 = vpop.permute.xlu0 %1780  ;;  %v1795_v39 = vmul.f32 %v7878_v33, %v1775_v24  ;;  %5035 = vmatprep.subr.bf16.mxu0 %v5034_v51 }
 0x25f   :  { %v1798_v6 = vmul.f32 %v7878_v33, %v1781_v18 }
 0x260   :  { %v5054_v55 = vpack.c.bf16 %v1795_v39, %v1794_v45  ;;  %v5068_v45 = vpack.c.bf16 %v7739_v19, %v7724_v28 }
 0x261   :  { %v1637_v63 = vpop.permute.xlu1 %1636 }
 0x262   :  { %v1657_v4 = vpop.permute.xlu0 %1656  ;;  %v1651_v54 = vmul.f32 %v7775_v7, %v1637_v63  ;;  %5055 = vmatprep.subr.bf16.mxu1 %v5054_v55 }
 0x263   :  { %5057 = vmatpush3.bf16.msra.mxu1 %v5056_v53  ;;  %v1676_v41 = vmul.f32 %v7904_v15, %v1657_v4 }
 0x264   :  { %v5036_v29 = vpack.c.bf16 %v1651_v54, %v1650_v3 }
 0x265   :  { %v1715_v62 = vpop.permute.xlu1 %1714 }
 0x266   :  { %v1721_v46 = vpop.permute.xlu0 %1720  ;;  %v1735_v61 = vmul.f32 %v7895_v27, %v1715_v62  ;;  %5037 = vmatpush3.bf16.msra.mxu0 %v5036_v29  ;;  %v7931_v29 = vld [vmem:[%s8947_s3 + $0x7] ss:$0 sm:$0xff] }
 0x267   :  { %v1738_v31 = vmul.f32 %v7895_v27, %v1721_v46 }
 0x268   :  { %v5038_v35 = vpack.c.bf16 %v1735_v61, %v1734_v58 }
 0x269   :  { %v1779_v14 = vpop.permute.xlu1 %1778 }
 0x26a   :  { %v1785_v22 = vpop.permute.xlu0 %1784  ;;  %v1797_v25 = vmul.f32 %v7878_v33, %v1779_v14  ;;  %5039 = vmatprep.subr.bf16.mxu0 %v5038_v35 }
 0x26b   :  { %v1800_v24 = vmul.f32 %v7878_v33, %v1785_v22 }
 0x26c   :  { %v5058_v23 = vpack.c.bf16 %v1797_v25, %v1796_v47 }
 0x26d   :  { %v1655_v38 = vpop.permute.xlu1 %1654 }
 0x26e   :  { %v1661_v1 = vpop.permute.xlu0 %1660  ;;  %v1675_v49 = vmul.f32 %v7904_v15, %v1655_v38  ;;  %5059 = vmatprep.subr.bf16.mxu1 %v5058_v23  ;;  %v7940_v38 = vld [vmem:[%s8947_s3 + $0x5] ss:$0 sm:$0xff] }
 0x26f   :  { %5061 = vmatpush3.bf16.msra.mxu1 %v5060_v26  ;;  %v1678_v55 = vmul.f32 %v7904_v15, %v1661_v1 }
 0x270   :  { %v5040_v60 = vpack.c.bf16 %v1675_v49, %v1674_v21 }
 0x271   :  { %v1719_v37 = vpop.permute.xlu1 %1718 }
 0x272   :  { %v1725_v17 = vpop.permute.xlu0 %1724  ;;  %v1737_v32 = vmul.f32 %v7895_v27, %v1719_v37  ;;  %5041 = vmatpush3.bf16.msra.mxu0 %v5040_v60  ;;  %v1574_v60 = vld [vmem:[#allocation7] sm:$0xff] }
 0x273   :  { %v1740_v3 = vmul.f32 %v7895_v27, %v1725_v17  ;;  %v1580_v17 = vld [vmem:[#allocation7 + $0x30] sm:$0xff] }
 0x274   :  { %v5042_v9 = vpack.c.bf16 %v1737_v32, %v1736_v40 }
 0x275   :  { %v1783_v43 = vpop.permute.xlu1 %1782 }
 0x276   :  { %v1803_v34 = vpop.permute.xlu0 %1802  ;;  %v1799_v0 = vmul.f32 %v7878_v33, %v1783_v43  ;;  %5043 = vmatprep.subr.bf16.mxu0 %v5042_v9 }
 0x277   :  { %v1824_v61 = vmul.f32 %v7931_v29, %v1803_v34  ;;  %v1579_v34 = vld [vmem:[#allocation7 + $0x28] sm:$0xff] }
 0x278   :  { %v5062_v12 = vpack.c.bf16 %v1799_v0, %v1798_v6  ;;  %v1585_v6 = vld [vmem:[#allocation7 + $0x58] sm:$0xff] }
 0x279   :  { %v1659_v36 = vpop.permute.xlu1 %1658 }
 0x27a   :  { %v1665_v2 = vpop.permute.xlu0 %1664  ;;  %v1677_v5 = vmul.f32 %v7904_v15, %v1659_v36  ;;  %5063 = vmatprep.subr.bf16.mxu1 %v5062_v12 }
 0x27b   :  { %5065 = vmatpush3.bf16.msra.mxu1 %v5064_v48  ;;  %v1680_v25 = vmul.f32 %v7904_v15, %v1665_v2 }
 0x27c   :  { %v5044_v59 = vpack.c.bf16 %v1677_v5, %v1676_v41  ;;  %v1584_v41 = vld [vmem:[#allocation7 + $0x50] sm:$0xff]  ;;  %v1590_v5 = vld [vmem:[#allocation7 + $0x80] sm:$0xff] }
 0x27d   :  { %v1723_v13 = vpop.permute.xlu1 %1722 }
 0x27e   :  { %v1739_v20 = vmul.f32 %v7895_v27, %v1723_v13  ;;  %5045 = vmatpush3.bf16.msra.mxu0 %v5044_v59  ;;  %v1743_v56 = vpop.permute.xlu0 %1742 }
 0x27f   :  { %v1764_v21 = vmul.f32 %v7940_v38, %v1743_v56  ;;  %v1589_v56 = vld [vmem:[#allocation7 + $0x78] sm:$0xff] }
 0x280   :  { %v5046_v16 = vpack.c.bf16 %v1739_v20, %v1738_v31 }
 0x281   :  { %v1787_v51 = vpop.permute.xlu1 %1786 }
 0x282   :  { %v1801_v18 = vmul.f32 %v7878_v33, %v1787_v51  ;;  %5047 = vmatprep.subr.bf16.mxu0 %v5046_v16  ;;  %v1807_v39 = vpop.permute.xlu0 %1806  ;;  %v1595_v51 = vld [vmem:[#allocation7 + $0xa8] sm:$0xff] }
 0x283   :  { %v1826_v9 = vmul.f32 %v7931_v29, %v1807_v39  ;;  %v1600_v39 = vld [vmem:[#allocation7 + $0xd0] sm:$0xff] }
 0x284   :  { %v5066_v50 = vpack.c.bf16 %v1801_v18, %v1800_v24 }
 0x285   :  { %v1663_v52 = vpop.permute.xlu1 %1662 }
 0x286   :  { %v1679_v63 = vmul.f32 %v7904_v15, %v1663_v52  ;;  %5067 = vmatprep.subr.bf16.mxu1 %v5066_v50  ;;  %v1747_v62 = vpop.permute.xlu0 %1746 }
 0x287   :  { %5069 = vmatpush3.bf16.msra.mxu1 %v5068_v45  ;;  %v1766_v48 = vmul.f32 %v7940_v38, %v1747_v62  ;;  %v1594_v45 = vld [vmem:[#allocation7 + $0xa0] sm:$0xff]  ;;  %v1605_v62 = vld [vmem:[#allocation7 + $0xf8] sm:$0xff] }
 0x288   :  { %v5048_v53 = vpack.c.bf16 %v1679_v63, %v1678_v55 }
 0x289   :  { %v1727_v4 = vpop.permute.xlu1 %1726 }
 0x28a   :  { %v1741_v54 = vmul.f32 %v7895_v27, %v1727_v4  ;;  %5049 = vmatpush3.bf16.msra.mxu0 %v5048_v53  ;;  %v1811_v47 = vpop.permute.xlu0 %1810 }
 0x28b   :  { %v1828_v31 = vmul.f32 %v7931_v29, %v1811_v47 }
 0x28c   :  { %v5050_v46 = vpack.c.bf16 %v1741_v54, %v1740_v3  ;;  %v1599_v54 = vld [vmem:[#allocation7 + $0xc8] sm:$0xff] }
 0x28d   :  { %v1805_v58 = vpop.permute.xlu1 %1804 }
 0x28e   :  { %v1825_v35 = vmul.f32 %v7931_v29, %v1805_v58  ;;  %5051 = vmatprep.subr.bf16.mxu0 %v5050_v46  ;;  %v1751_v37 = vpop.permute.xlu0 %1750 }
 0x28f   :  { %v1768_v50 = vmul.f32 %v7940_v38, %v1751_v37  ;;  %v1582_v37 = vld [vmem:[#allocation7 + $0x40] sm:$0xff] }
 0x290   :  { %v5070_v14 = vpack.c.bf16 %v1825_v35, %v1824_v61 }
 0x291   :  { %v1667_v22 = vpop.permute.xlu1 %1666 }
 0x292   :  { %v1681_v23 = vmul.f32 %v7904_v15, %v1667_v22  ;;  %5071 = vmatprep.subr.bf16.mxu1 %v5070_v14  ;;  %v1815_v36 = vpop.permute.xlu0 %1814  ;;  %v1604_v14 = vld [vmem:[#allocation7 + $0xf0] sm:$0xff]  ;;  %v7959_v22 = vld [vmem:[%s8947_s3 + $0x8] ss:$0 sm:$0xff] }
 0x293   :  { %v1830_v4 = vmul.f32 %v7931_v29, %v1815_v36 }
 0x294   :  { %v5052_v26 = vpack.c.bf16 %v1681_v23, %v1680_v25  ;;  %v1610_v25 = vld [vmem:[#allocation7 + $0x120] sm:$0xff] }
 0x295   :  { %v1745_v1 = vpop.permute.xlu1 %1744 }
 0x296   :  { %v1765_v49 = vmul.f32 %v7940_v38, %v1745_v1  ;;  %5053 = vmatpush3.bf16.msra.mxu0 %v5052_v26  ;;  %v1755_v16 = vpop.permute.xlu0 %1754 }
 0x297   :  { %v1770_v61 = vmul.f32 %v7940_v38, %v1755_v16  ;;  %v1591_v16 = vld [vmem:[#allocation7 + $0x88] sm:$0xff] }
 0x298   :  { %v5072_v40 = vpack.c.bf16 %v1765_v49, %v1764_v21  ;;  %v1576_v49 = vld [vmem:[#allocation7 + $0x10] sm:$0xff] }
 0x299   :  { %v1809_v32 = vpop.permute.xlu1 %1808  ;;  %1991 = vmatmul.mubr.f32.vlgmr.msra.gmra.mrb[0].mxu0 %v1574_v60  ;;  %v1609_v60 = vld [vmem:[#allocation7 + $0x118] sm:$0xff] }
 0x29a   :  { %v1827_v43 = vmul.f32 %v7931_v29, %v1809_v32  ;;  %5073 = vmatpush3.bf16.msra.mxu1 %v5072_v40  ;;  %1995 = vmatprep.mubr.f32.mxu0 %v1580_v17  ;;  %v1833_v53 = vpop.permute.xlu0 %1832  ;;  %v1578_v40 = vld [vmem:[#allocation7 + $0x20] sm:$0xff] }
 0x29b   :  { %v1854_v1 = vmul.f32 %v7959_v22, %v1833_v53  ;;  %v1598_v53 = vld [vmem:[#allocation7 + $0xc0] sm:$0xff] }
 0x29c   :  { %v5074_v0 = vpack.c.bf16 %v1827_v43, %v1826_v9 }
 0x29d   :  { %v1749_v12 = vpop.permute.xlu1 %1748  ;;  %1996 = vmatmul.mubr.f32.gmra.mrb[2].mxu0 %v1579_v34 }
 0x29e   :  { %v1767_v2 = vmul.f32 %v7940_v38, %v1749_v12  ;;  %5075 = vmatprep.subr.bf16.mxu1 %v5074_v0  ;;  %2000 = vmatprep.mubr.f32.mxu0 %v1585_v6  ;;  %v1837_v47 = vpop.permute.xlu0 %1836  ;;  %v1581_v6 = vld [vmem:[#allocation7 + $0x38] sm:$0xff]  ;;  %v1587_v0 = vld [vmem:[#allocation7 + $0x68] sm:$0xff] }
 0x29f   :  { %v1856_v43 = vmul.f32 %v7959_v22, %v1837_v47 }
 0x2a0   :  { %v5076_v59 = vpack.c.bf16 %v1767_v2, %v1766_v48 }
 0x2a1   :  { %v1813_v13 = vpop.permute.xlu1 %1812  ;;  %2001 = vmatmul.mubr.f32.gmra.mrb[4].mxu0 %v1584_v41  ;;  %v1586_v41 = vld [vmem:[#allocation7 + $0x60] sm:$0xff] }
 0x2a2   :  { %v1829_v20 = vmul.f32 %v7931_v29, %v1813_v13  ;;  %5077 = vmatpush3.bf16.msra.mxu1 %v5076_v59  ;;  %2005 = vmatprep.mubr.f32.mxu0 %v1590_v5  ;;  %v1841_v9 = vpop.permute.xlu0 %1840  ;;  %v1592_v59 = vld [vmem:[#allocation7 + $0x90] sm:$0xff] }
 0x2a3   :  { %v1858_v48 = vmul.f32 %v7959_v22, %v1841_v9 }
 0x2a4   :  { %v5078_v24 = vpack.c.bf16 %v1829_v20, %v1828_v31 }
 0x2a5   :  { %v1753_v18 = vpop.permute.xlu1 %1752  ;;  %2006 = vmatmul.mubr.f32.gmra.mrb[6].mxu0 %v1589_v56 }
 0x2a6   :  { %v1769_v52 = vmul.f32 %v7940_v38, %v1753_v18  ;;  %5079 = vmatprep.subr.bf16.mxu1 %v5078_v24  ;;  %2010 = vmatprep.mubr.f32.mxu0 %v1595_v51  ;;  %v1845_v5 = vpop.permute.xlu0 %1844  ;;  %v1597_v51 = vld [vmem:[#allocation7 + $0xb8] sm:$0xff]  ;;  %v1596_v18 = vld [vmem:[#allocation7 + $0xb0] sm:$0xff] }
 0x2a7   :  { %v1860_v20 = vmul.f32 %v7959_v22, %v1845_v5 }
 0x2a8   :  { %v5080_v55 = vpack.c.bf16 %v1769_v52, %v1768_v50  ;;  %v1583_v50 = vld [vmem:[#allocation7 + $0x48] sm:$0xff]  ;;  %v1602_v52 = vld [vmem:[#allocation7 + $0xe0] sm:$0xff] }
 0x2a9   :  { %v1817_v63 = vpop.permute.xlu1 %1816  ;;  %2011 = vmatmul.mubr.f32.gmra.mrb[8].mxu0 %v1594_v45  ;;  %v1588_v45 = vld [vmem:[#allocation7 + $0x70] sm:$0xff] }
 0x2aa   :  { %v1831_v3 = vmul.f32 %v7931_v29, %v1817_v63  ;;  %5081 = vmatpush3.bf16.msra.mxu1 %v5080_v55  ;;  %2015 = vmatprep.mubr.f32.mxu0 %v1600_v39  ;;  %v1601_v39 = vld [vmem:[#allocation7 + $0xd8] sm:$0xff]  ;;  %v1607_v63 = vld [vmem:[#allocation7 + $0x108] sm:$0xff] }
 0x2ab   :  { %v1593_v55 = vld [vmem:[#allocation7 + $0x98] sm:$0xff] }
 0x2ac   :  { %v5082_v46 = vpack.c.bf16 %v1831_v3, %v1830_v4  ;;  %v1606_v4 = vld [vmem:[#allocation7 + $0x100] sm:$0xff]  ;;  %v1603_v3 = vld [vmem:[#allocation7 + $0xe8] sm:$0xff] }
 0x2ad   :  { %v1757_v58 = vpop.permute.xlu1 %1756  ;;  %2016 = vmatmul.mubr.f32.gmra.mrb[10].mxu0 %v1599_v54  ;;  %v1612_v54 = vld [vmem:[#allocation7 + $0x130] sm:$0xff] }
 0x2ae   :  { %v1771_v35 = vmul.f32 %v7940_v38, %v1757_v58  ;;  %5083 = vmatprep.subr.bf16.mxu1 %v5082_v46  ;;  %2020 = vmatprep.mubr.f32.mxu0 %v1605_v62  ;;  %v1608_v62 = vld [vmem:[#allocation7 + $0x110] sm:$0xff]  ;;  %v1611_v46 = vld [vmem:[#allocation7 + $0x128] sm:$0xff]  ;;  %v1613_v58 = vld [vmem:[#allocation7 + $0x138] sm:$0xff] }
 0x2b0   :  { %v5084_v23 = vpack.c.bf16 %v1771_v35, %v1770_v61 }
 0x2b1   :  { %v1835_v26 = vpop.permute.xlu1 %1834  ;;  %2021 = vmatmul.mubr.f32.gmra.mrb[12].mxu0 %v1604_v14 }
 0x2b2   :  { %v1855_v21 = vmul.f32 %v7959_v22, %v1835_v26  ;;  %5085 = vmatpush3.bf16.msra.mxu1 %v5084_v23  ;;  %2025 = vmatprep.mubr.f32.mxu0 %v1610_v25 }
 0x2b4   :  { %v5086_v17 = vpack.c.bf16 %v1855_v21, %v1854_v1 }
 0x2b5   :  { %v1839_v32 = vpop.permute.xlu1 %1838  ;;  %2096 = vmatmul.mubr.f32.vlgmr.msra.gmra.mrb[0].mxu1 %v1576_v49  ;;  %2026 = vmatmul.mubr.f32.gmra.mrb[14].mxu0 %v1609_v60 }
 0x2b6   :  { %v1857_v34 = vmul.f32 %v7959_v22, %v1839_v32  ;;  %5087 = vmatprep.subr.bf16.mxu0 %v5086_v17  ;;  %2100 = vmatprep.mubr.f32.mxu1 %v1582_v37 }
 0x2b7   :  { %5089 = vmatpush3.bf16.msra.mxu0 %v5086_v17  ;;  %4907 = vmatprep.mubr.msk.f32.mxu0 %vm1550_vm0, %v1578_v40 }
 0x2b8   :  { %v5090_v12 = vpack.c.bf16 %v1857_v34, %v1856_v43 }
 0x2b9   :  { %v1843_v36 = vpop.permute.xlu1 %1842  ;;  %2101 = vmatmul.mubr.f32.gmra.mrb[2].mxu1 %v1581_v6 }
 0x2ba   :  { %v1859_v2 = vmul.f32 %v7959_v22, %v1843_v36  ;;  %5091 = vmatprep.subr.bf16.mxu0 %v5090_v12  ;;  %2105 = vmatprep.mubr.f32.mxu1 %v1587_v0  ;;  %v1865_v36 = vpop.permute.xlu0 %1864 }
 0x2bb   :  { %5093 = vmatpush3.bf16.msra.mxu0 %v5090_v12 }
 0x2bc   :  { %v5094_v13 = vpack.c.bf16 %v1859_v2, %v1858_v48 }
 0x2bd   :  { %v1847_v31 = vpop.permute.xlu1 %1846  ;;  %2106 = vmatmul.mubr.f32.gmra.mrb[4].mxu1 %v1586_v41 }
 0x2be   :  { %v1861_v56 = vmul.f32 %v7959_v22, %v1847_v31  ;;  %5095 = vmatprep.subr.bf16.mxu0 %v5094_v13  ;;  %2110 = vmatprep.mubr.f32.mxu1 %v1592_v59 }
 0x2bf   :  { %5097 = vmatpush3.bf16.msra.mxu0 %v5094_v13 }
 0x2c0   :  { %v5098_v24 = vpack.c.bf16 %v1861_v56, %v1860_v20 }
 0x2c1   :  { %2111 = vmatmul.mubr.f32.gmra.mrb[6].mxu1 %v1591_v16 }
 0x2c2   :  { %5099 = vmatprep.subr.bf16.mxu0 %v5098_v24  ;;  %2115 = vmatprep.mubr.f32.mxu1 %v1597_v51 }
 0x2c3   :  { %5101 = vmatpush3.bf16.msra.mxu0 %v5098_v24 }
 0x2c5   :  { %2116 = vmatmul.mubr.f32.gmra.mrb[8].mxu1 %v1596_v18 }
 0x2c6   :  { %4908 = vmatmul.mubr.msk.f32.vlgmr.msra.gmra.mrb[16].mxu0 %vm1550_vm0, %v1583_v50  ;;  %2120 = vmatprep.mubr.f32.mxu1 %v1602_v52 }
 0x2c7   :  { %4910 = vmatprep.mubr.msk.f32.mxu0 %vm1550_vm0, %v1588_v45 }
 0x2c9   :  { %2121 = vmatmul.mubr.f32.gmra.mrb[10].mxu1 %v1601_v39 }
 0x2ca   :  { %4911 = vmatmul.mubr.msk.f32.gmra.mrb[18].mxu0 %vm1550_vm0, %v1593_v55  ;;  %2125 = vmatprep.mubr.f32.mxu1 %v1607_v63 }
 0x2cb   :  { %4913 = vmatprep.mubr.msk.f32.mxu0 %vm1550_vm0, %v1598_v53  ;;  %v1880_v53 = vpop.permute.xlu0 %1879 }
 0x2cd   :  { %2126 = vmatmul.mubr.f32.gmra.mrb[12].mxu1 %v1606_v4 }
 0x2ce   :  { %4914 = vmatmul.mubr.msk.f32.gmra.mrb[20].mxu0 %vm1550_vm0, %v1603_v3  ;;  %2130 = vmatprep.mubr.f32.mxu1 %v1612_v54  ;;  %v1870_v48 = vpop.permute.xlu1 %1869 }
 0x2cf   :  { %4916 = vmatprep.mubr.msk.f32.mxu0 %vm1550_vm0, %v1608_v62 }
 0x2d1   :  { %2131 = vmatmul.mubr.f32.gmra.mrb[14].mxu1 %v1611_v46 }
 0x2d2   :  { %4917 = vmatmul.mubr.msk.f32.gmra.mrb[22].mxu0 %vm1550_vm0, %v1613_v58  ;;  %v1875_v50 = vpop.permute.xlu1 %1874 }
 0x2d6   :  { %v1885_v58 = vpop.permute.xlu1 %1884 }
 0x36c   :  { %v4402_v61 = vpop.f32.mrb[0].mxu0 }
 0x36d   :  { %v4403_v35 = vpop.f32.mrb[1].mxu0 }
 0x36e   :  { %v4404_v14 = vadd.f32 %v4403_v35, %v4402_v61 }
 0x370   :  { %v4405_v47 = vpop.f32.mrb[2].mxu0  ;;  %v1993_v13 = vadd.f32 %v4404_v14, %v1865_v36 }
 0x371   :  { %v4406_v25 = vpop.f32.mrb[3].mxu0 }
 0x372   :  { %v4407_v23 = vadd.f32 %v4406_v25, %v4405_v47 }
 0x374   :  { %v4408_v26 = vpop.f32.mrb[4].mxu0  ;;  %v1998_v24 = vadd.f32 %v4407_v23, %v1870_v48 }
 0x375   :  { %v4409_v1 = vpop.f32.mrb[5].mxu0 }
 0x376   :  { %v4410_v21 = vadd.f32 %v4409_v1, %v4408_v26 }
 0x378   :  { %v4411_v49 = vpop.f32.mrb[6].mxu0  ;;  %v2003_v55 = vadd.f32 %v4410_v21, %v1875_v50 }
 0x379   :  { %v4412_v60 = vpop.f32.mrb[7].mxu0 }
 0x37a   :  { %v4413_v37 = vadd.f32 %v4412_v60, %v4411_v49  ;;  %v1890_v49 = vpop.permute.xlu0 %1889 }
 0x37c   :  { %v4414_v17 = vpop.f32.mrb[8].mxu0  ;;  %v2008_v62 = vadd.f32 %v4413_v37, %v1880_v53 }
 0x37d   :  { %v4415_v40 = vpop.f32.mrb[9].mxu0 }
 0x37e   :  { %v4416_v32 = vadd.f32 %v4415_v40, %v4414_v17 }
 0x380   :  { %v4417_v9 = vpop.f32.mrb[10].mxu0  ;;  %v2013_v25 = vadd.f32 %v4416_v32, %v1885_v58  ;;  %v1895_v32 = vpop.permute.xlu1 %1894 }
 0x381   :  { %v4418_v43 = vpop.f32.mrb[11].mxu0 }
 0x382   :  { %v4419_v34 = vadd.f32 %v4418_v43, %v4417_v9 }
 0x384   :  { %v4420_v6 = vpop.f32.mrb[12].mxu0 }
 0x385   :  { %v4421_v0 = vpop.f32.mrb[13].mxu0 }
 0x386   :  { %v4422_v12 = vadd.f32 %v4421_v0, %v4420_v6  ;;  %v2018_v6 = vadd.f32 %v4419_v34, %v1890_v49  ;;  %v1900_v34 = vpop.permute.xlu0 %1899 }
 0x388   :  { %v4458_v2 = vpop.f32.mrb[0].mxu1  ;;  %v4423_v41 = vpop.f32.mrb[14].mxu0 }
 0x389   :  { %v4459_v5 = vpop.f32.mrb[1].mxu1  ;;  %v4424_v59 = vpop.f32.mrb[15].mxu0 }
 0x38a   :  { %v4460_v31 = vadd.f32 %v4459_v5, %v4458_v2  ;;  %v4425_v20 = vadd.f32 %v4424_v59, %v4423_v41 }
 0x38c   :  { %v4461_v56 = vpop.f32.mrb[2].mxu1  ;;  %v2098_v16 = vadd.f32 %v4460_v31, %v1993_v13  ;;  %v2023_v31 = vadd.f32 %v4422_v12, %v1895_v32 }
 0x38d   :  { %v4462_v51 = vpop.f32.mrb[3].mxu1 }
 0x38e   :  { %v4463_v18 = vadd.f32 %v4462_v51, %v4461_v56 }
 0x390   :  { %v4464_v52 = vpop.f32.mrb[4].mxu1  ;;  %v2103_v45 = vadd.f32 %v4463_v18, %v1998_v24 }
 0x391   :  { %v4465_v39 = vpop.f32.mrb[5].mxu1 }
 0x392   :  { %v4466_v63 = vadd.f32 %v4465_v39, %v4464_v52  ;;  %v2028_v39 = vadd.f32 %v4425_v20, %v1900_v34  ;;  %v4327_v34 = vld [vmem:[%s8949_s5 + $0x70] sm:$0xff] }
 0x394   :  { %v4467_v4 = vpop.f32.mrb[6].mxu1  ;;  %v2108_v3 = vadd.f32 %v4466_v63, %v2003_v55 }
 0x395   :  { %v4468_v54 = vpop.f32.mrb[7].mxu1 }
 0x396   :  { %v4469_v46 = vadd.f32 %v4468_v54, %v4467_v4 }
 0x398   :  { %v4470_v61 = vpop.f32.mrb[8].mxu1  ;;  %v2113_v35 = vadd.f32 %v4469_v46, %v2008_v62 }
 0x399   :  { %v4909_v14 = vpop.f32.mrb[16].mxu0  ;;  %v4471_v47 = vpop.f32.mrb[9].mxu1 }
 0x39a   :  { %v2208_v23 = vadd.f32 %v4909_v14, %v2103_v45  ;;  %v4472_v26 = vadd.f32 %v4471_v47, %v4470_v61  ;;  %v2202_v1 = vpop.f32.mrb[17].mxu0  ;;  %v2251_v61 = vld [vmem:[#allocation7 + $0x148] sm:$0xff] }
 0x39b   :  { %v2203_v60 = vadd.f32 %v2202_v1, %v2098_v16  ;;  %2619 = vmatprep.mubr.f32.mxu1 %v2251_v61 }
 0x39c   :  { %v7977_v17 = vmax.f32 %v2208_v23, 0.0  ;;  %v4473_v21 = vpop.f32.mrb[10].mxu1  ;;  %v2118_v40 = vadd.f32 %v4472_v26, %v2013_v25 }
 0x39d   :  { %v7979_v9 = vmax.f32 %v2203_v60, 0.0  ;;  %v4474_v43 = vpop.f32.mrb[11].mxu1  ;;  %v4912_v37 = vpop.f32.mrb[18].mxu0 }
 0x39e   :  { %v4475_v0 = vadd.f32 %v4474_v43, %v4473_v21  ;;  %v2218_v36 = vadd.f32 %v4912_v37, %v2113_v35  ;;  %v2212_v48 = vpop.f32.mrb[19].mxu0  ;;  %2349 = vrot.lane.b32.xlu0 %v7977_v17, %s5487_s2  ;;  %v2253_v35 = vld [vmem:[#allocation7 + $0x158] sm:$0xff] }
 0x39f   :  { %v2213_v2 = vadd.f32 %v2212_v48, %v2108_v3  ;;  %2347 = vrot.lane.b32.xlu1 %v7979_v9, %s5487_s2  ;;  %2724 = vmatprep.mubr.f32.mxu0 %v2253_v35  ;;  %v4321_v48 = vld [vmem:[%s8949_s5 + $0x40] sm:$0xff] }
 0x3a0   :  { %v4476_v41 = vpop.f32.mrb[12].mxu1  ;;  %v2123_v5 = vadd.f32 %v4475_v0, %v2018_v6  ;;  %v8009_v20 = vmax.f32 %v2218_v36, 0.0 }
 0x3a1   :  { %v4477_v59 = vpop.f32.mrb[13].mxu1  ;;  %v4915_v13 = vpop.f32.mrb[20].mxu0  ;;  %v8011_v3 = vmax.f32 %v2213_v2, 0.0  ;;  %v5136_v2 = vpack.c.bf16 %v7977_v17, %v7979_v9 }
 0x3a2   :  { %v4478_v56 = vadd.f32 %v4477_v59, %v4476_v41  ;;  %v2228_v16 = vadd.f32 %v4915_v13, %v2123_v5  ;;  %v2222_v51 = vpop.f32.mrb[21].mxu0  ;;  %2301 = vrot.lane.b32.xlu0 %v7977_v17, %s5488_s22  ;;  %v4324_v41 = vld [vmem:[%s8949_s5 + $0x58] sm:$0xff]  ;;  %v4323_v59 = vld [vmem:[%s8949_s5 + $0x50] sm:$0xff] }
 0x3a3   :  { %v2223_v24 = vadd.f32 %v2222_v51, %v2118_v40  ;;  %2299 = vrot.lane.b32.xlu1 %v7979_v9, %s5488_s22 }
 0x3a4   :  { %v4479_v18 = vpop.f32.mrb[14].mxu1  ;;  %v2128_v50 = vadd.f32 %v4478_v56, %v2023_v31  ;;  %v8041_v54 = vmax.f32 %v2228_v16, 0.0  ;;  %v4325_v31 = vld [vmem:[%s8949_s5 + $0x60] sm:$0xff]  ;;  %v4328_v16 = vld [vmem:[%s8949_s5 + $0x78] sm:$0xff] }
 0x3a5   :  { %v4480_v52 = vpop.f32.mrb[15].mxu1  ;;  %v4918_v45 = vpop.f32.mrb[22].mxu0  ;;  %v8043_v62 = vmax.f32 %v2223_v24, 0.0 }
 0x3a6   :  { %v4481_v55 = vadd.f32 %v4480_v52, %v4479_v18  ;;  %v2232_v63 = vpop.f32.mrb[23].mxu0  ;;  %2421 = vrot.lane.b32.xlu0 %v7977_v17, %s5489_s23 }
 0x3a7   :  { %v2233_v12 = vadd.f32 %v2232_v63, %v2128_v50  ;;  %2419 = vrot.lane.b32.xlu1 %v7979_v9, %s5489_s23  ;;  %v8172_v50 = vld [vmem:[%s8947_s3 + $0x2] ss:$0 sm:$0xff] }
 0x3a8   :  { %v2133_v53 = vadd.f32 %v4481_v55, %v2028_v39 }
 0x3a9   :  { %v8067_v58 = vmax.f32 %v2233_v12, 0.0  ;;  %v8179_v12 = vld [vmem:[%s8947_s3] ss:$0 sm:$0xff] }
 0x3aa   :  { %v2238_v4 = vadd.f32 %v4918_v45, %v2133_v53  ;;  %2373 = vrot.lane.b32.xlu0 %v7977_v17, %s5490_s24 }
 0x3ab   :  { %2371 = vrot.lane.b32.xlu1 %v7979_v9, %s5490_s24 }
 0x3ac   :  { %v8065_v46 = vmax.f32 %v2238_v4, 0.0 }
 0x3ae   :  { %2325 = vrot.lane.b32.xlu0 %v7977_v17, %s5482_s20 }
 0x3af   :  { %2323 = vrot.lane.b32.xlu1 %v7979_v9, %s5482_s20 }
 0x3b2   :  { %2445 = vrot.lane.b32.xlu0 %v7977_v17, %s5491_s29 }
 0x3b3   :  { %2443 = vrot.lane.b32.xlu1 %v7979_v9, %s5491_s29 }
 0x3b6   :  { %2397 = vrot.lane.b32.xlu0 %v7977_v17, %s5492_s30 }
 0x3b7   :  { %2395 = vrot.lane.b32.xlu1 %v7979_v9, %s5492_s30 }
 0x3ba   :  { %2353 = vrot.lane.b32.xlu0 %v8009_v20, %s5487_s2 }
 0x3bb   :  { %2351 = vrot.lane.b32.xlu1 %v8011_v3, %s5487_s2 }
 0x3be   :  { %2305 = vrot.lane.b32.xlu0 %v8009_v20, %s5488_s22 }
 0x3bf   :  { %2303 = vrot.lane.b32.xlu1 %v8011_v3, %s5488_s22 }
 0x3c2   :  { %2425 = vrot.lane.b32.xlu0 %v8009_v20, %s5489_s23 }
 0x3c3   :  { %2423 = vrot.lane.b32.xlu1 %v8011_v3, %s5489_s23 }
 0x3c6   :  { %2377 = vrot.lane.b32.xlu0 %v8009_v20, %s5490_s24 }
 0x3c7   :  { %2375 = vrot.lane.b32.xlu1 %v8011_v3, %s5490_s24 }
 0x3ca   :  { %2329 = vrot.lane.b32.xlu0 %v8009_v20, %s5482_s20 }
 0x3cb   :  { %2327 = vrot.lane.b32.xlu1 %v8011_v3, %s5482_s20 }
 0x3ce   :  { %2449 = vrot.lane.b32.xlu0 %v8009_v20, %s5491_s29 }
 0x3cf   :  { %2447 = vrot.lane.b32.xlu1 %v8011_v3, %s5491_s29 }
 0x3d2   :  { %2401 = vrot.lane.b32.xlu0 %v8009_v20, %s5492_s30 }
 0x3d3   :  { %2399 = vrot.lane.b32.xlu1 %v8011_v3, %s5492_s30 }
 0x3d6   :  { %2357 = vrot.lane.b32.xlu0 %v8041_v54, %s5487_s2 }
 0x3d7   :  { %2355 = vrot.lane.b32.xlu1 %v8043_v62, %s5487_s2 }
 0x3da   :  { %2309 = vrot.lane.b32.xlu0 %v8041_v54, %s5488_s22 }
 0x3db   :  { %2307 = vrot.lane.b32.xlu1 %v8043_v62, %s5488_s22 }
 0x3de   :  { %2429 = vrot.lane.b32.xlu0 %v8041_v54, %s5489_s23 }
 0x3df   :  { %2427 = vrot.lane.b32.xlu1 %v8043_v62, %s5489_s23 }
 0x3e2   :  { %2381 = vrot.lane.b32.xlu0 %v8041_v54, %s5490_s24 }
 0x3e3   :  { %2379 = vrot.lane.b32.xlu1 %v8043_v62, %s5490_s24 }
 0x3e6   :  { %2333 = vrot.lane.b32.xlu0 %v8041_v54, %s5482_s20 }
 0x3e7   :  { %2331 = vrot.lane.b32.xlu1 %v8043_v62, %s5482_s20 }
 0x3ea   :  { %2361 = vrot.lane.b32.xlu0 %v8065_v46, %s5487_s2 }
 0x3eb   :  { %2359 = vrot.lane.b32.xlu1 %v8067_v58, %s5487_s2 }
 0x3ee   :  { %2313 = vrot.lane.b32.xlu0 %v8065_v46, %s5488_s22 }
 0x3ef   :  { %2311 = vrot.lane.b32.xlu1 %v8067_v58, %s5488_s22 }
 0x3f2   :  { %2433 = vrot.lane.b32.xlu0 %v8065_v46, %s5489_s23 }
 0x3f3   :  { %2451 = vrot.lane.b32.xlu1 %v8043_v62, %s5491_s29 }
 0x3f6   :  { %2385 = vrot.lane.b32.xlu0 %v8065_v46, %s5490_s24 }
 0x3f7   :  { %2431 = vrot.lane.b32.xlu1 %v8067_v58, %s5489_s23 }
 0x3fa   :  { %2337 = vrot.lane.b32.xlu0 %v8065_v46, %s5482_s20 }
 0x3fb   :  { %2383 = vrot.lane.b32.xlu1 %v8067_v58, %s5490_s24 }
 0x3fe   :  { %2453 = vrot.lane.b32.xlu0 %v8041_v54, %s5491_s29 }
 0x3ff   :  { %2335 = vrot.lane.b32.xlu1 %v8067_v58, %s5482_s20 }
 0x402   :  { %2405 = vrot.lane.b32.xlu0 %v8041_v54, %s5492_s30 }
 0x403   :  { %2403 = vrot.lane.b32.xlu1 %v8043_v62, %s5492_s30 }
 0x406   :  { %2457 = vrot.lane.b32.xlu0 %v8065_v46, %s5491_s29 }
 0x407   :  { %2455 = vrot.lane.b32.xlu1 %v8067_v58, %s5491_s29 }
 0x40a   :  { %2409 = vrot.lane.b32.xlu0 %v8065_v46, %s5492_s30 }
 0x40b   :  { %2407 = vrot.lane.b32.xlu1 %v8067_v58, %s5492_s30 }
 0x40e   :  { %2469 = vrot.lane.b32.xlu0 %v7977_v17, %s5493_s9  ;;  %v4326_v17 = vld [vmem:[%s8949_s5 + $0x68] sm:$0xff] }
 0x40f   :  { %2467 = vrot.lane.b32.xlu1 %v7979_v9, %s5493_s9 }
 0x410   :  { %v2350_v14 = vpop.permute.xlu0 %2349 }
 0x411   :  { %v2364_v47 = vmul.f32 %v7764_v57, %v2350_v14  ;;  %v2348_v25 = vpop.permute.xlu1 %2347 }
 0x412   :  { %v2363_v23 = vmul.f32 %v7764_v57, %v2348_v25  ;;  %2473 = vrot.lane.b32.xlu0 %v8009_v20, %s5493_s9 }
 0x413   :  { %2471 = vrot.lane.b32.xlu1 %v8011_v3, %s5493_s9 }
 0x414   :  { %v5102_v26 = vpack.c.bf16 %v2364_v47, %v2363_v23  ;;  %v2302_v1 = vpop.permute.xlu0 %2301 }
 0x415   :  { %v2316_v49 = vmul.f32 %v7775_v7, %v2302_v1  ;;  %v2300_v60 = vpop.permute.xlu1 %2299 }
 0x416   :  { %v2315_v21 = vmul.f32 %v7775_v7, %v2300_v60  ;;  %2477 = vrot.lane.b32.xlu0 %v8041_v54, %s5493_s9  ;;  %5103 = vmatprep.subr.bf16.mxu1 %v5102_v26  ;;  %v4322_v7 = vld [vmem:[%s8949_s5 + $0x48] sm:$0xff]  ;;  %v5140_v60 = vpack.c.bf16 %v8009_v20, %v8011_v3 }
 0x417   :  { %2475 = vrot.lane.b32.xlu1 %v8043_v62, %s5493_s9 }
 0x418   :  { %v5104_v57 = vpack.c.bf16 %v2316_v49, %v2315_v21  ;;  %v2422_v40 = vpop.permute.xlu0 %2421 }
 0x419   :  { %v2436_v43 = vmul.f32 %v7878_v33, %v2422_v40  ;;  %v2420_v37 = vpop.permute.xlu1 %2419 }
 0x41a   :  { %v2435_v6 = vmul.f32 %v7878_v33, %v2420_v37  ;;  %2481 = vrot.lane.b32.xlu0 %v8065_v46, %s5493_s9  ;;  %5105 = vmatpush3.bf16.msra.mxu1 %v5104_v57 }
 0x41b   :  { %2479 = vrot.lane.b32.xlu1 %v8067_v58, %s5493_s9 }
 0x41c   :  { %v5134_v0 = vpack.c.bf16 %v2436_v43, %v2435_v6  ;;  %v8130_v36 = vpop.permute.xlu0 %2373 }
 0x41d   :  { %v8135_v32 = vpop.permute.xlu1 %2371 }
 0x41e   :  { %2498 = vperm.xlu0 %5374, %v4322_v7   ;;  %5135 = vmatprep.subr.bf16.mxu0 %v5134_v0 }
 0x41f   :  { %2493 = vperm.xlu1 %5375, %v4321_v48   ;;  %5137 = vmatpush3.bf16.msra.mxu0 %v5136_v2 }
 0x420   :  { %v8142_v5 = vpop.permute.xlu0 %2325 }
 0x421   :  { %v8147_v13 = vpop.permute.xlu1 %2323 }
 0x422   :  { %2508 = vperm.xlu0 %5374, %v4324_v41  }
 0x423   :  { %2503 = vperm.xlu1 %5375, %v4323_v59  }
 0x424   :  { %v8152_v9 = vpop.permute.xlu0 %2445 }
 0x425   :  { %v8157_v56 = vpop.permute.xlu1 %2443 }
 0x426   :  { %2518 = vperm.xlu0 %5374, %v4326_v17  }
 0x427   :  { %2513 = vperm.xlu1 %5375, %v4325_v31  }
 0x428   :  { %v8162_v51 = vpop.permute.xlu0 %2397 }
 0x429   :  { %v8167_v24 = vpop.permute.xlu1 %2395 }
 0x42a   :  { %2528 = vperm.xlu0 %5374, %v4328_v16  }
 0x42b   :  { %2523 = vperm.xlu1 %5375, %v4327_v34  }
 0x42c   :  { %v2354_v18 = vpop.permute.xlu0 %2353 }
 0x42d   :  { %v2366_v52 = vmul.f32 %v8172_v50, %v2354_v18  ;;  %v2352_v45 = vpop.permute.xlu1 %2351 }
 0x42e   :  { %v2365_v39 = vmul.f32 %v8172_v50, %v2352_v45 }
 0x430   :  { %v5106_v55 = vpack.c.bf16 %v2366_v52, %v2365_v39  ;;  %v2306_v63 = vpop.permute.xlu0 %2305 }
 0x431   :  { %v2318_v53 = vmul.f32 %v8179_v12, %v2306_v63  ;;  %v2304_v4 = vpop.permute.xlu1 %2303  ;;  %v5144_v63 = vpack.c.bf16 %v8041_v54, %v8043_v62 }
 0x432   :  { %v2317_v61 = vmul.f32 %v8179_v12, %v2304_v4  ;;  %5107 = vmatprep.subr.bf16.mxu1 %v5106_v55 }
 0x434   :  { %v5108_v35 = vpack.c.bf16 %v2318_v53, %v2317_v61  ;;  %v2426_v14 = vpop.permute.xlu0 %2425 }
 0x435   :  { %v2438_v47 = vmul.f32 %v7878_v33, %v2426_v14  ;;  %v2424_v25 = vpop.permute.xlu1 %2423 }
 0x436   :  { %v2437_v23 = vmul.f32 %v7878_v33, %v2424_v25  ;;  %5109 = vmatpush3.bf16.msra.mxu1 %v5108_v35 }
 0x438   :  { %v5138_v26 = vpack.c.bf16 %v2438_v47, %v2437_v23  ;;  %v2378_v1 = vpop.permute.xlu0 %2377 }
 0x439   :  { %v2376_v49 = vpop.permute.xlu1 %2375 }
 0x43a   :  { %5139 = vmatprep.subr.bf16.mxu0 %v5138_v26  ;;  %v2387_v26 = vmul.f32 %v7895_v27, %v8135_v32 }
 0x43b   :  { %5141 = vmatpush3.bf16.msra.mxu0 %v5140_v60 }
 0x43c   :  { %v2330_v21 = vpop.permute.xlu0 %2329 }
 0x43d   :  { %v2328_v57 = vpop.permute.xlu1 %2327 }
 0x440   :  { %v8187_v40 = vpop.permute.xlu0 %2449 }
 0x441   :  { %v8189_v43 = vpop.permute.xlu1 %2447 }
 0x444   :  { %v8191_v37 = vpop.permute.xlu0 %2401 }
 0x445   :  { %v8193_v6 = vpop.permute.xlu1 %2399 }
 0x448   :  { %v2358_v7 = vpop.permute.xlu0 %2357 }
 0x449   :  { %v2368_v0 = vmul.f32 %v8172_v50, %v2358_v7  ;;  %v2356_v48 = vpop.permute.xlu1 %2355  ;;  %v2340_v7 = vmul.f32 %v7904_v15, %v8142_v5 }
 0x44a   :  { %v2367_v2 = vmul.f32 %v8172_v50, %v2356_v48 }
 0x44c   :  { %v5110_v41 = vpack.c.bf16 %v2368_v0, %v2367_v2  ;;  %v2310_v20 = vpop.permute.xlu0 %2309  ;;  %v2339_v0 = vmul.f32 %v7904_v15, %v8147_v13  ;;  %v2341_v13 = vmul.f32 %v7904_v15, %v2328_v57 }
 0x44d   :  { %v2320_v3 = vmul.f32 %v8179_v12, %v2310_v20  ;;  %v2308_v59 = vpop.permute.xlu1 %2307  ;;  %v2389_v20 = vmul.f32 %v7895_v27, %v2376_v49 }
 0x44e   :  { %v2319_v17 = vmul.f32 %v8179_v12, %v2308_v59  ;;  %5111 = vmatprep.subr.bf16.mxu1 %v5110_v41  ;;  %v2459_v59 = vmul.f32 %v7931_v29, %v8157_v56  ;;  %v5120_v5 = vpack.c.bf16 %v2340_v7, %v2339_v0  ;;  %v8233_v56 = vld [vmem:[%s8947_s3 + $0x6] ss:$0 sm:$0xff] }
 0x450   :  { %v5112_v31 = vpack.c.bf16 %v2320_v3, %v2319_v17  ;;  %v2430_v16 = vpop.permute.xlu0 %2429  ;;  %v2460_v3 = vmul.f32 %v7931_v29, %v8152_v9  ;;  %v2342_v17 = vmul.f32 %v7904_v15, %v2330_v21 }
 0x451   :  { %v2440_v34 = vmul.f32 %v7878_v33, %v2430_v16  ;;  %v2428_v18 = vpop.permute.xlu1 %2427 }
 0x452   :  { %v2439_v52 = vmul.f32 %v7878_v33, %v2428_v18  ;;  %5113 = vmatpush3.bf16.msra.mxu1 %v5112_v31  ;;  %v2388_v33 = vmul.f32 %v7895_v27, %v8130_v36  ;;  %v2390_v36 = vmul.f32 %v7895_v27, %v2378_v1  ;;  %v8226_v27 = vld [vmem:[%s8947_s3 + $0x3] ss:$0 sm:$0xff]  ;;  %v5148_v18 = vpack.c.bf16 %v8065_v46, %v8067_v58 }
 0x453   :  { %v2462_v46 = vmul.f32 %v7931_v29, %v8187_v40  ;;  %v2414_v40 = vmul.f32 %v7940_v38, %v8191_v37 }
 0x454   :  { %v5142_v45 = vpack.c.bf16 %v2440_v34, %v2439_v52  ;;  %v2382_v39 = vpop.permute.xlu0 %2381  ;;  %v5118_v41 = vpack.c.bf16 %v2388_v33, %v2387_v26  ;;  %v5122_v16 = vpack.c.bf16 %v2390_v36, %v2389_v20  ;;  %v5150_v34 = vpack.c.bf16 %v2460_v3, %v2459_v59  ;;  %v2250_v20 = vld [vmem:[#allocation7 + $0x140] sm:$0xff]  ;;  %v2256_v3 = vld [vmem:[#allocation7 + $0x170] sm:$0xff] }
 0x455   :  { %v2380_v55 = vpop.permute.xlu1 %2379  ;;  %v2392_v1 = vmul.f32 %v8226_v27, %v2382_v39  ;;  %v5124_v52 = vpack.c.bf16 %v2342_v17, %v2341_v13  ;;  %v8243_v39 = vld [vmem:[%s8947_s3 + $0x1] ss:$0 sm:$0xff]  ;;  %v2413_v33 = vmul.f32 %v7940_v38, %v8193_v6 }
 0x456   :  { %5143 = vmatprep.subr.bf16.mxu0 %v5142_v45  ;;  %v2391_v9 = vmul.f32 %v8226_v27, %v2380_v55 }
 0x457   :  { %5145 = vmatpush3.bf16.msra.mxu0 %v5144_v63  ;;  %v5156_v37 = vpack.c.bf16 %v2414_v40, %v2413_v33  ;;  %v2263_v40 = vld [vmem:[#allocation7 + $0x1a8] sm:$0xff] }
 0x458   :  { %v2334_v53 = vpop.permute.xlu0 %2333  ;;  %v5126_v58 = vpack.c.bf16 %v2392_v1, %v2391_v9 }
 0x459   :  { %v2332_v4 = vpop.permute.xlu1 %2331  ;;  %v2344_v45 = vmul.f32 %v7904_v15, %v2334_v53  ;;  %v2461_v53 = vmul.f32 %v7931_v29, %v8189_v43 }
 0x45a   :  { %v2343_v55 = vmul.f32 %v8243_v39, %v2332_v4 }
 0x45b   :  { %v5154_v26 = vpack.c.bf16 %v2462_v46, %v2461_v53 }
 0x45c   :  { %v2362_v61 = vpop.permute.xlu0 %2361 }
 0x45d   :  { %v2370_v35 = vmul.f32 %v8172_v50, %v2362_v61  ;;  %v2360_v14 = vpop.permute.xlu1 %2359 }
 0x45e   :  { %v2369_v47 = vmul.f32 %v8172_v50, %v2360_v14  ;;  %v2411_v14 = vmul.f32 %v7940_v38, %v8167_v24 }
 0x460   :  { %v5114_v25 = vpack.c.bf16 %v2370_v35, %v2369_v47  ;;  %v2314_v23 = vpop.permute.xlu0 %2313  ;;  %v2412_v35 = vmul.f32 %v7940_v38, %v8162_v51  ;;  %v5128_v51 = vpack.c.bf16 %v2344_v45, %v2343_v55 }
 0x461   :  { %v2322_v54 = vmul.f32 %v8179_v12, %v2314_v23  ;;  %v2312_v62 = vpop.permute.xlu1 %2311 }
 0x462   :  { %v2321_v60 = vmul.f32 %v8179_v12, %v2312_v62  ;;  %5115 = vmatprep.subr.bf16.mxu1 %v5114_v25  ;;  %v5152_v24 = vpack.c.bf16 %v2412_v35, %v2411_v14  ;;  %v2252_v35 = vld [vmem:[#allocation7 + $0x150] sm:$0xff]  ;;  %v2271_v14 = vld [vmem:[#allocation7 + $0x1e8] sm:$0xff] }
 0x464   :  { %v5116_v48 = vpack.c.bf16 %v2322_v54, %v2321_v60  ;;  %v2434_v2 = vpop.permute.xlu0 %2433 }
 0x465   :  { %v2452_v32 = vpop.permute.xlu1 %2451  ;;  %v2442_v21 = vmul.f32 %v8233_v56, %v2434_v2 }
 0x466   :  { %5117 = vmatpush3.bf16.msra.mxu1 %v5116_v48  ;;  %v2463_v7 = vmul.f32 %v7931_v29, %v2452_v32 }
 0x467   :  { %5119 = vmatprep.subr.bf16.mxu1 %v5118_v41 }
 0x468   :  { %v2386_v31 = vpop.permute.xlu0 %2385 }
 0x469   :  { %v2432_v49 = vpop.permute.xlu1 %2431  ;;  %v2394_v47 = vmul.f32 %v8226_v27, %v2386_v31  ;;  %v2255_v31 = vld [vmem:[#allocation7 + $0x168] sm:$0xff] }
 0x46a   :  { %v2441_v57 = vmul.f32 %v8233_v56, %v2432_v49  ;;  %5121 = vmatpush3.bf16.msra.mxu1 %v5120_v5 }
 0x46b   :  { %5123 = vmatprep.subr.bf16.mxu1 %v5122_v16  ;;  %v2261_v16 = vld [vmem:[#allocation7 + $0x198] sm:$0xff] }
 0x46c   :  { %v5146_v63 = vpack.c.bf16 %v2442_v21, %v2441_v57  ;;  %v2338_v61 = vpop.permute.xlu0 %2337 }
 0x46d   :  { %v2384_v15 = vpop.permute.xlu1 %2383  ;;  %v2346_v54 = vmul.f32 %v8243_v39, %v2338_v61  ;;  %v2265_v61 = vld [vmem:[#allocation7 + $0x1b8] sm:$0xff] }
 0x46e   :  { %v2393_v4 = vmul.f32 %v8226_v27, %v2384_v15  ;;  %5125 = vmatpush3.bf16.msra.mxu1 %v5124_v52  ;;  %5147 = vmatprep.subr.bf16.mxu0 %v5146_v63 }
 0x46f   :  { %5127 = vmatprep.subr.bf16.mxu1 %v5126_v58  ;;  %5149 = vmatpush3.bf16.msra.mxu0 %v5148_v18  ;;  %v2266_v18 = vld [vmem:[#allocation7 + $0x1c0] sm:$0xff] }
 0x470   :  { %v5130_v25 = vpack.c.bf16 %v2394_v47, %v2393_v4  ;;  %v2454_v23 = vpop.permute.xlu0 %2453  ;;  %5151 = vmatprep.subr.bf16.mxu0 %v5150_v34  ;;  %v2260_v34 = vld [vmem:[#allocation7 + $0x190] sm:$0xff]  ;;  %v2270_v4 = vld [vmem:[#allocation7 + $0x1e0] sm:$0xff] }
 0x471   :  { %v2336_v43 = vpop.permute.xlu1 %2335  ;;  %v2464_v62 = vmul.f32 %v7931_v29, %v2454_v23 }
 0x472   :  { %v2345_v60 = vmul.f32 %v8243_v39, %v2336_v43  ;;  %5129 = vmatpush3.bf16.msra.mxu1 %v5128_v51  ;;  %v2257_v51 = vld [vmem:[#allocation7 + $0x178] sm:$0xff] }
 0x473   :  { %5131 = vmatprep.subr.bf16.mxu1 %v5130_v25  ;;  %5153 = vmatpush3.bf16.msra.mxu0 %v5152_v24  ;;  %v5158_v41 = vpack.c.bf16 %v2464_v62, %v2463_v7  ;;  %v2276_v25 = vld [vmem:[#allocation7 + $0x210] sm:$0xff]  ;;  %v2262_v62 = vld [vmem:[#allocation7 + $0x1a0] sm:$0xff] }
 0x474   :  { %v5132_v0 = vpack.c.bf16 %v2346_v54, %v2345_v60  ;;  %v2406_v48 = vpop.permute.xlu0 %2405  ;;  %5155 = vmatprep.subr.bf16.mxu0 %v5154_v26  ;;  %v2275_v54 = vld [vmem:[#allocation7 + $0x208] sm:$0xff]  ;;  %v2281_v60 = vld [vmem:[#allocation7 + $0x238] sm:$0xff] }
 0x475   :  { %v2416_v2 = vmul.f32 %v7940_v38, %v2406_v48  ;;  %v2404_v6 = vpop.permute.xlu1 %2403  ;;  %v2268_v48 = vld [vmem:[#allocation7 + $0x1d0] sm:$0xff] }
 0x476   :  { %v2415_v36 = vmul.f32 %v7940_v38, %v2404_v6  ;;  %5133 = vmatpush3.bf16.msra.mxu1 %v5132_v0 }
 0x477   :  { %5157 = vmatpush3.bf16.msra.mxu0 %v5156_v37 }
 0x478   :  { %v5160_v59 = vpack.c.bf16 %v2416_v2, %v2415_v36  ;;  %v2458_v5 = vpop.permute.xlu0 %2457  ;;  %5159 = vmatprep.subr.bf16.mxu0 %v5158_v41  ;;  %v2280_v41 = vld [vmem:[#allocation7 + $0x230] sm:$0xff]  ;;  %v2267_v36 = vld [vmem:[#allocation7 + $0x1c8] sm:$0xff] }
 0x479   :  { %v2466_v17 = vmul.f32 %v7931_v29, %v2458_v5  ;;  %2620 = vmatmul.mubr.f32.vlgmr.msra.gmra.mrb[16].mxu1 %v2250_v20  ;;  %v2456_v32 = vpop.permute.xlu1 %2455  ;;  %v2286_v20 = vld [vmem:[#allocation7 + $0x260] sm:$0xff]  ;;  %v2285_v5 = vld [vmem:[#allocation7 + $0x258] sm:$0xff] }
 0x47a   :  { %v2465_v13 = vmul.f32 %v7931_v29, %v2456_v32  ;;  %2624 = vmatprep.mubr.f32.mxu1 %v2256_v3  ;;  %v2278_v32 = vld [vmem:[#allocation7 + $0x220] sm:$0xff] }
 0x47b   :  { %5161 = vmatpush3.bf16.msra.mxu0 %v5160_v59  ;;  %v2273_v59 = vld [vmem:[#allocation7 + $0x1f8] sm:$0xff] }
 0x47c   :  { %v5162_v1 = vpack.c.bf16 %v2466_v17, %v2465_v13  ;;  %v2410_v9 = vpop.permute.xlu0 %2409  ;;  %v2272_v17 = vld [vmem:[#allocation7 + $0x1f0] sm:$0xff]  ;;  %v2254_v13 = vld [vmem:[#allocation7 + $0x160] sm:$0xff] }
 0x47d   :  { %v2418_v49 = vmul.f32 %v7940_v38, %v2410_v9  ;;  %2625 = vmatmul.mubr.f32.gmra.mrb[18].mxu1 %v2255_v31  ;;  %v2408_v21 = vpop.permute.xlu1 %2407  ;;  %v2259_v31 = vld [vmem:[#allocation7 + $0x188] sm:$0xff]  ;;  %v2282_v9 = vld [vmem:[#allocation7 + $0x240] sm:$0xff] }
 0x47e   :  { %v2417_v57 = vmul.f32 %v7940_v38, %v2408_v21  ;;  %5163 = vmatprep.subr.bf16.mxu0 %v5162_v1  ;;  %2629 = vmatprep.mubr.f32.mxu1 %v2261_v16  ;;  %v2258_v38 = vld [vmem:[#allocation7 + $0x180] sm:$0xff]  ;;  %v2283_v16 = vld [vmem:[#allocation7 + $0x248] sm:$0xff]  ;;  %v2264_v1 = vld [vmem:[#allocation7 + $0x1b0] sm:$0xff] }
 0x47f   :  { %v2288_v21 = vld [vmem:[#allocation7 + $0x270] sm:$0xff] }
 0x480   :  { %v5164_v52 = vpack.c.bf16 %v2418_v49, %v2417_v57  ;;  %v2470_v45 = vpop.permute.xlu0 %2469  ;;  %v2269_v49 = vld [vmem:[#allocation7 + $0x1d8] sm:$0xff]  ;;  %v2274_v57 = vld [vmem:[#allocation7 + $0x200] sm:$0xff] }
 0x481   :  { %v2484_v29 = vmul.f32 %v7959_v22, %v2470_v45  ;;  %2630 = vmatmul.mubr.f32.gmra.mrb[20].mxu1 %v2260_v34  ;;  %v2468_v55 = vpop.permute.xlu1 %2467  ;;  %v2287_v34 = vld [vmem:[#allocation7 + $0x268] sm:$0xff]  ;;  %v2289_v45 = vld [vmem:[#allocation7 + $0x278] sm:$0xff] }
 0x482   :  { %v2483_v63 = vmul.f32 %v7959_v22, %v2468_v55  ;;  %5165 = vmatpush3.bf16.msra.mxu0 %v5164_v52  ;;  %2634 = vmatprep.mubr.f32.mxu1 %v2266_v18  ;;  %v2279_v18 = vld [vmem:[#allocation7 + $0x228] sm:$0xff]  ;;  %v2284_v52 = vld [vmem:[#allocation7 + $0x250] sm:$0xff] }
 0x484   :  { %v5166_v46 = vpack.c.bf16 %v2484_v29, %v2483_v63  ;;  %v2474_v58 = vpop.permute.xlu0 %2473 }
 0x485   :  { %v2486_v15 = vmul.f32 %v7959_v22, %v2474_v58  ;;  %2635 = vmatmul.mubr.f32.gmra.mrb[22].mxu1 %v2265_v61  ;;  %v2472_v53 = vpop.permute.xlu1 %2471  ;;  %2725 = vmatmul.mubr.f32.vlgmr.msra.gmra.mrb[24].mxu0 %v2252_v35 }
 0x486   :  { %v2485_v47 = vmul.f32 %v7959_v22, %v2472_v53  ;;  %5167 = vmatprep.subr.bf16.mxu1 %v5166_v46  ;;  %2639 = vmatprep.mubr.f32.mxu1 %v2271_v14 }
 0x487   :  { %5169 = vmatpush3.bf16.msra.mxu1 %v5166_v46  ;;  %2729 = vmatprep.mubr.f32.mxu0 %v2258_v38 }
 0x488   :  { %v5170_v23 = vpack.c.bf16 %v2486_v15, %v2485_v47  ;;  %v2478_v24 = vpop.permute.xlu0 %2477 }
 0x489   :  { %v2488_v33 = vmul.f32 %v7959_v22, %v2478_v24  ;;  %2640 = vmatmul.mubr.f32.gmra.mrb[24].mxu1 %v2270_v4  ;;  %v2476_v43 = vpop.permute.xlu1 %2475  ;;  %2730 = vmatmul.mubr.f32.gmra.mrb[26].mxu0 %v2257_v51 }
 0x48a   :  { %v2487_v26 = vmul.f32 %v7959_v22, %v2476_v43  ;;  %5171 = vmatprep.subr.bf16.mxu1 %v5170_v23  ;;  %2644 = vmatprep.mubr.f32.mxu1 %v2276_v25 }
 0x48b   :  { %5173 = vmatpush3.bf16.msra.mxu1 %v5170_v23  ;;  %2734 = vmatprep.mubr.f32.mxu0 %v2263_v40 }
 0x48c   :  { %v5174_v7 = vpack.c.bf16 %v2488_v33, %v2487_v26  ;;  %v2482_v0 = vpop.permute.xlu0 %2481 }
 0x48d   :  { %v2490_v37 = vmul.f32 %v7959_v22, %v2482_v0  ;;  %2645 = vmatmul.mubr.f32.gmra.mrb[26].mxu1 %v2275_v54  ;;  %v2480_v2 = vpop.permute.xlu1 %2479  ;;  %2735 = vmatmul.mubr.f32.gmra.mrb[28].mxu0 %v2262_v62 }
 0x48e   :  { %v2489_v6 = vmul.f32 %v7959_v22, %v2480_v2  ;;  %5175 = vmatprep.subr.bf16.mxu1 %v5174_v7  ;;  %2649 = vmatprep.mubr.f32.mxu1 %v2281_v60  ;;  %v2277_v22 = vld [vmem:[#allocation7 + $0x218] sm:$0xff] }
 0x48f   :  { %5177 = vmatpush3.bf16.msra.mxu1 %v5174_v7  ;;  %2739 = vmatprep.mubr.f32.mxu0 %v2268_v48 }
 0x490   :  { %v5178_v3 = vpack.c.bf16 %v2490_v37, %v2489_v6 }
 0x491   :  { %2650 = vmatmul.mubr.f32.gmra.mrb[28].mxu1 %v2280_v41  ;;  %2740 = vmatmul.mubr.f32.gmra.mrb[30].mxu0 %v2267_v36 }
 0x492   :  { %5179 = vmatprep.subr.bf16.mxu1 %v5178_v3  ;;  %2654 = vmatprep.mubr.f32.mxu1 %v2286_v20 }
 0x493   :  { %5181 = vmatpush3.bf16.msra.mxu1 %v5178_v3  ;;  %2744 = vmatprep.mubr.f32.mxu0 %v2273_v59 }
 0x495   :  { %2655 = vmatmul.mubr.f32.gmra.mrb[30].mxu1 %v2285_v5  ;;  %2745 = vmatmul.mubr.f32.gmra.mrb[32].mxu0 %v2272_v17 }
 0x496   :  { %2749 = vmatprep.mubr.f32.mxu0 %v2278_v32  ;;  %4935 = vmatprep.mubr.msk.f32.mxu1 %vm1550_vm0, %v2254_v13 }
 0x499   :  { %2750 = vmatmul.mubr.f32.gmra.mrb[34].mxu0 %v2277_v22  ;;  %4936 = vmatmul.mubr.msk.f32.vlgmr.msra.gmra.mrb[32].mxu1 %vm1550_vm0, %v2259_v31 }
 0x49a   :  { %2754 = vmatprep.mubr.f32.mxu0 %v2283_v16  ;;  %4938 = vmatprep.mubr.msk.f32.mxu1 %vm1550_vm0, %v2264_v1 }
 0x49d   :  { %2755 = vmatmul.mubr.f32.gmra.mrb[36].mxu0 %v2282_v9  ;;  %4939 = vmatmul.mubr.msk.f32.gmra.mrb[34].mxu1 %vm1550_vm0, %v2269_v49  ;;  %v2499_v40 = vpop.permute.xlu0 %2498 }
 0x49e   :  { %2759 = vmatprep.mubr.f32.mxu0 %v2288_v21  ;;  %4941 = vmatprep.mubr.msk.f32.mxu1 %vm1550_vm0, %v2274_v57  ;;  %v2494_v15 = vpop.permute.xlu1 %2493 }
 0x4a1   :  { %2760 = vmatmul.mubr.f32.gmra.mrb[38].mxu0 %v2287_v34  ;;  %4942 = vmatmul.mubr.msk.f32.gmra.mrb[36].mxu1 %vm1550_vm0, %v2279_v18  ;;  %v2509_v5 = vpop.permute.xlu0 %2508 }
 0x4a2   :  { %4944 = vmatprep.mubr.msk.f32.mxu1 %vm1550_vm0, %v2284_v52  ;;  %v2504_v48 = vpop.permute.xlu1 %2503 }
 0x4a5   :  { %4945 = vmatmul.mubr.msk.f32.gmra.mrb[38].mxu1 %vm1550_vm0, %v2289_v45 }
 0x4a6   :  { %v2514_v49 = vpop.permute.xlu1 %2513 }
 0x54c   :  { %v4530_v29 = vpop.f32.mrb[16].mxu1 }
 0x54d   :  { %v4531_v55 = vpop.f32.mrb[17].mxu1 }
 0x54e   :  { %v4532_v63 = vadd.f32 %v4531_v55, %v4530_v29 }
 0x550   :  { %v4533_v61 = vpop.f32.mrb[18].mxu1  ;;  %v2622_v25 = vadd.f32 %v4532_v63, %v2494_v15  ;;  %v2519_v63 = vpop.permute.xlu0 %2518 }
 0x551   :  { %v4534_v35 = vpop.f32.mrb[19].mxu1 }
 0x552   :  { %v4535_v14 = vadd.f32 %v4534_v35, %v4533_v61 }
 0x554   :  { %v4536_v46 = vpop.f32.mrb[20].mxu1  ;;  %v2627_v60 = vadd.f32 %v4535_v14, %v2499_v40 }
 0x555   :  { %v4537_v58 = vpop.f32.mrb[21].mxu1 }
 0x556   :  { %v4538_v38 = vadd.f32 %v4537_v58, %v4536_v46 }
 0x558   :  { %v4539_v53 = vpop.f32.mrb[22].mxu1  ;;  %v4586_v47 = vpop.f32.mrb[24].mxu0  ;;  %v2632_v20 = vadd.f32 %v4538_v38, %v2504_v48 }
 0x559   :  { %v4540_v4 = vpop.f32.mrb[23].mxu1  ;;  %v4587_v51 = vpop.f32.mrb[25].mxu0 }
 0x55a   :  { %v4541_v23 = vadd.f32 %v4540_v4, %v4539_v53  ;;  %v4588_v24 = vadd.f32 %v4587_v51, %v4586_v47  ;;  %v2524_v4 = vpop.permute.xlu1 %2523 }
 0x55c   :  { %v4542_v33 = vpop.f32.mrb[24].mxu1  ;;  %v4589_v43 = vpop.f32.mrb[26].mxu0  ;;  %v2727_v26 = vadd.f32 %v4588_v24, %v2622_v25  ;;  %v2637_v16 = vadd.f32 %v4541_v23, %v2509_v5 }
 0x55d   :  { %v4543_v54 = vpop.f32.mrb[25].mxu1  ;;  %v4590_v62 = vpop.f32.mrb[27].mxu0 }
 0x55e   :  { %v4544_v7 = vadd.f32 %v4543_v54, %v4542_v33  ;;  %v4591_v0 = vadd.f32 %v4590_v62, %v4589_v43 }
 0x560   :  { %v4545_v37 = vpop.f32.mrb[26].mxu1  ;;  %v4592_v2 = vpop.f32.mrb[28].mxu0  ;;  %v2732_v6 = vadd.f32 %v4591_v0, %v2627_v60  ;;  %v2642_v45 = vadd.f32 %v4544_v7, %v2514_v49 }
 0x561   :  { %v4546_v41 = vpop.f32.mrb[27].mxu1  ;;  %v4593_v36 = vpop.f32.mrb[29].mxu0 }
 0x562   :  { %v4547_v3 = vadd.f32 %v4546_v41, %v4545_v37  ;;  %v4594_v59 = vadd.f32 %v4593_v36, %v4592_v2 }
 0x564   :  { %v4548_v17 = vpop.f32.mrb[28].mxu1  ;;  %v4595_v32 = vpop.f32.mrb[30].mxu0  ;;  %v2737_v13 = vadd.f32 %v4594_v59, %v2632_v20  ;;  %v2647_v15 = vadd.f32 %v4547_v3, %v2519_v63  ;;  %v4338_v63 = vld [vmem:[%s8949_s5 + $0x88] sm:$0xff] }
 0x565   :  { %v4549_v22 = vpop.f32.mrb[29].mxu1  ;;  %v4596_v31 = vpop.f32.mrb[31].mxu0 }
 0x566   :  { %v4550_v1 = vadd.f32 %v4549_v22, %v4548_v17  ;;  %v4597_v9 = vadd.f32 %v4596_v31, %v4595_v32 }
 0x568   :  { %v4551_v21 = vpop.f32.mrb[30].mxu1  ;;  %v4598_v57 = vpop.f32.mrb[32].mxu0  ;;  %v2742_v34 = vadd.f32 %v4597_v9, %v2637_v16  ;;  %v2652_v62 = vadd.f32 %v4550_v1, %v2524_v4  ;;  %v4342_v4 = vld [vmem:[%s8949_s5 + $0xa8] sm:$0xff] }
 0x569   :  { %v4552_v18 = vpop.f32.mrb[31].mxu1  ;;  %v4599_v52 = vpop.f32.mrb[33].mxu0 }
 0x56a   :  { %v4553_v29 = vadd.f32 %v4552_v18, %v4551_v21  ;;  %v4600_v55 = vadd.f32 %v4599_v52, %v4598_v57 }
 0x56c   :  { %v4601_v61 = vpop.f32.mrb[34].mxu0  ;;  %v4937_v35 = vpop.f32.mrb[32].mxu1  ;;  %v2747_v14 = vadd.f32 %v4600_v55, %v2642_v45 }
 0x56d   :  { %v2837_v46 = vadd.f32 %v4937_v35, %v2732_v6  ;;  %v4602_v58 = vpop.f32.mrb[35].mxu0  ;;  %v2831_v38 = vpop.f32.mrb[33].mxu1 }
 0x56e   :  { %v4603_v53 = vadd.f32 %v4602_v58, %v4601_v61  ;;  %v2832_v47 = vadd.f32 %v2831_v38, %v2727_v26  ;;  %v4340_v38 = vld [vmem:[%s8949_s5 + $0x98] sm:$0xff] }
 0x56f   :  { %v8287_v51 = vadd.f32 %v2837_v46, %v7634_v42  ;;  %v2529_v42 = vpop.permute.xlu0 %2528 }
 0x570   :  { %v8290_v25 = vadd.f32 %v2832_v47, %v7624_v10  ;;  %v4604_v23 = vpop.f32.mrb[36].mxu0  ;;  %v4940_v24 = vpop.f32.mrb[34].mxu1  ;;  %v2752_v40 = vadd.f32 %v4603_v53, %v2647_v15  ;;  %v2657_v6 = vadd.f32 %v4553_v29, %v2529_v42  ;;  %v4339_v53 = vld [vmem:[%s8949_s5 + $0x90] sm:$0xff] }
 0x571   :  { %v2847_v33 = vadd.f32 %v4940_v24, %v2742_v34  ;;  %v4605_v43 = vpop.f32.mrb[37].mxu0  ;;  %v2841_v54 = vpop.f32.mrb[35].mxu1  ;;  %2978 = vrot.lane.b32.xlu0 %v8287_v51, %s5487_s2  ;;  %v4341_v24 = vld [vmem:[%s8949_s5 + $0xa0] sm:$0xff] }
 0x572   :  { %v4606_v60 = vadd.f32 %v4605_v43, %v4604_v23  ;;  %v2842_v7 = vadd.f32 %v2841_v54, %v2737_v13  ;;  %2976 = vrot.lane.b32.xlu1 %v8290_v25, %s5487_s2  ;;  %v5216_v58 = vpack.c.bf16 %v8287_v51, %v8290_v25  ;;  %v4343_v54 = vld [vmem:[%s8949_s5 + $0xb0] sm:$0xff] }
 0x573   :  { %v8321_v32 = vadd.f32 %v2847_v33, %v7666_v11  ;;  %v4344_v33 = vld [vmem:[%s8949_s5 + $0xb8] sm:$0xff] }
 0x574   :  { %v4607_v26 = vpop.f32.mrb[38].mxu0  ;;  %v4943_v0 = vpop.f32.mrb[36].mxu1  ;;  %v2757_v10 = vadd.f32 %v4606_v60, %v2652_v62  ;;  %v8324_v13 = vadd.f32 %v2842_v7, %v7657_v8 }
 0x575   :  { %v2857_v48 = vadd.f32 %v4943_v0, %v2752_v40  ;;  %v4608_v37 = vpop.f32.mrb[39].mxu0  ;;  %v2851_v2 = vpop.f32.mrb[37].mxu1  ;;  %2930 = vrot.lane.b32.xlu0 %v8287_v51, %s5488_s22 }
 0x576   :  { %v4609_v41 = vadd.f32 %v4608_v37, %v4607_v26  ;;  %v2852_v36 = vadd.f32 %v2851_v2, %v2747_v14  ;;  %2928 = vrot.lane.b32.xlu1 %v8290_v25, %s5488_s22  ;;  %v4337_v14 = vld [vmem:[%s8949_s5 + $0x80] sm:$0xff] }
 0x577   :  { %v8355_v8 = vadd.f32 %v2857_v48, %v7717_v44 }
 0x578   :  { %v2762_v20 = vadd.f32 %v4609_v41, %v2657_v6  ;;  %v4946_v3 = vpop.f32.mrb[38].mxu1  ;;  %v8358_v11 = vadd.f32 %v2852_v36, %v7695_v30 }
 0x579   :  { %v2861_v59 = vpop.f32.mrb[39].mxu1  ;;  %3050 = vrot.lane.b32.xlu0 %v8287_v51, %s5489_s23 }
 0x57a   :  { %v2867_v5 = vadd.f32 %v4946_v3, %v2762_v20  ;;  %v2862_v17 = vadd.f32 %v2861_v59, %v2757_v10  ;;  %3048 = vrot.lane.b32.xlu1 %v8290_v25, %s5489_s23 }
 0x57c   :  { %v8381_v30 = vadd.f32 %v2867_v5, %v7739_v19  ;;  %v8384_v44 = vadd.f32 %v2862_v17, %v7724_v28  ;;  %v2880_v28 = vld [vmem:[#allocation7 + $0x288] sm:$0xff]  ;;  %v2882_v19 = vld [vmem:[#allocation7 + $0x298] sm:$0xff] }
 0x57d   :  { %3002 = vrot.lane.b32.xlu0 %v8287_v51, %s5490_s24  ;;  %3248 = vmatprep.mubr.f32.mxu0 %v2880_v28  ;;  %v5220_v28 = vpack.c.bf16 %v8321_v32, %v8324_v13 }
 0x57e   :  { %3000 = vrot.lane.b32.xlu1 %v8290_v25, %s5490_s24  ;;  %3353 = vmatprep.mubr.f32.mxu1 %v2882_v19 }
 0x581   :  { %2954 = vrot.lane.b32.xlu0 %v8287_v51, %s5482_s20 }
 0x582   :  { %2952 = vrot.lane.b32.xlu1 %v8290_v25, %s5482_s20 }
 0x585   :  { %3074 = vrot.lane.b32.xlu0 %v8287_v51, %s5491_s29 }
 0x586   :  { %3072 = vrot.lane.b32.xlu1 %v8290_v25, %s5491_s29 }
 0x589   :  { %3026 = vrot.lane.b32.xlu0 %v8287_v51, %s5492_s30 }
 0x58a   :  { %3024 = vrot.lane.b32.xlu1 %v8290_v25, %s5492_s30 }
 0x58d   :  { %2982 = vrot.lane.b32.xlu0 %v8321_v32, %s5487_s2 }
 0x58e   :  { %2980 = vrot.lane.b32.xlu1 %v8324_v13, %s5487_s2 }
 0x591   :  { %2934 = vrot.lane.b32.xlu0 %v8321_v32, %s5488_s22 }
 0x592   :  { %2932 = vrot.lane.b32.xlu1 %v8324_v13, %s5488_s22 }
 0x595   :  { %3054 = vrot.lane.b32.xlu0 %v8321_v32, %s5489_s23 }
 0x596   :  { %3052 = vrot.lane.b32.xlu1 %v8324_v13, %s5489_s23 }
 0x599   :  { %3006 = vrot.lane.b32.xlu0 %v8321_v32, %s5490_s24 }
 0x59a   :  { %3004 = vrot.lane.b32.xlu1 %v8324_v13, %s5490_s24 }
 0x59d   :  { %2958 = vrot.lane.b32.xlu0 %v8321_v32, %s5482_s20 }
 0x59e   :  { %2956 = vrot.lane.b32.xlu1 %v8324_v13, %s5482_s20 }
 0x5a1   :  { %3078 = vrot.lane.b32.xlu0 %v8321_v32, %s5491_s29 }
 0x5a2   :  { %3076 = vrot.lane.b32.xlu1 %v8324_v13, %s5491_s29 }
 0x5a5   :  { %3030 = vrot.lane.b32.xlu0 %v8321_v32, %s5492_s30 }
 0x5a6   :  { %3028 = vrot.lane.b32.xlu1 %v8324_v13, %s5492_s30 }
 0x5a9   :  { %2986 = vrot.lane.b32.xlu0 %v8355_v8, %s5487_s2 }
 0x5aa   :  { %2984 = vrot.lane.b32.xlu1 %v8358_v11, %s5487_s2 }
 0x5ad   :  { %2938 = vrot.lane.b32.xlu0 %v8355_v8, %s5488_s22 }
 0x5ae   :  { %2936 = vrot.lane.b32.xlu1 %v8358_v11, %s5488_s22 }
 0x5b1   :  { %3058 = vrot.lane.b32.xlu0 %v8355_v8, %s5489_s23 }
 0x5b2   :  { %3056 = vrot.lane.b32.xlu1 %v8358_v11, %s5489_s23 }
 0x5b5   :  { %3010 = vrot.lane.b32.xlu0 %v8355_v8, %s5490_s24 }
 0x5b6   :  { %3008 = vrot.lane.b32.xlu1 %v8358_v11, %s5490_s24 }
 0x5b9   :  { %2962 = vrot.lane.b32.xlu0 %v8355_v8, %s5482_s20 }
 0x5ba   :  { %2960 = vrot.lane.b32.xlu1 %v8358_v11, %s5482_s20 }
 0x5bd   :  { %2990 = vrot.lane.b32.xlu0 %v8381_v30, %s5487_s2 }
 0x5be   :  { %2988 = vrot.lane.b32.xlu1 %v8384_v44, %s5487_s2 }
 0x5c1   :  { %2942 = vrot.lane.b32.xlu0 %v8381_v30, %s5488_s22 }
 0x5c2   :  { %2940 = vrot.lane.b32.xlu1 %v8384_v44, %s5488_s22 }
 0x5c5   :  { %3062 = vrot.lane.b32.xlu0 %v8381_v30, %s5489_s23 }
 0x5c6   :  { %3080 = vrot.lane.b32.xlu1 %v8358_v11, %s5491_s29 }
 0x5c9   :  { %3014 = vrot.lane.b32.xlu0 %v8381_v30, %s5490_s24 }
 0x5ca   :  { %3060 = vrot.lane.b32.xlu1 %v8384_v44, %s5489_s23 }
 0x5cd   :  { %2966 = vrot.lane.b32.xlu0 %v8381_v30, %s5482_s20 }
 0x5ce   :  { %3012 = vrot.lane.b32.xlu1 %v8384_v44, %s5490_s24 }
 0x5d1   :  { %3082 = vrot.lane.b32.xlu0 %v8355_v8, %s5491_s29 }
 0x5d2   :  { %2964 = vrot.lane.b32.xlu1 %v8384_v44, %s5482_s20 }
 0x5d5   :  { %3034 = vrot.lane.b32.xlu0 %v8355_v8, %s5492_s30 }
 0x5d6   :  { %3032 = vrot.lane.b32.xlu1 %v8358_v11, %s5492_s30 }
 0x5d9   :  { %3086 = vrot.lane.b32.xlu0 %v8381_v30, %s5491_s29 }
 0x5da   :  { %3084 = vrot.lane.b32.xlu1 %v8384_v44, %s5491_s29 }
 0x5dd   :  { %3038 = vrot.lane.b32.xlu0 %v8381_v30, %s5492_s30 }
 0x5de   :  { %3036 = vrot.lane.b32.xlu1 %v8384_v44, %s5492_s30 }
 0x5e1   :  { %3098 = vrot.lane.b32.xlu0 %v8287_v51, %s5493_s9 }
 0x5e2   :  { %3096 = vrot.lane.b32.xlu1 %v8290_v25, %s5493_s9 }
 0x5e3   :  { %v2979_v22 = vpop.permute.xlu0 %2978 }
 0x5e4   :  { %v2993_v31 = vmul.f32 %v8172_v50, %v2979_v22  ;;  %v2977_v16 = vpop.permute.xlu1 %2976 }
 0x5e5   :  { %v2992_v1 = vmul.f32 %v8172_v50, %v2977_v16  ;;  %3102 = vrot.lane.b32.xlu0 %v8321_v32, %s5493_s9 }
 0x5e6   :  { %3100 = vrot.lane.b32.xlu1 %v8324_v13, %s5493_s9 }
 0x5e7   :  { %v5182_v9 = vpack.c.bf16 %v2993_v31, %v2992_v1  ;;  %v2931_v49 = vpop.permute.xlu0 %2930 }
 0x5e8   :  { %v2945_v21 = vmul.f32 %v8179_v12, %v2931_v49  ;;  %v2929_v57 = vpop.permute.xlu1 %2928 }
 0x5e9   :  { %v2944_v34 = vmul.f32 %v8179_v12, %v2929_v57  ;;  %3106 = vrot.lane.b32.xlu0 %v8355_v8, %s5493_s9  ;;  %5183 = vmatprep.subr.bf16.mxu0 %v5182_v9 }
 0x5ea   :  { %3104 = vrot.lane.b32.xlu1 %v8358_v11, %s5493_s9 }
 0x5eb   :  { %v5184_v18 = vpack.c.bf16 %v2945_v21, %v2944_v34  ;;  %v3051_v52 = vpop.permute.xlu0 %3050 }
 0x5ec   :  { %v3065_v45 = vmul.f32 %v8233_v56, %v3051_v52  ;;  %v3049_v29 = vpop.permute.xlu1 %3048 }
 0x5ed   :  { %v3064_v55 = vmul.f32 %v8233_v56, %v3049_v29  ;;  %3110 = vrot.lane.b32.xlu0 %v8381_v30, %s5493_s9  ;;  %5185 = vmatpush3.bf16.msra.mxu0 %v5184_v18 }
 0x5ee   :  { %3108 = vrot.lane.b32.xlu1 %v8384_v44, %s5493_s9 }
 0x5ef   :  { %v5214_v61 = vpack.c.bf16 %v3065_v45, %v3064_v55  ;;  %v8447_v35 = vpop.permute.xlu0 %3002 }
 0x5f0   :  { %v8452_v46 = vpop.permute.xlu1 %3000 }
 0x5f1   :  { %3127 = vperm.xlu0 %5374, %v4338_v63   ;;  %5215 = vmatprep.subr.bf16.mxu1 %v5214_v61 }
 0x5f2   :  { %3122 = vperm.xlu1 %5375, %v4337_v14   ;;  %5217 = vmatpush3.bf16.msra.mxu1 %v5216_v58 }
 0x5f3   :  { %v8459_v15 = vpop.permute.xlu0 %2954 }
 0x5f4   :  { %v8464_v47 = vpop.permute.xlu1 %2952 }
 0x5f5   :  { %3137 = vperm.xlu0 %5374, %v4340_v38  }
 0x5f6   :  { %3132 = vperm.xlu1 %5375, %v4339_v53  }
 0x5f7   :  { %v8469_v23 = vpop.permute.xlu0 %3074 }
 0x5f8   :  { %v8474_v40 = vpop.permute.xlu1 %3072 }
 0x5f9   :  { %3147 = vperm.xlu0 %5374, %v4342_v4  }
 0x5fa   :  { %3142 = vperm.xlu1 %5375, %v4341_v24  }
 0x5fb   :  { %v8479_v43 = vpop.permute.xlu0 %3026 }
 0x5fc   :  { %v8484_v62 = vpop.permute.xlu1 %3024 }
 0x5fd   :  { %3157 = vperm.xlu0 %5374, %v4344_v33  }
 0x5fe   :  { %3152 = vperm.xlu1 %5375, %v4343_v54  }
 0x5ff   :  { %v2983_v60 = vpop.permute.xlu0 %2982 }
 0x600   :  { %v2995_v7 = vmul.f32 %v8172_v50, %v2983_v60  ;;  %v2981_v42 = vpop.permute.xlu1 %2980  ;;  %v8513_v60 = vld [vmem:[%s8947_s3 + $0x2] ss:$0 sm:$0xff] }
 0x601   :  { %v2994_v26 = vmul.f32 %v8172_v50, %v2981_v42 }
 0x603   :  { %v5186_v0 = vpack.c.bf16 %v2995_v7, %v2994_v26  ;;  %v2935_v10 = vpop.permute.xlu0 %2934 }
 0x604   :  { %v2947_v48 = vmul.f32 %v8179_v12, %v2935_v10  ;;  %v2933_v37 = vpop.permute.xlu1 %2932 }
 0x605   :  { %v2946_v2 = vmul.f32 %v8179_v12, %v2933_v37  ;;  %5187 = vmatprep.subr.bf16.mxu0 %v5186_v0  ;;  %v3016_v37 = vmul.f32 %v8226_v27, %v8452_v46 }
 0x607   :  { %v5188_v6 = vpack.c.bf16 %v2947_v48, %v2946_v2  ;;  %v3055_v41 = vpop.permute.xlu0 %3054  ;;  %v3017_v48 = vmul.f32 %v8226_v27, %v8447_v35  ;;  %v8524_v2 = vld [vmem:[%s8947_s3] ss:$0 sm:$0xff]  ;;  %v2968_v35 = vmul.f32 %v8243_v39, %v8464_v47 }
 0x608   :  { %v3067_v36 = vmul.f32 %v8233_v56, %v3055_v41  ;;  %v3053_v20 = vpop.permute.xlu1 %3052 }
 0x609   :  { %v3066_v3 = vmul.f32 %v8233_v56, %v3053_v20  ;;  %5189 = vmatpush3.bf16.msra.mxu0 %v5188_v6  ;;  %v2969_v20 = vmul.f32 %v8243_v39, %v8459_v15  ;;  %v5198_v46 = vpack.c.bf16 %v3017_v48, %v3016_v37 }
 0x60b   :  { %v5218_v59 = vpack.c.bf16 %v3067_v36, %v3066_v3  ;;  %v3007_v5 = vpop.permute.xlu0 %3006 }
 0x60c   :  { %v3005_v17 = vpop.permute.xlu1 %3004 }
 0x60d   :  { %5219 = vmatprep.subr.bf16.mxu1 %v5218_v59 }
 0x60e   :  { %5221 = vmatpush3.bf16.msra.mxu1 %v5220_v28  ;;  %v3019_v28 = vmul.f32 %v8226_v27, %v3007_v5 }
 0x60f   :  { %v2959_v19 = vpop.permute.xlu0 %2958 }
 0x610   :  { %v2957_v22 = vpop.permute.xlu1 %2956 }
 0x611   :  { %v2970_v5 = vmul.f32 %v8243_v39, %v2957_v22 }
 0x613   :  { %v8494_v31 = vpop.permute.xlu0 %3078 }
 0x614   :  { %v8496_v16 = vpop.permute.xlu1 %3076 }
 0x617   :  { %v8498_v1 = vpop.permute.xlu0 %3030 }
 0x618   :  { %v8500_v9 = vpop.permute.xlu1 %3028 }
 0x61b   :  { %v2987_v49 = vpop.permute.xlu0 %2986 }
 0x61c   :  { %v2997_v21 = vmul.f32 %v8172_v50, %v2987_v49  ;;  %v2985_v57 = vpop.permute.xlu1 %2984  ;;  %v3018_v49 = vmul.f32 %v8226_v27, %v3005_v17 }
 0x61d   :  { %v2996_v34 = vmul.f32 %v8172_v50, %v2985_v57  ;;  %v5224_v50 = vpack.c.bf16 %v8355_v8, %v8358_v11  ;;  %v8537_v57 = vld [vmem:[%s8947_s3 + $0x7] ss:$0 sm:$0xff] }
 0x61e   :  { %v3089_v15 = vmul.f32 %v8537_v57, %v8469_v23  ;;  %v3088_v47 = vmul.f32 %v8537_v57, %v8474_v40  ;;  %v5228_v40 = vpack.c.bf16 %v8381_v30, %v8384_v44 }
 0x61f   :  { %v5190_v18 = vpack.c.bf16 %v2997_v21, %v2996_v34  ;;  %v2939_v52 = vpop.permute.xlu0 %2938  ;;  %v5200_v34 = vpack.c.bf16 %v2969_v20, %v2968_v35 }
 0x620   :  { %v2949_v45 = vmul.f32 %v8179_v12, %v2939_v52  ;;  %v2937_v29 = vpop.permute.xlu1 %2936  ;;  %v5202_v52 = vpack.c.bf16 %v3019_v28, %v3018_v49 }
 0x621   :  { %v2948_v55 = vmul.f32 %v8179_v12, %v2937_v29  ;;  %5191 = vmatprep.subr.bf16.mxu0 %v5190_v18  ;;  %v2971_v18 = vmul.f32 %v8243_v39, %v2959_v19 }
 0x623   :  { %v5192_v63 = vpack.c.bf16 %v2949_v45, %v2948_v55  ;;  %v3059_v61 = vpop.permute.xlu0 %3058  ;;  %v5204_v19 = vpack.c.bf16 %v2971_v18, %v2970_v5 }
 0x624   :  { %v3069_v14 = vmul.f32 %v8233_v56, %v3059_v61  ;;  %v3057_v58 = vpop.permute.xlu1 %3056  ;;  %v5230_v61 = vpack.c.bf16 %v3089_v15, %v3088_v47  ;;  %v2884_v47 = vld [vmem:[#allocation7 + $0x2a8] sm:$0xff] }
 0x625   :  { %v3068_v38 = vmul.f32 %v8233_v56, %v3057_v58  ;;  %5193 = vmatpush3.bf16.msra.mxu0 %v5192_v63 }
 0x627   :  { %v5222_v53 = vpack.c.bf16 %v3069_v14, %v3068_v38  ;;  %v3011_v4 = vpop.permute.xlu0 %3010 }
 0x628   :  { %v3009_v24 = vpop.permute.xlu1 %3008  ;;  %v3021_v45 = vmul.f32 %v8226_v27, %v3011_v4 }
 0x629   :  { %5223 = vmatprep.subr.bf16.mxu1 %v5222_v53  ;;  %v3020_v29 = vmul.f32 %v8226_v27, %v3009_v24  ;;  %v8556_v53 = vld [vmem:[%s8947_s3 + $0x5] ss:$0 sm:$0xff]  ;;  %v3091_v24 = vmul.f32 %v8537_v57, %v8494_v31 }
 0x62a   :  { %5225 = vmatpush3.bf16.msra.mxu1 %v5224_v50  ;;  %v3040_v4 = vmul.f32 %v8556_v53, %v8484_v62  ;;  %v3043_v31 = vmul.f32 %v8556_v53, %v8498_v1 }
 0x62b   :  { %v2963_v33 = vpop.permute.xlu0 %2962  ;;  %v5206_v50 = vpack.c.bf16 %v3021_v45, %v3020_v29  ;;  %v2889_v29 = vld [vmem:[#allocation7 + $0x2d0] sm:$0xff] }
 0x62c   :  { %v2961_v54 = vpop.permute.xlu1 %2960  ;;  %v2973_v22 = vmul.f32 %v8243_v39, %v2963_v33 }
 0x62d   :  { %v2972_v14 = vmul.f32 %v8243_v39, %v2961_v54  ;;  %v3090_v54 = vmul.f32 %v8537_v57, %v8496_v16 }
 0x62f   :  { %v2991_v12 = vpop.permute.xlu0 %2990 }
 0x630   :  { %v2999_v7 = vmul.f32 %v8513_v60, %v2991_v12  ;;  %v2989_v42 = vpop.permute.xlu1 %2988 }
 0x631   :  { %v2998_v26 = vmul.f32 %v8513_v60, %v2989_v42 }
 0x633   :  { %v5194_v0 = vpack.c.bf16 %v2999_v7, %v2998_v26  ;;  %v2943_v10 = vpop.permute.xlu0 %2942 }
 0x634   :  { %v2951_v6 = vmul.f32 %v8524_v2, %v2943_v10  ;;  %v2941_v41 = vpop.permute.xlu1 %2940  ;;  %v5234_v10 = vpack.c.bf16 %v3091_v24, %v3090_v54  ;;  %v2887_v24 = vld [vmem:[#allocation7 + $0x2c0] sm:$0xff] }
 0x635   :  { %v2950_v36 = vmul.f32 %v8524_v2, %v2941_v41  ;;  %5195 = vmatprep.subr.bf16.mxu0 %v5194_v0  ;;  %v3042_v0 = vmul.f32 %v8556_v53, %v8500_v9 }
 0x637   :  { %v5196_v3 = vpack.c.bf16 %v2951_v6, %v2950_v36  ;;  %v3063_v59 = vpop.permute.xlu0 %3062  ;;  %v5236_v1 = vpack.c.bf16 %v3043_v31, %v3042_v0 }
 0x638   :  { %v3081_v21 = vpop.permute.xlu1 %3080  ;;  %v3071_v63 = vmul.f32 %v8233_v56, %v3063_v59  ;;  %v2879_v59 = vld [vmem:[#allocation7 + $0x280] sm:$0xff] }
 0x639   :  { %5197 = vmatpush3.bf16.msra.mxu0 %v5196_v3  ;;  %v3092_v6 = vmul.f32 %v8537_v57, %v3081_v21 }
 0x63a   :  { %5199 = vmatprep.subr.bf16.mxu0 %v5198_v46  ;;  %v2885_v46 = vld [vmem:[#allocation7 + $0x2b0] sm:$0xff] }
 0x63b   :  { %v3015_v17 = vpop.permute.xlu0 %3014 }
 0x63c   :  { %v3061_v55 = vpop.permute.xlu1 %3060  ;;  %v3023_v12 = vmul.f32 %v8226_v27, %v3015_v17 }
 0x63d   :  { %v3070_v23 = vmul.f32 %v8233_v56, %v3061_v55  ;;  %5201 = vmatpush3.bf16.msra.mxu0 %v5200_v34  ;;  %v3041_v56 = vmul.f32 %v8556_v53, %v8479_v43  ;;  %v5208_v43 = vpack.c.bf16 %v2973_v22, %v2972_v14  ;;  %v2890_v34 = vld [vmem:[#allocation7 + $0x2d8] sm:$0xff]  ;;  %v2895_v55 = vld [vmem:[#allocation7 + $0x300] sm:$0xff] }
 0x63e   :  { %5203 = vmatprep.subr.bf16.mxu0 %v5202_v52  ;;  %v2894_v14 = vld [vmem:[#allocation7 + $0x2f8] sm:$0xff] }
 0x63f   :  { %v5226_v58 = vpack.c.bf16 %v3071_v63, %v3070_v23  ;;  %v2967_v38 = vpop.permute.xlu0 %2966  ;;  %v5232_v62 = vpack.c.bf16 %v3041_v56, %v3040_v4 }
 0x640   :  { %v3013_v33 = vpop.permute.xlu1 %3012  ;;  %v2975_v48 = vmul.f32 %v8243_v39, %v2967_v38  ;;  %v2900_v38 = vld [vmem:[#allocation7 + $0x328] sm:$0xff] }
 0x641   :  { %v3022_v7 = vmul.f32 %v8226_v27, %v3013_v33  ;;  %5205 = vmatpush3.bf16.msra.mxu0 %v5204_v19  ;;  %5227 = vmatprep.subr.bf16.mxu1 %v5226_v58  ;;  %v2881_v58 = vld [vmem:[#allocation7 + $0x290] sm:$0xff] }
 0x642   :  { %5207 = vmatprep.subr.bf16.mxu0 %v5206_v50  ;;  %5229 = vmatpush3.bf16.msra.mxu1 %v5228_v40 }
 0x643   :  { %v5210_v42 = vpack.c.bf16 %v3023_v12, %v3022_v7  ;;  %v3083_v26 = vpop.permute.xlu0 %3082  ;;  %5231 = vmatprep.subr.bf16.mxu1 %v5230_v61  ;;  %v8585_v61 = vld [vmem:[%s8947_s3 + $0x8] ss:$0 sm:$0xff]  ;;  %v2899_v12 = vld [vmem:[#allocation7 + $0x320] sm:$0xff]  ;;  %v2886_v7 = vld [vmem:[#allocation7 + $0x2b8] sm:$0xff] }
 0x644   :  { %v2965_v16 = vpop.permute.xlu1 %2964  ;;  %v3093_v27 = vmul.f32 %v8537_v57, %v3083_v26 }
 0x645   :  { %v2974_v37 = vmul.f32 %v8243_v39, %v2965_v16  ;;  %5209 = vmatpush3.bf16.msra.mxu0 %v5208_v43  ;;  %v2905_v43 = vld [vmem:[#allocation7 + $0x350] sm:$0xff] }
 0x646   :  { %5211 = vmatprep.subr.bf16.mxu0 %v5210_v42  ;;  %5233 = vmatpush3.bf16.msra.mxu1 %v5232_v62  ;;  %v5238_v35 = vpack.c.bf16 %v3093_v27, %v3092_v6  ;;  %v2892_v62 = vld [vmem:[#allocation7 + $0x2e8] sm:$0xff]  ;;  %v2910_v27 = vld [vmem:[#allocation7 + $0x378] sm:$0xff] }
 0x647   :  { %v5212_v41 = vpack.c.bf16 %v2975_v48, %v2974_v37  ;;  %v3035_v36 = vpop.permute.xlu0 %3034  ;;  %5235 = vmatprep.subr.bf16.mxu1 %v5234_v10  ;;  %v2904_v10 = vld [vmem:[#allocation7 + $0x348] sm:$0xff]  ;;  %v2891_v48 = vld [vmem:[#allocation7 + $0x2e0] sm:$0xff] }
 0x648   :  { %v3045_v20 = vmul.f32 %v8556_v53, %v3035_v36  ;;  %v3033_v9 = vpop.permute.xlu1 %3032 }
 0x649   :  { %v3044_v3 = vmul.f32 %v8556_v53, %v3033_v9  ;;  %5213 = vmatpush3.bf16.msra.mxu0 %v5212_v41  ;;  %v2897_v41 = vld [vmem:[#allocation7 + $0x310] sm:$0xff] }
 0x64a   :  { %5237 = vmatpush3.bf16.msra.mxu1 %v5236_v1  ;;  %v2909_v9 = vld [vmem:[#allocation7 + $0x370] sm:$0xff] }
 0x64b   :  { %v5240_v39 = vpack.c.bf16 %v3045_v20, %v3044_v3  ;;  %v3087_v28 = vpop.permute.xlu0 %3086  ;;  %5239 = vmatprep.subr.bf16.mxu1 %v5238_v35  ;;  %v2896_v35 = vld [vmem:[#allocation7 + $0x308] sm:$0xff]  ;;  %v2915_v3 = vld [vmem:[#allocation7 + $0x3a0] sm:$0xff] }
 0x64c   :  { %v3095_v49 = vmul.f32 %v8537_v57, %v3087_v28  ;;  %3249 = vmatmul.mubr.f32.vlgmr.msra.gmra.mrb[40].mxu0 %v2879_v59  ;;  %v3085_v21 = vpop.permute.xlu1 %3084  ;;  %v2901_v28 = vld [vmem:[#allocation7 + $0x330] sm:$0xff] }
 0x64d   :  { %v3094_v15 = vmul.f32 %v8537_v57, %v3085_v21  ;;  %3253 = vmatprep.mubr.f32.mxu0 %v2885_v46  ;;  %v2902_v46 = vld [vmem:[#allocation7 + $0x338] sm:$0xff]  ;;  %v2883_v21 = vld [vmem:[#allocation7 + $0x2a0] sm:$0xff] }
 0x64e   :  { %5241 = vmatpush3.bf16.msra.mxu1 %v5240_v39  ;;  %v2914_v39 = vld [vmem:[#allocation7 + $0x398] sm:$0xff] }
 0x64f   :  { %v5242_v18 = vpack.c.bf16 %v3095_v49, %v3094_v15  ;;  %v3039_v5 = vpop.permute.xlu0 %3038  ;;  %v2907_v49 = vld [vmem:[#allocation7 + $0x360] sm:$0xff]  ;;  %v2906_v15 = vld [vmem:[#allocation7 + $0x358] sm:$0xff] }
 0x650   :  { %v3047_v17 = vmul.f32 %v8556_v53, %v3039_v5  ;;  %3254 = vmatmul.mubr.f32.gmra.mrb[42].mxu0 %v2884_v47  ;;  %v3037_v52 = vpop.permute.xlu1 %3036  ;;  %v2888_v47 = vld [vmem:[#allocation7 + $0x2c8] sm:$0xff]  ;;  %v2911_v5 = vld [vmem:[#allocation7 + $0x380] sm:$0xff] }
 0x651   :  { %v3046_v45 = vmul.f32 %v8556_v53, %v3037_v52  ;;  %5243 = vmatprep.subr.bf16.mxu1 %v5242_v18  ;;  %3258 = vmatprep.mubr.f32.mxu0 %v2890_v34  ;;  %v2912_v34 = vld [vmem:[#allocation7 + $0x388] sm:$0xff]  ;;  %v2893_v18 = vld [vmem:[#allocation7 + $0x2f0] sm:$0xff] }
 0x652   :  { %v2917_v52 = vld [vmem:[#allocation7 + $0x3b0] sm:$0xff] }
 0x653   :  { %v5244_v63 = vpack.c.bf16 %v3047_v17, %v3046_v45  ;;  %v3099_v23 = vpop.permute.xlu0 %3098  ;;  %v2898_v17 = vld [vmem:[#allocation7 + $0x318] sm:$0xff]  ;;  %v2903_v45 = vld [vmem:[#allocation7 + $0x340] sm:$0xff] }
 0x654   :  { %v3113_v40 = vmul.f32 %v8585_v61, %v3099_v23  ;;  %3259 = vmatmul.mubr.f32.gmra.mrb[44].mxu0 %v2889_v29  ;;  %v3097_v19 = vpop.permute.xlu1 %3096  ;;  %v2916_v29 = vld [vmem:[#allocation7 + $0x3a8] sm:$0xff]  ;;  %v2918_v23 = vld [vmem:[#allocation7 + $0x3b8] sm:$0xff] }
 0x655   :  { %v3112_v22 = vmul.f32 %v8585_v61, %v3097_v19  ;;  %5245 = vmatpush3.bf16.msra.mxu1 %v5244_v63  ;;  %3263 = vmatprep.mubr.f32.mxu0 %v2895_v55  ;;  %v2908_v55 = vld [vmem:[#allocation7 + $0x368] sm:$0xff]  ;;  %v2913_v63 = vld [vmem:[#allocation7 + $0x390] sm:$0xff] }
 0x657   :  { %v5246_v56 = vpack.c.bf16 %v3113_v40, %v3112_v22  ;;  %v3103_v4 = vpop.permute.xlu0 %3102 }
 0x658   :  { %v3115_v50 = vmul.f32 %v8585_v61, %v3103_v4  ;;  %3264 = vmatmul.mubr.f32.gmra.mrb[46].mxu0 %v2894_v14  ;;  %v3101_v33 = vpop.permute.xlu1 %3100  ;;  %3354 = vmatmul.mubr.f32.vlgmr.msra.gmra.mrb[40].mxu1 %v2881_v58 }
 0x659   :  { %v3114_v54 = vmul.f32 %v8585_v61, %v3101_v33  ;;  %5247 = vmatprep.subr.bf16.mxu0 %v5246_v56  ;;  %3268 = vmatprep.mubr.f32.mxu0 %v2900_v38 }
 0x65a   :  { %5249 = vmatpush3.bf16.msra.mxu0 %v5246_v56  ;;  %3358 = vmatprep.mubr.f32.mxu1 %v2887_v24 }
 0x65b   :  { %v5250_v42 = vpack.c.bf16 %v3115_v50, %v3114_v54  ;;  %v3107_v26 = vpop.permute.xlu0 %3106 }
 0x65c   :  { %v3117_v31 = vmul.f32 %v8585_v61, %v3107_v26  ;;  %3269 = vmatmul.mubr.f32.gmra.mrb[48].mxu0 %v2899_v12  ;;  %v3105_v0 = vpop.permute.xlu1 %3104  ;;  %3359 = vmatmul.mubr.f32.gmra.mrb[42].mxu1 %v2886_v7 }
 0x65d   :  { %v3116_v16 = vmul.f32 %v8585_v61, %v3105_v0  ;;  %5251 = vmatprep.subr.bf16.mxu0 %v5250_v42  ;;  %3273 = vmatprep.mubr.f32.mxu0 %v2905_v43 }
 0x65e   :  { %5253 = vmatpush3.bf16.msra.mxu0 %v5250_v42  ;;  %3363 = vmatprep.mubr.f32.mxu1 %v2892_v62 }
 0x65f   :  { %v5254_v37 = vpack.c.bf16 %v3117_v31, %v3116_v16  ;;  %v3111_v6 = vpop.permute.xlu0 %3110 }
 0x660   :  { %v3119_v36 = vmul.f32 %v8585_v61, %v3111_v6  ;;  %3274 = vmatmul.mubr.f32.gmra.mrb[50].mxu0 %v2904_v10  ;;  %v3109_v1 = vpop.permute.xlu1 %3108  ;;  %3364 = vmatmul.mubr.f32.gmra.mrb[44].mxu1 %v2891_v48 }
 0x661   :  { %v3118_v20 = vmul.f32 %v8585_v61, %v3109_v1  ;;  %5255 = vmatprep.subr.bf16.mxu0 %v5254_v37  ;;  %3278 = vmatprep.mubr.f32.mxu0 %v2910_v27 }
 0x662   :  { %5257 = vmatpush3.bf16.msra.mxu0 %v5254_v37  ;;  %3368 = vmatprep.mubr.f32.mxu1 %v2897_v41 }
 0x663   :  { %v5258_v59 = vpack.c.bf16 %v3119_v36, %v3118_v20 }
 0x664   :  { %3279 = vmatmul.mubr.f32.gmra.mrb[52].mxu0 %v2909_v9  ;;  %3369 = vmatmul.mubr.f32.gmra.mrb[46].mxu1 %v2896_v35 }
 0x665   :  { %5259 = vmatprep.subr.bf16.mxu0 %v5258_v59  ;;  %3283 = vmatprep.mubr.f32.mxu0 %v2915_v3 }
 0x666   :  { %5261 = vmatpush3.bf16.msra.mxu0 %v5258_v59  ;;  %3373 = vmatprep.mubr.f32.mxu1 %v2902_v46 }
 0x668   :  { %3284 = vmatmul.mubr.f32.gmra.mrb[54].mxu0 %v2914_v39  ;;  %3374 = vmatmul.mubr.f32.gmra.mrb[48].mxu1 %v2901_v28 }
 0x669   :  { %3378 = vmatprep.mubr.f32.mxu1 %v2907_v49  ;;  %4963 = vmatprep.mubr.msk.f32.mxu0 %vm1550_vm0, %v2883_v21 }
 0x66c   :  { %3379 = vmatmul.mubr.f32.gmra.mrb[50].mxu1 %v2906_v15  ;;  %4964 = vmatmul.mubr.msk.f32.vlgmr.msra.gmra.mrb[56].mxu0 %vm1550_vm0, %v2888_v47 }
 0x66d   :  { %3383 = vmatprep.mubr.f32.mxu1 %v2912_v34  ;;  %4966 = vmatprep.mubr.msk.f32.mxu0 %vm1550_vm0, %v2893_v18 }
 0x670   :  { %3384 = vmatmul.mubr.f32.gmra.mrb[52].mxu1 %v2911_v5  ;;  %4967 = vmatmul.mubr.msk.f32.gmra.mrb[58].mxu0 %vm1550_vm0, %v2898_v17  ;;  %v3128_v62 = vpop.permute.xlu0 %3127 }
 0x671   :  { %3388 = vmatprep.mubr.f32.mxu1 %v2917_v52  ;;  %4969 = vmatprep.mubr.msk.f32.mxu0 %vm1550_vm0, %v2903_v45  ;;  %v3123_v50 = vpop.permute.xlu1 %3122 }
 0x674   :  { %3389 = vmatmul.mubr.f32.gmra.mrb[54].mxu1 %v2916_v29  ;;  %4970 = vmatmul.mubr.msk.f32.gmra.mrb[60].mxu0 %vm1550_vm0, %v2908_v55  ;;  %v3138_v39 = vpop.permute.xlu0 %3137 }
 0x675   :  { %4972 = vmatprep.mubr.msk.f32.mxu0 %vm1550_vm0, %v2913_v63  ;;  %v3133_v41 = vpop.permute.xlu1 %3132 }
 0x678   :  { %4973 = vmatmul.mubr.msk.f32.gmra.mrb[62].mxu0 %vm1550_vm0, %v2918_v23 }
 0x679   :  { %v3143_v17 = vpop.permute.xlu1 %3142 }
 0x71f   :  { %v4658_v40 = vpop.f32.mrb[40].mxu0 }
 0x720   :  { %v4659_v19 = vpop.f32.mrb[41].mxu0 }
 0x721   :  { %v4660_v22 = vadd.f32 %v4659_v19, %v4658_v40 }
 0x723   :  { %v4661_v14 = vpop.f32.mrb[42].mxu0  ;;  %v3251_v43 = vadd.f32 %v4660_v22, %v3123_v50  ;;  %v3148_v22 = vpop.permute.xlu0 %3147 }
 0x724   :  { %v4662_v58 = vpop.f32.mrb[43].mxu0 }
 0x725   :  { %v4663_v38 = vadd.f32 %v4662_v58, %v4661_v14 }
 0x727   :  { %v4664_v56 = vpop.f32.mrb[44].mxu0  ;;  %v3256_v27 = vadd.f32 %v4663_v38, %v3128_v62 }
 0x728   :  { %v4665_v4 = vpop.f32.mrb[45].mxu0 }
 0x729   :  { %v4666_v24 = vadd.f32 %v4665_v4, %v4664_v56 }
 0x72b   :  { %v4667_v33 = vpop.f32.mrb[46].mxu0  ;;  %v4714_v54 = vpop.f32.mrb[40].mxu1  ;;  %v3261_v3 = vadd.f32 %v4666_v24, %v3133_v41 }
 0x72c   :  { %v4668_v12 = vpop.f32.mrb[47].mxu0  ;;  %v4715_v7 = vpop.f32.mrb[41].mxu1 }
 0x72d   :  { %v4669_v42 = vadd.f32 %v4668_v12, %v4667_v33  ;;  %v4716_v26 = vadd.f32 %v4715_v7, %v4714_v54  ;;  %v3153_v12 = vpop.permute.xlu1 %3152 }
 0x72f   :  { %v4670_v31 = vpop.f32.mrb[48].mxu0  ;;  %v4717_v0 = vpop.f32.mrb[42].mxu1  ;;  %v3356_v16 = vadd.f32 %v4716_v26, %v3251_v43  ;;  %v3266_v34 = vadd.f32 %v4669_v42, %v3138_v39 }
 0x730   :  { %v4671_v10 = vpop.f32.mrb[49].mxu0  ;;  %v4718_v48 = vpop.f32.mrb[43].mxu1 }
 0x731   :  { %v4672_v37 = vadd.f32 %v4671_v10, %v4670_v31  ;;  %v4719_v6 = vadd.f32 %v4718_v48, %v4717_v0 }
 0x733   :  { %v4673_v36 = vpop.f32.mrb[50].mxu0  ;;  %v4720_v1 = vpop.f32.mrb[44].mxu1  ;;  %v3361_v20 = vadd.f32 %v4719_v6, %v3256_v27  ;;  %v3271_v23 = vadd.f32 %v4672_v37, %v3143_v17 }
 0x734   :  { %v4674_v9 = vpop.f32.mrb[51].mxu0  ;;  %v4721_v35 = vpop.f32.mrb[45].mxu1 }
 0x735   :  { %v4675_v59 = vadd.f32 %v4674_v9, %v4673_v36  ;;  %v4722_v46 = vadd.f32 %v4721_v35, %v4720_v1 }
 0x737   :  { %v4676_v28 = vpop.f32.mrb[52].mxu0  ;;  %v4723_v49 = vpop.f32.mrb[46].mxu1  ;;  %v3366_v21 = vadd.f32 %v4722_v46, %v3261_v3  ;;  %v3276_v50 = vadd.f32 %v4675_v59, %v3148_v22 }
 0x738   :  { %v4677_v15 = vpop.f32.mrb[53].mxu0  ;;  %v4724_v47 = vpop.f32.mrb[47].mxu1 }
 0x739   :  { %v4678_v18 = vadd.f32 %v4677_v15, %v4676_v28  ;;  %v4725_v5 = vadd.f32 %v4724_v47, %v4723_v49 }
 0x73b   :  { %v4679_v52 = vpop.f32.mrb[54].mxu0  ;;  %v4726_v45 = vpop.f32.mrb[48].mxu1  ;;  %v3371_v29 = vadd.f32 %v4725_v5, %v3266_v34  ;;  %v3281_v48 = vadd.f32 %v4678_v18, %v3153_v12 }
 0x73c   :  { %v4680_v55 = vpop.f32.mrb[55].mxu0  ;;  %v4727_v63 = vpop.f32.mrb[49].mxu1 }
 0x73d   :  { %v4681_v40 = vadd.f32 %v4680_v55, %v4679_v52  ;;  %v4728_v19 = vadd.f32 %v4727_v63, %v4726_v45  ;;  %v3509_v52 = vld [vmem:[#allocation7 + $0x3c8] sm:$0xff]  ;;  %v3511_v45 = vld [vmem:[#allocation7 + $0x3d8] sm:$0xff] }
 0x73e   :  { %3877 = vmatprep.mubr.f32.mxu1 %v3509_v52  ;;  %3982 = vmatprep.mubr.f32.mxu0 %v3511_v45 }
 0x73f   :  { %v4729_v14 = vpop.f32.mrb[50].mxu1  ;;  %v4965_v58 = vpop.f32.mrb[56].mxu0  ;;  %v3376_v38 = vadd.f32 %v4728_v19, %v3271_v23 }
 0x740   :  { %v3466_v56 = vadd.f32 %v4965_v58, %v3361_v20  ;;  %v4730_v4 = vpop.f32.mrb[51].mxu1  ;;  %v3460_v24 = vpop.f32.mrb[57].mxu0 }
 0x741   :  { %v4731_v33 = vadd.f32 %v4730_v4, %v4729_v14  ;;  %v3461_v54 = vadd.f32 %v3460_v24, %v3356_v16  ;;  %v3158_v16 = vpop.permute.xlu0 %3157  ;;  %v8750_v4 = vld [vmem:[%s8947_s3 + $0x6] ss:$0 sm:$0xff] }
 0x742   :  { %v8603_v7 = vmax.f32 %v3466_v56, 0.0  ;;  %v3286_v35 = vadd.f32 %v4681_v40, %v3158_v16 }
 0x743   :  { %v8605_v43 = vmax.f32 %v3461_v54, 0.0  ;;  %v4732_v42 = vpop.f32.mrb[52].mxu1  ;;  %v4968_v26 = vpop.f32.mrb[58].mxu0  ;;  %v3381_v62 = vadd.f32 %v4731_v33, %v3276_v50  ;;  %v4354_v54 = vld [vmem:[%s8949_s5 + $0xc8] sm:$0xff] }
 0x744   :  { %v3476_v31 = vadd.f32 %v4968_v26, %v3371_v29  ;;  %v4733_v0 = vpop.f32.mrb[53].mxu1  ;;  %v3470_v10 = vpop.f32.mrb[59].mxu0  ;;  %3607 = vrot.lane.b32.xlu0 %v8603_v7, %s5487_s2  ;;  %v4353_v26 = vld [vmem:[%s8949_s5 + $0xc0] sm:$0xff] }
 0x745   :  { %v4734_v27 = vadd.f32 %v4733_v0, %v4732_v42  ;;  %v3471_v37 = vadd.f32 %v3470_v10, %v3366_v21  ;;  %3605 = vrot.lane.b32.xlu1 %v8605_v43, %s5487_s2  ;;  %v5296_v10 = vpack.c.bf16 %v8603_v7, %v8605_v43 }
 0x746   :  { %v8635_v15 = vmax.f32 %v3476_v31, 0.0 }
 0x747   :  { %v4735_v6 = vpop.f32.mrb[54].mxu1  ;;  %v4971_v41 = vpop.f32.mrb[60].mxu0  ;;  %v3386_v36 = vadd.f32 %v4734_v27, %v3281_v48  ;;  %v8637_v47 = vmax.f32 %v3471_v37, 0.0  ;;  %v4356_v27 = vld [vmem:[%s8949_s5 + $0xd8] sm:$0xff] }
 0x748   :  { %v3486_v1 = vadd.f32 %v4971_v41, %v3381_v62  ;;  %v4736_v20 = vpop.f32.mrb[55].mxu1  ;;  %v3480_v9 = vpop.f32.mrb[61].mxu0  ;;  %3559 = vrot.lane.b32.xlu0 %v8603_v7, %s5488_s22  ;;  %v8767_v62 = vld [vmem:[%s8947_s3 + $0x3] ss:$0 sm:$0xff] }
 0x749   :  { %v4737_v3 = vadd.f32 %v4736_v20, %v4735_v6  ;;  %v3481_v59 = vadd.f32 %v3480_v9, %v3376_v38  ;;  %3557 = vrot.lane.b32.xlu1 %v8605_v43, %s5488_s22  ;;  %v4355_v6 = vld [vmem:[%s8949_s5 + $0xd0] sm:$0xff] }
 0x74a   :  { %v8667_v34 = vmax.f32 %v3486_v1, 0.0  ;;  %v4358_v1 = vld [vmem:[%s8949_s5 + $0xe8] sm:$0xff] }
 0x74b   :  { %v3391_v46 = vadd.f32 %v4737_v3, %v3286_v35  ;;  %v4974_v39 = vpop.f32.mrb[62].mxu0  ;;  %v8669_v18 = vmax.f32 %v3481_v59, 0.0  ;;  %v4357_v35 = vld [vmem:[%s8949_s5 + $0xe0] sm:$0xff] }
 0x74c   :  { %v3490_v28 = vpop.f32.mrb[63].mxu0  ;;  %3679 = vrot.lane.b32.xlu0 %v8603_v7, %s5489_s23 }
 0x74d   :  { %v3496_v49 = vadd.f32 %v4974_v39, %v3391_v46  ;;  %v3491_v21 = vadd.f32 %v3490_v28, %v3386_v36  ;;  %3677 = vrot.lane.b32.xlu1 %v8605_v43, %s5489_s23  ;;  %v4360_v39 = vld [vmem:[%s8949_s5 + $0xf8] sm:$0xff] }
 0x74f   :  { %v8691_v5 = vmax.f32 %v3496_v49, 0.0  ;;  %v8693_v17 = vmax.f32 %v3491_v21, 0.0  ;;  %v4359_v21 = vld [vmem:[%s8949_s5 + $0xf0] sm:$0xff] }
 0x750   :  { %3631 = vrot.lane.b32.xlu0 %v8603_v7, %s5490_s24 }
 0x751   :  { %3629 = vrot.lane.b32.xlu1 %v8605_v43, %s5490_s24 }
 0x754   :  { %3583 = vrot.lane.b32.xlu0 %v8603_v7, %s5482_s20 }
 0x755   :  { %3581 = vrot.lane.b32.xlu1 %v8605_v43, %s5482_s20 }
 0x758   :  { %3703 = vrot.lane.b32.xlu0 %v8603_v7, %s5491_s29 }
 0x759   :  { %3701 = vrot.lane.b32.xlu1 %v8605_v43, %s5491_s29 }
 0x75c   :  { %3655 = vrot.lane.b32.xlu0 %v8603_v7, %s5492_s30 }
 0x75d   :  { %3653 = vrot.lane.b32.xlu1 %v8605_v43, %s5492_s30 }
 0x760   :  { %3611 = vrot.lane.b32.xlu0 %v8635_v15, %s5487_s2 }
 0x761   :  { %3609 = vrot.lane.b32.xlu1 %v8637_v47, %s5487_s2 }
 0x764   :  { %3563 = vrot.lane.b32.xlu0 %v8635_v15, %s5488_s22 }
 0x765   :  { %3561 = vrot.lane.b32.xlu1 %v8637_v47, %s5488_s22 }
 0x768   :  { %3683 = vrot.lane.b32.xlu0 %v8635_v15, %s5489_s23 }
 0x769   :  { %3681 = vrot.lane.b32.xlu1 %v8637_v47, %s5489_s23 }
 0x76c   :  { %3635 = vrot.lane.b32.xlu0 %v8635_v15, %s5490_s24 }
 0x76d   :  { %3633 = vrot.lane.b32.xlu1 %v8637_v47, %s5490_s24 }
 0x770   :  { %3587 = vrot.lane.b32.xlu0 %v8635_v15, %s5482_s20 }
 0x771   :  { %3585 = vrot.lane.b32.xlu1 %v8637_v47, %s5482_s20 }
 0x774   :  { %3707 = vrot.lane.b32.xlu0 %v8635_v15, %s5491_s29 }
 0x775   :  { %3705 = vrot.lane.b32.xlu1 %v8637_v47, %s5491_s29 }
 0x778   :  { %3659 = vrot.lane.b32.xlu0 %v8635_v15, %s5492_s30 }
 0x779   :  { %3657 = vrot.lane.b32.xlu1 %v8637_v47, %s5492_s30 }
 0x77c   :  { %3615 = vrot.lane.b32.xlu0 %v8667_v34, %s5487_s2 }
 0x77d   :  { %3613 = vrot.lane.b32.xlu1 %v8669_v18, %s5487_s2 }
 0x780   :  { %3567 = vrot.lane.b32.xlu0 %v8667_v34, %s5488_s22 }
 0x781   :  { %3565 = vrot.lane.b32.xlu1 %v8669_v18, %s5488_s22 }
 0x784   :  { %3687 = vrot.lane.b32.xlu0 %v8667_v34, %s5489_s23 }
 0x785   :  { %3685 = vrot.lane.b32.xlu1 %v8669_v18, %s5489_s23 }
 0x788   :  { %3639 = vrot.lane.b32.xlu0 %v8667_v34, %s5490_s24 }
 0x789   :  { %3637 = vrot.lane.b32.xlu1 %v8669_v18, %s5490_s24 }
 0x78c   :  { %3591 = vrot.lane.b32.xlu0 %v8667_v34, %s5482_s20 }
 0x78d   :  { %3589 = vrot.lane.b32.xlu1 %v8669_v18, %s5482_s20 }
 0x790   :  { %3619 = vrot.lane.b32.xlu0 %v8691_v5, %s5487_s2 }
 0x791   :  { %3617 = vrot.lane.b32.xlu1 %v8693_v17, %s5487_s2  ;;  %s5498_s2 = smov [#allocation9]  }
 0x794   :  { %3571 = vrot.lane.b32.xlu0 %v8691_v5, %s5488_s22 }
 0x795   :  { %3569 = vrot.lane.b32.xlu1 %v8693_v17, %s5488_s22  ;;  %s4224_s22 = sshll.u32 %s5498_s2, 4  ;;  %s4225_s22 = int_to_ptr.vmem [resolvable:$true] %s4224_s22 }
 0x796   :  { %p5454_p8 = scmp.lt.s32.totalorder %s4225_s22, %s4225_s22 }
 0x798   :  { %3691 = vrot.lane.b32.xlu0 %v8691_v5, %s5489_s23 }
 0x799   :  { %3709 = vrot.lane.b32.xlu1 %v8669_v18, %s5491_s29 }
 0x79c   :  { %3643 = vrot.lane.b32.xlu0 %v8691_v5, %s5490_s24 }
 0x79d   :  { %3689 = vrot.lane.b32.xlu1 %v8693_v17, %s5489_s23  ;;  %s5449_s23 = scalar_lea.vmem %s4225_s22, 128 }
 0x79e   :  { %p5450_p7 = scmp.ne.s32.totalorder %s4225_s22, %s5449_s23  ;;  %p5455_p9 = scmp.lt.s32.totalorder %s5449_s23, %s5449_s23 }
 0x7a0   :  { %3595 = vrot.lane.b32.xlu0 %v8691_v5, %s5482_s20  ;;  %p5456_p10 = por %p5455_p9, %p5454_p8 }
 0x7a1   :  { %3641 = vrot.lane.b32.xlu1 %v8693_v17, %s5490_s24 }
 0x7a2   :  { %p5457_p11 = pnand %p5456_p10, %p5450_p7 }
 0x7a4   :  { %3711 = vrot.lane.b32.xlu0 %v8667_v34, %s5491_s29 }
 0x7a5   :  { %3593 = vrot.lane.b32.xlu1 %v8693_v17, %s5482_s20 }
 0x7a8   :  { %3663 = vrot.lane.b32.xlu0 %v8667_v34, %s5492_s30 }
 0x7a9   :  { %3661 = vrot.lane.b32.xlu1 %v8669_v18, %s5492_s30 }
 0x7ac   :  { %3715 = vrot.lane.b32.xlu0 %v8691_v5, %s5491_s29 }
 0x7ad   :  { %3713 = vrot.lane.b32.xlu1 %v8693_v17, %s5491_s29 }
 0x7b0   :  { %3667 = vrot.lane.b32.xlu0 %v8691_v5, %s5492_s30 }
 0x7b1   :  { %3665 = vrot.lane.b32.xlu1 %v8693_v17, %s5492_s30 }
 0x7b4   :  { %3727 = vrot.lane.b32.xlu0 %v8603_v7, %s5493_s9  ;;  %v8788_v7 = vld [vmem:[%s8947_s3 + $0x1] ss:$0 sm:$0xff] }
 0x7b5   :  { %3725 = vrot.lane.b32.xlu1 %v8605_v43, %s5493_s9 }
 0x7b6   :  { %v3608_v29 = vpop.permute.xlu0 %3607 }
 0x7b7   :  { %v3622_v55 = vmul.f32 %v8513_v60, %v3608_v29  ;;  %v3606_v63 = vpop.permute.xlu1 %3605 }
 0x7b8   :  { %v3621_v23 = vmul.f32 %v8513_v60, %v3606_v63  ;;  %3731 = vrot.lane.b32.xlu0 %v8635_v15, %s5493_s9 }
 0x7b9   :  { %3729 = vrot.lane.b32.xlu1 %v8637_v47, %s5493_s9 }
 0x7ba   :  { %v5262_v40 = vpack.c.bf16 %v3622_v55, %v3621_v23  ;;  %v3560_v19 = vpop.permute.xlu0 %3559  ;;  %v4137_v23 = vld [vmem:[%s8951_s7] sm:$0xff] }
 0x7bb   :  { %v3574_v22 = vmul.f32 %v8524_v2, %v3560_v19  ;;  %v3558_v14 = vpop.permute.xlu1 %3557 }
 0x7bc   :  { %v3573_v58 = vmul.f32 %v8524_v2, %v3558_v14  ;;  %3735 = vrot.lane.b32.xlu0 %v8667_v34, %s5493_s9  ;;  %5263 = vmatprep.subr.bf16.mxu1 %v5262_v40 }
 0x7bd   :  { %3733 = vrot.lane.b32.xlu1 %v8669_v18, %s5493_s9 }
 0x7be   :  { %v5264_v38 = vpack.c.bf16 %v3574_v22, %v3573_v58  ;;  %v3680_v56 = vpop.permute.xlu0 %3679 }
 0x7bf   :  { %v3694_v24 = vmul.f32 %v8750_v4, %v3680_v56  ;;  %v3678_v50 = vpop.permute.xlu1 %3677 }
 0x7c0   :  { %v3693_v33 = vmul.f32 %v8750_v4, %v3678_v50  ;;  %3739 = vrot.lane.b32.xlu0 %v8691_v5, %s5493_s9  ;;  %5265 = vmatpush3.bf16.msra.mxu1 %v5264_v38 }
 0x7c1   :  { %3737 = vrot.lane.b32.xlu1 %v8693_v17, %s5493_s9 }
 0x7c2   :  { %v5294_v12 = vpack.c.bf16 %v3694_v24, %v3693_v33  ;;  %v3632_v42 = vpop.permute.xlu0 %3631 }
 0x7c3   :  { %v8770_v31 = vmul.f32 %v8767_v62, %v3632_v42  ;;  %v3630_v0 = vpop.permute.xlu1 %3629 }
 0x7c4   :  { %v8775_v48 = vmul.f32 %v8767_v62, %v3630_v0  ;;  %3756 = vperm.xlu0 %5374, %v4354_v54   ;;  %5295 = vmatprep.subr.bf16.mxu0 %v5294_v12 }
 0x7c5   :  { %3751 = vperm.xlu1 %5375, %v4353_v26   ;;  %5297 = vmatpush3.bf16.msra.mxu0 %v5296_v10 }
 0x7c6   :  { %v5278_v37 = vpack.c.bf16 %v8770_v31, %v8775_v48  ;;  %v3584_v16 = vpop.permute.xlu0 %3583 }
 0x7c7   :  { %v8791_v43 = vmul.f32 %v8788_v7, %v3584_v16  ;;  %v3582_v41 = vpop.permute.xlu1 %3581 }
 0x7c8   :  { %v8794_v36 = vmul.f32 %v8788_v7, %v3582_v41  ;;  %3766 = vperm.xlu0 %5374, %v4356_v27   ;;  %v5300_v27 = vpack.c.bf16 %v8635_v15, %v8637_v47 }
 0x7c9   :  { %3761 = vperm.xlu1 %5375, %v4355_v6  }
 0x7ca   :  { %v5280_v20 = vpack.c.bf16 %v8791_v43, %v8794_v36  ;;  %v3704_v9 = vpop.permute.xlu0 %3703 }
 0x7cb   :  { %v8805_v3 = vmul.f32 %v8537_v57, %v3704_v9  ;;  %v3702_v59 = vpop.permute.xlu1 %3701 }
 0x7cc   :  { %v8808_v46 = vmul.f32 %v8537_v57, %v3702_v59  ;;  %3776 = vperm.xlu0 %5374, %v4358_v1  }
 0x7cd   :  { %3771 = vperm.xlu1 %5375, %v4357_v35  }
 0x7ce   :  { %v5310_v28 = vpack.c.bf16 %v8805_v3, %v8808_v46  ;;  %v3656_v49 = vpop.permute.xlu0 %3655 }
 0x7cf   :  { %v8819_v52 = vmul.f32 %v8556_v53, %v3656_v49  ;;  %v3654_v45 = vpop.permute.xlu1 %3653 }
 0x7d0   :  { %v8822_v29 = vmul.f32 %v8556_v53, %v3654_v45  ;;  %3786 = vperm.xlu0 %5374, %v4360_v39  }
 0x7d1   :  { %3781 = vperm.xlu1 %5375, %v4359_v21  }
 0x7d2   :  { %v5312_v55 = vpack.c.bf16 %v8819_v52, %v8822_v29  ;;  %v3612_v63 = vpop.permute.xlu0 %3611 }
 0x7d3   :  { %v3624_v40 = vmul.f32 %v8513_v60, %v3612_v63  ;;  %v3610_v19 = vpop.permute.xlu1 %3609 }
 0x7d4   :  { %v3623_v22 = vmul.f32 %v8513_v60, %v3610_v19 }
 0x7d5   :  { %4140 = vperm.xlu1 %5375, %v4137_v23  }
 0x7d6   :  { %v5266_v14 = vpack.c.bf16 %v3624_v40, %v3623_v22  ;;  %v3564_v58 = vpop.permute.xlu0 %3563 }
 0x7d7   :  { %v3576_v38 = vmul.f32 %v8524_v2, %v3564_v58  ;;  %v3562_v56 = vpop.permute.xlu1 %3561 }
 0x7d8   :  { %v3575_v24 = vmul.f32 %v8524_v2, %v3562_v56  ;;  %5267 = vmatprep.subr.bf16.mxu1 %v5266_v14 }
 0x7da   :  { %v5268_v50 = vpack.c.bf16 %v3576_v38, %v3575_v24  ;;  %v3684_v33 = vpop.permute.xlu0 %3683 }
 0x7db   :  { %v3696_v54 = vmul.f32 %v8750_v4, %v3684_v33  ;;  %v3682_v12 = vpop.permute.xlu1 %3681 }
 0x7dc   :  { %v3695_v42 = vmul.f32 %v8750_v4, %v3682_v12  ;;  %5269 = vmatpush3.bf16.msra.mxu1 %v5268_v50  ;;  %v5304_v50 = vpack.c.bf16 %v8667_v34, %v8669_v18 }
 0x7de   :  { %v5298_v26 = vpack.c.bf16 %v3696_v54, %v3695_v42  ;;  %v3636_v0 = vpop.permute.xlu0 %3635 }
 0x7df   :  { %v3634_v10 = vpop.permute.xlu1 %3633  ;;  %v3648_v18 = vmul.f32 %v8767_v62, %v3636_v0 }
 0x7e0   :  { %5299 = vmatprep.subr.bf16.mxu0 %v5298_v26 }
 0x7e1   :  { %5301 = vmatpush3.bf16.msra.mxu0 %v5300_v27 }
 0x7e2   :  { %v3588_v16 = vpop.permute.xlu0 %3587 }
 0x7e3   :  { %v3586_v6 = vpop.permute.xlu1 %3585 }
 0x7e6   :  { %v3708_v41 = vpop.permute.xlu0 %3707 }
 0x7e7   :  { %v8837_v1 = vpop.permute.xlu1 %3705 }
 0x7ea   :  { %v8839_v9 = vpop.permute.xlu0 %3659 }
 0x7eb   :  { %v8841_v35 = vpop.permute.xlu1 %3657 }
 0x7ee   :  { %v3616_v59 = vpop.permute.xlu0 %3615 }
 0x7ef   :  { %v3626_v39 = vmul.f32 %v8513_v60, %v3616_v59  ;;  %v3614_v49 = vpop.permute.xlu1 %3613 }
 0x7f0   :  { %v3625_v21 = vmul.f32 %v8513_v60, %v3614_v49 }
 0x7f2   :  { %v5270_v45 = vpack.c.bf16 %v3626_v39, %v3625_v21  ;;  %v3568_v63 = vpop.permute.xlu0 %3567 }
 0x7f3   :  { %v3578_v15 = vmul.f32 %v8524_v2, %v3568_v63  ;;  %v3566_v47 = vpop.permute.xlu1 %3565 }
 0x7f4   :  { %v3577_v23 = vmul.f32 %v8524_v2, %v3566_v47  ;;  %5271 = vmatprep.subr.bf16.mxu1 %v5270_v45 }
 0x7f6   :  { %v5272_v40 = vpack.c.bf16 %v3578_v15, %v3577_v23  ;;  %v3688_v19 = vpop.permute.xlu0 %3687  ;;  %v3647_v15 = vmul.f32 %v8767_v62, %v3634_v10  ;;  %v3599_v23 = vmul.f32 %v8788_v7, %v3586_v6 }
 0x7f7   :  { %v3698_v22 = vmul.f32 %v8750_v4, %v3688_v19  ;;  %v3686_v14 = vpop.permute.xlu1 %3685 }
 0x7f8   :  { %v3697_v58 = vmul.f32 %v8750_v4, %v3686_v14  ;;  %5273 = vmatpush3.bf16.msra.mxu1 %v5272_v40  ;;  %v5282_v19 = vpack.c.bf16 %v3648_v18, %v3647_v15 }
 0x7fa   :  { %v5302_v38 = vpack.c.bf16 %v3698_v22, %v3697_v58  ;;  %v3640_v56 = vpop.permute.xlu0 %3639  ;;  %v3720_v58 = vmul.f32 %v8537_v57, %v3708_v41 }
 0x7fb   :  { %v3638_v24 = vpop.permute.xlu1 %3637 }
 0x7fc   :  { %5303 = vmatprep.subr.bf16.mxu0 %v5302_v38  ;;  %v3649_v22 = vmul.f32 %v8767_v62, %v3638_v24  ;;  %v5308_v24 = vpack.c.bf16 %v8691_v5, %v8693_v17  ;;  %v3672_v5 = vmul.f32 %v8556_v53, %v8839_v9  ;;  %v3671_v17 = vmul.f32 %v8556_v53, %v8841_v35 }
 0x7fd   :  { %5305 = vmatpush3.bf16.msra.mxu0 %v5304_v50 }
 0x7fe   :  { %v3592_v33 = vpop.permute.xlu0 %3591  ;;  %v5316_v9 = vpack.c.bf16 %v3672_v5, %v3671_v17  ;;  %v3533_v17 = vld [vmem:[#allocation7 + $0x488] sm:$0xff] }
 0x7ff   :  { %v3590_v54 = vpop.permute.xlu1 %3589  ;;  %v3602_v48 = vmul.f32 %v8788_v7, %v3592_v33 }
 0x802   :  { %v3620_v12 = vpop.permute.xlu0 %3619 }
 0x803   :  { %v3628_v42 = vmul.f32 %v8513_v60, %v3620_v12  ;;  %v3618_v26 = vpop.permute.xlu1 %3617 }
 0x804   :  { %v3627_v27 = vmul.f32 %v8513_v60, %v3618_v26  ;;  %v3600_v60 = vmul.f32 %v8788_v7, %v3588_v16 }
 0x806   :  { %v5274_v59 = vpack.c.bf16 %v3628_v42, %v3627_v27  ;;  %v3572_v39 = vpop.permute.xlu0 %3571  ;;  %v5284_v31 = vpack.c.bf16 %v3600_v60, %v3599_v23  ;;  %v3518_v60 = vld [vmem:[#allocation7 + $0x410] sm:$0xff]  ;;  %v3524_v23 = vld [vmem:[#allocation7 + $0x440] sm:$0xff] }
 0x807   :  { %v3580_v49 = vmul.f32 %v8524_v2, %v3572_v39  ;;  %v3570_v21 = vpop.permute.xlu1 %3569 }
 0x808   :  { %v3579_v45 = vmul.f32 %v8524_v2, %v3570_v21  ;;  %5275 = vmatprep.subr.bf16.mxu1 %v5274_v59  ;;  %v3650_v2 = vmul.f32 %v8767_v62, %v3640_v56  ;;  %v3514_v59 = vld [vmem:[#allocation7 + $0x3f0] sm:$0xff]  ;;  %v3513_v21 = vld [vmem:[#allocation7 + $0x3e8] sm:$0xff] }
 0x80a   :  { %v5276_v63 = vpack.c.bf16 %v3580_v49, %v3579_v45  ;;  %v3692_v34 = vpop.permute.xlu0 %3691  ;;  %v5286_v38 = vpack.c.bf16 %v3650_v2, %v3649_v22  ;;  %v3519_v45 = vld [vmem:[#allocation7 + $0x418] sm:$0xff] }
 0x80b   :  { %v3710_v47 = vpop.permute.xlu1 %3709  ;;  %v3700_v0 = vmul.f32 %v8750_v4, %v3692_v34  ;;  %v5392_v34 = vld [vmem:[%s8947_s3 + $0x5] ss:$0 sm:$0xff] }
 0x80c   :  { %5277 = vmatpush3.bf16.msra.mxu1 %v5276_v63  ;;  %v3721_v3 = vmul.f32 %v8537_v57, %v3710_v47 }
 0x80d   :  { %5279 = vmatprep.subr.bf16.mxu1 %v5278_v37  ;;  %v3601_v37 = vmul.f32 %v8788_v7, %v3590_v54 }
 0x80e   :  { %v3644_v40 = vpop.permute.xlu0 %3643 }
 0x80f   :  { %v3690_v14 = vpop.permute.xlu1 %3689  ;;  %v3652_v43 = vmul.f32 %v8767_v62, %v3644_v40 }
 0x810   :  { %v3699_v10 = vmul.f32 %v8750_v4, %v3690_v14  ;;  %5281 = vmatpush3.bf16.msra.mxu1 %v5280_v20  ;;  %v3719_v4 = vmul.f32 %v8537_v57, %v8837_v1  ;;  %v5288_v20 = vpack.c.bf16 %v3602_v48, %v3601_v37 }
 0x811   :  { %5283 = vmatprep.subr.bf16.mxu1 %v5282_v19 }
 0x812   :  { %v5306_v16 = vpack.c.bf16 %v3700_v0, %v3699_v10  ;;  %v3596_v6 = vpop.permute.xlu0 %3595  ;;  %v5314_v1 = vpack.c.bf16 %v3720_v58, %v3719_v4  ;;  %v3523_v0 = vld [vmem:[#allocation7 + $0x438] sm:$0xff]  ;;  %v3510_v10 = vld [vmem:[#allocation7 + $0x3d0] sm:$0xff] }
 0x813   :  { %v3642_v56 = vpop.permute.xlu1 %3641  ;;  %v3534_v4 = vld [vmem:[#allocation7 + $0x490] sm:$0xff] }
 0x814   :  { %v3651_v36 = vmul.f32 %v8767_v62, %v3642_v56  ;;  %5285 = vmatpush3.bf16.msra.mxu1 %v5284_v31  ;;  %5307 = vmatprep.subr.bf16.mxu0 %v5306_v16  ;;  %v3604_v62 = vmul.f32 %v8788_v7, %v3596_v6  ;;  %v3529_v31 = vld [vmem:[#allocation7 + $0x468] sm:$0xff]  ;;  %v3516_v16 = vld [vmem:[#allocation7 + $0x400] sm:$0xff] }
 0x815   :  { %5287 = vmatprep.subr.bf16.mxu1 %v5286_v38  ;;  %5309 = vmatpush3.bf16.msra.mxu0 %v5308_v24  ;;  %v3528_v56 = vld [vmem:[#allocation7 + $0x460] sm:$0xff]  ;;  %v3515_v24 = vld [vmem:[#allocation7 + $0x3f8] sm:$0xff] }
 0x816   :  { %v5290_v50 = vpack.c.bf16 %v3652_v43, %v3651_v36  ;;  %v3712_v33 = vpop.permute.xlu0 %3711  ;;  %5311 = vmatprep.subr.bf16.mxu0 %v5310_v28 }
 0x817   :  { %v3594_v41 = vpop.permute.xlu1 %3593  ;;  %v3722_v54 = vmul.f32 %v8537_v57, %v3712_v33  ;;  %v5391_v57 = vld [vmem:[%s8947_s3 + $0x7] ss:$0 sm:$0xff] }
 0x818   :  { %v3603_v12 = vmul.f32 %v8788_v7, %v3594_v41  ;;  %5289 = vmatpush3.bf16.msra.mxu1 %v5288_v20  ;;  %v3508_v7 = vld [vmem:[#allocation7 + $0x3c0] sm:$0xff]  ;;  %v3521_v20 = vld [vmem:[#allocation7 + $0x428] sm:$0xff] }
 0x819   :  { %5291 = vmatprep.subr.bf16.mxu1 %v5290_v50  ;;  %5313 = vmatpush3.bf16.msra.mxu0 %v5312_v55  ;;  %v5318_v26 = vpack.c.bf16 %v3722_v54, %v3721_v3  ;;  %v3520_v41 = vld [vmem:[#allocation7 + $0x420] sm:$0xff] }
 0x81a   :  { %v5292_v46 = vpack.c.bf16 %v3604_v62, %v3603_v12  ;;  %v3664_v28 = vpop.permute.xlu0 %3663  ;;  %5315 = vmatprep.subr.bf16.mxu0 %v5314_v1  ;;  %v3539_v1 = vld [vmem:[#allocation7 + $0x4b8] sm:$0xff]  ;;  %v3526_v12 = vld [vmem:[#allocation7 + $0x450] sm:$0xff] }
 0x81b   :  { %v3674_v35 = vmul.f32 %v8556_v53, %v3664_v28  ;;  %v3662_v42 = vpop.permute.xlu1 %3661 }
 0x81c   :  { %v3673_v27 = vmul.f32 %v8556_v53, %v3662_v42  ;;  %5293 = vmatpush3.bf16.msra.mxu1 %v5292_v46  ;;  %v3544_v42 = vld [vmem:[#allocation7 + $0x4e0] sm:$0xff] }
 0x81d   :  { %5317 = vmatpush3.bf16.msra.mxu0 %v5316_v9  ;;  %v3538_v9 = vld [vmem:[#allocation7 + $0x4b0] sm:$0xff] }
 0x81e   :  { %v5320_v39 = vpack.c.bf16 %v3674_v35, %v3673_v27  ;;  %v3716_v49 = vpop.permute.xlu0 %3715  ;;  %5319 = vmatprep.subr.bf16.mxu0 %v5318_v26  ;;  %v3525_v35 = vld [vmem:[#allocation7 + $0x448] sm:$0xff]  ;;  %v3531_v27 = vld [vmem:[#allocation7 + $0x478] sm:$0xff] }
 0x81f   :  { %v3724_v52 = vmul.f32 %v5391_v57, %v3716_v49  ;;  %3878 = vmatmul.mubr.f32.vlgmr.msra.gmra.mrb[56].mxu1 %v3508_v7  ;;  %v3714_v29 = vpop.permute.xlu1 %3713  ;;  %v3543_v7 = vld [vmem:[#allocation7 + $0x4d8] sm:$0xff]  ;;  %v3512_v49 = vld [vmem:[#allocation7 + $0x3e0] sm:$0xff] }
 0x820   :  { %v3723_v55 = vmul.f32 %v5391_v57, %v3714_v29  ;;  %3882 = vmatprep.mubr.f32.mxu1 %v3514_v59  ;;  %v3530_v59 = vld [vmem:[#allocation7 + $0x470] sm:$0xff]  ;;  %v3517_v57 = vld [vmem:[#allocation7 + $0x408] sm:$0xff] }
 0x821   :  { %5321 = vmatpush3.bf16.msra.mxu0 %v5320_v39  ;;  %v3536_v39 = vld [vmem:[#allocation7 + $0x4a0] sm:$0xff]  ;;  %v3522_v29 = vld [vmem:[#allocation7 + $0x430] sm:$0xff] }
 0x822   :  { %v5322_v53 = vpack.c.bf16 %v3724_v52, %v3723_v55  ;;  %v3668_v63 = vpop.permute.xlu0 %3667  ;;  %v3541_v52 = vld [vmem:[#allocation7 + $0x4c8] sm:$0xff]  ;;  %v3540_v55 = vld [vmem:[#allocation7 + $0x4c0] sm:$0xff] }
 0x823   :  { %v3676_v18 = vmul.f32 %v5392_v34, %v3668_v63  ;;  %3883 = vmatmul.mubr.f32.gmra.mrb[58].mxu1 %v3513_v21  ;;  %v3666_v15 = vpop.permute.xlu1 %3665  ;;  %v3527_v21 = vld [vmem:[#allocation7 + $0x458] sm:$0xff]  ;;  %v3545_v63 = vld [vmem:[#allocation7 + $0x4e8] sm:$0xff] }
 0x824   :  { %v3675_v47 = vmul.f32 %v5392_v34, %v3666_v15  ;;  %5323 = vmatprep.subr.bf16.mxu0 %v5322_v53  ;;  %3887 = vmatprep.mubr.f32.mxu1 %v3519_v45  ;;  %v3546_v45 = vld [vmem:[#allocation7 + $0x4f0] sm:$0xff]  ;;  %v3532_v53 = vld [vmem:[#allocation7 + $0x480] sm:$0xff]  ;;  %v3537_v34 = vld [vmem:[#allocation7 + $0x4a8] sm:$0xff] }
 0x825   :  { %v3547_v15 = vld [vmem:[#allocation7 + $0x4f8] sm:$0xff] }
 0x826   :  { %v5324_v40 = vpack.c.bf16 %v3676_v18, %v3675_v47  ;;  %v3728_v19 = vpop.permute.xlu0 %3727  ;;  %v3542_v18 = vld [vmem:[#allocation7 + $0x4d0] sm:$0xff]  ;;  %v5495_v47 = vmov 0.0|0.0  }
 0x827   :  { %v3742_v2 = vmul.f32 %v8585_v61, %v3728_v19  ;;  %3888 = vmatmul.mubr.f32.gmra.mrb[60].mxu1 %v3518_v60  ;;  %v3726_v22 = vpop.permute.xlu1 %3725  ;;  %v5497_v60 = vmov 0.0  }
 0x828   :  { %v3741_v14 = vmul.f32 %v8585_v61, %v3726_v22  ;;  %5325 = vmatpush3.bf16.msra.mxu0 %v5324_v40  ;;  %3892 = vmatprep.mubr.f32.mxu1 %v3524_v23 }
 0x82a   :  { %v5326_v48 = vpack.c.bf16 %v3742_v2, %v3741_v14  ;;  %v3732_v37 = vpop.permute.xlu0 %3731 }
 0x82b   :  { %v3744_v6 = vmul.f32 %v8585_v61, %v3732_v37  ;;  %3893 = vmatmul.mubr.f32.gmra.mrb[62].mxu1 %v3523_v0  ;;  %v3730_v58 = vpop.permute.xlu1 %3729  ;;  %3983 = vmatmul.mubr.f32.vlgmr.msra.gmra.mrb[64].mxu0 %v3510_v10 }
 0x82c   :  { %v3743_v38 = vmul.f32 %v8585_v61, %v3730_v58  ;;  %5327 = vmatprep.subr.bf16.mxu1 %v5326_v48  ;;  %3897 = vmatprep.mubr.f32.mxu1 %v3529_v31 }
 0x82d   :  { %5329 = vmatpush3.bf16.msra.mxu1 %v5326_v48  ;;  %3987 = vmatprep.mubr.f32.mxu0 %v3516_v16 }
 0x82e   :  { %v5330_v43 = vpack.c.bf16 %v3744_v6, %v3743_v38  ;;  %v3736_v36 = vpop.permute.xlu0 %3735 }
 0x82f   :  { %v3746_v50 = vmul.f32 %v8585_v61, %v3736_v36  ;;  %3898 = vmatmul.mubr.f32.gmra.mrb[64].mxu1 %v3528_v56  ;;  %v3734_v33 = vpop.permute.xlu1 %3733  ;;  %3988 = vmatmul.mubr.f32.gmra.mrb[66].mxu0 %v3515_v24 }
 0x830   :  { %v3745_v5 = vmul.f32 %v8585_v61, %v3734_v33  ;;  %5331 = vmatprep.subr.bf16.mxu1 %v5330_v43  ;;  %3902 = vmatprep.mubr.f32.mxu1 %v3534_v4 }
 0x831   :  { %5333 = vmatpush3.bf16.msra.mxu1 %v5330_v43  ;;  %3992 = vmatprep.mubr.f32.mxu0 %v3521_v20 }
 0x832   :  { %v5334_v62 = vpack.c.bf16 %v3746_v50, %v3745_v5  ;;  %v3740_v54 = vpop.permute.xlu0 %3739 }
 0x833   :  { %v3748_v3 = vmul.f32 %v8585_v61, %v3740_v54  ;;  %3903 = vmatmul.mubr.f32.gmra.mrb[66].mxu1 %v3533_v17  ;;  %v3738_v46 = vpop.permute.xlu1 %3737  ;;  %3993 = vmatmul.mubr.f32.gmra.mrb[68].mxu0 %v3520_v41 }
 0x834   :  { %v3747_v28 = vmul.f32 %v8585_v61, %v3738_v46  ;;  %5335 = vmatprep.subr.bf16.mxu1 %v5334_v62  ;;  %3907 = vmatprep.mubr.f32.mxu1 %v3539_v1  ;;  %v3535_v61 = vld [vmem:[#allocation7 + $0x498] sm:$0xff] }
 0x835   :  { %5337 = vmatpush3.bf16.msra.mxu1 %v5334_v62  ;;  %3997 = vmatprep.mubr.f32.mxu0 %v3526_v12 }
 0x836   :  { %v5338_v26 = vpack.c.bf16 %v3748_v3, %v3747_v28 }
 0x837   :  { %3908 = vmatmul.mubr.f32.gmra.mrb[68].mxu1 %v3538_v9  ;;  %3998 = vmatmul.mubr.f32.gmra.mrb[70].mxu0 %v3525_v35 }
 0x838   :  { %5339 = vmatprep.subr.bf16.mxu1 %v5338_v26  ;;  %3912 = vmatprep.mubr.f32.mxu1 %v3544_v42 }
 0x839   :  { %5341 = vmatpush3.bf16.msra.mxu1 %v5338_v26  ;;  %4002 = vmatprep.mubr.f32.mxu0 %v3531_v27 }
 0x83a   :  { %5342 = vmatprep.subr.bf16.mxu1 %v5495_v47 }
 0x83b   :  { %3913 = vmatmul.mubr.f32.gmra.mrb[70].mxu1 %v3543_v7  ;;  %4003 = vmatmul.mubr.f32.gmra.mrb[72].mxu0 %v3530_v59 }
 0x83c   :  { %4007 = vmatprep.mubr.f32.mxu0 %v3536_v39  ;;  %4991 = vmatprep.mubr.msk.f32.mxu1 %vm1550_vm0, %v3512_v49 }
 0x83f   :  { %4008 = vmatmul.mubr.f32.gmra.mrb[74].mxu0 %v3535_v61  ;;  %4992 = vmatmul.mubr.msk.f32.vlgmr.msra.gmra.mrb[72].mxu1 %vm1550_vm0, %v3517_v57 }
 0x840   :  { %4012 = vmatprep.mubr.f32.mxu0 %v3541_v52  ;;  %4994 = vmatprep.mubr.msk.f32.mxu1 %vm1550_vm0, %v3522_v29 }
 0x843   :  { %4013 = vmatmul.mubr.f32.gmra.mrb[76].mxu0 %v3540_v55  ;;  %4995 = vmatmul.mubr.msk.f32.gmra.mrb[74].mxu1 %vm1550_vm0, %v3527_v21  ;;  %v3757_v4 = vpop.permute.xlu0 %3756 }
 0x844   :  { %4017 = vmatprep.mubr.f32.mxu0 %v3546_v45  ;;  %4997 = vmatprep.mubr.msk.f32.mxu1 %vm1550_vm0, %v3532_v53  ;;  %v3752_v48 = vpop.permute.xlu1 %3751 }
 0x847   :  { %4018 = vmatmul.mubr.f32.gmra.mrb[78].mxu0 %v3545_v63  ;;  %4998 = vmatmul.mubr.msk.f32.gmra.mrb[76].mxu1 %vm1550_vm0, %v3537_v34  ;;  %v3767_v42 = vpop.permute.xlu0 %3766 }
 0x848   :  { %5000 = vmatprep.mubr.msk.f32.mxu1 %vm1550_vm0, %v3542_v18  ;;  %v3762_v1 = vpop.permute.xlu1 %3761 }
 0x84b   :  { %5001 = vmatmul.mubr.msk.f32.gmra.mrb[78].mxu1 %vm1550_vm0, %v3547_v15  ;;  %v3777_v15 = vpop.permute.xlu0 %3776 }
 0x84c   :  { %5019 = vmatprep.mubr.msk.f32.mxu1 %vm5496_vm1, %v5497_v60  ;;  %v3772_v52 = vpop.permute.xlu1 %3771 }
 0x8f2   :  { %v4786_v23 = vpop.f32.mrb[56].mxu1 }
 0x8f3   :  { %v4787_v40 = vpop.f32.mrb[57].mxu1 }
 0x8f4   :  { %v4788_v19 = vadd.f32 %v4787_v40, %v4786_v23 }
 0x8f6   :  { %v4789_v2 = vpop.f32.mrb[58].mxu1  ;;  %v3880_v38 = vadd.f32 %v4788_v19, %v3752_v48 }
 0x8f7   :  { %v4790_v22 = vpop.f32.mrb[59].mxu1 }
 0x8f8   :  { %v4791_v14 = vadd.f32 %v4790_v22, %v4789_v2 }
 0x8fa   :  { %v4792_v0 = vpop.f32.mrb[60].mxu1  ;;  %v3885_v5 = vadd.f32 %v4791_v14, %v3757_v4 }
 0x8fb   :  { %v4793_v10 = vpop.f32.mrb[61].mxu1 }
 0x8fc   :  { %v4794_v31 = vadd.f32 %v4793_v10, %v4792_v0 }
 0x8fe   :  { %v4795_v37 = vpop.f32.mrb[62].mxu1  ;;  %v4842_v16 = vpop.f32.mrb[64].mxu0  ;;  %v3890_v28 = vadd.f32 %v4794_v31, %v3762_v1 }
 0x8ff   :  { %v4796_v6 = vpop.f32.mrb[63].mxu1  ;;  %v4843_v58 = vpop.f32.mrb[65].mxu0 }
 0x900   :  { %v4797_v56 = vadd.f32 %v4796_v6, %v4795_v37  ;;  %v4844_v24 = vadd.f32 %v4843_v58, %v4842_v16  ;;  %v3782_v31 = vpop.permute.xlu1 %3781 }
 0x902   :  { %v4798_v43 = vpop.f32.mrb[64].mxu1  ;;  %v4845_v36 = vpop.f32.mrb[66].mxu0  ;;  %v3985_v20 = vadd.f32 %v4844_v24, %v3880_v38  ;;  %v3895_v49 = vadd.f32 %v4797_v56, %v3767_v42 }
 0x903   :  { %v4799_v50 = vpop.f32.mrb[65].mxu1  ;;  %v4846_v33 = vpop.f32.mrb[67].mxu0 }
 0x904   :  { %v4800_v17 = vadd.f32 %v4799_v50, %v4798_v43  ;;  %v4847_v41 = vadd.f32 %v4846_v33, %v4845_v36  ;;  %v3787_v33 = vpop.permute.xlu0 %3786 }
 0x906   :  { %v4801_v62 = vpop.f32.mrb[66].mxu1  ;;  %v4848_v54 = vpop.f32.mrb[68].mxu0  ;;  %v3990_v12 = vadd.f32 %v4847_v41, %v3885_v5  ;;  %v3900_v63 = vadd.f32 %v4800_v17, %v3772_v52 }
 0x907   :  { %v4802_v3 = vpop.f32.mrb[67].mxu1  ;;  %v4849_v46 = vpop.f32.mrb[69].mxu0 }
 0x908   :  { %v4803_v9 = vadd.f32 %v4802_v3, %v4801_v62  ;;  %v4850_v35 = vadd.f32 %v4849_v46, %v4848_v54 }
 0x90a   :  { %v4804_v26 = vpop.f32.mrb[68].mxu1  ;;  %v4851_v27 = vpop.f32.mrb[70].mxu0  ;;  %v3995_v7 = vadd.f32 %v4850_v35, %v3890_v28  ;;  %v3905_v14 = vadd.f32 %v4803_v9, %v3777_v15 }
 0x90b   :  { %v4805_v59 = vpop.f32.mrb[69].mxu1  ;;  %v4852_v39 = vpop.f32.mrb[71].mxu0 }
 0x90c   :  { %v4806_v61 = vadd.f32 %v4805_v59, %v4804_v26  ;;  %v4853_v57 = vadd.f32 %v4852_v39, %v4851_v27 }
 0x90e   :  { %v4807_v29 = vpop.f32.mrb[70].mxu1  ;;  %v4854_v55 = vpop.f32.mrb[72].mxu0  ;;  %v4000_v21 = vadd.f32 %v4853_v57, %v3895_v49  ;;  %v3910_v4 = vadd.f32 %v4806_v61, %v3782_v31 }
 0x90f   :  { %v4808_v45 = vpop.f32.mrb[71].mxu1  ;;  %v4855_v53 = vpop.f32.mrb[73].mxu0 }
 0x910   :  { %v4809_v34 = vadd.f32 %v4808_v45, %v4807_v29  ;;  %v4856_v18 = vadd.f32 %v4855_v53, %v4854_v55 }
 0x912   :  { %v4857_v60 = vpop.f32.mrb[74].mxu0  ;;  %v4993_v23 = vpop.f32.mrb[72].mxu1  ;;  %v4005_v40 = vadd.f32 %v4856_v18, %v3900_v63  ;;  %v3915_v54 = vadd.f32 %v4809_v34, %v3787_v33 }
 0x913   :  { %v4095_v19 = vadd.f32 %v4993_v23, %v3990_v12  ;;  %v4858_v2 = vpop.f32.mrb[75].mxu0  ;;  %v4089_v22 = vpop.f32.mrb[73].mxu1 }
 0x914   :  { %v4859_v0 = vadd.f32 %v4858_v2, %v4857_v60  ;;  %v4090_v10 = vadd.f32 %v4089_v22, %v3985_v20 }
 0x915   :  { %v4129_v48 = vadd.f32 %v4095_v19, %v8287_v51 }
 0x916   :  { %v4128_v37 = vadd.f32 %v4090_v10, %v8290_v25  ;;  %v4860_v16 = vpop.f32.mrb[76].mxu0  ;;  %v4996_v6 = vpop.f32.mrb[74].mxu1  ;;  %v4010_v58 = vadd.f32 %v4859_v0, %v3905_v14 }
 0x917   :  { %v4105_v38 = vadd.f32 %v4996_v6, %v4000_v21  ;;  %v4861_v56 = vpop.f32.mrb[77].mxu0  ;;  %v4099_v24 = vpop.f32.mrb[75].mxu1 }
 0x918   :  { %v5343_v43 = vpack.c.bf16 %v4129_v48, %v4128_v37  ;;  %v4862_v36 = vadd.f32 %v4861_v56, %v4860_v16  ;;  %v4100_v50 = vadd.f32 %v4099_v24, %v3995_v7 }
 0x919   :  { %v4131_v5 = vadd.f32 %v4105_v38, %v8321_v32 }
 0x91a   :  { %v4130_v20 = vadd.f32 %v4100_v50, %v8324_v13  ;;  %v4863_v17 = vpop.f32.mrb[78].mxu0  ;;  %v4999_v41 = vpop.f32.mrb[76].mxu1  ;;  %5344 = vmatpush3.bf16.msra.mxu1 %v5343_v43  ;;  %v4015_v51 = vadd.f32 %v4862_v36, %v3910_v4 }
 0x91b   :  { %v4115_v25 = vadd.f32 %v4999_v41, %v4010_v58  ;;  %v4864_v1 = vpop.f32.mrb[79].mxu0  ;;  %v4109_v62 = vpop.f32.mrb[77].mxu1  ;;  %5345 = vmatprep.subr.bf16.mxu1 %v5495_v47 }
 0x91c   :  { %v5346_v12 = vpack.c.bf16 %v4131_v5, %v4130_v20  ;;  %v4865_v3 = vadd.f32 %v4864_v1, %v4863_v17  ;;  %v4110_v46 = vadd.f32 %v4109_v62, %v4005_v40 }
 0x91d   :  { %v4133_v28 = vadd.f32 %v4115_v25, %v8355_v8  ;;  %v4136_v8 = vld [vmem:[%s8950_s6] sm:$0xff] }
 0x91e   :  { %v4132_v9 = vadd.f32 %v4110_v46, %v8358_v11  ;;  %v4020_v32 = vadd.f32 %v4865_v3, %v3915_v54  ;;  %v5002_v35 = vpop.f32.mrb[78].mxu1  ;;  %5347 = vmatpush3.bf16.msra.mxu1 %v5346_v12  ;;  %v4141_v11 = vpop.permute.xlu1 %4140 }
 0x91f   :  { %v4119_v13 = vpop.f32.mrb[79].mxu1  ;;  %5348 = vmatprep.subr.bf16.mxu1 %v5495_v47 }
 0x920   :  { %v5349_v42 = vpack.c.bf16 %v4133_v28, %v4132_v9  ;;  %v4125_v26 = vadd.f32 %v5002_v35, %v4020_v32  ;;  %v4120_v27 = vadd.f32 %v4119_v13, %v4015_v51 }
 0x922   :  { %v4135_v7 = vadd.f32 %v4125_v26, %v8381_v30  ;;  %v4134_v59 = vadd.f32 %v4120_v27, %v8384_v44  ;;  %5350 = vmatpush3.bf16.msra.mxu1 %v5349_v42 }
 0x923   :  { %5351 = vmatprep.subr.bf16.mxu1 %v5495_v47 }
 0x924   :  { %v5352_v39 = vpack.c.bf16 %v4135_v7, %v4134_v59 }
 0x926   :  { %5353 = vmatpush3.bf16.msra.mxu1 %v5352_v39 }
 0x929   :  { %5020 = vmatmul.mubr.msk.f32.vlgmr.msra.gmra.mrb[80].mxu1 %vm1550_vm0, %v4136_v8 }
 0x9fc   :  { %v4212_v49 = vpop.f32.mrb[80].mxu1 }
 0x9fd   :  { %v4213_v61 = vadd.f32 %v4212_v49, %v4141_v11  ;;  %v5021_v57 = vpop.f32.mrb[81].mxu1 }
 0x9ff   :  { %5376 = vtanh.f32 %v4213_v61 }
 0xa09   :  { %v5377_v30 = vpop.eup %5376 }
 0xa0a   :  { %4217 = vst [vmem:[#allocation9] sm:$0xff] %v5377_v30 }
 0xa0b   :  { %5460 = shalt.err (!%p5457_p11)
}
 0xa0c   :  { %s5461_s29 = scalar_lea.hbm %s8952_s8, 128 }
 0xa0d   :  { %p5462_p12 = scmp.ne.s32.totalorder %s8952_s8, %s5461_s29  ;;  %p5465_p13 = scmp.lt.u32.totalorder %s5461_s29, %s8952_s8 }
 0xa0f   :  { %p5467_p0 = pnand %p5465_p13, %p5462_p12 }
 0xa11   :  { %5470 = shalt.err (!%p5467_p0)
}
 0xa12   :  { %4227 = dma.vmem_to_hbm [thread:$0]  %s4225_s22, 128, %s8952_s8, [#allocation4]  }
 0xa13   :  { %5477 = dma.done.wait [#allocation4], 128  }
 0xa14   :  { %5478 = vsyncadd [#allocation4], 4294967168 }
 0xa15   :  { %4231 = vsyncpa [#allocation3], 1 }
 0xa16   :  { %4232 = vsyncpa [#allocation8], 1 }
 0xa17   :  { %4233 = vsyncpa [#allocation4], 1 }
 0xa18   :  { %4234 = vsyncpa [#allocation5], 1 }

</bundles_post_ra>
